<compile_context>
chip_gen: v7x
topology: tpu7x:2x2x1
jax: 0.10.0
libtpu: 0.0.40
codegen_flags: <defaults>
</compile_context>

<pallas_src>
import math
import numpy as np
import jax
import jax.numpy as jnp
from jax.experimental import pallas as pl
from jax.experimental.pallas import tpu as pltpu


_MXU_DTYPE = jnp.bfloat16   # matmul operands (accumulation stays f32)
_ACT_DTYPE = jnp.bfloat16   # activation scratch dtype


# ----------------------------------------------------------------------------
# static network plan
# ----------------------------------------------------------------------------

def build_plan(D, HO, in_ch, hid):
    """Conv descriptors (name, H, W, [cin per input tensor], cout) + per-level sizes."""
    assert D % 16 == 0 and HO % 16 == 0, "need 4 levels of 2x pooling over (D, H)"
    lv = [(D >> k, HO >> k) for k in range(5)]
    ch = [hid, 2 * hid, 4 * hid, 8 * hid, 8 * hid]          # channels of x1..x5
    convs = [('inc1', lv[0][0], lv[0][1], [in_ch], hid),
             ('inc2', lv[0][0], lv[0][1], [hid], hid)]
    for k in range(1, 5):
        convs.append((f'down{k}_1', lv[k][0], lv[k][1], [ch[k - 1]], ch[k]))
        convs.append((f'down{k}_2', lv[k][0], lv[k][1], [ch[k]], ch[k]))
    upout = [4 * hid, 2 * hid, hid, hid]
    for k in range(1, 5):
        lev = 4 - k
        cskip = ch[lev]                      # == channels of the upsampled tensor as well
        cout = upout[k - 1]
        convs.append((f'up{k}_1', lv[lev][0], lv[lev][1], [cskip, cskip], cout))
        convs.append((f'up{k}_2', lv[lev][0], lv[lev][1], [cout], cout))
    return convs, lv


def _interp_matrix(n_in):
    """(2*n_in, n_in) linear interpolation matrix, align_corners=True (out = M @ in)."""
    n_out = 2 * n_in
    M = np.zeros((n_out, n_in), np.float32)
    if n_in == 1:
        M[:, 0] = 1.0
        return M
    for i in range(n_out):
        src = i * (n_in - 1) / (n_out - 1)
        i0 = int(np.floor(src))
        i1 = min(i0 + 1, n_in - 1)
        f = src - i0
        M[i, i0] += 1.0 - f
        M[i, i1] += f
    return M


def _interp_pairs(n_in):
    """Static (i0, i1, frac) per output row for 2x align_corners=True upsampling."""
    out = []
    for i in range(2 * n_in):
        if n_in == 1:
            out.append((0, 0, 0.0))
            continue
        src = i * (n_in - 1) / (2 * n_in - 1)
        i0 = int(np.floor(src))
        i1 = min(i0 + 1, n_in - 1)
        out.append((i0, i1, float(src - i0)))
    return out


def _band_matrix(w, Ws, stride=1):
    """w: (3,3,Cin,Cout) -> (3, stride*Ws*Cin, Ws*Cout).

    Folds the 3 dx (H) taps AND the H zero padding into a banded matrix: out-of-range taps
    are simply zero rows, so the conv input needs no lane halo.  stride=2 reads the
    un-compacted (pooled) tensor whose valid values sit at even Cin-blocks.
    """
    _, _, Cin, Cout = w.shape
    band = np.zeros((3, stride * Ws * Cin, Ws * Cout), np.float32)
    for dy in range(3):
        for wo in range(Ws):
            for dx in range(3):
                j = wo + dx - 1
                if 0 <= j < Ws:
                    band[dy, stride * j * Cin:(stride * j + 1) * Cin,
                         wo * Cout:(wo + 1) * Cout] = w[dy, dx]
    return band


# ----------------------------------------------------------------------------
# parameters (canonical layout) with BN folded as inference-mode scale/bias
# ----------------------------------------------------------------------------

def init_unet_params(key, in_ch=1, classes=4, hid=8, D=16, HO=16):
    conv_list, _ = build_plan(D, HO, in_ch, hid)
    params = {'convs': {}, 'outc': {}}
    keys = jax.random.split(key, len(conv_list) + 1)
    eps = 1e-5
    for kk, (name, Hs, Ws, cins, cout) in zip(keys[:-1], conv_list):
        cin_t = sum(cins)
        k1, k2, k3, k4 = jax.random.split(kk, 4)
        w = jax.random.normal(k1, (3, 3, cin_t, cout), jnp.float32) * np.sqrt(2.0 / (9 * cin_t))
        conv_b = 0.05 * jax.random.normal(k2, (cout,), jnp.float32)
        gamma = 1.0 + 0.1 * jax.random.normal(k3, (cout,), jnp.float32)
        beta = 0.05 * jax.random.normal(k4, (cout,), jnp.float32)
        scale = gamma / jnp.sqrt(1.0 + eps)            # running_var = 1, running_mean = 0
        bias = conv_b * scale + beta
        params['convs'][name] = {'w': w, 'scale': scale, 'bias': bias}
    k1, k2 = jax.random.split(keys[-1])
    params['outc'] = {'w': jax.random.normal(k1, (hid, classes), jnp.float32) / np.sqrt(hid),
                      'b': 0.05 * jax.random.normal(k2, (classes,), jnp.float32)}
    return params


# ----------------------------------------------------------------------------
# the fused Pallas forward pass
# ----------------------------------------------------------------------------

def unet_forward(x, params, in_ch=1, classes=4, hid=8):
    N, Ci, D, HO, WO = x.shape
    assert Ci == in_ch
    conv_list, lv = build_plan(D, HO, in_ch, hid)
    NW = N * WO
    # sublane (batch) dim: multiple of 16 (bf16 packing) once the batch is big enough
    BP = 8 if NW <= 8 else -(-NW // 16) * 16

    # --- fold NCDHW -> (D, batch, H*Cin): lane = h*Cin + ci, batch = n*W + w ---
    x_l = jnp.transpose(x, (2, 0, 4, 3, 1)).reshape(D, NW, HO * in_ch)
    if BP != NW:
        x_l = jnp.pad(x_l, ((0, 0), (0, BP - NW), (0, 0)))
    x_l = x_l.astype(_ACT_DTYPE)

    # --- wrapper-side weight prep: halo-free banded matrices, tiled scale/bias ---
    convs_op, conv_meta = {}, {}
    for (name, Hs, Ws, cins, cout) in conv_list:
        stride = 2 if (name.startswith('down') and name.endswith('_1')) else 1
        WC = Ws * cout
        fold = (WC % 128 == 0)               # fold dy taps into matmul N when slices stay aligned
        pr = params['convs'][name]
        w = np.asarray(pr['w'], np.float32)
        bands, off = [], 0
        for c in cins:                       # split weights: [skip ; upsampled]
            b = _band_matrix(w[:, :, off:off + c, :], Ws, stride=stride)
            off += c
            if fold:
                b = np.concatenate([b[0], b[1], b[2]], axis=-1)   # (K, 3*WC)
            bands.append(jnp.asarray(b, _MXU_DTYPE))
        scale = np.asarray(pr['scale'], np.float32).reshape(-1)
        bias = np.asarray(pr['bias'], np.float32).reshape(-1)
        convs_op[name] = {'bands': bands,
                          'scale': jnp.asarray(np.tile(scale, Ws)[None, :]),
                          'bias': jnp.asarray(np.tile(bias, Ws)[None, :])}
        pads = [name] if len(cins) == 1 else [name + '_skip', name + '_up']
        conv_meta[name] = dict(Hs=Hs, Ws=Ws, cout=cout, cins=list(cins),
                               stride=stride, fold=fold, pads=pads)

    # 1x1 output conv, classes padded so the output slab is 128-lane dense
    cp_mult = 128 // math.gcd(HO, 128)
    CP = -(-classes // cp_mult) * cp_mult
    w1 = np.asarray(params['outc']['w'], np.float32)    # (hid, classes)
    b1 = np.asarray(params['outc']['b'], np.float32).reshape(-1)
    Wd = np.zeros((HO * hid, HO * CP), np.float32)
    bd = np.zeros((HO * CP,), np.float32)
    for i in range(HO):
        Wd[i * hid:(i + 1) * hid, i * CP:i * CP + classes] = w1
        bd[i * CP:i * CP + classes] = b1
    outc_op = {'w': jnp.asarray(Wd, _MXU_DTYPE), 'b': jnp.asarray(bd[None, :])}

    up_chan = [8 * hid, 4 * hid, 2 * hid, hid]          # channels upsampled at up1..up4
    upw_op, up_hpairs = [], []
    for k in range(1, 5):
        h_in, w_in = lv[5 - k]
        U = _interp_matrix(w_in)
        upw_op.append(jnp.asarray(np.kron(U.T, np.eye(up_chan[k - 1], dtype=np.float32)),
                                  _MXU_DTYPE))
        up_hpairs.append(_interp_pairs(h_in))

    operands = {'x': x_l, 'convs': convs_op, 'outc': outc_op, 'upw': upw_op}
    leaves, treedef = jax.tree_util.tree_flatten(operands)
    n_leaves = len(leaves)

    # --- scratch: one bf16 VMEM buffer per conv input tensor, 2 D-halo rows, no lane halo ---
    pad_idx, scratch_shapes = {}, []
    for (name, Hs, Ws, cins, cout) in conv_list:
        meta = conv_meta[name]
        for pn, c in zip(meta['pads'], cins):
            pad_idx[pn] = len(scratch_shapes)
            scratch_shapes.append(
                pltpu.VMEM((Hs + 2, BP, meta['stride'] * Ws * c), _ACT_DTYPE))

    # --- the whole UNet as one kernel; activations never leave VMEM ---
    def unet_kernel(*refs):
        ops = jax.tree_util.tree_unflatten(treedef, refs[:n_leaves])
        out_ref = refs[n_leaves]
        scratch = refs[n_leaves + 1:]
        P = lambda n: scratch[pad_idx[n]]
        CV = ops['convs']

        def stage(pad_ref, val):
            # zero only the two D-halo rows; interior store is lane-dense (no lane halo)
            hs = val.shape[0]
            zrow = jnp.zeros((1,) + tuple(pad_ref.shape[1:]), _ACT_DTYPE)
            pad_ref[0:1, :, :] = zrow
            pad_ref[hs + 1:hs + 2, :, :] = zrow
            pad_ref[1:hs + 1, :, :] = val.astype(_ACT_DTYPE)

        def run_conv(name):
            meta = conv_meta[name]
            hs, cout = meta['Hs'], meta['cout']
            WC = meta['Ws'] * cout
            cv = CV[name]
            if meta['fold']:
                # dy taps folded into N (3*WC wide): one wide dot per input tensor,
                # uninterrupted accumulation, then two row-shifted (vreg-aligned) adds.
                y3 = None
                for band_ref, pn in zip(cv['bands'], meta['pads']):
                    pad_ref = P(pn)
                    K = pad_ref.shape[2]
                    p = pad_ref[...].reshape((hs + 2) * BP, K)
                    d = jnp.dot(p, band_ref[...], preferred_element_type=jnp.float32)
                    y3 = d if y3 is None else y3 + d
                y3 = y3.reshape(hs + 2, BP, 3 * WC)
                acc = (y3[0:hs, :, 0:WC]
                       + y3[1:hs + 1, :, WC:2 * WC]
                       + y3[2:hs + 2, :, 2 * WC:3 * WC])
            else:
                acc = None
                for band_ref, pn in zip(cv['bands'], meta['pads']):
                    pad_ref = P(pn)
                    K = pad_ref.shape[2]
                    for dy in range(3):          # 3 taps along D; dx taps live in the band
                        patch = pad_ref[dy:dy + hs, :, :].reshape(hs * BP, K)
                        d = jnp.dot(patch, band_ref[dy],
                                    preferred_element_type=jnp.float32)
                        acc = d if acc is None else acc + d
                acc = acc.reshape(hs, BP, WC)
            # BN (folded) + ReLU epilogue in f32
            return jnp.maximum(acc * cv['scale'][...] + cv['bias'][...], 0.0)

        def pool_into(src_name, dst_name, hs_in, c):
            # MaxPool3d((2,2,1)): D pair-max on row blocks + one lane-rotate pair-max.
            # H compaction is folded into the next conv's stride-2 band (odd blocks ignored).
            v = P(src_name)[1:hs_in + 1, :, :].astype(jnp.float32)
            hh = hs_in // 2
            wc = v.shape[-1]
            vr = v.reshape(hh, 2, BP, wc)
            rp = jnp.maximum(vr[:, 0], vr[:, 1])
            m = jnp.maximum(rp, pltpu.roll(rp, shift=wc - c, axis=2))
            stage(P(dst_name), m)

        def up_into(x_small, dst_name, uw_ref, hpairs):
            # trilinear (2,2,1) upsample, align_corners=True:
            #   D axis: static row blends (VPU); H axis: bf16 MXU matmul with kron(U.T, I_c)
            rows = []
            for (i0, i1, f) in hpairs:
                if f == 0.0:
                    rows.append(x_small[i0])
                else:
                    rows.append(x_small[i0] * (1.0 - f) + x_small[i1] * f)
            xh = jnp.stack(rows, axis=0)                      # (2*h_in, BP, w_in*c) f32
            hs = xh.shape[0]
            win_c = xh.shape[-1]
            xw = jnp.dot(xh.reshape(hs * BP, win_c).astype(_MXU_DTYPE), uw_ref[...],
                         preferred_element_type=jnp.float32)
            stage(P(dst_name), xw.reshape(hs, BP, uw_ref.shape[1]))

        # where encoder activation x_j lives (== the decoder skip slot that consumes it)
        skip_pad = {j: f'up{5 - j}_1_skip' for j in range(1, 5)}

        # ---------------- encoder ----------------
        stage(P('inc1'), ops['x'][...])
        stage(P('inc2'), run_conv('inc1'))
        stage(P(skip_pad[1]), run_conv('inc2'))               # x1 -> its skip slot directly
        x5 = None
        for k in range(1, 5):
            n1, n2 = f'down{k}_1', f'down{k}_2'
            pool_into(skip_pad[k], n1, lv[k - 1][0], conv_meta[n1]['cins'][0])
            stage(P(n2), run_conv(n1))
            y = run_conv(n2)
            if k < 4:
                stage(P(skip_pad[k + 1]), y)                  # x_{k+1} -> its skip slot
            else:
                x5 = y                                        # bottleneck (no skip)

        # ---------------- decoder ----------------
        xd = x5
        for k in range(1, 5):
            n1, n2 = f'up{k}_1', f'up{k}_2'
            up_into(xd, n1 + '_up', ops['upw'][k - 1], up_hpairs[k - 1])
            stage(P(n2), run_conv(n1))                        # skip half is already staged
            xd = run_conv(n2)

        # ---------------- 1x1 output conv (no BN / ReLU), lane-dense output ----------------
        win = xd.reshape(D * BP, HO * hid).astype(_MXU_DTYPE)
        logits = jnp.dot(win, ops['outc']['w'][...],
                         preferred_element_type=jnp.float32) + ops['outc']['b'][...]
        out_ref[...] = logits.reshape(D, BP, HO * CP)

    out = pl.pallas_call(
        unet_kernel,
        out_shape=jax.ShapeDtypeStruct((D, BP, HO * CP), jnp.float32),
        scratch_shapes=scratch_shapes,
    )(*leaves)

    out = out[:, :NW, :].reshape(D, N, WO, HO, CP)[..., :classes]
    return jnp.transpose(out, (1, 4, 0, 3, 2))            # back to (N, C, D, H, W)


# ----------------------------------------------------------------------------
# plain-JAX reference (same canonical params / same bf16 rounding) for validation
# ----------------------------------------------------------------------------

def unet_reference(x, params, in_ch=1, classes=4, hid=8):
    N, Ci, D, HO, WO = x.shape
    xf = jnp.transpose(x, (0, 4, 2, 3, 1)).reshape(N * WO, D, HO, Ci)
    P = params['convs']

    def conv3(v, pr, relu=True):
        w = pr['w'].astype(_MXU_DTYPE)
        B, Hk, Wk, Cin = v.shape
        Cout = w.shape[-1]
        vp = jnp.pad(v, ((0, 0), (1, 1), (1, 1), (0, 0)))
        acc = jnp.zeros((B, Hk, Wk, Cout), jnp.float32)
        for dy in range(3):
            for dx in range(3):
                patch = vp[:, dy:dy + Hk, dx:dx + Wk, :].astype(_MXU_DTYPE)
                acc = acc + jnp.einsum('bhwc,cd->bhwd', patch, w[dy, dx],
                                       preferred_element_type=jnp.float32)
        y = acc * pr['scale'] + pr['bias']
        return jnp.maximum(y, 0.0) if relu else y

    def pool(v):
        B, Hk, Wk, C = v.shape
        return v.reshape(B, Hk // 2, 2, Wk // 2, 2, C).max(axis=(2, 4))

    def upsample(v):
        B, Hk, Wk, C = v.shape
        Uh = jnp.asarray(_interp_matrix(Hk))
        Uw = jnp.asarray(_interp_matrix(Wk))
        v = jnp.einsum('hH,bHwc->bhwc', Uh, v)
        v = jnp.einsum('wW,bhWc->bhwc', Uw, v)
        return v

    def dc(v, n1, n2):
        return conv3(conv3(v, P[n1]), P[n2])

    x1 = dc(xf, 'inc1', 'inc2')
    x2 = dc(pool(x1), 'down1_1', 'down1_2')
    x3 = dc(pool(x2), 'down2_1', 'down2_2')
    x4 = dc(pool(x3), 'down3_1', 'down3_2')
    x5 = dc(pool(x4), 'down4_1', 'down4_2')

    def upb(lo, skip, n1, n2):
        return dc(jnp.concatenate([skip, upsample(lo)], axis=-1), n1, n2)

    x6 = upb(x5, x4, 'up1_1', 'up1_2')
    x7 = upb(x6, x3, 'up2_1', 'up2_2')
    x8 = upb(x7, x2, 'up3_1', 'up3_2')
    x9 = upb(x8, x1, 'up4_1', 'up4_2')

    wl = params['outc']['w'].astype(_MXU_DTYPE)
    logits = jnp.einsum('bhwc,cd->bhwd', x9.astype(_MXU_DTYPE), wl,
                        preferred_element_type=jnp.float32) + params['outc']['b']
    logits = logits.reshape(N, WO, D, HO, classes)
    return jnp.transpose(logits, (0, 4, 2, 3, 1))


# ----------------------------------------------------------------------------
# main
# ----------------------------------------------------------------------------

if __name__ == "__main__":
    key = jax.random.PRNGKey(0)
    kx, kp = jax.random.split(key)

    # small shapes consistent with the module: N=1, C_in=1, D=16, H=16, W=4 (NCDHW)
    N, CIN, D, H, W = 1, 1, 16, 16, 4
    CLASSES, HID = 4, 8

    x = jax.random.normal(kx, (N, CIN, D, H, W), jnp.float32)
    params = init_unet_params(kp, in_ch=CIN, classes=CLASSES, hid=HID, D=D, HO=H)

    logits = unet_forward(x, params, in_ch=CIN, classes=CLASSES, hid=HID)
    logits = jax.block_until_ready(logits)

    assert logits.shape == (N, CLASSES, D, H, W), logits.shape
    assert bool(jnp.all(jnp.isfinite(logits)))

    ref = unet_reference(x, params, in_ch=CIN, classes=CLASSES, hid=HID)
    err = float(jnp.max(jnp.abs(logits - ref)))
    tol = 3e-2 + 3e-2 * float(jnp.max(jnp.abs(ref)))
    assert err < tol, (err, tol)

    print("KERNEL_OK")
</pallas_src>

<mosaic_0001>
module attributes {stable_mosaic.version = 11 : i64} {
  func.func @unet_kernel(%arg0: memref<128x384xbf16, #tpu.memory_space<vmem>>, %arg1: memref<1x128xf32, #tpu.memory_space<vmem>>, %arg2: memref<1x128xf32, #tpu.memory_space<vmem>>, %arg3: memref<128x384xbf16, #tpu.memory_space<vmem>>, %arg4: memref<1x128xf32, #tpu.memory_space<vmem>>, %arg5: memref<1x128xf32, #tpu.memory_space<vmem>>, %arg6: memref<128x384xbf16, #tpu.memory_space<vmem>>, %arg7: memref<1x128xf32, #tpu.memory_space<vmem>>, %arg8: memref<1x128xf32, #tpu.memory_space<vmem>>, %arg9: memref<128x384xbf16, #tpu.memory_space<vmem>>, %arg10: memref<1x128xf32, #tpu.memory_space<vmem>>, %arg11: memref<1x128xf32, #tpu.memory_space<vmem>>, %arg12: memref<128x384xbf16, #tpu.memory_space<vmem>>, %arg13: memref<1x128xf32, #tpu.memory_space<vmem>>, %arg14: memref<1x128xf32, #tpu.memory_space<vmem>>, %arg15: memref<128x384xbf16, #tpu.memory_space<vmem>>, %arg16: memref<1x128xf32, #tpu.memory_space<vmem>>, %arg17: memref<1x128xf32, #tpu.memory_space<vmem>>, %arg18: memref<3x128x64xbf16, #tpu.memory_space<vmem>>, %arg19: memref<1x64xf32, #tpu.memory_space<vmem>>, %arg20: memref<1x64xf32, #tpu.memory_space<vmem>>, %arg21: memref<3x64x64xbf16, #tpu.memory_space<vmem>>, %arg22: memref<1x64xf32, #tpu.memory_space<vmem>>, %arg23: memref<1x64xf32, #tpu.memory_space<vmem>>, %arg24: memref<16x384xbf16, #tpu.memory_space<vmem>>, %arg25: memref<1x128xf32, #tpu.memory_space<vmem>>, %arg26: memref<1x128xf32, #tpu.memory_space<vmem>>, %arg27: memref<128x384xbf16, #tpu.memory_space<vmem>>, %arg28: memref<1x128xf32, #tpu.memory_space<vmem>>, %arg29: memref<1x128xf32, #tpu.memory_space<vmem>>, %arg30: memref<3x128x64xbf16, #tpu.memory_space<vmem>>, %arg31: memref<3x128x64xbf16, #tpu.memory_space<vmem>>, %arg32: memref<1x64xf32, #tpu.memory_space<vmem>>, %arg33: memref<1x64xf32, #tpu.memory_space<vmem>>, %arg34: memref<3x64x64xbf16, #tpu.memory_space<vmem>>, %arg35: memref<1x64xf32, #tpu.memory_space<vmem>>, %arg36: memref<1x64xf32, #tpu.memory_space<vmem>>, %arg37: memref<3x128x64xbf16, #tpu.memory_space<vmem>>, %arg38: memref<3x128x64xbf16, #tpu.memory_space<vmem>>, %arg39: memref<1x64xf32, #tpu.memory_space<vmem>>, %arg40: memref<1x64xf32, #tpu.memory_space<vmem>>, %arg41: memref<3x64x64xbf16, #tpu.memory_space<vmem>>, %arg42: memref<1x64xf32, #tpu.memory_space<vmem>>, %arg43: memref<1x64xf32, #tpu.memory_space<vmem>>, %arg44: memref<3x128x64xbf16, #tpu.memory_space<vmem>>, %arg45: memref<3x128x64xbf16, #tpu.memory_space<vmem>>, %arg46: memref<1x64xf32, #tpu.memory_space<vmem>>, %arg47: memref<1x64xf32, #tpu.memory_space<vmem>>, %arg48: memref<3x64x64xbf16, #tpu.memory_space<vmem>>, %arg49: memref<1x64xf32, #tpu.memory_space<vmem>>, %arg50: memref<1x64xf32, #tpu.memory_space<vmem>>, %arg51: memref<128x384xbf16, #tpu.memory_space<vmem>>, %arg52: memref<128x384xbf16, #tpu.memory_space<vmem>>, %arg53: memref<1x128xf32, #tpu.memory_space<vmem>>, %arg54: memref<1x128xf32, #tpu.memory_space<vmem>>, %arg55: memref<128x384xbf16, #tpu.memory_space<vmem>>, %arg56: memref<1x128xf32, #tpu.memory_space<vmem>>, %arg57: memref<1x128xf32, #tpu.memory_space<vmem>>, %arg58: memref<1x128xf32, #tpu.memory_space<vmem>>, %arg59: memref<128x128xbf16, #tpu.memory_space<vmem>>, %arg60: memref<64x128xbf16, #tpu.memory_space<vmem>>, %arg61: memref<64x128xbf16, #tpu.memory_space<vmem>>, %arg62: memref<64x128xbf16, #tpu.memory_space<vmem>>, %arg63: memref<64x128xbf16, #tpu.memory_space<vmem>>, %arg64: memref<16x8x16xbf16, #tpu.memory_space<vmem>>, %arg65: memref<16x8x128xf32, #tpu.memory_space<vmem>>, %arg66: memref<18x8x16xbf16, #tpu.memory_space<vmem>>, %arg67: memref<18x8x128xbf16, #tpu.memory_space<vmem>>, %arg68: memref<10x8x128xbf16, #tpu.memory_space<vmem>>, %arg69: memref<10x8x128xbf16, #tpu.memory_space<vmem>>, %arg70: memref<6x8x128xbf16, #tpu.memory_space<vmem>>, %arg71: memref<6x8x128xbf16, #tpu.memory_space<vmem>>, %arg72: memref<4x8x128xbf16, #tpu.memory_space<vmem>>, %arg73: memref<4x8x128xbf16, #tpu.memory_space<vmem>>, %arg74: memref<3x8x128xbf16, #tpu.memory_space<vmem>>, %arg75: memref<3x8x64xbf16, #tpu.memory_space<vmem>>, %arg76: memref<4x8x128xbf16, #tpu.memory_space<vmem>>, %arg77: memref<4x8x128xbf16, #tpu.memory_space<vmem>>, %arg78: memref<4x8x64xbf16, #tpu.memory_space<vmem>>, %arg79: memref<6x8x128xbf16, #tpu.memory_space<vmem>>, %arg80: memref<6x8x128xbf16, #tpu.memory_space<vmem>>, %arg81: memref<6x8x64xbf16, #tpu.memory_space<vmem>>, %arg82: memref<10x8x128xbf16, #tpu.memory_space<vmem>>, %arg83: memref<10x8x128xbf16, #tpu.memory_space<vmem>>, %arg84: memref<10x8x64xbf16, #tpu.memory_space<vmem>>, %arg85: memref<18x8x128xbf16, #tpu.memory_space<vmem>>, %arg86: memref<18x8x128xbf16, #tpu.memory_space<vmem>>, %arg87: memref<18x8x128xbf16, #tpu.memory_space<vmem>>) attributes {dimension_semantics = [], scalar_prefetch = 0 : i64, scratch_operands = 22 : i64, tpu.core_type = #tpu.core_type<tc>} {
    %c0 = arith.constant 0 : index
    %c0_0 = arith.constant 0 : index
    %c0_1 = arith.constant 0 : index
    %0 = vector.load %arg64[%c0, %c0_0, %c0_1] : memref<16x8x16xbf16, #tpu.memory_space<vmem>>, vector<16x8x16xbf16>
    %cst = arith.constant 0.000000e+00 : bf16
    %1 = vector.broadcast %cst : bf16 to vector<1x8x16xbf16>
    %c0_2 = arith.constant 0 : index
    %c0_3 = arith.constant 0 : index
    %c0_4 = arith.constant 0 : index
    %2 = vector.load %arg66[%c0_2, %c0_3, %c0_4] : memref<18x8x16xbf16, #tpu.memory_space<vmem>>, vector<1x8x16xbf16>
    tpu.vector_store %arg66[%c0_2, %c0_3, %c0_4], %1 {strides = array<i32>} : memref<18x8x16xbf16, #tpu.memory_space<vmem>>, vector<1x8x16xbf16>,
    %c17 = arith.constant 17 : index
    %c0_5 = arith.constant 0 : index
    %c0_6 = arith.constant 0 : index
    %3 = vector.load %arg66[%c17, %c0_5, %c0_6] : memref<18x8x16xbf16, #tpu.memory_space<vmem>>, vector<1x8x16xbf16>
    tpu.vector_store %arg66[%c17, %c0_5, %c0_6], %1 {strides = array<i32>} : memref<18x8x16xbf16, #tpu.memory_space<vmem>>, vector<1x8x16xbf16>,
    %c1 = arith.constant 1 : index
    %c0_7 = arith.constant 0 : index
    %c0_8 = arith.constant 0 : index
    %4 = vector.load %arg66[%c1, %c0_7, %c0_8] : memref<18x8x16xbf16, #tpu.memory_space<vmem>>, vector<16x8x16xbf16>
    tpu.vector_store %arg66[%c1, %c0_7, %c0_8], %0 {strides = array<i32>} : memref<18x8x16xbf16, #tpu.memory_space<vmem>>, vector<16x8x16xbf16>,
    %c0_9 = arith.constant 0 : index
    %c0_10 = arith.constant 0 : index
    %c0_11 = arith.constant 0 : index
    %5 = vector.load %arg66[%c0_9, %c0_10, %c0_11] : memref<18x8x16xbf16, #tpu.memory_space<vmem>>, vector<18x8x16xbf16>
    %6 = vector.shape_cast %5 : vector<18x8x16xbf16> to vector<144x16xbf16>
    %c0_12 = arith.constant 0 : index
    %c0_13 = arith.constant 0 : index
    %7 = vector.load %arg24[%c0_12, %c0_13] : memref<16x384xbf16, #tpu.memory_space<vmem>>, vector<16x384xbf16>
    %cst_14 = arith.constant dense<0.000000e+00> : vector<144x384xf32>
    %8 = tpu.matmul %6, %7, %cst_14 {dimension_numbers = #tpu.dot_dimension_numbers<[1], [0], [0], [1], [0, 0, 1, 1], [], []>} : vector<144x16xbf16>, vector<16x384xbf16>, vector<144x384xf32> -> vector<144x384xf32>
    %9 = vector.shape_cast %8 : vector<144x384xf32> to vector<18x8x384xf32>
    %10 = vector.extract_strided_slice %9 {offsets = [0, 0, 0], sizes = [16, 8, 128], strides = [1, 1, 1]} : vector<18x8x384xf32> to vector<16x8x128xf32>
    %11 = vector.extract_strided_slice %9 {offsets = [1, 0, 128], sizes = [16, 8, 128], strides = [1, 1, 1]} : vector<18x8x384xf32> to vector<16x8x128xf32>
    %12 = arith.addf %10, %11 : vector<16x8x128xf32>
    %13 = vector.extract_strided_slice %9 {offsets = [2, 0, 256], sizes = [16, 8, 128], strides = [1, 1, 1]} : vector<18x8x384xf32> to vector<16x8x128xf32>
    %14 = arith.addf %12, %13 : vector<16x8x128xf32>
    %c0_15 = arith.constant 0 : index
    %c0_16 = arith.constant 0 : index
    %15 = vector.load %arg26[%c0_15, %c0_16] : memref<1x128xf32, #tpu.memory_space<vmem>>, vector<1x128xf32>
    %16 = vector.shape_cast %15 : vector<1x128xf32> to vector<1x1x128xf32>
    %17 = vector.broadcast %16 : vector<1x1x128xf32> to vector<16x8x128xf32>
    %18 = arith.mulf %14, %17 : vector<16x8x128xf32>
    %c0_17 = arith.constant 0 : index
    %c0_18 = arith.constant 0 : index
    %19 = vector.load %arg25[%c0_17, %c0_18] : memref<1x128xf32, #tpu.memory_space<vmem>>, vector<1x128xf32>
    %20 = vector.shape_cast %19 : vector<1x128xf32> to vector<1x1x128xf32>
    %21 = vector.broadcast %20 : vector<1x1x128xf32> to vector<16x8x128xf32>
    %22 = arith.addf %18, %21 : vector<16x8x128xf32>
    %cst_19 = arith.constant 0.000000e+00 : f32
    %23 = vector.broadcast %cst_19 : f32 to vector<16x8x128xf32>
    %24 = arith.maximumf %22, %23 : vector<16x8x128xf32>
    %cst_20 = arith.constant 0.000000e+00 : bf16
    %25 = vector.broadcast %cst_20 : bf16 to vector<1x8x128xbf16>
    %c0_21 = arith.constant 0 : index
    %c0_22 = arith.constant 0 : index
    %c0_23 = arith.constant 0 : index
    %26 = vector.load %arg67[%c0_21, %c0_22, %c0_23] : memref<18x8x128xbf16, #tpu.memory_space<vmem>>, vector<1x8x128xbf16>
    tpu.vector_store %arg67[%c0_21, %c0_22, %c0_23], %25 {strides = array<i32>} : memref<18x8x128xbf16, #tpu.memory_space<vmem>>, vector<1x8x128xbf16>,
    %c17_24 = arith.constant 17 : index
    %c0_25 = arith.constant 0 : index
    %c0_26 = arith.constant 0 : index
    %27 = vector.load %arg67[%c17_24, %c0_25, %c0_26] : memref<18x8x128xbf16, #tpu.memory_space<vmem>>, vector<1x8x128xbf16>
    tpu.vector_store %arg67[%c17_24, %c0_25, %c0_26], %25 {strides = array<i32>} : memref<18x8x128xbf16, #tpu.memory_space<vmem>>, vector<1x8x128xbf16>,
    %28 = arith.truncf %24 : vector<16x8x128xf32> to vector<16x8x128xbf16>
    %c1_27 = arith.constant 1 : index
    %c0_28 = arith.constant 0 : index
    %c0_29 = arith.constant 0 : index
    %29 = vector.load %arg67[%c1_27, %c0_28, %c0_29] : memref<18x8x128xbf16, #tpu.memory_space<vmem>>, vector<16x8x128xbf16>
    tpu.vector_store %arg67[%c1_27, %c0_28, %c0_29], %28 {strides = array<i32>} : memref<18x8x128xbf16, #tpu.memory_space<vmem>>, vector<16x8x128xbf16>,
    %c0_30 = arith.constant 0 : index
    %c0_31 = arith.constant 0 : index
    %c0_32 = arith.constant 0 : index
    %30 = vector.load %arg67[%c0_30, %c0_31, %c0_32] : memref<18x8x128xbf16, #tpu.memory_space<vmem>>, vector<18x8x128xbf16>
    %31 = vector.shape_cast %30 : vector<18x8x128xbf16> to vector<144x128xbf16>
    %c0_33 = arith.constant 0 : index
    %c0_34 = arith.constant 0 : index
    %32 = vector.load %arg27[%c0_33, %c0_34] : memref<128x384xbf16, #tpu.memory_space<vmem>>, vector<128x384xbf16>
    %cst_35 = arith.constant dense<0.000000e+00> : vector<144x384xf32>
    %33 = tpu.matmul %31, %32, %cst_35 {dimension_numbers = #tpu.dot_dimension_numbers<[1], [0], [0], [1], [0, 0, 1, 1], [], []>} : vector<144x128xbf16>, vector<128x384xbf16>, vector<144x384xf32> -> vector<144x384xf32>
    %34 = vector.shape_cast %33 : vector<144x384xf32> to vector<18x8x384xf32>
    %35 = vector.extract_strided_slice %34 {offsets = [0, 0, 0], sizes = [16, 8, 128], strides = [1, 1, 1]} : vector<18x8x384xf32> to vector<16x8x128xf32>
    %36 = vector.extract_strided_slice %34 {offsets = [1, 0, 128], sizes = [16, 8, 128], strides = [1, 1, 1]} : vector<18x8x384xf32> to vector<16x8x128xf32>
    %37 = arith.addf %35, %36 : vector<16x8x128xf32>
    %38 = vector.extract_strided_slice %34 {offsets = [2, 0, 256], sizes = [16, 8, 128], strides = [1, 1, 1]} : vector<18x8x384xf32> to vector<16x8x128xf32>
    %39 = arith.addf %37, %38 : vector<16x8x128xf32>
    %c0_36 = arith.constant 0 : index
    %c0_37 = arith.constant 0 : index
    %40 = vector.load %arg29[%c0_36, %c0_37] : memref<1x128xf32, #tpu.memory_space<vmem>>, vector<1x128xf32>
    %41 = vector.shape_cast %40 : vector<1x128xf32> to vector<1x1x128xf32>
    %42 = vector.broadcast %41 : vector<1x1x128xf32> to vector<16x8x128xf32>
    %43 = arith.mulf %39, %42 : vector<16x8x128xf32>
    %c0_38 = arith.constant 0 : index
    %c0_39 = arith.constant 0 : index
    %44 = vector.load %arg28[%c0_38, %c0_39] : memref<1x128xf32, #tpu.memory_space<vmem>>, vector<1x128xf32>
    %45 = vector.shape_cast %44 : vector<1x128xf32> to vector<1x1x128xf32>
    %46 = vector.broadcast %45 : vector<1x1x128xf32> to vector<16x8x128xf32>
    %47 = arith.addf %43, %46 : vector<16x8x128xf32>
    %cst_40 = arith.constant 0.000000e+00 : f32
    %48 = vector.broadcast %cst_40 : f32 to vector<16x8x128xf32>
    %49 = arith.maximumf %47, %48 : vector<16x8x128xf32>
    %cst_41 = arith.constant 0.000000e+00 : bf16
    %50 = vector.broadcast %cst_41 : bf16 to vector<1x8x128xbf16>
    %c0_42 = arith.constant 0 : index
    %c0_43 = arith.constant 0 : index
    %c0_44 = arith.constant 0 : index
    %51 = vector.load %arg85[%c0_42, %c0_43, %c0_44] : memref<18x8x128xbf16, #tpu.memory_space<vmem>>, vector<1x8x128xbf16>
    tpu.vector_store %arg85[%c0_42, %c0_43, %c0_44], %50 {strides = array<i32>} : memref<18x8x128xbf16, #tpu.memory_space<vmem>>, vector<1x8x128xbf16>,
    %c17_45 = arith.constant 17 : index
    %c0_46 = arith.constant 0 : index
    %c0_47 = arith.constant 0 : index
    %52 = vector.load %arg85[%c17_45, %c0_46, %c0_47] : memref<18x8x128xbf16, #tpu.memory_space<vmem>>, vector<1x8x128xbf16>
    tpu.vector_store %arg85[%c17_45, %c0_46, %c0_47], %50 {strides = array<i32>} : memref<18x8x128xbf16, #tpu.memory_space<vmem>>, vector<1x8x128xbf16>,
    %53 = arith.truncf %49 : vector<16x8x128xf32> to vector<16x8x128xbf16>
    %c1_48 = arith.constant 1 : index
    %c0_49 = arith.constant 0 : index
    %c0_50 = arith.constant 0 : index
    %54 = vector.load %arg85[%c1_48, %c0_49, %c0_50] : memref<18x8x128xbf16, #tpu.memory_space<vmem>>, vector<16x8x128xbf16>
    tpu.vector_store %arg85[%c1_48, %c0_49, %c0_50], %53 {strides = array<i32>} : memref<18x8x128xbf16, #tpu.memory_space<vmem>>, vector<16x8x128xbf16>,
    %c1_51 = arith.constant 1 : index
    %c0_52 = arith.constant 0 : index
    %c0_53 = arith.constant 0 : index
    %55 = vector.load %arg85[%c1_51, %c0_52, %c0_53] : memref<18x8x128xbf16, #tpu.memory_space<vmem>>, vector<16x8x128xbf16>
    %56 = arith.extf %55 : vector<16x8x128xbf16> to vector<16x8x128xf32>
    %57 = vector.shape_cast %56 : vector<16x8x128xf32> to vector<8x2x8x128xf32>
    %58 = vector.extract_strided_slice %57 {offsets = [0, 0, 0, 0], sizes = [8, 1, 8, 128], strides = [1, 1, 1, 1]} : vector<8x2x8x128xf32> to vector<8x1x8x128xf32>
    %59 = vector.shape_cast %58 : vector<8x1x8x128xf32> to vector<8x8x128xf32>
    %60 = vector.extract_strided_slice %57 {offsets = [0, 1, 0, 0], sizes = [8, 1, 8, 128], strides = [1, 1, 1, 1]} : vector<8x2x8x128xf32> to vector<8x1x8x128xf32>
    %61 = vector.shape_cast %60 : vector<8x1x8x128xf32> to vector<8x8x128xf32>
    %62 = arith.maximumf %59, %61 : vector<8x8x128xf32>
    %c120_i32 = arith.constant 120 : i32
    %63 = tpu.dynamic_rotate %62 by %c120_i32 dim 2 : vector<8x8x128xf32>, i32 -> vector<8x8x128xf32>
    %64 = arith.maximumf %62, %63 : vector<8x8x128xf32>
    %cst_54 = arith.constant 0.000000e+00 : bf16
    %65 = vector.broadcast %cst_54 : bf16 to vector<1x8x128xbf16>
    %c0_55 = arith.constant 0 : index
    %c0_56 = arith.constant 0 : index
    %c0_57 = arith.constant 0 : index
    %66 = vector.load %arg68[%c0_55, %c0_56, %c0_57] : memref<10x8x128xbf16, #tpu.memory_space<vmem>>, vector<1x8x128xbf16>
    tpu.vector_store %arg68[%c0_55, %c0_56, %c0_57], %65 {strides = array<i32>} : memref<10x8x128xbf16, #tpu.memory_space<vmem>>, vector<1x8x128xbf16>,
    %c9 = arith.constant 9 : index
    %c0_58 = arith.constant 0 : index
    %c0_59 = arith.constant 0 : index
    %67 = vector.load %arg68[%c9, %c0_58, %c0_59] : memref<10x8x128xbf16, #tpu.memory_space<vmem>>, vector<1x8x128xbf16>
    tpu.vector_store %arg68[%c9, %c0_58, %c0_59], %65 {strides = array<i32>} : memref<10x8x128xbf16, #tpu.memory_space<vmem>>, vector<1x8x128xbf16>,
    %68 = arith.truncf %64 : vector<8x8x128xf32> to vector<8x8x128xbf16>
    %c1_60 = arith.constant 1 : index
    %c0_61 = arith.constant 0 : index
    %c0_62 = arith.constant 0 : index
    %69 = vector.load %arg68[%c1_60, %c0_61, %c0_62] : memref<10x8x128xbf16, #tpu.memory_space<vmem>>, vector<8x8x128xbf16>
    tpu.vector_store %arg68[%c1_60, %c0_61, %c0_62], %68 {strides = array<i32>} : memref<10x8x128xbf16, #tpu.memory_space<vmem>>, vector<8x8x128xbf16>,
    %c0_63 = arith.constant 0 : index
    %c0_64 = arith.constant 0 : index
    %c0_65 = arith.constant 0 : index
    %70 = vector.load %arg68[%c0_63, %c0_64, %c0_65] : memref<10x8x128xbf16, #tpu.memory_space<vmem>>, vector<10x8x128xbf16>
    %71 = vector.shape_cast %70 : vector<10x8x128xbf16> to vector<80x128xbf16>
    %c0_66 = arith.constant 0 : index
    %c0_67 = arith.constant 0 : index
    %72 = vector.load %arg0[%c0_66, %c0_67] : memref<128x384xbf16, #tpu.memory_space<vmem>>, vector<128x384xbf16>
    %cst_68 = arith.constant dense<0.000000e+00> : vector<80x384xf32>
    %73 = tpu.matmul %71, %72, %cst_68 {dimension_numbers = #tpu.dot_dimension_numbers<[1], [0], [0], [1], [0, 0, 1, 1], [], []>} : vector<80x128xbf16>, vector<128x384xbf16>, vector<80x384xf32> -> vector<80x384xf32>
    %74 = vector.shape_cast %73 : vector<80x384xf32> to vector<10x8x384xf32>
    %75 = vector.extract_strided_slice %74 {offsets = [0, 0, 0], sizes = [8, 8, 128], strides = [1, 1, 1]} : vector<10x8x384xf32> to vector<8x8x128xf32>
    %76 = vector.extract_strided_slice %74 {offsets = [1, 0, 128], sizes = [8, 8, 128], strides = [1, 1, 1]} : vector<10x8x384xf32> to vector<8x8x128xf32>
    %77 = arith.addf %75, %76 : vector<8x8x128xf32>
    %78 = vector.extract_strided_slice %74 {offsets = [2, 0, 256], sizes = [8, 8, 128], strides = [1, 1, 1]} : vector<10x8x384xf32> to vector<8x8x128xf32>
    %79 = arith.addf %77, %78 : vector<8x8x128xf32>
    %c0_69 = arith.constant 0 : index
    %c0_70 = arith.constant 0 : index
    %80 = vector.load %arg2[%c0_69, %c0_70] : memref<1x128xf32, #tpu.memory_space<vmem>>, vector<1x128xf32>
    %81 = vector.shape_cast %80 : vector<1x128xf32> to vector<1x1x128xf32>
    %82 = vector.broadcast %81 : vector<1x1x128xf32> to vector<8x8x128xf32>
    %83 = arith.mulf %79, %82 : vector<8x8x128xf32>
    %c0_71 = arith.constant 0 : index
    %c0_72 = arith.constant 0 : index
    %84 = vector.load %arg1[%c0_71, %c0_72] : memref<1x128xf32, #tpu.memory_space<vmem>>, vector<1x128xf32>
    %85 = vector.shape_cast %84 : vector<1x128xf32> to vector<1x1x128xf32>
    %86 = vector.broadcast %85 : vector<1x1x128xf32> to vector<8x8x128xf32>
    %87 = arith.addf %83, %86 : vector<8x8x128xf32>
    %cst_73 = arith.constant 0.000000e+00 : f32
    %88 = vector.broadcast %cst_73 : f32 to vector<8x8x128xf32>
    %89 = arith.maximumf %87, %88 : vector<8x8x128xf32>
    %cst_74 = arith.constant 0.000000e+00 : bf16
    %90 = vector.broadcast %cst_74 : bf16 to vector<1x8x128xbf16>
    %c0_75 = arith.constant 0 : index
    %c0_76 = arith.constant 0 : index
    %c0_77 = arith.constant 0 : index
    %91 = vector.load %arg69[%c0_75, %c0_76, %c0_77] : memref<10x8x128xbf16, #tpu.memory_space<vmem>>, vector<1x8x128xbf16>
    tpu.vector_store %arg69[%c0_75, %c0_76, %c0_77], %90 {strides = array<i32>} : memref<10x8x128xbf16, #tpu.memory_space<vmem>>, vector<1x8x128xbf16>,
    %c9_78 = arith.constant 9 : index
    %c0_79 = arith.constant 0 : index
    %c0_80 = arith.constant 0 : index
    %92 = vector.load %arg69[%c9_78, %c0_79, %c0_80] : memref<10x8x128xbf16, #tpu.memory_space<vmem>>, vector<1x8x128xbf16>
    tpu.vector_store %arg69[%c9_78, %c0_79, %c0_80], %90 {strides = array<i32>} : memref<10x8x128xbf16, #tpu.memory_space<vmem>>, vector<1x8x128xbf16>,
    %93 = arith.truncf %89 : vector<8x8x128xf32> to vector<8x8x128xbf16>
    %c1_81 = arith.constant 1 : index
    %c0_82 = arith.constant 0 : index
    %c0_83 = arith.constant 0 : index
    %94 = vector.load %arg69[%c1_81, %c0_82, %c0_83] : memref<10x8x128xbf16, #tpu.memory_space<vmem>>, vector<8x8x128xbf16>
    tpu.vector_store %arg69[%c1_81, %c0_82, %c0_83], %93 {strides = array<i32>} : memref<10x8x128xbf16, #tpu.memory_space<vmem>>, vector<8x8x128xbf16>,
    %c0_84 = arith.constant 0 : index
    %c0_85 = arith.constant 0 : index
    %c0_86 = arith.constant 0 : index
    %95 = vector.load %arg69[%c0_84, %c0_85, %c0_86] : memref<10x8x128xbf16, #tpu.memory_space<vmem>>, vector<10x8x128xbf16>
    %96 = vector.shape_cast %95 : vector<10x8x128xbf16> to vector<80x128xbf16>
    %c0_87 = arith.constant 0 : index
    %c0_88 = arith.constant 0 : index
    %97 = vector.load %arg3[%c0_87, %c0_88] : memref<128x384xbf16, #tpu.memory_space<vmem>>, vector<128x384xbf16>
    %cst_89 = arith.constant dense<0.000000e+00> : vector<80x384xf32>
    %98 = tpu.matmul %96, %97, %cst_89 {dimension_numbers = #tpu.dot_dimension_numbers<[1], [0], [0], [1], [0, 0, 1, 1], [], []>} : vector<80x128xbf16>, vector<128x384xbf16>, vector<80x384xf32> -> vector<80x384xf32>
    %99 = vector.shape_cast %98 : vector<80x384xf32> to vector<10x8x384xf32>
    %100 = vector.extract_strided_slice %99 {offsets = [0, 0, 0], sizes = [8, 8, 128], strides = [1, 1, 1]} : vector<10x8x384xf32> to vector<8x8x128xf32>
    %101 = vector.extract_strided_slice %99 {offsets = [1, 0, 128], sizes = [8, 8, 128], strides = [1, 1, 1]} : vector<10x8x384xf32> to vector<8x8x128xf32>
    %102 = arith.addf %100, %101 : vector<8x8x128xf32>
    %103 = vector.extract_strided_slice %99 {offsets = [2, 0, 256], sizes = [8, 8, 128], strides = [1, 1, 1]} : vector<10x8x384xf32> to vector<8x8x128xf32>
    %104 = arith.addf %102, %103 : vector<8x8x128xf32>
    %c0_90 = arith.constant 0 : index
    %c0_91 = arith.constant 0 : index
    %105 = vector.load %arg5[%c0_90, %c0_91] : memref<1x128xf32, #tpu.memory_space<vmem>>, vector<1x128xf32>
    %106 = vector.shape_cast %105 : vector<1x128xf32> to vector<1x1x128xf32>
    %107 = vector.broadcast %106 : vector<1x1x128xf32> to vector<8x8x128xf32>
    %108 = arith.mulf %104, %107 : vector<8x8x128xf32>
    %c0_92 = arith.constant 0 : index
    %c0_93 = arith.constant 0 : index
    %109 = vector.load %arg4[%c0_92, %c0_93] : memref<1x128xf32, #tpu.memory_space<vmem>>, vector<1x128xf32>
    %110 = vector.shape_cast %109 : vector<1x128xf32> to vector<1x1x128xf32>
    %111 = vector.broadcast %110 : vector<1x1x128xf32> to vector<8x8x128xf32>
    %112 = arith.addf %108, %111 : vector<8x8x128xf32>
    %cst_94 = arith.constant 0.000000e+00 : f32
    %113 = vector.broadcast %cst_94 : f32 to vector<8x8x128xf32>
    %114 = arith.maximumf %112, %113 : vector<8x8x128xf32>
    %cst_95 = arith.constant 0.000000e+00 : bf16
    %115 = vector.broadcast %cst_95 : bf16 to vector<1x8x128xbf16>
    %c0_96 = arith.constant 0 : index
    %c0_97 = arith.constant 0 : index
    %c0_98 = arith.constant 0 : index
    %116 = vector.load %arg82[%c0_96, %c0_97, %c0_98] : memref<10x8x128xbf16, #tpu.memory_space<vmem>>, vector<1x8x128xbf16>
    tpu.vector_store %arg82[%c0_96, %c0_97, %c0_98], %115 {strides = array<i32>} : memref<10x8x128xbf16, #tpu.memory_space<vmem>>, vector<1x8x128xbf16>,
    %c9_99 = arith.constant 9 : index
    %c0_100 = arith.constant 0 : index
    %c0_101 = arith.constant 0 : index
    %117 = vector.load %arg82[%c9_99, %c0_100, %c0_101] : memref<10x8x128xbf16, #tpu.memory_space<vmem>>, vector<1x8x128xbf16>
    tpu.vector_store %arg82[%c9_99, %c0_100, %c0_101], %115 {strides = array<i32>} : memref<10x8x128xbf16, #tpu.memory_space<vmem>>, vector<1x8x128xbf16>,
    %118 = arith.truncf %114 : vector<8x8x128xf32> to vector<8x8x128xbf16>
    %c1_102 = arith.constant 1 : index
    %c0_103 = arith.constant 0 : index
    %c0_104 = arith.constant 0 : index
    %119 = vector.load %arg82[%c1_102, %c0_103, %c0_104] : memref<10x8x128xbf16, #tpu.memory_space<vmem>>, vector<8x8x128xbf16>
    tpu.vector_store %arg82[%c1_102, %c0_103, %c0_104], %118 {strides = array<i32>} : memref<10x8x128xbf16, #tpu.memory_space<vmem>>, vector<8x8x128xbf16>,
    %c1_105 = arith.constant 1 : index
    %c0_106 = arith.constant 0 : index
    %c0_107 = arith.constant 0 : index
    %120 = vector.load %arg82[%c1_105, %c0_106, %c0_107] : memref<10x8x128xbf16, #tpu.memory_space<vmem>>, vector<8x8x128xbf16>
    %121 = arith.extf %120 : vector<8x8x128xbf16> to vector<8x8x128xf32>
    %122 = vector.shape_cast %121 : vector<8x8x128xf32> to vector<4x2x8x128xf32>
    %123 = vector.extract_strided_slice %122 {offsets = [0, 0, 0, 0], sizes = [4, 1, 8, 128], strides = [1, 1, 1, 1]} : vector<4x2x8x128xf32> to vector<4x1x8x128xf32>
    %124 = vector.shape_cast %123 : vector<4x1x8x128xf32> to vector<4x8x128xf32>
    %125 = vector.extract_strided_slice %122 {offsets = [0, 1, 0, 0], sizes = [4, 1, 8, 128], strides = [1, 1, 1, 1]} : vector<4x2x8x128xf32> to vector<4x1x8x128xf32>
    %126 = vector.shape_cast %125 : vector<4x1x8x128xf32> to vector<4x8x128xf32>
    %127 = arith.maximumf %124, %126 : vector<4x8x128xf32>
    %c112_i32 = arith.constant 112 : i32
    %128 = tpu.dynamic_rotate %127 by %c112_i32 dim 2 : vector<4x8x128xf32>, i32 -> vector<4x8x128xf32>
    %129 = arith.maximumf %127, %128 : vector<4x8x128xf32>
    %cst_108 = arith.constant 0.000000e+00 : bf16
    %130 = vector.broadcast %cst_108 : bf16 to vector<1x8x128xbf16>
    %c0_109 = arith.constant 0 : index
    %c0_110 = arith.constant 0 : index
    %c0_111 = arith.constant 0 : index
    %131 = vector.load %arg70[%c0_109, %c0_110, %c0_111] : memref<6x8x128xbf16, #tpu.memory_space<vmem>>, vector<1x8x128xbf16>
    tpu.vector_store %arg70[%c0_109, %c0_110, %c0_111], %130 {strides = array<i32>} : memref<6x8x128xbf16, #tpu.memory_space<vmem>>, vector<1x8x128xbf16>,
    %c5 = arith.constant 5 : index
    %c0_112 = arith.constant 0 : index
    %c0_113 = arith.constant 0 : index
    %132 = vector.load %arg70[%c5, %c0_112, %c0_113] : memref<6x8x128xbf16, #tpu.memory_space<vmem>>, vector<1x8x128xbf16>
    tpu.vector_store %arg70[%c5, %c0_112, %c0_113], %130 {strides = array<i32>} : memref<6x8x128xbf16, #tpu.memory_space<vmem>>, vector<1x8x128xbf16>,
    %133 = arith.truncf %129 : vector<4x8x128xf32> to vector<4x8x128xbf16>
    %c1_114 = arith.constant 1 : index
    %c0_115 = arith.constant 0 : index
    %c0_116 = arith.constant 0 : index
    %134 = vector.load %arg70[%c1_114, %c0_115, %c0_116] : memref<6x8x128xbf16, #tpu.memory_space<vmem>>, vector<4x8x128xbf16>
    tpu.vector_store %arg70[%c1_114, %c0_115, %c0_116], %133 {strides = array<i32>} : memref<6x8x128xbf16, #tpu.memory_space<vmem>>, vector<4x8x128xbf16>,
    %c0_117 = arith.constant 0 : index
    %c0_118 = arith.constant 0 : index
    %c0_119 = arith.constant 0 : index
    %135 = vector.load %arg70[%c0_117, %c0_118, %c0_119] : memref<6x8x128xbf16, #tpu.memory_space<vmem>>, vector<6x8x128xbf16>
    %136 = vector.shape_cast %135 : vector<6x8x128xbf16> to vector<48x128xbf16>
    %c0_120 = arith.constant 0 : index
    %c0_121 = arith.constant 0 : index
    %137 = vector.load %arg6[%c0_120, %c0_121] : memref<128x384xbf16, #tpu.memory_space<vmem>>, vector<128x384xbf16>
    %cst_122 = arith.constant dense<0.000000e+00> : vector<48x384xf32>
    %138 = tpu.matmul %136, %137, %cst_122 {dimension_numbers = #tpu.dot_dimension_numbers<[1], [0], [0], [1], [0, 0, 1, 1], [], []>} : vector<48x128xbf16>, vector<128x384xbf16>, vector<48x384xf32> -> vector<48x384xf32>
    %139 = vector.shape_cast %138 : vector<48x384xf32> to vector<6x8x384xf32>
    %140 = vector.extract_strided_slice %139 {offsets = [0, 0, 0], sizes = [4, 8, 128], strides = [1, 1, 1]} : vector<6x8x384xf32> to vector<4x8x128xf32>
    %141 = vector.extract_strided_slice %139 {offsets = [1, 0, 128], sizes = [4, 8, 128], strides = [1, 1, 1]} : vector<6x8x384xf32> to vector<4x8x128xf32>
    %142 = arith.addf %140, %141 : vector<4x8x128xf32>
    %143 = vector.extract_strided_slice %139 {offsets = [2, 0, 256], sizes = [4, 8, 128], strides = [1, 1, 1]} : vector<6x8x384xf32> to vector<4x8x128xf32>
    %144 = arith.addf %142, %143 : vector<4x8x128xf32>
    %c0_123 = arith.constant 0 : index
    %c0_124 = arith.constant 0 : index
    %145 = vector.load %arg8[%c0_123, %c0_124] : memref<1x128xf32, #tpu.memory_space<vmem>>, vector<1x128xf32>
    %146 = vector.shape_cast %145 : vector<1x128xf32> to vector<1x1x128xf32>
    %147 = vector.broadcast %146 : vector<1x1x128xf32> to vector<4x8x128xf32>
    %148 = arith.mulf %144, %147 : vector<4x8x128xf32>
    %c0_125 = arith.constant 0 : index
    %c0_126 = arith.constant 0 : index
    %149 = vector.load %arg7[%c0_125, %c0_126] : memref<1x128xf32, #tpu.memory_space<vmem>>, vector<1x128xf32>
    %150 = vector.shape_cast %149 : vector<1x128xf32> to vector<1x1x128xf32>
    %151 = vector.broadcast %150 : vector<1x1x128xf32> to vector<4x8x128xf32>
    %152 = arith.addf %148, %151 : vector<4x8x128xf32>
    %cst_127 = arith.constant 0.000000e+00 : f32
    %153 = vector.broadcast %cst_127 : f32 to vector<4x8x128xf32>
    %154 = arith.maximumf %152, %153 : vector<4x8x128xf32>
    %cst_128 = arith.constant 0.000000e+00 : bf16
    %155 = vector.broadcast %cst_128 : bf16 to vector<1x8x128xbf16>
    %c0_129 = arith.constant 0 : index
    %c0_130 = arith.constant 0 : index
    %c0_131 = arith.constant 0 : index
    %156 = vector.load %arg71[%c0_129, %c0_130, %c0_131] : memref<6x8x128xbf16, #tpu.memory_space<vmem>>, vector<1x8x128xbf16>
    tpu.vector_store %arg71[%c0_129, %c0_130, %c0_131], %155 {strides = array<i32>} : memref<6x8x128xbf16, #tpu.memory_space<vmem>>, vector<1x8x128xbf16>,
    %c5_132 = arith.constant 5 : index
    %c0_133 = arith.constant 0 : index
    %c0_134 = arith.constant 0 : index
    %157 = vector.load %arg71[%c5_132, %c0_133, %c0_134] : memref<6x8x128xbf16, #tpu.memory_space<vmem>>, vector<1x8x128xbf16>
    tpu.vector_store %arg71[%c5_132, %c0_133, %c0_134], %155 {strides = array<i32>} : memref<6x8x128xbf16, #tpu.memory_space<vmem>>, vector<1x8x128xbf16>,
    %158 = arith.truncf %154 : vector<4x8x128xf32> to vector<4x8x128xbf16>
    %c1_135 = arith.constant 1 : index
    %c0_136 = arith.constant 0 : index
    %c0_137 = arith.constant 0 : index
    %159 = vector.load %arg71[%c1_135, %c0_136, %c0_137] : memref<6x8x128xbf16, #tpu.memory_space<vmem>>, vector<4x8x128xbf16>
    tpu.vector_store %arg71[%c1_135, %c0_136, %c0_137], %158 {strides = array<i32>} : memref<6x8x128xbf16, #tpu.memory_space<vmem>>, vector<4x8x128xbf16>,
    %c0_138 = arith.constant 0 : index
    %c0_139 = arith.constant 0 : index
    %c0_140 = arith.constant 0 : index
    %160 = vector.load %arg71[%c0_138, %c0_139, %c0_140] : memref<6x8x128xbf16, #tpu.memory_space<vmem>>, vector<6x8x128xbf16>
    %161 = vector.shape_cast %160 : vector<6x8x128xbf16> to vector<48x128xbf16>
    %c0_141 = arith.constant 0 : index
    %c0_142 = arith.constant 0 : index
    %162 = vector.load %arg9[%c0_141, %c0_142] : memref<128x384xbf16, #tpu.memory_space<vmem>>, vector<128x384xbf16>
    %cst_143 = arith.constant dense<0.000000e+00> : vector<48x384xf32>
    %163 = tpu.matmul %161, %162, %cst_143 {dimension_numbers = #tpu.dot_dimension_numbers<[1], [0], [0], [1], [0, 0, 1, 1], [], []>} : vector<48x128xbf16>, vector<128x384xbf16>, vector<48x384xf32> -> vector<48x384xf32>
    %164 = vector.shape_cast %163 : vector<48x384xf32> to vector<6x8x384xf32>
    %165 = vector.extract_strided_slice %164 {offsets = [0, 0, 0], sizes = [4, 8, 128], strides = [1, 1, 1]} : vector<6x8x384xf32> to vector<4x8x128xf32>
    %166 = vector.extract_strided_slice %164 {offsets = [1, 0, 128], sizes = [4, 8, 128], strides = [1, 1, 1]} : vector<6x8x384xf32> to vector<4x8x128xf32>
    %167 = arith.addf %165, %166 : vector<4x8x128xf32>
    %168 = vector.extract_strided_slice %164 {offsets = [2, 0, 256], sizes = [4, 8, 128], strides = [1, 1, 1]} : vector<6x8x384xf32> to vector<4x8x128xf32>
    %169 = arith.addf %167, %168 : vector<4x8x128xf32>
    %c0_144 = arith.constant 0 : index
    %c0_145 = arith.constant 0 : index
    %170 = vector.load %arg11[%c0_144, %c0_145] : memref<1x128xf32, #tpu.memory_space<vmem>>, vector<1x128xf32>
    %171 = vector.shape_cast %170 : vector<1x128xf32> to vector<1x1x128xf32>
    %172 = vector.broadcast %171 : vector<1x1x128xf32> to vector<4x8x128xf32>
    %173 = arith.mulf %169, %172 : vector<4x8x128xf32>
    %c0_146 = arith.constant 0 : index
    %c0_147 = arith.constant 0 : index
    %174 = vector.load %arg10[%c0_146, %c0_147] : memref<1x128xf32, #tpu.memory_space<vmem>>, vector<1x128xf32>
    %175 = vector.shape_cast %174 : vector<1x128xf32> to vector<1x1x128xf32>
    %176 = vector.broadcast %175 : vector<1x1x128xf32> to vector<4x8x128xf32>
    %177 = arith.addf %173, %176 : vector<4x8x128xf32>
    %cst_148 = arith.constant 0.000000e+00 : f32
    %178 = vector.broadcast %cst_148 : f32 to vector<4x8x128xf32>
    %179 = arith.maximumf %177, %178 : vector<4x8x128xf32>
    %cst_149 = arith.constant 0.000000e+00 : bf16
    %180 = vector.broadcast %cst_149 : bf16 to vector<1x8x128xbf16>
    %c0_150 = arith.constant 0 : index
    %c0_151 = arith.constant 0 : index
    %c0_152 = arith.constant 0 : index
    %181 = vector.load %arg79[%c0_150, %c0_151, %c0_152] : memref<6x8x128xbf16, #tpu.memory_space<vmem>>, vector<1x8x128xbf16>
    tpu.vector_store %arg79[%c0_150, %c0_151, %c0_152], %180 {strides = array<i32>} : memref<6x8x128xbf16, #tpu.memory_space<vmem>>, vector<1x8x128xbf16>,
    %c5_153 = arith.constant 5 : index
    %c0_154 = arith.constant 0 : index
    %c0_155 = arith.constant 0 : index
    %182 = vector.load %arg79[%c5_153, %c0_154, %c0_155] : memref<6x8x128xbf16, #tpu.memory_space<vmem>>, vector<1x8x128xbf16>
    tpu.vector_store %arg79[%c5_153, %c0_154, %c0_155], %180 {strides = array<i32>} : memref<6x8x128xbf16, #tpu.memory_space<vmem>>, vector<1x8x128xbf16>,
    %183 = arith.truncf %179 : vector<4x8x128xf32> to vector<4x8x128xbf16>
    %c1_156 = arith.constant 1 : index
    %c0_157 = arith.constant 0 : index
    %c0_158 = arith.constant 0 : index
    %184 = vector.load %arg79[%c1_156, %c0_157, %c0_158] : memref<6x8x128xbf16, #tpu.memory_space<vmem>>, vector<4x8x128xbf16>
    tpu.vector_store %arg79[%c1_156, %c0_157, %c0_158], %183 {strides = array<i32>} : memref<6x8x128xbf16, #tpu.memory_space<vmem>>, vector<4x8x128xbf16>,
    %c1_159 = arith.constant 1 : index
    %c0_160 = arith.constant 0 : index
    %c0_161 = arith.constant 0 : index
    %185 = vector.load %arg79[%c1_159, %c0_160, %c0_161] : memref<6x8x128xbf16, #tpu.memory_space<vmem>>, vector<4x8x128xbf16>
    %186 = arith.extf %185 : vector<4x8x128xbf16> to vector<4x8x128xf32>
    %187 = vector.shape_cast %186 : vector<4x8x128xf32> to vector<2x2x8x128xf32>
    %188 = vector.extract_strided_slice %187 {offsets = [0, 0, 0, 0], sizes = [2, 1, 8, 128], strides = [1, 1, 1, 1]} : vector<2x2x8x128xf32> to vector<2x1x8x128xf32>
    %189 = vector.shape_cast %188 : vector<2x1x8x128xf32> to vector<2x8x128xf32>
    %190 = vector.extract_strided_slice %187 {offsets = [0, 1, 0, 0], sizes = [2, 1, 8, 128], strides = [1, 1, 1, 1]} : vector<2x2x8x128xf32> to vector<2x1x8x128xf32>
    %191 = vector.shape_cast %190 : vector<2x1x8x128xf32> to vector<2x8x128xf32>
    %192 = arith.maximumf %189, %191 : vector<2x8x128xf32>
    %c96_i32 = arith.constant 96 : i32
    %193 = tpu.dynamic_rotate %192 by %c96_i32 dim 2 : vector<2x8x128xf32>, i32 -> vector<2x8x128xf32>
    %194 = arith.maximumf %192, %193 : vector<2x8x128xf32>
    %cst_162 = arith.constant 0.000000e+00 : bf16
    %195 = vector.broadcast %cst_162 : bf16 to vector<1x8x128xbf16>
    %c0_163 = arith.constant 0 : index
    %c0_164 = arith.constant 0 : index
    %c0_165 = arith.constant 0 : index
    %196 = vector.load %arg72[%c0_163, %c0_164, %c0_165] : memref<4x8x128xbf16, #tpu.memory_space<vmem>>, vector<1x8x128xbf16>
    tpu.vector_store %arg72[%c0_163, %c0_164, %c0_165], %195 {strides = array<i32>} : memref<4x8x128xbf16, #tpu.memory_space<vmem>>, vector<1x8x128xbf16>,
    %c3 = arith.constant 3 : index
    %c0_166 = arith.constant 0 : index
    %c0_167 = arith.constant 0 : index
    %197 = vector.load %arg72[%c3, %c0_166, %c0_167] : memref<4x8x128xbf16, #tpu.memory_space<vmem>>, vector<1x8x128xbf16>
    tpu.vector_store %arg72[%c3, %c0_166, %c0_167], %195 {strides = array<i32>} : memref<4x8x128xbf16, #tpu.memory_space<vmem>>, vector<1x8x128xbf16>,
    %198 = arith.truncf %194 : vector<2x8x128xf32> to vector<2x8x128xbf16>
    %c1_168 = arith.constant 1 : index
    %c0_169 = arith.constant 0 : index
    %c0_170 = arith.constant 0 : index
    %199 = vector.load %arg72[%c1_168, %c0_169, %c0_170] : memref<4x8x128xbf16, #tpu.memory_space<vmem>>, vector<2x8x128xbf16>
    tpu.vector_store %arg72[%c1_168, %c0_169, %c0_170], %198 {strides = array<i32>} : memref<4x8x128xbf16, #tpu.memory_space<vmem>>, vector<2x8x128xbf16>,
    %c0_171 = arith.constant 0 : index
    %c0_172 = arith.constant 0 : index
    %c0_173 = arith.constant 0 : index
    %200 = vector.load %arg72[%c0_171, %c0_172, %c0_173] : memref<4x8x128xbf16, #tpu.memory_space<vmem>>, vector<4x8x128xbf16>
    %201 = vector.shape_cast %200 : vector<4x8x128xbf16> to vector<32x128xbf16>
    %c0_174 = arith.constant 0 : index
    %c0_175 = arith.constant 0 : index
    %202 = vector.load %arg12[%c0_174, %c0_175] : memref<128x384xbf16, #tpu.memory_space<vmem>>, vector<128x384xbf16>
    %cst_176 = arith.constant dense<0.000000e+00> : vector<32x384xf32>
    %203 = tpu.matmul %201, %202, %cst_176 {dimension_numbers = #tpu.dot_dimension_numbers<[1], [0], [0], [1], [0, 0, 1, 1], [], []>} : vector<32x128xbf16>, vector<128x384xbf16>, vector<32x384xf32> -> vector<32x384xf32>
    %204 = vector.shape_cast %203 : vector<32x384xf32> to vector<4x8x384xf32>
    %205 = vector.extract_strided_slice %204 {offsets = [0, 0, 0], sizes = [2, 8, 128], strides = [1, 1, 1]} : vector<4x8x384xf32> to vector<2x8x128xf32>
    %206 = vector.extract_strided_slice %204 {offsets = [1, 0, 128], sizes = [2, 8, 128], strides = [1, 1, 1]} : vector<4x8x384xf32> to vector<2x8x128xf32>
    %207 = arith.addf %205, %206 : vector<2x8x128xf32>
    %208 = vector.extract_strided_slice %204 {offsets = [2, 0, 256], sizes = [2, 8, 128], strides = [1, 1, 1]} : vector<4x8x384xf32> to vector<2x8x128xf32>
    %209 = arith.addf %207, %208 : vector<2x8x128xf32>
    %c0_177 = arith.constant 0 : index
    %c0_178 = arith.constant 0 : index
    %210 = vector.load %arg14[%c0_177, %c0_178] : memref<1x128xf32, #tpu.memory_space<vmem>>, vector<1x128xf32>
    %211 = vector.shape_cast %210 : vector<1x128xf32> to vector<1x1x128xf32>
    %212 = vector.broadcast %211 : vector<1x1x128xf32> to vector<2x8x128xf32>
    %213 = arith.mulf %209, %212 : vector<2x8x128xf32>
    %c0_179 = arith.constant 0 : index
    %c0_180 = arith.constant 0 : index
    %214 = vector.load %arg13[%c0_179, %c0_180] : memref<1x128xf32, #tpu.memory_space<vmem>>, vector<1x128xf32>
    %215 = vector.shape_cast %214 : vector<1x128xf32> to vector<1x1x128xf32>
    %216 = vector.broadcast %215 : vector<1x1x128xf32> to vector<2x8x128xf32>
    %217 = arith.addf %213, %216 : vector<2x8x128xf32>
    %cst_181 = arith.constant 0.000000e+00 : f32
    %218 = vector.broadcast %cst_181 : f32 to vector<2x8x128xf32>
    %219 = arith.maximumf %217, %218 : vector<2x8x128xf32>
    %cst_182 = arith.constant 0.000000e+00 : bf16
    %220 = vector.broadcast %cst_182 : bf16 to vector<1x8x128xbf16>
    %c0_183 = arith.constant 0 : index
    %c0_184 = arith.constant 0 : index
    %c0_185 = arith.constant 0 : index
    %221 = vector.load %arg73[%c0_183, %c0_184, %c0_185] : memref<4x8x128xbf16, #tpu.memory_space<vmem>>, vector<1x8x128xbf16>
    tpu.vector_store %arg73[%c0_183, %c0_184, %c0_185], %220 {strides = array<i32>} : memref<4x8x128xbf16, #tpu.memory_space<vmem>>, vector<1x8x128xbf16>,
    %c3_186 = arith.constant 3 : index
    %c0_187 = arith.constant 0 : index
    %c0_188 = arith.constant 0 : index
    %222 = vector.load %arg73[%c3_186, %c0_187, %c0_188] : memref<4x8x128xbf16, #tpu.memory_space<vmem>>, vector<1x8x128xbf16>
    tpu.vector_store %arg73[%c3_186, %c0_187, %c0_188], %220 {strides = array<i32>} : memref<4x8x128xbf16, #tpu.memory_space<vmem>>, vector<1x8x128xbf16>,
    %223 = arith.truncf %219 : vector<2x8x128xf32> to vector<2x8x128xbf16>
    %c1_189 = arith.constant 1 : index
    %c0_190 = arith.constant 0 : index
    %c0_191 = arith.constant 0 : index
    %224 = vector.load %arg73[%c1_189, %c0_190, %c0_191] : memref<4x8x128xbf16, #tpu.memory_space<vmem>>, vector<2x8x128xbf16>
    tpu.vector_store %arg73[%c1_189, %c0_190, %c0_191], %223 {strides = array<i32>} : memref<4x8x128xbf16, #tpu.memory_space<vmem>>, vector<2x8x128xbf16>,
    %c0_192 = arith.constant 0 : index
    %c0_193 = arith.constant 0 : index
    %c0_194 = arith.constant 0 : index
    %225 = vector.load %arg73[%c0_192, %c0_193, %c0_194] : memref<4x8x128xbf16, #tpu.memory_space<vmem>>, vector<4x8x128xbf16>
    %226 = vector.shape_cast %225 : vector<4x8x128xbf16> to vector<32x128xbf16>
    %c0_195 = arith.constant 0 : index
    %c0_196 = arith.constant 0 : index
    %227 = vector.load %arg15[%c0_195, %c0_196] : memref<128x384xbf16, #tpu.memory_space<vmem>>, vector<128x384xbf16>
    %cst_197 = arith.constant dense<0.000000e+00> : vector<32x384xf32>
    %228 = tpu.matmul %226, %227, %cst_197 {dimension_numbers = #tpu.dot_dimension_numbers<[1], [0], [0], [1], [0, 0, 1, 1], [], []>} : vector<32x128xbf16>, vector<128x384xbf16>, vector<32x384xf32> -> vector<32x384xf32>
    %229 = vector.shape_cast %228 : vector<32x384xf32> to vector<4x8x384xf32>
    %230 = vector.extract_strided_slice %229 {offsets = [0, 0, 0], sizes = [2, 8, 128], strides = [1, 1, 1]} : vector<4x8x384xf32> to vector<2x8x128xf32>
    %231 = vector.extract_strided_slice %229 {offsets = [1, 0, 128], sizes = [2, 8, 128], strides = [1, 1, 1]} : vector<4x8x384xf32> to vector<2x8x128xf32>
    %232 = arith.addf %230, %231 : vector<2x8x128xf32>
    %233 = vector.extract_strided_slice %229 {offsets = [2, 0, 256], sizes = [2, 8, 128], strides = [1, 1, 1]} : vector<4x8x384xf32> to vector<2x8x128xf32>
    %234 = arith.addf %232, %233 : vector<2x8x128xf32>
    %c0_198 = arith.constant 0 : index
    %c0_199 = arith.constant 0 : index
    %235 = vector.load %arg17[%c0_198, %c0_199] : memref<1x128xf32, #tpu.memory_space<vmem>>, vector<1x128xf32>
    %236 = vector.shape_cast %235 : vector<1x128xf32> to vector<1x1x128xf32>
    %237 = vector.broadcast %236 : vector<1x1x128xf32> to vector<2x8x128xf32>
    %238 = arith.mulf %234, %237 : vector<2x8x128xf32>
    %c0_200 = arith.constant 0 : index
    %c0_201 = arith.constant 0 : index
    %239 = vector.load %arg16[%c0_200, %c0_201] : memref<1x128xf32, #tpu.memory_space<vmem>>, vector<1x128xf32>
    %240 = vector.shape_cast %239 : vector<1x128xf32> to vector<1x1x128xf32>
    %241 = vector.broadcast %240 : vector<1x1x128xf32> to vector<2x8x128xf32>
    %242 = arith.addf %238, %241 : vector<2x8x128xf32>
    %cst_202 = arith.constant 0.000000e+00 : f32
    %243 = vector.broadcast %cst_202 : f32 to vector<2x8x128xf32>
    %244 = arith.maximumf %242, %243 : vector<2x8x128xf32>
    %cst_203 = arith.constant 0.000000e+00 : bf16
    %245 = vector.broadcast %cst_203 : bf16 to vector<1x8x128xbf16>
    %c0_204 = arith.constant 0 : index
    %c0_205 = arith.constant 0 : index
    %c0_206 = arith.constant 0 : index
    %246 = vector.load %arg76[%c0_204, %c0_205, %c0_206] : memref<4x8x128xbf16, #tpu.memory_space<vmem>>, vector<1x8x128xbf16>
    tpu.vector_store %arg76[%c0_204, %c0_205, %c0_206], %245 {strides = array<i32>} : memref<4x8x128xbf16, #tpu.memory_space<vmem>>, vector<1x8x128xbf16>,
    %c3_207 = arith.constant 3 : index
    %c0_208 = arith.constant 0 : index
    %c0_209 = arith.constant 0 : index
    %247 = vector.load %arg76[%c3_207, %c0_208, %c0_209] : memref<4x8x128xbf16, #tpu.memory_space<vmem>>, vector<1x8x128xbf16>
    tpu.vector_store %arg76[%c3_207, %c0_208, %c0_209], %245 {strides = array<i32>} : memref<4x8x128xbf16, #tpu.memory_space<vmem>>, vector<1x8x128xbf16>,
    %248 = arith.truncf %244 : vector<2x8x128xf32> to vector<2x8x128xbf16>
    %c1_210 = arith.constant 1 : index
    %c0_211 = arith.constant 0 : index
    %c0_212 = arith.constant 0 : index
    %249 = vector.load %arg76[%c1_210, %c0_211, %c0_212] : memref<4x8x128xbf16, #tpu.memory_space<vmem>>, vector<2x8x128xbf16>
    tpu.vector_store %arg76[%c1_210, %c0_211, %c0_212], %248 {strides = array<i32>} : memref<4x8x128xbf16, #tpu.memory_space<vmem>>, vector<2x8x128xbf16>,
    %c1_213 = arith.constant 1 : index
    %c0_214 = arith.constant 0 : index
    %c0_215 = arith.constant 0 : index
    %250 = vector.load %arg76[%c1_213, %c0_214, %c0_215] : memref<4x8x128xbf16, #tpu.memory_space<vmem>>, vector<2x8x128xbf16>
    %251 = arith.extf %250 : vector<2x8x128xbf16> to vector<2x8x128xf32>
    %252 = vector.shape_cast %251 : vector<2x8x128xf32> to vector<1x2x8x128xf32>
    %253 = vector.extract_strided_slice %252 {offsets = [0, 0, 0, 0], sizes = [1, 1, 8, 128], strides = [1, 1, 1, 1]} : vector<1x2x8x128xf32> to vector<1x1x8x128xf32>
    %254 = vector.shape_cast %253 : vector<1x1x8x128xf32> to vector<1x8x128xf32>
    %255 = vector.extract_strided_slice %252 {offsets = [0, 1, 0, 0], sizes = [1, 1, 8, 128], strides = [1, 1, 1, 1]} : vector<1x2x8x128xf32> to vector<1x1x8x128xf32>
    %256 = vector.shape_cast %255 : vector<1x1x8x128xf32> to vector<1x8x128xf32>
    %257 = arith.maximumf %254, %256 : vector<1x8x128xf32>
    %c64_i32 = arith.constant 64 : i32
    %258 = tpu.dynamic_rotate %257 by %c64_i32 dim 2 : vector<1x8x128xf32>, i32 -> vector<1x8x128xf32>
    %259 = arith.maximumf %257, %258 : vector<1x8x128xf32>
    %cst_216 = arith.constant 0.000000e+00 : bf16
    %260 = vector.broadcast %cst_216 : bf16 to vector<1x8x128xbf16>
    %c0_217 = arith.constant 0 : index
    %c0_218 = arith.constant 0 : index
    %c0_219 = arith.constant 0 : index
    %261 = vector.load %arg74[%c0_217, %c0_218, %c0_219] : memref<3x8x128xbf16, #tpu.memory_space<vmem>>, vector<1x8x128xbf16>
    tpu.vector_store %arg74[%c0_217, %c0_218, %c0_219], %260 {strides = array<i32>} : memref<3x8x128xbf16, #tpu.memory_space<vmem>>, vector<1x8x128xbf16>,
    %c2 = arith.constant 2 : index
    %c0_220 = arith.constant 0 : index
    %c0_221 = arith.constant 0 : index
    %262 = vector.load %arg74[%c2, %c0_220, %c0_221] : memref<3x8x128xbf16, #tpu.memory_space<vmem>>, vector<1x8x128xbf16>
    tpu.vector_store %arg74[%c2, %c0_220, %c0_221], %260 {strides = array<i32>} : memref<3x8x128xbf16, #tpu.memory_space<vmem>>, vector<1x8x128xbf16>,
    %263 = arith.truncf %259 : vector<1x8x128xf32> to vector<1x8x128xbf16>
    %c1_222 = arith.constant 1 : index
    %c0_223 = arith.constant 0 : index
    %c0_224 = arith.constant 0 : index
    %264 = vector.load %arg74[%c1_222, %c0_223, %c0_224] : memref<3x8x128xbf16, #tpu.memory_space<vmem>>, vector<1x8x128xbf16>
    tpu.vector_store %arg74[%c1_222, %c0_223, %c0_224], %263 {strides = array<i32>} : memref<3x8x128xbf16, #tpu.memory_space<vmem>>, vector<1x8x128xbf16>,
    %c0_225 = arith.constant 0 : index
    %c0_226 = arith.constant 0 : index
    %c0_227 = arith.constant 0 : index
    %265 = vector.load %arg74[%c0_225, %c0_226, %c0_227] : memref<3x8x128xbf16, #tpu.memory_space<vmem>>, vector<1x8x128xbf16>
    %266 = vector.shape_cast %265 : vector<1x8x128xbf16> to vector<8x128xbf16>
    %c0_228 = arith.constant 0 : index
    %c0_229 = arith.constant 0 : index
    %c0_230 = arith.constant 0 : index
    %267 = vector.load %arg18[%c0_228, %c0_229, %c0_230] : memref<3x128x64xbf16, #tpu.memory_space<vmem>>, vector<1x128x64xbf16>
    %268 = vector.shape_cast %267 : vector<1x128x64xbf16> to vector<128x64xbf16>
    %cst_231 = arith.constant dense<0.000000e+00> : vector<8x64xf32>
    %269 = tpu.matmul %266, %268, %cst_231 {dimension_numbers = #tpu.dot_dimension_numbers<[1], [0], [0], [1], [0, 0, 1, 1], [], []>} : vector<8x128xbf16>, vector<128x64xbf16>, vector<8x64xf32> -> vector<8x64xf32>
    %c1_232 = arith.constant 1 : index
    %c0_233 = arith.constant 0 : index
    %c0_234 = arith.constant 0 : index
    %270 = vector.load %arg74[%c1_232, %c0_233, %c0_234] : memref<3x8x128xbf16, #tpu.memory_space<vmem>>, vector<1x8x128xbf16>
    %271 = vector.shape_cast %270 : vector<1x8x128xbf16> to vector<8x128xbf16>
    %c1_235 = arith.constant 1 : index
    %c0_236 = arith.constant 0 : index
    %c0_237 = arith.constant 0 : index
    %272 = vector.load %arg18[%c1_235, %c0_236, %c0_237] : memref<3x128x64xbf16, #tpu.memory_space<vmem>>, vector<1x128x64xbf16>
    %273 = vector.shape_cast %272 : vector<1x128x64xbf16> to vector<128x64xbf16>
    %cst_238 = arith.constant dense<0.000000e+00> : vector<8x64xf32>
    %274 = tpu.matmul %271, %273, %cst_238 {dimension_numbers = #tpu.dot_dimension_numbers<[1], [0], [0], [1], [0, 0, 1, 1], [], []>} : vector<8x128xbf16>, vector<128x64xbf16>, vector<8x64xf32> -> vector<8x64xf32>
    %275 = arith.addf %269, %274 : vector<8x64xf32>
    %c2_239 = arith.constant 2 : index
    %c0_240 = arith.constant 0 : index
    %c0_241 = arith.constant 0 : index
    %276 = vector.load %arg74[%c2_239, %c0_240, %c0_241] : memref<3x8x128xbf16, #tpu.memory_space<vmem>>, vector<1x8x128xbf16>
    %277 = vector.shape_cast %276 : vector<1x8x128xbf16> to vector<8x128xbf16>
    %c2_242 = arith.constant 2 : index
    %c0_243 = arith.constant 0 : index
    %c0_244 = arith.constant 0 : index
    %278 = vector.load %arg18[%c2_242, %c0_243, %c0_244] : memref<3x128x64xbf16, #tpu.memory_space<vmem>>, vector<1x128x64xbf16>
    %279 = vector.shape_cast %278 : vector<1x128x64xbf16> to vector<128x64xbf16>
    %cst_245 = arith.constant dense<0.000000e+00> : vector<8x64xf32>
    %280 = tpu.matmul %277, %279, %cst_245 {dimension_numbers = #tpu.dot_dimension_numbers<[1], [0], [0], [1], [0, 0, 1, 1], [], []>} : vector<8x128xbf16>, vector<128x64xbf16>, vector<8x64xf32> -> vector<8x64xf32>
    %281 = arith.addf %275, %280 : vector<8x64xf32>
    %282 = vector.shape_cast %281 : vector<8x64xf32> to vector<1x8x64xf32>
    %c0_246 = arith.constant 0 : index
    %c0_247 = arith.constant 0 : index
    %283 = vector.load %arg20[%c0_246, %c0_247] : memref<1x64xf32, #tpu.memory_space<vmem>>, vector<1x64xf32>
    %284 = vector.shape_cast %283 : vector<1x64xf32> to vector<1x1x64xf32>
    %285 = vector.broadcast %284 : vector<1x1x64xf32> to vector<1x8x64xf32>
    %286 = arith.mulf %282, %285 : vector<1x8x64xf32>
    %c0_248 = arith.constant 0 : index
    %c0_249 = arith.constant 0 : index
    %287 = vector.load %arg19[%c0_248, %c0_249] : memref<1x64xf32, #tpu.memory_space<vmem>>, vector<1x64xf32>
    %288 = vector.shape_cast %287 : vector<1x64xf32> to vector<1x1x64xf32>
    %289 = vector.broadcast %288 : vector<1x1x64xf32> to vector<1x8x64xf32>
    %290 = arith.addf %286, %289 : vector<1x8x64xf32>
    %cst_250 = arith.constant 0.000000e+00 : f32
    %291 = vector.broadcast %cst_250 : f32 to vector<1x8x64xf32>
    %292 = arith.maximumf %290, %291 : vector<1x8x64xf32>
    %cst_251 = arith.constant 0.000000e+00 : bf16
    %293 = vector.broadcast %cst_251 : bf16 to vector<1x8x64xbf16>
    %c0_252 = arith.constant 0 : index
    %c0_253 = arith.constant 0 : index
    %c0_254 = arith.constant 0 : index
    %294 = vector.load %arg75[%c0_252, %c0_253, %c0_254] : memref<3x8x64xbf16, #tpu.memory_space<vmem>>, vector<1x8x64xbf16>
    tpu.vector_store %arg75[%c0_252, %c0_253, %c0_254], %293 {strides = array<i32>} : memref<3x8x64xbf16, #tpu.memory_space<vmem>>, vector<1x8x64xbf16>,
    %c2_255 = arith.constant 2 : index
    %c0_256 = arith.constant 0 : index
    %c0_257 = arith.constant 0 : index
    %295 = vector.load %arg75[%c2_255, %c0_256, %c0_257] : memref<3x8x64xbf16, #tpu.memory_space<vmem>>, vector<1x8x64xbf16>
    tpu.vector_store %arg75[%c2_255, %c0_256, %c0_257], %293 {strides = array<i32>} : memref<3x8x64xbf16, #tpu.memory_space<vmem>>, vector<1x8x64xbf16>,
    %296 = arith.truncf %292 : vector<1x8x64xf32> to vector<1x8x64xbf16>
    %c1_258 = arith.constant 1 : index
    %c0_259 = arith.constant 0 : index
    %c0_260 = arith.constant 0 : index
    %297 = vector.load %arg75[%c1_258, %c0_259, %c0_260] : memref<3x8x64xbf16, #tpu.memory_space<vmem>>, vector<1x8x64xbf16>
    tpu.vector_store %arg75[%c1_258, %c0_259, %c0_260], %296 {strides = array<i32>} : memref<3x8x64xbf16, #tpu.memory_space<vmem>>, vector<1x8x64xbf16>,
    %c0_261 = arith.constant 0 : index
    %c0_262 = arith.constant 0 : index
    %c0_263 = arith.constant 0 : index
    %298 = vector.load %arg75[%c0_261, %c0_262, %c0_263] : memref<3x8x64xbf16, #tpu.memory_space<vmem>>, vector<1x8x64xbf16>
    %299 = vector.shape_cast %298 : vector<1x8x64xbf16> to vector<8x64xbf16>
    %c0_264 = arith.constant 0 : index
    %c0_265 = arith.constant 0 : index
    %c0_266 = arith.constant 0 : index
    %300 = vector.load %arg21[%c0_264, %c0_265, %c0_266] : memref<3x64x64xbf16, #tpu.memory_space<vmem>>, vector<1x64x64xbf16>
    %301 = vector.shape_cast %300 : vector<1x64x64xbf16> to vector<64x64xbf16>
    %cst_267 = arith.constant dense<0.000000e+00> : vector<8x64xf32>
    %302 = tpu.matmul %299, %301, %cst_267 {dimension_numbers = #tpu.dot_dimension_numbers<[1], [0], [0], [1], [0, 0, 1, 1], [], []>} : vector<8x64xbf16>, vector<64x64xbf16>, vector<8x64xf32> -> vector<8x64xf32>
    %c1_268 = arith.constant 1 : index
    %c0_269 = arith.constant 0 : index
    %c0_270 = arith.constant 0 : index
    %303 = vector.load %arg75[%c1_268, %c0_269, %c0_270] : memref<3x8x64xbf16, #tpu.memory_space<vmem>>, vector<1x8x64xbf16>
    %304 = vector.shape_cast %303 : vector<1x8x64xbf16> to vector<8x64xbf16>
    %c1_271 = arith.constant 1 : index
    %c0_272 = arith.constant 0 : index
    %c0_273 = arith.constant 0 : index
    %305 = vector.load %arg21[%c1_271, %c0_272, %c0_273] : memref<3x64x64xbf16, #tpu.memory_space<vmem>>, vector<1x64x64xbf16>
    %306 = vector.shape_cast %305 : vector<1x64x64xbf16> to vector<64x64xbf16>
    %cst_274 = arith.constant dense<0.000000e+00> : vector<8x64xf32>
    %307 = tpu.matmul %304, %306, %cst_274 {dimension_numbers = #tpu.dot_dimension_numbers<[1], [0], [0], [1], [0, 0, 1, 1], [], []>} : vector<8x64xbf16>, vector<64x64xbf16>, vector<8x64xf32> -> vector<8x64xf32>
    %308 = arith.addf %302, %307 : vector<8x64xf32>
    %c2_275 = arith.constant 2 : index
    %c0_276 = arith.constant 0 : index
    %c0_277 = arith.constant 0 : index
    %309 = vector.load %arg75[%c2_275, %c0_276, %c0_277] : memref<3x8x64xbf16, #tpu.memory_space<vmem>>, vector<1x8x64xbf16>
    %310 = vector.shape_cast %309 : vector<1x8x64xbf16> to vector<8x64xbf16>
    %c2_278 = arith.constant 2 : index
    %c0_279 = arith.constant 0 : index
    %c0_280 = arith.constant 0 : index
    %311 = vector.load %arg21[%c2_278, %c0_279, %c0_280] : memref<3x64x64xbf16, #tpu.memory_space<vmem>>, vector<1x64x64xbf16>
    %312 = vector.shape_cast %311 : vector<1x64x64xbf16> to vector<64x64xbf16>
    %cst_281 = arith.constant dense<0.000000e+00> : vector<8x64xf32>
    %313 = tpu.matmul %310, %312, %cst_281 {dimension_numbers = #tpu.dot_dimension_numbers<[1], [0], [0], [1], [0, 0, 1, 1], [], []>} : vector<8x64xbf16>, vector<64x64xbf16>, vector<8x64xf32> -> vector<8x64xf32>
    %314 = arith.addf %308, %313 : vector<8x64xf32>
    %315 = vector.shape_cast %314 : vector<8x64xf32> to vector<1x8x64xf32>
    %c0_282 = arith.constant 0 : index
    %c0_283 = arith.constant 0 : index
    %316 = vector.load %arg23[%c0_282, %c0_283] : memref<1x64xf32, #tpu.memory_space<vmem>>, vector<1x64xf32>
    %317 = vector.shape_cast %316 : vector<1x64xf32> to vector<1x1x64xf32>
    %318 = vector.broadcast %317 : vector<1x1x64xf32> to vector<1x8x64xf32>
    %319 = arith.mulf %315, %318 : vector<1x8x64xf32>
    %c0_284 = arith.constant 0 : index
    %c0_285 = arith.constant 0 : index
    %320 = vector.load %arg22[%c0_284, %c0_285] : memref<1x64xf32, #tpu.memory_space<vmem>>, vector<1x64xf32>
    %321 = vector.shape_cast %320 : vector<1x64xf32> to vector<1x1x64xf32>
    %322 = vector.broadcast %321 : vector<1x1x64xf32> to vector<1x8x64xf32>
    %323 = arith.addf %319, %322 : vector<1x8x64xf32>
    %cst_286 = arith.constant 0.000000e+00 : f32
    %324 = vector.broadcast %cst_286 : f32 to vector<1x8x64xf32>
    %325 = arith.maximumf %323, %324 : vector<1x8x64xf32>
    %326 = vector.shape_cast %325 : vector<1x8x64xf32> to vector<8x64xf32>
    %327 = vector.shape_cast %325 : vector<1x8x64xf32> to vector<8x64xf32>
    %328 = vector.shape_cast %326 : vector<8x64xf32> to vector<1x8x64xf32>
    %329 = vector.shape_cast %327 : vector<8x64xf32> to vector<1x8x64xf32>
    %330 = tpu.concatenate %328, %329 in 0 : vector<1x8x64xf32>, vector<1x8x64xf32> -> vector<2x8x64xf32>
    %331 = vector.shape_cast %330 : vector<2x8x64xf32> to vector<16x64xf32>
    %332 = arith.truncf %331 : vector<16x64xf32> to vector<16x64xbf16>
    %c0_287 = arith.constant 0 : index
    %c0_288 = arith.constant 0 : index
    %333 = vector.load %arg60[%c0_287, %c0_288] : memref<64x128xbf16, #tpu.memory_space<vmem>>, vector<64x128xbf16>
    %cst_289 = arith.constant dense<0.000000e+00> : vector<16x128xf32>
    %334 = tpu.matmul %332, %333, %cst_289 {dimension_numbers = #tpu.dot_dimension_numbers<[1], [0], [0], [1], [0, 0, 1, 1], [], []>} : vector<16x64xbf16>, vector<64x128xbf16>, vector<16x128xf32> -> vector<16x128xf32>
    %335 = vector.shape_cast %334 : vector<16x128xf32> to vector<2x8x128xf32>
    %cst_290 = arith.constant 0.000000e+00 : bf16
    %336 = vector.broadcast %cst_290 : bf16 to vector<1x8x128xbf16>
    %c0_291 = arith.constant 0 : index
    %c0_292 = arith.constant 0 : index
    %c0_293 = arith.constant 0 : index
    %337 = vector.load %arg77[%c0_291, %c0_292, %c0_293] : memref<4x8x128xbf16, #tpu.memory_space<vmem>>, vector<1x8x128xbf16>
    tpu.vector_store %arg77[%c0_291, %c0_292, %c0_293], %336 {strides = array<i32>} : memref<4x8x128xbf16, #tpu.memory_space<vmem>>, vector<1x8x128xbf16>,
    %c3_294 = arith.constant 3 : index
    %c0_295 = arith.constant 0 : index
    %c0_296 = arith.constant 0 : index
    %338 = vector.load %arg77[%c3_294, %c0_295, %c0_296] : memref<4x8x128xbf16, #tpu.memory_space<vmem>>, vector<1x8x128xbf16>
    tpu.vector_store %arg77[%c3_294, %c0_295, %c0_296], %336 {strides = array<i32>} : memref<4x8x128xbf16, #tpu.memory_space<vmem>>, vector<1x8x128xbf16>,
    %339 = arith.truncf %335 : vector<2x8x128xf32> to vector<2x8x128xbf16>
    %c1_297 = arith.constant 1 : index
    %c0_298 = arith.constant 0 : index
    %c0_299 = arith.constant 0 : index
    %340 = vector.load %arg77[%c1_297, %c0_298, %c0_299] : memref<4x8x128xbf16, #tpu.memory_space<vmem>>, vector<2x8x128xbf16>
    tpu.vector_store %arg77[%c1_297, %c0_298, %c0_299], %339 {strides = array<i32>} : memref<4x8x128xbf16, #tpu.memory_space<vmem>>, vector<2x8x128xbf16>,
    %c0_300 = arith.constant 0 : index
    %c0_301 = arith.constant 0 : index
    %c0_302 = arith.constant 0 : index
    %341 = vector.load %arg76[%c0_300, %c0_301, %c0_302] : memref<4x8x128xbf16, #tpu.memory_space<vmem>>, vector<2x8x128xbf16>
    %342 = vector.shape_cast %341 : vector<2x8x128xbf16> to vector<16x128xbf16>
    %c0_303 = arith.constant 0 : index
    %c0_304 = arith.constant 0 : index
    %c0_305 = arith.constant 0 : index
    %343 = vector.load %arg30[%c0_303, %c0_304, %c0_305] : memref<3x128x64xbf16, #tpu.memory_space<vmem>>, vector<1x128x64xbf16>
    %344 = vector.shape_cast %343 : vector<1x128x64xbf16> to vector<128x64xbf16>
    %cst_306 = arith.constant dense<0.000000e+00> : vector<16x64xf32>
    %345 = tpu.matmul %342, %344, %cst_306 {dimension_numbers = #tpu.dot_dimension_numbers<[1], [0], [0], [1], [0, 0, 1, 1], [], []>} : vector<16x128xbf16>, vector<128x64xbf16>, vector<16x64xf32> -> vector<16x64xf32>
    %c1_307 = arith.constant 1 : index
    %c0_308 = arith.constant 0 : index
    %c0_309 = arith.constant 0 : index
    %346 = vector.load %arg76[%c1_307, %c0_308, %c0_309] : memref<4x8x128xbf16, #tpu.memory_space<vmem>>, vector<2x8x128xbf16>
    %347 = vector.shape_cast %346 : vector<2x8x128xbf16> to vector<16x128xbf16>
    %c1_310 = arith.constant 1 : index
    %c0_311 = arith.constant 0 : index
    %c0_312 = arith.constant 0 : index
    %348 = vector.load %arg30[%c1_310, %c0_311, %c0_312] : memref<3x128x64xbf16, #tpu.memory_space<vmem>>, vector<1x128x64xbf16>
    %349 = vector.shape_cast %348 : vector<1x128x64xbf16> to vector<128x64xbf16>
    %cst_313 = arith.constant dense<0.000000e+00> : vector<16x64xf32>
    %350 = tpu.matmul %347, %349, %cst_313 {dimension_numbers = #tpu.dot_dimension_numbers<[1], [0], [0], [1], [0, 0, 1, 1], [], []>} : vector<16x128xbf16>, vector<128x64xbf16>, vector<16x64xf32> -> vector<16x64xf32>
    %351 = arith.addf %345, %350 : vector<16x64xf32>
    %c2_314 = arith.constant 2 : index
    %c0_315 = arith.constant 0 : index
    %c0_316 = arith.constant 0 : index
    %352 = vector.load %arg76[%c2_314, %c0_315, %c0_316] : memref<4x8x128xbf16, #tpu.memory_space<vmem>>, vector<2x8x128xbf16>
    %353 = vector.shape_cast %352 : vector<2x8x128xbf16> to vector<16x128xbf16>
    %c2_317 = arith.constant 2 : index
    %c0_318 = arith.constant 0 : index
    %c0_319 = arith.constant 0 : index
    %354 = vector.load %arg30[%c2_317, %c0_318, %c0_319] : memref<3x128x64xbf16, #tpu.memory_space<vmem>>, vector<1x128x64xbf16>
    %355 = vector.shape_cast %354 : vector<1x128x64xbf16> to vector<128x64xbf16>
    %cst_320 = arith.constant dense<0.000000e+00> : vector<16x64xf32>
    %356 = tpu.matmul %353, %355, %cst_320 {dimension_numbers = #tpu.dot_dimension_numbers<[1], [0], [0], [1], [0, 0, 1, 1], [], []>} : vector<16x128xbf16>, vector<128x64xbf16>, vector<16x64xf32> -> vector<16x64xf32>
    %357 = arith.addf %351, %356 : vector<16x64xf32>
    %c0_321 = arith.constant 0 : index
    %c0_322 = arith.constant 0 : index
    %c0_323 = arith.constant 0 : index
    %358 = vector.load %arg77[%c0_321, %c0_322, %c0_323] : memref<4x8x128xbf16, #tpu.memory_space<vmem>>, vector<2x8x128xbf16>
    %359 = vector.shape_cast %358 : vector<2x8x128xbf16> to vector<16x128xbf16>
    %c0_324 = arith.constant 0 : index
    %c0_325 = arith.constant 0 : index
    %c0_326 = arith.constant 0 : index
    %360 = vector.load %arg31[%c0_324, %c0_325, %c0_326] : memref<3x128x64xbf16, #tpu.memory_space<vmem>>, vector<1x128x64xbf16>
    %361 = vector.shape_cast %360 : vector<1x128x64xbf16> to vector<128x64xbf16>
    %cst_327 = arith.constant dense<0.000000e+00> : vector<16x64xf32>
    %362 = tpu.matmul %359, %361, %cst_327 {dimension_numbers = #tpu.dot_dimension_numbers<[1], [0], [0], [1], [0, 0, 1, 1], [], []>} : vector<16x128xbf16>, vector<128x64xbf16>, vector<16x64xf32> -> vector<16x64xf32>
    %363 = arith.addf %357, %362 : vector<16x64xf32>
    %c1_328 = arith.constant 1 : index
    %c0_329 = arith.constant 0 : index
    %c0_330 = arith.constant 0 : index
    %364 = vector.load %arg77[%c1_328, %c0_329, %c0_330] : memref<4x8x128xbf16, #tpu.memory_space<vmem>>, vector<2x8x128xbf16>
    %365 = vector.shape_cast %364 : vector<2x8x128xbf16> to vector<16x128xbf16>
    %c1_331 = arith.constant 1 : index
    %c0_332 = arith.constant 0 : index
    %c0_333 = arith.constant 0 : index
    %366 = vector.load %arg31[%c1_331, %c0_332, %c0_333] : memref<3x128x64xbf16, #tpu.memory_space<vmem>>, vector<1x128x64xbf16>
    %367 = vector.shape_cast %366 : vector<1x128x64xbf16> to vector<128x64xbf16>
    %cst_334 = arith.constant dense<0.000000e+00> : vector<16x64xf32>
    %368 = tpu.matmul %365, %367, %cst_334 {dimension_numbers = #tpu.dot_dimension_numbers<[1], [0], [0], [1], [0, 0, 1, 1], [], []>} : vector<16x128xbf16>, vector<128x64xbf16>, vector<16x64xf32> -> vector<16x64xf32>
    %369 = arith.addf %363, %368 : vector<16x64xf32>
    %c2_335 = arith.constant 2 : index
    %c0_336 = arith.constant 0 : index
    %c0_337 = arith.constant 0 : index
    %370 = vector.load %arg77[%c2_335, %c0_336, %c0_337] : memref<4x8x128xbf16, #tpu.memory_space<vmem>>, vector<2x8x128xbf16>
    %371 = vector.shape_cast %370 : vector<2x8x128xbf16> to vector<16x128xbf16>
    %c2_338 = arith.constant 2 : index
    %c0_339 = arith.constant 0 : index
    %c0_340 = arith.constant 0 : index
    %372 = vector.load %arg31[%c2_338, %c0_339, %c0_340] : memref<3x128x64xbf16, #tpu.memory_space<vmem>>, vector<1x128x64xbf16>
    %373 = vector.shape_cast %372 : vector<1x128x64xbf16> to vector<128x64xbf16>
    %cst_341 = arith.constant dense<0.000000e+00> : vector<16x64xf32>
    %374 = tpu.matmul %371, %373, %cst_341 {dimension_numbers = #tpu.dot_dimension_numbers<[1], [0], [0], [1], [0, 0, 1, 1], [], []>} : vector<16x128xbf16>, vector<128x64xbf16>, vector<16x64xf32> -> vector<16x64xf32>
    %375 = arith.addf %369, %374 : vector<16x64xf32>
    %376 = vector.shape_cast %375 : vector<16x64xf32> to vector<2x8x64xf32>
    %c0_342 = arith.constant 0 : index
    %c0_343 = arith.constant 0 : index
    %377 = vector.load %arg33[%c0_342, %c0_343] : memref<1x64xf32, #tpu.memory_space<vmem>>, vector<1x64xf32>
    %378 = vector.shape_cast %377 : vector<1x64xf32> to vector<1x1x64xf32>
    %379 = vector.broadcast %378 : vector<1x1x64xf32> to vector<2x8x64xf32>
    %380 = arith.mulf %376, %379 : vector<2x8x64xf32>
    %c0_344 = arith.constant 0 : index
    %c0_345 = arith.constant 0 : index
    %381 = vector.load %arg32[%c0_344, %c0_345] : memref<1x64xf32, #tpu.memory_space<vmem>>, vector<1x64xf32>
    %382 = vector.shape_cast %381 : vector<1x64xf32> to vector<1x1x64xf32>
    %383 = vector.broadcast %382 : vector<1x1x64xf32> to vector<2x8x64xf32>
    %384 = arith.addf %380, %383 : vector<2x8x64xf32>
    %cst_346 = arith.constant 0.000000e+00 : f32
    %385 = vector.broadcast %cst_346 : f32 to vector<2x8x64xf32>
    %386 = arith.maximumf %384, %385 : vector<2x8x64xf32>
    %cst_347 = arith.constant 0.000000e+00 : bf16
    %387 = vector.broadcast %cst_347 : bf16 to vector<1x8x64xbf16>
    %c0_348 = arith.constant 0 : index
    %c0_349 = arith.constant 0 : index
    %c0_350 = arith.constant 0 : index
    %388 = vector.load %arg78[%c0_348, %c0_349, %c0_350] : memref<4x8x64xbf16, #tpu.memory_space<vmem>>, vector<1x8x64xbf16>
    tpu.vector_store %arg78[%c0_348, %c0_349, %c0_350], %387 {strides = array<i32>} : memref<4x8x64xbf16, #tpu.memory_space<vmem>>, vector<1x8x64xbf16>,
    %c3_351 = arith.constant 3 : index
    %c0_352 = arith.constant 0 : index
    %c0_353 = arith.constant 0 : index
    %389 = vector.load %arg78[%c3_351, %c0_352, %c0_353] : memref<4x8x64xbf16, #tpu.memory_space<vmem>>, vector<1x8x64xbf16>
    tpu.vector_store %arg78[%c3_351, %c0_352, %c0_353], %387 {strides = array<i32>} : memref<4x8x64xbf16, #tpu.memory_space<vmem>>, vector<1x8x64xbf16>,
    %390 = arith.truncf %386 : vector<2x8x64xf32> to vector<2x8x64xbf16>
    %c1_354 = arith.constant 1 : index
    %c0_355 = arith.constant 0 : index
    %c0_356 = arith.constant 0 : index
    %391 = vector.load %arg78[%c1_354, %c0_355, %c0_356] : memref<4x8x64xbf16, #tpu.memory_space<vmem>>, vector<2x8x64xbf16>
    tpu.vector_store %arg78[%c1_354, %c0_355, %c0_356], %390 {strides = array<i32>} : memref<4x8x64xbf16, #tpu.memory_space<vmem>>, vector<2x8x64xbf16>,
    %c0_357 = arith.constant 0 : index
    %c0_358 = arith.constant 0 : index
    %c0_359 = arith.constant 0 : index
    %392 = vector.load %arg78[%c0_357, %c0_358, %c0_359] : memref<4x8x64xbf16, #tpu.memory_space<vmem>>, vector<2x8x64xbf16>
    %393 = vector.shape_cast %392 : vector<2x8x64xbf16> to vector<16x64xbf16>
    %c0_360 = arith.constant 0 : index
    %c0_361 = arith.constant 0 : index
    %c0_362 = arith.constant 0 : index
    %394 = vector.load %arg34[%c0_360, %c0_361, %c0_362] : memref<3x64x64xbf16, #tpu.memory_space<vmem>>, vector<1x64x64xbf16>
    %395 = vector.shape_cast %394 : vector<1x64x64xbf16> to vector<64x64xbf16>
    %cst_363 = arith.constant dense<0.000000e+00> : vector<16x64xf32>
    %396 = tpu.matmul %393, %395, %cst_363 {dimension_numbers = #tpu.dot_dimension_numbers<[1], [0], [0], [1], [0, 0, 1, 1], [], []>} : vector<16x64xbf16>, vector<64x64xbf16>, vector<16x64xf32> -> vector<16x64xf32>
    %c1_364 = arith.constant 1 : index
    %c0_365 = arith.constant 0 : index
    %c0_366 = arith.constant 0 : index
    %397 = vector.load %arg78[%c1_364, %c0_365, %c0_366] : memref<4x8x64xbf16, #tpu.memory_space<vmem>>, vector<2x8x64xbf16>
    %398 = vector.shape_cast %397 : vector<2x8x64xbf16> to vector<16x64xbf16>
    %c1_367 = arith.constant 1 : index
    %c0_368 = arith.constant 0 : index
    %c0_369 = arith.constant 0 : index
    %399 = vector.load %arg34[%c1_367, %c0_368, %c0_369] : memref<3x64x64xbf16, #tpu.memory_space<vmem>>, vector<1x64x64xbf16>
    %400 = vector.shape_cast %399 : vector<1x64x64xbf16> to vector<64x64xbf16>
    %cst_370 = arith.constant dense<0.000000e+00> : vector<16x64xf32>
    %401 = tpu.matmul %398, %400, %cst_370 {dimension_numbers = #tpu.dot_dimension_numbers<[1], [0], [0], [1], [0, 0, 1, 1], [], []>} : vector<16x64xbf16>, vector<64x64xbf16>, vector<16x64xf32> -> vector<16x64xf32>
    %402 = arith.addf %396, %401 : vector<16x64xf32>
    %c2_371 = arith.constant 2 : index
    %c0_372 = arith.constant 0 : index
    %c0_373 = arith.constant 0 : index
    %403 = vector.load %arg78[%c2_371, %c0_372, %c0_373] : memref<4x8x64xbf16, #tpu.memory_space<vmem>>, vector<2x8x64xbf16>
    %404 = vector.shape_cast %403 : vector<2x8x64xbf16> to vector<16x64xbf16>
    %c2_374 = arith.constant 2 : index
    %c0_375 = arith.constant 0 : index
    %c0_376 = arith.constant 0 : index
    %405 = vector.load %arg34[%c2_374, %c0_375, %c0_376] : memref<3x64x64xbf16, #tpu.memory_space<vmem>>, vector<1x64x64xbf16>
    %406 = vector.shape_cast %405 : vector<1x64x64xbf16> to vector<64x64xbf16>
    %cst_377 = arith.constant dense<0.000000e+00> : vector<16x64xf32>
    %407 = tpu.matmul %404, %406, %cst_377 {dimension_numbers = #tpu.dot_dimension_numbers<[1], [0], [0], [1], [0, 0, 1, 1], [], []>} : vector<16x64xbf16>, vector<64x64xbf16>, vector<16x64xf32> -> vector<16x64xf32>
    %408 = arith.addf %402, %407 : vector<16x64xf32>
    %409 = vector.shape_cast %408 : vector<16x64xf32> to vector<2x8x64xf32>
    %c0_378 = arith.constant 0 : index
    %c0_379 = arith.constant 0 : index
    %410 = vector.load %arg36[%c0_378, %c0_379] : memref<1x64xf32, #tpu.memory_space<vmem>>, vector<1x64xf32>
    %411 = vector.shape_cast %410 : vector<1x64xf32> to vector<1x1x64xf32>
    %412 = vector.broadcast %411 : vector<1x1x64xf32> to vector<2x8x64xf32>
    %413 = arith.mulf %409, %412 : vector<2x8x64xf32>
    %c0_380 = arith.constant 0 : index
    %c0_381 = arith.constant 0 : index
    %414 = vector.load %arg35[%c0_380, %c0_381] : memref<1x64xf32, #tpu.memory_space<vmem>>, vector<1x64xf32>
    %415 = vector.shape_cast %414 : vector<1x64xf32> to vector<1x1x64xf32>
    %416 = vector.broadcast %415 : vector<1x1x64xf32> to vector<2x8x64xf32>
    %417 = arith.addf %413, %416 : vector<2x8x64xf32>
    %cst_382 = arith.constant 0.000000e+00 : f32
    %418 = vector.broadcast %cst_382 : f32 to vector<2x8x64xf32>
    %419 = arith.maximumf %417, %418 : vector<2x8x64xf32>
    %420 = vector.extract_strided_slice %419 {offsets = [0, 0, 0], sizes = [1, 8, 64], strides = [1, 1, 1]} : vector<2x8x64xf32> to vector<1x8x64xf32>
    %421 = vector.shape_cast %420 : vector<1x8x64xf32> to vector<8x64xf32>
    %422 = vector.extract_strided_slice %419 {offsets = [0, 0, 0], sizes = [1, 8, 64], strides = [1, 1, 1]} : vector<2x8x64xf32> to vector<1x8x64xf32>
    %423 = vector.shape_cast %422 : vector<1x8x64xf32> to vector<8x64xf32>
    %cst_383 = arith.constant 0.666666686 : f32
    %424 = vector.broadcast %cst_383 : f32 to vector<8x64xf32>
    %425 = arith.mulf %423, %424 : vector<8x64xf32>
    %426 = vector.extract_strided_slice %419 {offsets = [1, 0, 0], sizes = [1, 8, 64], strides = [1, 1, 1]} : vector<2x8x64xf32> to vector<1x8x64xf32>
    %427 = vector.shape_cast %426 : vector<1x8x64xf32> to vector<8x64xf32>
    %cst_384 = arith.constant 0.333333343 : f32
    %428 = vector.broadcast %cst_384 : f32 to vector<8x64xf32>
    %429 = arith.mulf %427, %428 : vector<8x64xf32>
    %430 = arith.addf %425, %429 : vector<8x64xf32>
    %431 = vector.extract_strided_slice %419 {offsets = [0, 0, 0], sizes = [1, 8, 64], strides = [1, 1, 1]} : vector<2x8x64xf32> to vector<1x8x64xf32>
    %432 = vector.shape_cast %431 : vector<1x8x64xf32> to vector<8x64xf32>
    %cst_385 = arith.constant 0.333333343 : f32
    %433 = vector.broadcast %cst_385 : f32 to vector<8x64xf32>
    %434 = arith.mulf %432, %433 : vector<8x64xf32>
    %435 = vector.extract_strided_slice %419 {offsets = [1, 0, 0], sizes = [1, 8, 64], strides = [1, 1, 1]} : vector<2x8x64xf32> to vector<1x8x64xf32>
    %436 = vector.shape_cast %435 : vector<1x8x64xf32> to vector<8x64xf32>
    %cst_386 = arith.constant 0.666666686 : f32
    %437 = vector.broadcast %cst_386 : f32 to vector<8x64xf32>
    %438 = arith.mulf %436, %437 : vector<8x64xf32>
    %439 = arith.addf %434, %438 : vector<8x64xf32>
    %440 = vector.extract_strided_slice %419 {offsets = [1, 0, 0], sizes = [1, 8, 64], strides = [1, 1, 1]} : vector<2x8x64xf32> to vector<1x8x64xf32>
    %441 = vector.shape_cast %440 : vector<1x8x64xf32> to vector<8x64xf32>
    %442 = vector.shape_cast %421 : vector<8x64xf32> to vector<1x8x64xf32>
    %443 = vector.shape_cast %430 : vector<8x64xf32> to vector<1x8x64xf32>
    %444 = vector.shape_cast %439 : vector<8x64xf32> to vector<1x8x64xf32>
    %445 = vector.shape_cast %441 : vector<8x64xf32> to vector<1x8x64xf32>
    %446 = tpu.concatenate %442, %443, %444, %445 in 0 : vector<1x8x64xf32>, vector<1x8x64xf32>, vector<1x8x64xf32>, vector<1x8x64xf32> -> vector<4x8x64xf32>
    %447 = vector.shape_cast %446 : vector<4x8x64xf32> to vector<32x64xf32>
    %448 = arith.truncf %447 : vector<32x64xf32> to vector<32x64xbf16>
    %c0_387 = arith.constant 0 : index
    %c0_388 = arith.constant 0 : index
    %449 = vector.load %arg61[%c0_387, %c0_388] : memref<64x128xbf16, #tpu.memory_space<vmem>>, vector<64x128xbf16>
    %cst_389 = arith.constant dense<0.000000e+00> : vector<32x128xf32>
    %450 = tpu.matmul %448, %449, %cst_389 {dimension_numbers = #tpu.dot_dimension_numbers<[1], [0], [0], [1], [0, 0, 1, 1], [], []>} : vector<32x64xbf16>, vector<64x128xbf16>, vector<32x128xf32> -> vector<32x128xf32>
    %451 = vector.shape_cast %450 : vector<32x128xf32> to vector<4x8x128xf32>
    %cst_390 = arith.constant 0.000000e+00 : bf16
    %452 = vector.broadcast %cst_390 : bf16 to vector<1x8x128xbf16>
    %c0_391 = arith.constant 0 : index
    %c0_392 = arith.constant 0 : index
    %c0_393 = arith.constant 0 : index
    %453 = vector.load %arg80[%c0_391, %c0_392, %c0_393] : memref<6x8x128xbf16, #tpu.memory_space<vmem>>, vector<1x8x128xbf16>
    tpu.vector_store %arg80[%c0_391, %c0_392, %c0_393], %452 {strides = array<i32>} : memref<6x8x128xbf16, #tpu.memory_space<vmem>>, vector<1x8x128xbf16>,
    %c5_394 = arith.constant 5 : index
    %c0_395 = arith.constant 0 : index
    %c0_396 = arith.constant 0 : index
    %454 = vector.load %arg80[%c5_394, %c0_395, %c0_396] : memref<6x8x128xbf16, #tpu.memory_space<vmem>>, vector<1x8x128xbf16>
    tpu.vector_store %arg80[%c5_394, %c0_395, %c0_396], %452 {strides = array<i32>} : memref<6x8x128xbf16, #tpu.memory_space<vmem>>, vector<1x8x128xbf16>,
    %455 = arith.truncf %451 : vector<4x8x128xf32> to vector<4x8x128xbf16>
    %c1_397 = arith.constant 1 : index
    %c0_398 = arith.constant 0 : index
    %c0_399 = arith.constant 0 : index
    %456 = vector.load %arg80[%c1_397, %c0_398, %c0_399] : memref<6x8x128xbf16, #tpu.memory_space<vmem>>, vector<4x8x128xbf16>
    tpu.vector_store %arg80[%c1_397, %c0_398, %c0_399], %455 {strides = array<i32>} : memref<6x8x128xbf16, #tpu.memory_space<vmem>>, vector<4x8x128xbf16>,
    %c0_400 = arith.constant 0 : index
    %c0_401 = arith.constant 0 : index
    %c0_402 = arith.constant 0 : index
    %457 = vector.load %arg79[%c0_400, %c0_401, %c0_402] : memref<6x8x128xbf16, #tpu.memory_space<vmem>>, vector<4x8x128xbf16>
    %458 = vector.shape_cast %457 : vector<4x8x128xbf16> to vector<32x128xbf16>
    %c0_403 = arith.constant 0 : index
    %c0_404 = arith.constant 0 : index
    %c0_405 = arith.constant 0 : index
    %459 = vector.load %arg37[%c0_403, %c0_404, %c0_405] : memref<3x128x64xbf16, #tpu.memory_space<vmem>>, vector<1x128x64xbf16>
    %460 = vector.shape_cast %459 : vector<1x128x64xbf16> to vector<128x64xbf16>
    %cst_406 = arith.constant dense<0.000000e+00> : vector<32x64xf32>
    %461 = tpu.matmul %458, %460, %cst_406 {dimension_numbers = #tpu.dot_dimension_numbers<[1], [0], [0], [1], [0, 0, 1, 1], [], []>} : vector<32x128xbf16>, vector<128x64xbf16>, vector<32x64xf32> -> vector<32x64xf32>
    %c1_407 = arith.constant 1 : index
    %c0_408 = arith.constant 0 : index
    %c0_409 = arith.constant 0 : index
    %462 = vector.load %arg79[%c1_407, %c0_408, %c0_409] : memref<6x8x128xbf16, #tpu.memory_space<vmem>>, vector<4x8x128xbf16>
    %463 = vector.shape_cast %462 : vector<4x8x128xbf16> to vector<32x128xbf16>
    %c1_410 = arith.constant 1 : index
    %c0_411 = arith.constant 0 : index
    %c0_412 = arith.constant 0 : index
    %464 = vector.load %arg37[%c1_410, %c0_411, %c0_412] : memref<3x128x64xbf16, #tpu.memory_space<vmem>>, vector<1x128x64xbf16>
    %465 = vector.shape_cast %464 : vector<1x128x64xbf16> to vector<128x64xbf16>
    %cst_413 = arith.constant dense<0.000000e+00> : vector<32x64xf32>
    %466 = tpu.matmul %463, %465, %cst_413 {dimension_numbers = #tpu.dot_dimension_numbers<[1], [0], [0], [1], [0, 0, 1, 1], [], []>} : vector<32x128xbf16>, vector<128x64xbf16>, vector<32x64xf32> -> vector<32x64xf32>
    %467 = arith.addf %461, %466 : vector<32x64xf32>
    %c2_414 = arith.constant 2 : index
    %c0_415 = arith.constant 0 : index
    %c0_416 = arith.constant 0 : index
    %468 = vector.load %arg79[%c2_414, %c0_415, %c0_416] : memref<6x8x128xbf16, #tpu.memory_space<vmem>>, vector<4x8x128xbf16>
    %469 = vector.shape_cast %468 : vector<4x8x128xbf16> to vector<32x128xbf16>
    %c2_417 = arith.constant 2 : index
    %c0_418 = arith.constant 0 : index
    %c0_419 = arith.constant 0 : index
    %470 = vector.load %arg37[%c2_417, %c0_418, %c0_419] : memref<3x128x64xbf16, #tpu.memory_space<vmem>>, vector<1x128x64xbf16>
    %471 = vector.shape_cast %470 : vector<1x128x64xbf16> to vector<128x64xbf16>
    %cst_420 = arith.constant dense<0.000000e+00> : vector<32x64xf32>
    %472 = tpu.matmul %469, %471, %cst_420 {dimension_numbers = #tpu.dot_dimension_numbers<[1], [0], [0], [1], [0, 0, 1, 1], [], []>} : vector<32x128xbf16>, vector<128x64xbf16>, vector<32x64xf32> -> vector<32x64xf32>
    %473 = arith.addf %467, %472 : vector<32x64xf32>
    %c0_421 = arith.constant 0 : index
    %c0_422 = arith.constant 0 : index
    %c0_423 = arith.constant 0 : index
    %474 = vector.load %arg80[%c0_421, %c0_422, %c0_423] : memref<6x8x128xbf16, #tpu.memory_space<vmem>>, vector<4x8x128xbf16>
    %475 = vector.shape_cast %474 : vector<4x8x128xbf16> to vector<32x128xbf16>
    %c0_424 = arith.constant 0 : index
    %c0_425 = arith.constant 0 : index
    %c0_426 = arith.constant 0 : index
    %476 = vector.load %arg38[%c0_424, %c0_425, %c0_426] : memref<3x128x64xbf16, #tpu.memory_space<vmem>>, vector<1x128x64xbf16>
    %477 = vector.shape_cast %476 : vector<1x128x64xbf16> to vector<128x64xbf16>
    %cst_427 = arith.constant dense<0.000000e+00> : vector<32x64xf32>
    %478 = tpu.matmul %475, %477, %cst_427 {dimension_numbers = #tpu.dot_dimension_numbers<[1], [0], [0], [1], [0, 0, 1, 1], [], []>} : vector<32x128xbf16>, vector<128x64xbf16>, vector<32x64xf32> -> vector<32x64xf32>
    %479 = arith.addf %473, %478 : vector<32x64xf32>
    %c1_428 = arith.constant 1 : index
    %c0_429 = arith.constant 0 : index
    %c0_430 = arith.constant 0 : index
    %480 = vector.load %arg80[%c1_428, %c0_429, %c0_430] : memref<6x8x128xbf16, #tpu.memory_space<vmem>>, vector<4x8x128xbf16>
    %481 = vector.shape_cast %480 : vector<4x8x128xbf16> to vector<32x128xbf16>
    %c1_431 = arith.constant 1 : index
    %c0_432 = arith.constant 0 : index
    %c0_433 = arith.constant 0 : index
    %482 = vector.load %arg38[%c1_431, %c0_432, %c0_433] : memref<3x128x64xbf16, #tpu.memory_space<vmem>>, vector<1x128x64xbf16>
    %483 = vector.shape_cast %482 : vector<1x128x64xbf16> to vector<128x64xbf16>
    %cst_434 = arith.constant dense<0.000000e+00> : vector<32x64xf32>
    %484 = tpu.matmul %481, %483, %cst_434 {dimension_numbers = #tpu.dot_dimension_numbers<[1], [0], [0], [1], [0, 0, 1, 1], [], []>} : vector<32x128xbf16>, vector<128x64xbf16>, vector<32x64xf32> -> vector<32x64xf32>
    %485 = arith.addf %479, %484 : vector<32x64xf32>
    %c2_435 = arith.constant 2 : index
    %c0_436 = arith.constant 0 : index
    %c0_437 = arith.constant 0 : index
    %486 = vector.load %arg80[%c2_435, %c0_436, %c0_437] : memref<6x8x128xbf16, #tpu.memory_space<vmem>>, vector<4x8x128xbf16>
    %487 = vector.shape_cast %486 : vector<4x8x128xbf16> to vector<32x128xbf16>
    %c2_438 = arith.constant 2 : index
    %c0_439 = arith.constant 0 : index
    %c0_440 = arith.constant 0 : index
    %488 = vector.load %arg38[%c2_438, %c0_439, %c0_440] : memref<3x128x64xbf16, #tpu.memory_space<vmem>>, vector<1x128x64xbf16>
    %489 = vector.shape_cast %488 : vector<1x128x64xbf16> to vector<128x64xbf16>
    %cst_441 = arith.constant dense<0.000000e+00> : vector<32x64xf32>
    %490 = tpu.matmul %487, %489, %cst_441 {dimension_numbers = #tpu.dot_dimension_numbers<[1], [0], [0], [1], [0, 0, 1, 1], [], []>} : vector<32x128xbf16>, vector<128x64xbf16>, vector<32x64xf32> -> vector<32x64xf32>
    %491 = arith.addf %485, %490 : vector<32x64xf32>
    %492 = vector.shape_cast %491 : vector<32x64xf32> to vector<4x8x64xf32>
    %c0_442 = arith.constant 0 : index
    %c0_443 = arith.constant 0 : index
    %493 = vector.load %arg40[%c0_442, %c0_443] : memref<1x64xf32, #tpu.memory_space<vmem>>, vector<1x64xf32>
    %494 = vector.shape_cast %493 : vector<1x64xf32> to vector<1x1x64xf32>
    %495 = vector.broadcast %494 : vector<1x1x64xf32> to vector<4x8x64xf32>
    %496 = arith.mulf %492, %495 : vector<4x8x64xf32>
    %c0_444 = arith.constant 0 : index
    %c0_445 = arith.constant 0 : index
    %497 = vector.load %arg39[%c0_444, %c0_445] : memref<1x64xf32, #tpu.memory_space<vmem>>, vector<1x64xf32>
    %498 = vector.shape_cast %497 : vector<1x64xf32> to vector<1x1x64xf32>
    %499 = vector.broadcast %498 : vector<1x1x64xf32> to vector<4x8x64xf32>
    %500 = arith.addf %496, %499 : vector<4x8x64xf32>
    %cst_446 = arith.constant 0.000000e+00 : f32
    %501 = vector.broadcast %cst_446 : f32 to vector<4x8x64xf32>
    %502 = arith.maximumf %500, %501 : vector<4x8x64xf32>
    %cst_447 = arith.constant 0.000000e+00 : bf16
    %503 = vector.broadcast %cst_447 : bf16 to vector<1x8x64xbf16>
    %c0_448 = arith.constant 0 : index
    %c0_449 = arith.constant 0 : index
    %c0_450 = arith.constant 0 : index
    %504 = vector.load %arg81[%c0_448, %c0_449, %c0_450] : memref<6x8x64xbf16, #tpu.memory_space<vmem>>, vector<1x8x64xbf16>
    tpu.vector_store %arg81[%c0_448, %c0_449, %c0_450], %503 {strides = array<i32>} : memref<6x8x64xbf16, #tpu.memory_space<vmem>>, vector<1x8x64xbf16>,
    %c5_451 = arith.constant 5 : index
    %c0_452 = arith.constant 0 : index
    %c0_453 = arith.constant 0 : index
    %505 = vector.load %arg81[%c5_451, %c0_452, %c0_453] : memref<6x8x64xbf16, #tpu.memory_space<vmem>>, vector<1x8x64xbf16>
    tpu.vector_store %arg81[%c5_451, %c0_452, %c0_453], %503 {strides = array<i32>} : memref<6x8x64xbf16, #tpu.memory_space<vmem>>, vector<1x8x64xbf16>,
    %506 = arith.truncf %502 : vector<4x8x64xf32> to vector<4x8x64xbf16>
    %c1_454 = arith.constant 1 : index
    %c0_455 = arith.constant 0 : index
    %c0_456 = arith.constant 0 : index
    %507 = vector.load %arg81[%c1_454, %c0_455, %c0_456] : memref<6x8x64xbf16, #tpu.memory_space<vmem>>, vector<4x8x64xbf16>
    tpu.vector_store %arg81[%c1_454, %c0_455, %c0_456], %506 {strides = array<i32>} : memref<6x8x64xbf16, #tpu.memory_space<vmem>>, vector<4x8x64xbf16>,
    %c0_457 = arith.constant 0 : index
    %c0_458 = arith.constant 0 : index
    %c0_459 = arith.constant 0 : index
    %508 = vector.load %arg81[%c0_457, %c0_458, %c0_459] : memref<6x8x64xbf16, #tpu.memory_space<vmem>>, vector<4x8x64xbf16>
    %509 = vector.shape_cast %508 : vector<4x8x64xbf16> to vector<32x64xbf16>
    %c0_460 = arith.constant 0 : index
    %c0_461 = arith.constant 0 : index
    %c0_462 = arith.constant 0 : index
    %510 = vector.load %arg41[%c0_460, %c0_461, %c0_462] : memref<3x64x64xbf16, #tpu.memory_space<vmem>>, vector<1x64x64xbf16>
    %511 = vector.shape_cast %510 : vector<1x64x64xbf16> to vector<64x64xbf16>
    %cst_463 = arith.constant dense<0.000000e+00> : vector<32x64xf32>
    %512 = tpu.matmul %509, %511, %cst_463 {dimension_numbers = #tpu.dot_dimension_numbers<[1], [0], [0], [1], [0, 0, 1, 1], [], []>} : vector<32x64xbf16>, vector<64x64xbf16>, vector<32x64xf32> -> vector<32x64xf32>
    %c1_464 = arith.constant 1 : index
    %c0_465 = arith.constant 0 : index
    %c0_466 = arith.constant 0 : index
    %513 = vector.load %arg81[%c1_464, %c0_465, %c0_466] : memref<6x8x64xbf16, #tpu.memory_space<vmem>>, vector<4x8x64xbf16>
    %514 = vector.shape_cast %513 : vector<4x8x64xbf16> to vector<32x64xbf16>
    %c1_467 = arith.constant 1 : index
    %c0_468 = arith.constant 0 : index
    %c0_469 = arith.constant 0 : index
    %515 = vector.load %arg41[%c1_467, %c0_468, %c0_469] : memref<3x64x64xbf16, #tpu.memory_space<vmem>>, vector<1x64x64xbf16>
    %516 = vector.shape_cast %515 : vector<1x64x64xbf16> to vector<64x64xbf16>
    %cst_470 = arith.constant dense<0.000000e+00> : vector<32x64xf32>
    %517 = tpu.matmul %514, %516, %cst_470 {dimension_numbers = #tpu.dot_dimension_numbers<[1], [0], [0], [1], [0, 0, 1, 1], [], []>} : vector<32x64xbf16>, vector<64x64xbf16>, vector<32x64xf32> -> vector<32x64xf32>
    %518 = arith.addf %512, %517 : vector<32x64xf32>
    %c2_471 = arith.constant 2 : index
    %c0_472 = arith.constant 0 : index
    %c0_473 = arith.constant 0 : index
    %519 = vector.load %arg81[%c2_471, %c0_472, %c0_473] : memref<6x8x64xbf16, #tpu.memory_space<vmem>>, vector<4x8x64xbf16>
    %520 = vector.shape_cast %519 : vector<4x8x64xbf16> to vector<32x64xbf16>
    %c2_474 = arith.constant 2 : index
    %c0_475 = arith.constant 0 : index
    %c0_476 = arith.constant 0 : index
    %521 = vector.load %arg41[%c2_474, %c0_475, %c0_476] : memref<3x64x64xbf16, #tpu.memory_space<vmem>>, vector<1x64x64xbf16>
    %522 = vector.shape_cast %521 : vector<1x64x64xbf16> to vector<64x64xbf16>
    %cst_477 = arith.constant dense<0.000000e+00> : vector<32x64xf32>
    %523 = tpu.matmul %520, %522, %cst_477 {dimension_numbers = #tpu.dot_dimension_numbers<[1], [0], [0], [1], [0, 0, 1, 1], [], []>} : vector<32x64xbf16>, vector<64x64xbf16>, vector<32x64xf32> -> vector<32x64xf32>
    %524 = arith.addf %518, %523 : vector<32x64xf32>
    %525 = vector.shape_cast %524 : vector<32x64xf32> to vector<4x8x64xf32>
    %c0_478 = arith.constant 0 : index
    %c0_479 = arith.constant 0 : index
    %526 = vector.load %arg43[%c0_478, %c0_479] : memref<1x64xf32, #tpu.memory_space<vmem>>, vector<1x64xf32>
    %527 = vector.shape_cast %526 : vector<1x64xf32> to vector<1x1x64xf32>
    %528 = vector.broadcast %527 : vector<1x1x64xf32> to vector<4x8x64xf32>
    %529 = arith.mulf %525, %528 : vector<4x8x64xf32>
    %c0_480 = arith.constant 0 : index
    %c0_481 = arith.constant 0 : index
    %530 = vector.load %arg42[%c0_480, %c0_481] : memref<1x64xf32, #tpu.memory_space<vmem>>, vector<1x64xf32>
    %531 = vector.shape_cast %530 : vector<1x64xf32> to vector<1x1x64xf32>
    %532 = vector.broadcast %531 : vector<1x1x64xf32> to vector<4x8x64xf32>
    %533 = arith.addf %529, %532 : vector<4x8x64xf32>
    %cst_482 = arith.constant 0.000000e+00 : f32
    %534 = vector.broadcast %cst_482 : f32 to vector<4x8x64xf32>
    %535 = arith.maximumf %533, %534 : vector<4x8x64xf32>
    %536 = vector.extract_strided_slice %535 {offsets = [0, 0, 0], sizes = [1, 8, 64], strides = [1, 1, 1]} : vector<4x8x64xf32> to vector<1x8x64xf32>
    %537 = vector.shape_cast %536 : vector<1x8x64xf32> to vector<8x64xf32>
    %538 = vector.extract_strided_slice %535 {offsets = [0, 0, 0], sizes = [1, 8, 64], strides = [1, 1, 1]} : vector<4x8x64xf32> to vector<1x8x64xf32>
    %539 = vector.shape_cast %538 : vector<1x8x64xf32> to vector<8x64xf32>
    %cst_483 = arith.constant 0.571428597 : f32
    %540 = vector.broadcast %cst_483 : f32 to vector<8x64xf32>
    %541 = arith.mulf %539, %540 : vector<8x64xf32>
    %542 = vector.extract_strided_slice %535 {offsets = [1, 0, 0], sizes = [1, 8, 64], strides = [1, 1, 1]} : vector<4x8x64xf32> to vector<1x8x64xf32>
    %543 = vector.shape_cast %542 : vector<1x8x64xf32> to vector<8x64xf32>
    %cst_484 = arith.constant 0.428571433 : f32
    %544 = vector.broadcast %cst_484 : f32 to vector<8x64xf32>
    %545 = arith.mulf %543, %544 : vector<8x64xf32>
    %546 = arith.addf %541, %545 : vector<8x64xf32>
    %547 = vector.extract_strided_slice %535 {offsets = [0, 0, 0], sizes = [1, 8, 64], strides = [1, 1, 1]} : vector<4x8x64xf32> to vector<1x8x64xf32>
    %548 = vector.shape_cast %547 : vector<1x8x64xf32> to vector<8x64xf32>
    %cst_485 = arith.constant 0.142857149 : f32
    %549 = vector.broadcast %cst_485 : f32 to vector<8x64xf32>
    %550 = arith.mulf %548, %549 : vector<8x64xf32>
    %551 = vector.extract_strided_slice %535 {offsets = [1, 0, 0], sizes = [1, 8, 64], strides = [1, 1, 1]} : vector<4x8x64xf32> to vector<1x8x64xf32>
    %552 = vector.shape_cast %551 : vector<1x8x64xf32> to vector<8x64xf32>
    %cst_486 = arith.constant 0.857142865 : f32
    %553 = vector.broadcast %cst_486 : f32 to vector<8x64xf32>
    %554 = arith.mulf %552, %553 : vector<8x64xf32>
    %555 = arith.addf %550, %554 : vector<8x64xf32>
    %556 = vector.extract_strided_slice %535 {offsets = [1, 0, 0], sizes = [1, 8, 64], strides = [1, 1, 1]} : vector<4x8x64xf32> to vector<1x8x64xf32>
    %557 = vector.shape_cast %556 : vector<1x8x64xf32> to vector<8x64xf32>
    %cst_487 = arith.constant 0.714285731 : f32
    %558 = vector.broadcast %cst_487 : f32 to vector<8x64xf32>
    %559 = arith.mulf %557, %558 : vector<8x64xf32>
    %560 = vector.extract_strided_slice %535 {offsets = [2, 0, 0], sizes = [1, 8, 64], strides = [1, 1, 1]} : vector<4x8x64xf32> to vector<1x8x64xf32>
    %561 = vector.shape_cast %560 : vector<1x8x64xf32> to vector<8x64xf32>
    %cst_488 = arith.constant 0.285714298 : f32
    %562 = vector.broadcast %cst_488 : f32 to vector<8x64xf32>
    %563 = arith.mulf %561, %562 : vector<8x64xf32>
    %564 = arith.addf %559, %563 : vector<8x64xf32>
    %565 = vector.extract_strided_slice %535 {offsets = [1, 0, 0], sizes = [1, 8, 64], strides = [1, 1, 1]} : vector<4x8x64xf32> to vector<1x8x64xf32>
    %566 = vector.shape_cast %565 : vector<1x8x64xf32> to vector<8x64xf32>
    %cst_489 = arith.constant 0.285714298 : f32
    %567 = vector.broadcast %cst_489 : f32 to vector<8x64xf32>
    %568 = arith.mulf %566, %567 : vector<8x64xf32>
    %569 = vector.extract_strided_slice %535 {offsets = [2, 0, 0], sizes = [1, 8, 64], strides = [1, 1, 1]} : vector<4x8x64xf32> to vector<1x8x64xf32>
    %570 = vector.shape_cast %569 : vector<1x8x64xf32> to vector<8x64xf32>
    %cst_490 = arith.constant 0.714285731 : f32
    %571 = vector.broadcast %cst_490 : f32 to vector<8x64xf32>
    %572 = arith.mulf %570, %571 : vector<8x64xf32>
    %573 = arith.addf %568, %572 : vector<8x64xf32>
    %574 = vector.extract_strided_slice %535 {offsets = [2, 0, 0], sizes = [1, 8, 64], strides = [1, 1, 1]} : vector<4x8x64xf32> to vector<1x8x64xf32>
    %575 = vector.shape_cast %574 : vector<1x8x64xf32> to vector<8x64xf32>
    %cst_491 = arith.constant 0.857142865 : f32
    %576 = vector.broadcast %cst_491 : f32 to vector<8x64xf32>
    %577 = arith.mulf %575, %576 : vector<8x64xf32>
    %578 = vector.extract_strided_slice %535 {offsets = [3, 0, 0], sizes = [1, 8, 64], strides = [1, 1, 1]} : vector<4x8x64xf32> to vector<1x8x64xf32>
    %579 = vector.shape_cast %578 : vector<1x8x64xf32> to vector<8x64xf32>
    %cst_492 = arith.constant 0.142857149 : f32
    %580 = vector.broadcast %cst_492 : f32 to vector<8x64xf32>
    %581 = arith.mulf %579, %580 : vector<8x64xf32>
    %582 = arith.addf %577, %581 : vector<8x64xf32>
    %583 = vector.extract_strided_slice %535 {offsets = [2, 0, 0], sizes = [1, 8, 64], strides = [1, 1, 1]} : vector<4x8x64xf32> to vector<1x8x64xf32>
    %584 = vector.shape_cast %583 : vector<1x8x64xf32> to vector<8x64xf32>
    %cst_493 = arith.constant 0.428571433 : f32
    %585 = vector.broadcast %cst_493 : f32 to vector<8x64xf32>
    %586 = arith.mulf %584, %585 : vector<8x64xf32>
    %587 = vector.extract_strided_slice %535 {offsets = [3, 0, 0], sizes = [1, 8, 64], strides = [1, 1, 1]} : vector<4x8x64xf32> to vector<1x8x64xf32>
    %588 = vector.shape_cast %587 : vector<1x8x64xf32> to vector<8x64xf32>
    %cst_494 = arith.constant 0.571428597 : f32
    %589 = vector.broadcast %cst_494 : f32 to vector<8x64xf32>
    %590 = arith.mulf %588, %589 : vector<8x64xf32>
    %591 = arith.addf %586, %590 : vector<8x64xf32>
    %592 = vector.extract_strided_slice %535 {offsets = [3, 0, 0], sizes = [1, 8, 64], strides = [1, 1, 1]} : vector<4x8x64xf32> to vector<1x8x64xf32>
    %593 = vector.shape_cast %592 : vector<1x8x64xf32> to vector<8x64xf32>
    %594 = vector.shape_cast %537 : vector<8x64xf32> to vector<1x8x64xf32>
    %595 = vector.shape_cast %546 : vector<8x64xf32> to vector<1x8x64xf32>
    %596 = vector.shape_cast %555 : vector<8x64xf32> to vector<1x8x64xf32>
    %597 = vector.shape_cast %564 : vector<8x64xf32> to vector<1x8x64xf32>
    %598 = vector.shape_cast %573 : vector<8x64xf32> to vector<1x8x64xf32>
    %599 = vector.shape_cast %582 : vector<8x64xf32> to vector<1x8x64xf32>
    %600 = vector.shape_cast %591 : vector<8x64xf32> to vector<1x8x64xf32>
    %601 = vector.shape_cast %593 : vector<8x64xf32> to vector<1x8x64xf32>
    %602 = tpu.concatenate %594, %595, %596, %597, %598, %599, %600, %601 in 0 : vector<1x8x64xf32>, vector<1x8x64xf32>, vector<1x8x64xf32>, vector<1x8x64xf32>, vector<1x8x64xf32>, vector<1x8x64xf32>, vector<1x8x64xf32>, vector<1x8x64xf32> -> vector<8x8x64xf32>
    %603 = vector.shape_cast %602 : vector<8x8x64xf32> to vector<64x64xf32>
    %604 = arith.truncf %603 : vector<64x64xf32> to vector<64x64xbf16>
    %c0_495 = arith.constant 0 : index
    %c0_496 = arith.constant 0 : index
    %605 = vector.load %arg62[%c0_495, %c0_496] : memref<64x128xbf16, #tpu.memory_space<vmem>>, vector<64x128xbf16>
    %cst_497 = arith.constant dense<0.000000e+00> : vector<64x128xf32>
    %606 = tpu.matmul %604, %605, %cst_497 {dimension_numbers = #tpu.dot_dimension_numbers<[1], [0], [0], [1], [0, 0, 1, 1], [], []>} : vector<64x64xbf16>, vector<64x128xbf16>, vector<64x128xf32> -> vector<64x128xf32>
    %607 = vector.shape_cast %606 : vector<64x128xf32> to vector<8x8x128xf32>
    %cst_498 = arith.constant 0.000000e+00 : bf16
    %608 = vector.broadcast %cst_498 : bf16 to vector<1x8x128xbf16>
    %c0_499 = arith.constant 0 : index
    %c0_500 = arith.constant 0 : index
    %c0_501 = arith.constant 0 : index
    %609 = vector.load %arg83[%c0_499, %c0_500, %c0_501] : memref<10x8x128xbf16, #tpu.memory_space<vmem>>, vector<1x8x128xbf16>
    tpu.vector_store %arg83[%c0_499, %c0_500, %c0_501], %608 {strides = array<i32>} : memref<10x8x128xbf16, #tpu.memory_space<vmem>>, vector<1x8x128xbf16>,
    %c9_502 = arith.constant 9 : index
    %c0_503 = arith.constant 0 : index
    %c0_504 = arith.constant 0 : index
    %610 = vector.load %arg83[%c9_502, %c0_503, %c0_504] : memref<10x8x128xbf16, #tpu.memory_space<vmem>>, vector<1x8x128xbf16>
    tpu.vector_store %arg83[%c9_502, %c0_503, %c0_504], %608 {strides = array<i32>} : memref<10x8x128xbf16, #tpu.memory_space<vmem>>, vector<1x8x128xbf16>,
    %611 = arith.truncf %607 : vector<8x8x128xf32> to vector<8x8x128xbf16>
    %c1_505 = arith.constant 1 : index
    %c0_506 = arith.constant 0 : index
    %c0_507 = arith.constant 0 : index
    %612 = vector.load %arg83[%c1_505, %c0_506, %c0_507] : memref<10x8x128xbf16, #tpu.memory_space<vmem>>, vector<8x8x128xbf16>
    tpu.vector_store %arg83[%c1_505, %c0_506, %c0_507], %611 {strides = array<i32>} : memref<10x8x128xbf16, #tpu.memory_space<vmem>>, vector<8x8x128xbf16>,
    %c0_508 = arith.constant 0 : index
    %c0_509 = arith.constant 0 : index
    %c0_510 = arith.constant 0 : index
    %613 = vector.load %arg82[%c0_508, %c0_509, %c0_510] : memref<10x8x128xbf16, #tpu.memory_space<vmem>>, vector<8x8x128xbf16>
    %614 = vector.shape_cast %613 : vector<8x8x128xbf16> to vector<64x128xbf16>
    %c0_511 = arith.constant 0 : index
    %c0_512 = arith.constant 0 : index
    %c0_513 = arith.constant 0 : index
    %615 = vector.load %arg44[%c0_511, %c0_512, %c0_513] : memref<3x128x64xbf16, #tpu.memory_space<vmem>>, vector<1x128x64xbf16>
    %616 = vector.shape_cast %615 : vector<1x128x64xbf16> to vector<128x64xbf16>
    %cst_514 = arith.constant dense<0.000000e+00> : vector<64x64xf32>
    %617 = tpu.matmul %614, %616, %cst_514 {dimension_numbers = #tpu.dot_dimension_numbers<[1], [0], [0], [1], [0, 0, 1, 1], [], []>} : vector<64x128xbf16>, vector<128x64xbf16>, vector<64x64xf32> -> vector<64x64xf32>
    %c1_515 = arith.constant 1 : index
    %c0_516 = arith.constant 0 : index
    %c0_517 = arith.constant 0 : index
    %618 = vector.load %arg82[%c1_515, %c0_516, %c0_517] : memref<10x8x128xbf16, #tpu.memory_space<vmem>>, vector<8x8x128xbf16>
    %619 = vector.shape_cast %618 : vector<8x8x128xbf16> to vector<64x128xbf16>
    %c1_518 = arith.constant 1 : index
    %c0_519 = arith.constant 0 : index
    %c0_520 = arith.constant 0 : index
    %620 = vector.load %arg44[%c1_518, %c0_519, %c0_520] : memref<3x128x64xbf16, #tpu.memory_space<vmem>>, vector<1x128x64xbf16>
    %621 = vector.shape_cast %620 : vector<1x128x64xbf16> to vector<128x64xbf16>
    %cst_521 = arith.constant dense<0.000000e+00> : vector<64x64xf32>
    %622 = tpu.matmul %619, %621, %cst_521 {dimension_numbers = #tpu.dot_dimension_numbers<[1], [0], [0], [1], [0, 0, 1, 1], [], []>} : vector<64x128xbf16>, vector<128x64xbf16>, vector<64x64xf32> -> vector<64x64xf32>
    %623 = arith.addf %617, %622 : vector<64x64xf32>
    %c2_522 = arith.constant 2 : index
    %c0_523 = arith.constant 0 : index
    %c0_524 = arith.constant 0 : index
    %624 = vector.load %arg82[%c2_522, %c0_523, %c0_524] : memref<10x8x128xbf16, #tpu.memory_space<vmem>>, vector<8x8x128xbf16>
    %625 = vector.shape_cast %624 : vector<8x8x128xbf16> to vector<64x128xbf16>
    %c2_525 = arith.constant 2 : index
    %c0_526 = arith.constant 0 : index
    %c0_527 = arith.constant 0 : index
    %626 = vector.load %arg44[%c2_525, %c0_526, %c0_527] : memref<3x128x64xbf16, #tpu.memory_space<vmem>>, vector<1x128x64xbf16>
    %627 = vector.shape_cast %626 : vector<1x128x64xbf16> to vector<128x64xbf16>
    %cst_528 = arith.constant dense<0.000000e+00> : vector<64x64xf32>
    %628 = tpu.matmul %625, %627, %cst_528 {dimension_numbers = #tpu.dot_dimension_numbers<[1], [0], [0], [1], [0, 0, 1, 1], [], []>} : vector<64x128xbf16>, vector<128x64xbf16>, vector<64x64xf32> -> vector<64x64xf32>
    %629 = arith.addf %623, %628 : vector<64x64xf32>
    %c0_529 = arith.constant 0 : index
    %c0_530 = arith.constant 0 : index
    %c0_531 = arith.constant 0 : index
    %630 = vector.load %arg83[%c0_529, %c0_530, %c0_531] : memref<10x8x128xbf16, #tpu.memory_space<vmem>>, vector<8x8x128xbf16>
    %631 = vector.shape_cast %630 : vector<8x8x128xbf16> to vector<64x128xbf16>
    %c0_532 = arith.constant 0 : index
    %c0_533 = arith.constant 0 : index
    %c0_534 = arith.constant 0 : index
    %632 = vector.load %arg45[%c0_532, %c0_533, %c0_534] : memref<3x128x64xbf16, #tpu.memory_space<vmem>>, vector<1x128x64xbf16>
    %633 = vector.shape_cast %632 : vector<1x128x64xbf16> to vector<128x64xbf16>
    %cst_535 = arith.constant dense<0.000000e+00> : vector<64x64xf32>
    %634 = tpu.matmul %631, %633, %cst_535 {dimension_numbers = #tpu.dot_dimension_numbers<[1], [0], [0], [1], [0, 0, 1, 1], [], []>} : vector<64x128xbf16>, vector<128x64xbf16>, vector<64x64xf32> -> vector<64x64xf32>
    %635 = arith.addf %629, %634 : vector<64x64xf32>
    %c1_536 = arith.constant 1 : index
    %c0_537 = arith.constant 0 : index
    %c0_538 = arith.constant 0 : index
    %636 = vector.load %arg83[%c1_536, %c0_537, %c0_538] : memref<10x8x128xbf16, #tpu.memory_space<vmem>>, vector<8x8x128xbf16>
    %637 = vector.shape_cast %636 : vector<8x8x128xbf16> to vector<64x128xbf16>
    %c1_539 = arith.constant 1 : index
    %c0_540 = arith.constant 0 : index
    %c0_541 = arith.constant 0 : index
    %638 = vector.load %arg45[%c1_539, %c0_540, %c0_541] : memref<3x128x64xbf16, #tpu.memory_space<vmem>>, vector<1x128x64xbf16>
    %639 = vector.shape_cast %638 : vector<1x128x64xbf16> to vector<128x64xbf16>
    %cst_542 = arith.constant dense<0.000000e+00> : vector<64x64xf32>
    %640 = tpu.matmul %637, %639, %cst_542 {dimension_numbers = #tpu.dot_dimension_numbers<[1], [0], [0], [1], [0, 0, 1, 1], [], []>} : vector<64x128xbf16>, vector<128x64xbf16>, vector<64x64xf32> -> vector<64x64xf32>
    %641 = arith.addf %635, %640 : vector<64x64xf32>
    %c2_543 = arith.constant 2 : index
    %c0_544 = arith.constant 0 : index
    %c0_545 = arith.constant 0 : index
    %642 = vector.load %arg83[%c2_543, %c0_544, %c0_545] : memref<10x8x128xbf16, #tpu.memory_space<vmem>>, vector<8x8x128xbf16>
    %643 = vector.shape_cast %642 : vector<8x8x128xbf16> to vector<64x128xbf16>
    %c2_546 = arith.constant 2 : index
    %c0_547 = arith.constant 0 : index
    %c0_548 = arith.constant 0 : index
    %644 = vector.load %arg45[%c2_546, %c0_547, %c0_548] : memref<3x128x64xbf16, #tpu.memory_space<vmem>>, vector<1x128x64xbf16>
    %645 = vector.shape_cast %644 : vector<1x128x64xbf16> to vector<128x64xbf16>
    %cst_549 = arith.constant dense<0.000000e+00> : vector<64x64xf32>
    %646 = tpu.matmul %643, %645, %cst_549 {dimension_numbers = #tpu.dot_dimension_numbers<[1], [0], [0], [1], [0, 0, 1, 1], [], []>} : vector<64x128xbf16>, vector<128x64xbf16>, vector<64x64xf32> -> vector<64x64xf32>
    %647 = arith.addf %641, %646 : vector<64x64xf32>
    %648 = vector.shape_cast %647 : vector<64x64xf32> to vector<8x8x64xf32>
    %c0_550 = arith.constant 0 : index
    %c0_551 = arith.constant 0 : index
    %649 = vector.load %arg47[%c0_550, %c0_551] : memref<1x64xf32, #tpu.memory_space<vmem>>, vector<1x64xf32>
    %650 = vector.shape_cast %649 : vector<1x64xf32> to vector<1x1x64xf32>
    %651 = vector.broadcast %650 : vector<1x1x64xf32> to vector<8x8x64xf32>
    %652 = arith.mulf %648, %651 : vector<8x8x64xf32>
    %c0_552 = arith.constant 0 : index
    %c0_553 = arith.constant 0 : index
    %653 = vector.load %arg46[%c0_552, %c0_553] : memref<1x64xf32, #tpu.memory_space<vmem>>, vector<1x64xf32>
    %654 = vector.shape_cast %653 : vector<1x64xf32> to vector<1x1x64xf32>
    %655 = vector.broadcast %654 : vector<1x1x64xf32> to vector<8x8x64xf32>
    %656 = arith.addf %652, %655 : vector<8x8x64xf32>
    %cst_554 = arith.constant 0.000000e+00 : f32
    %657 = vector.broadcast %cst_554 : f32 to vector<8x8x64xf32>
    %658 = arith.maximumf %656, %657 : vector<8x8x64xf32>
    %cst_555 = arith.constant 0.000000e+00 : bf16
    %659 = vector.broadcast %cst_555 : bf16 to vector<1x8x64xbf16>
    %c0_556 = arith.constant 0 : index
    %c0_557 = arith.constant 0 : index
    %c0_558 = arith.constant 0 : index
    %660 = vector.load %arg84[%c0_556, %c0_557, %c0_558] : memref<10x8x64xbf16, #tpu.memory_space<vmem>>, vector<1x8x64xbf16>
    tpu.vector_store %arg84[%c0_556, %c0_557, %c0_558], %659 {strides = array<i32>} : memref<10x8x64xbf16, #tpu.memory_space<vmem>>, vector<1x8x64xbf16>,
    %c9_559 = arith.constant 9 : index
    %c0_560 = arith.constant 0 : index
    %c0_561 = arith.constant 0 : index
    %661 = vector.load %arg84[%c9_559, %c0_560, %c0_561] : memref<10x8x64xbf16, #tpu.memory_space<vmem>>, vector<1x8x64xbf16>
    tpu.vector_store %arg84[%c9_559, %c0_560, %c0_561], %659 {strides = array<i32>} : memref<10x8x64xbf16, #tpu.memory_space<vmem>>, vector<1x8x64xbf16>,
    %662 = arith.truncf %658 : vector<8x8x64xf32> to vector<8x8x64xbf16>
    %c1_562 = arith.constant 1 : index
    %c0_563 = arith.constant 0 : index
    %c0_564 = arith.constant 0 : index
    %663 = vector.load %arg84[%c1_562, %c0_563, %c0_564] : memref<10x8x64xbf16, #tpu.memory_space<vmem>>, vector<8x8x64xbf16>
    tpu.vector_store %arg84[%c1_562, %c0_563, %c0_564], %662 {strides = array<i32>} : memref<10x8x64xbf16, #tpu.memory_space<vmem>>, vector<8x8x64xbf16>,
    %c0_565 = arith.constant 0 : index
    %c0_566 = arith.constant 0 : index
    %c0_567 = arith.constant 0 : index
    %664 = vector.load %arg84[%c0_565, %c0_566, %c0_567] : memref<10x8x64xbf16, #tpu.memory_space<vmem>>, vector<8x8x64xbf16>
    %665 = vector.shape_cast %664 : vector<8x8x64xbf16> to vector<64x64xbf16>
    %c0_568 = arith.constant 0 : index
    %c0_569 = arith.constant 0 : index
    %c0_570 = arith.constant 0 : index
    %666 = vector.load %arg48[%c0_568, %c0_569, %c0_570] : memref<3x64x64xbf16, #tpu.memory_space<vmem>>, vector<1x64x64xbf16>
    %667 = vector.shape_cast %666 : vector<1x64x64xbf16> to vector<64x64xbf16>
    %cst_571 = arith.constant dense<0.000000e+00> : vector<64x64xf32>
    %668 = tpu.matmul %665, %667, %cst_571 {dimension_numbers = #tpu.dot_dimension_numbers<[1], [0], [0], [1], [0, 0, 1, 1], [], []>} : vector<64x64xbf16>, vector<64x64xbf16>, vector<64x64xf32> -> vector<64x64xf32>
    %c1_572 = arith.constant 1 : index
    %c0_573 = arith.constant 0 : index
    %c0_574 = arith.constant 0 : index
    %669 = vector.load %arg84[%c1_572, %c0_573, %c0_574] : memref<10x8x64xbf16, #tpu.memory_space<vmem>>, vector<8x8x64xbf16>
    %670 = vector.shape_cast %669 : vector<8x8x64xbf16> to vector<64x64xbf16>
    %c1_575 = arith.constant 1 : index
    %c0_576 = arith.constant 0 : index
    %c0_577 = arith.constant 0 : index
    %671 = vector.load %arg48[%c1_575, %c0_576, %c0_577] : memref<3x64x64xbf16, #tpu.memory_space<vmem>>, vector<1x64x64xbf16>
    %672 = vector.shape_cast %671 : vector<1x64x64xbf16> to vector<64x64xbf16>
    %cst_578 = arith.constant dense<0.000000e+00> : vector<64x64xf32>
    %673 = tpu.matmul %670, %672, %cst_578 {dimension_numbers = #tpu.dot_dimension_numbers<[1], [0], [0], [1], [0, 0, 1, 1], [], []>} : vector<64x64xbf16>, vector<64x64xbf16>, vector<64x64xf32> -> vector<64x64xf32>
    %674 = arith.addf %668, %673 : vector<64x64xf32>
    %c2_579 = arith.constant 2 : index
    %c0_580 = arith.constant 0 : index
    %c0_581 = arith.constant 0 : index
    %675 = vector.load %arg84[%c2_579, %c0_580, %c0_581] : memref<10x8x64xbf16, #tpu.memory_space<vmem>>, vector<8x8x64xbf16>
    %676 = vector.shape_cast %675 : vector<8x8x64xbf16> to vector<64x64xbf16>
    %c2_582 = arith.constant 2 : index
    %c0_583 = arith.constant 0 : index
    %c0_584 = arith.constant 0 : index
    %677 = vector.load %arg48[%c2_582, %c0_583, %c0_584] : memref<3x64x64xbf16, #tpu.memory_space<vmem>>, vector<1x64x64xbf16>
    %678 = vector.shape_cast %677 : vector<1x64x64xbf16> to vector<64x64xbf16>
    %cst_585 = arith.constant dense<0.000000e+00> : vector<64x64xf32>
    %679 = tpu.matmul %676, %678, %cst_585 {dimension_numbers = #tpu.dot_dimension_numbers<[1], [0], [0], [1], [0, 0, 1, 1], [], []>} : vector<64x64xbf16>, vector<64x64xbf16>, vector<64x64xf32> -> vector<64x64xf32>
    %680 = arith.addf %674, %679 : vector<64x64xf32>
    %681 = vector.shape_cast %680 : vector<64x64xf32> to vector<8x8x64xf32>
    %c0_586 = arith.constant 0 : index
    %c0_587 = arith.constant 0 : index
    %682 = vector.load %arg50[%c0_586, %c0_587] : memref<1x64xf32, #tpu.memory_space<vmem>>, vector<1x64xf32>
    %683 = vector.shape_cast %682 : vector<1x64xf32> to vector<1x1x64xf32>
    %684 = vector.broadcast %683 : vector<1x1x64xf32> to vector<8x8x64xf32>
    %685 = arith.mulf %681, %684 : vector<8x8x64xf32>
    %c0_588 = arith.constant 0 : index
    %c0_589 = arith.constant 0 : index
    %686 = vector.load %arg49[%c0_588, %c0_589] : memref<1x64xf32, #tpu.memory_space<vmem>>, vector<1x64xf32>
    %687 = vector.shape_cast %686 : vector<1x64xf32> to vector<1x1x64xf32>
    %688 = vector.broadcast %687 : vector<1x1x64xf32> to vector<8x8x64xf32>
    %689 = arith.addf %685, %688 : vector<8x8x64xf32>
    %cst_590 = arith.constant 0.000000e+00 : f32
    %690 = vector.broadcast %cst_590 : f32 to vector<8x8x64xf32>
    %691 = arith.maximumf %689, %690 : vector<8x8x64xf32>
    %692 = vector.extract_strided_slice %691 {offsets = [0, 0, 0], sizes = [1, 8, 64], strides = [1, 1, 1]} : vector<8x8x64xf32> to vector<1x8x64xf32>
    %693 = vector.shape_cast %692 : vector<1x8x64xf32> to vector<8x64xf32>
    %694 = vector.extract_strided_slice %691 {offsets = [0, 0, 0], sizes = [1, 8, 64], strides = [1, 1, 1]} : vector<8x8x64xf32> to vector<1x8x64xf32>
    %695 = vector.shape_cast %694 : vector<1x8x64xf32> to vector<8x64xf32>
    %cst_591 = arith.constant 0.533333361 : f32
    %696 = vector.broadcast %cst_591 : f32 to vector<8x64xf32>
    %697 = arith.mulf %695, %696 : vector<8x64xf32>
    %698 = vector.extract_strided_slice %691 {offsets = [1, 0, 0], sizes = [1, 8, 64], strides = [1, 1, 1]} : vector<8x8x64xf32> to vector<1x8x64xf32>
    %699 = vector.shape_cast %698 : vector<1x8x64xf32> to vector<8x64xf32>
    %cst_592 = arith.constant 0.466666669 : f32
    %700 = vector.broadcast %cst_592 : f32 to vector<8x64xf32>
    %701 = arith.mulf %699, %700 : vector<8x64xf32>
    %702 = arith.addf %697, %701 : vector<8x64xf32>
    %703 = vector.extract_strided_slice %691 {offsets = [0, 0, 0], sizes = [1, 8, 64], strides = [1, 1, 1]} : vector<8x8x64xf32> to vector<1x8x64xf32>
    %704 = vector.shape_cast %703 : vector<1x8x64xf32> to vector<8x64xf32>
    %cst_593 = arith.constant 0.0666666701 : f32
    %705 = vector.broadcast %cst_593 : f32 to vector<8x64xf32>
    %706 = arith.mulf %704, %705 : vector<8x64xf32>
    %707 = vector.extract_strided_slice %691 {offsets = [1, 0, 0], sizes = [1, 8, 64], strides = [1, 1, 1]} : vector<8x8x64xf32> to vector<1x8x64xf32>
    %708 = vector.shape_cast %707 : vector<1x8x64xf32> to vector<8x64xf32>
    %cst_594 = arith.constant 0.933333337 : f32
    %709 = vector.broadcast %cst_594 : f32 to vector<8x64xf32>
    %710 = arith.mulf %708, %709 : vector<8x64xf32>
    %711 = arith.addf %706, %710 : vector<8x64xf32>
    %712 = vector.extract_strided_slice %691 {offsets = [1, 0, 0], sizes = [1, 8, 64], strides = [1, 1, 1]} : vector<8x8x64xf32> to vector<1x8x64xf32>
    %713 = vector.shape_cast %712 : vector<1x8x64xf32> to vector<8x64xf32>
    %cst_595 = arith.constant 6.000000e-01 : f32
    %714 = vector.broadcast %cst_595 : f32 to vector<8x64xf32>
    %715 = arith.mulf %713, %714 : vector<8x64xf32>
    %716 = vector.extract_strided_slice %691 {offsets = [2, 0, 0], sizes = [1, 8, 64], strides = [1, 1, 1]} : vector<8x8x64xf32> to vector<1x8x64xf32>
    %717 = vector.shape_cast %716 : vector<1x8x64xf32> to vector<8x64xf32>
    %cst_596 = arith.constant 4.000000e-01 : f32
    %718 = vector.broadcast %cst_596 : f32 to vector<8x64xf32>
    %719 = arith.mulf %717, %718 : vector<8x64xf32>
    %720 = arith.addf %715, %719 : vector<8x64xf32>
    %721 = vector.extract_strided_slice %691 {offsets = [1, 0, 0], sizes = [1, 8, 64], strides = [1, 1, 1]} : vector<8x8x64xf32> to vector<1x8x64xf32>
    %722 = vector.shape_cast %721 : vector<1x8x64xf32> to vector<8x64xf32>
    %cst_597 = arith.constant 0.13333334 : f32
    %723 = vector.broadcast %cst_597 : f32 to vector<8x64xf32>
    %724 = arith.mulf %722, %723 : vector<8x64xf32>
    %725 = vector.extract_strided_slice %691 {offsets = [2, 0, 0], sizes = [1, 8, 64], strides = [1, 1, 1]} : vector<8x8x64xf32> to vector<1x8x64xf32>
    %726 = vector.shape_cast %725 : vector<1x8x64xf32> to vector<8x64xf32>
    %cst_598 = arith.constant 0.866666674 : f32
    %727 = vector.broadcast %cst_598 : f32 to vector<8x64xf32>
    %728 = arith.mulf %726, %727 : vector<8x64xf32>
    %729 = arith.addf %724, %728 : vector<8x64xf32>
    %730 = vector.extract_strided_slice %691 {offsets = [2, 0, 0], sizes = [1, 8, 64], strides = [1, 1, 1]} : vector<8x8x64xf32> to vector<1x8x64xf32>
    %731 = vector.shape_cast %730 : vector<1x8x64xf32> to vector<8x64xf32>
    %cst_599 = arith.constant 0.666666686 : f32
    %732 = vector.broadcast %cst_599 : f32 to vector<8x64xf32>
    %733 = arith.mulf %731, %732 : vector<8x64xf32>
    %734 = vector.extract_strided_slice %691 {offsets = [3, 0, 0], sizes = [1, 8, 64], strides = [1, 1, 1]} : vector<8x8x64xf32> to vector<1x8x64xf32>
    %735 = vector.shape_cast %734 : vector<1x8x64xf32> to vector<8x64xf32>
    %cst_600 = arith.constant 0.333333343 : f32
    %736 = vector.broadcast %cst_600 : f32 to vector<8x64xf32>
    %737 = arith.mulf %735, %736 : vector<8x64xf32>
    %738 = arith.addf %733, %737 : vector<8x64xf32>
    %739 = vector.extract_strided_slice %691 {offsets = [2, 0, 0], sizes = [1, 8, 64], strides = [1, 1, 1]} : vector<8x8x64xf32> to vector<1x8x64xf32>
    %740 = vector.shape_cast %739 : vector<1x8x64xf32> to vector<8x64xf32>
    %cst_601 = arith.constant 2.000000e-01 : f32
    %741 = vector.broadcast %cst_601 : f32 to vector<8x64xf32>
    %742 = arith.mulf %740, %741 : vector<8x64xf32>
    %743 = vector.extract_strided_slice %691 {offsets = [3, 0, 0], sizes = [1, 8, 64], strides = [1, 1, 1]} : vector<8x8x64xf32> to vector<1x8x64xf32>
    %744 = vector.shape_cast %743 : vector<1x8x64xf32> to vector<8x64xf32>
    %cst_602 = arith.constant 8.000000e-01 : f32
    %745 = vector.broadcast %cst_602 : f32 to vector<8x64xf32>
    %746 = arith.mulf %744, %745 : vector<8x64xf32>
    %747 = arith.addf %742, %746 : vector<8x64xf32>
    %748 = vector.extract_strided_slice %691 {offsets = [3, 0, 0], sizes = [1, 8, 64], strides = [1, 1, 1]} : vector<8x8x64xf32> to vector<1x8x64xf32>
    %749 = vector.shape_cast %748 : vector<1x8x64xf32> to vector<8x64xf32>
    %cst_603 = arith.constant 0.733333349 : f32
    %750 = vector.broadcast %cst_603 : f32 to vector<8x64xf32>
    %751 = arith.mulf %749, %750 : vector<8x64xf32>
    %752 = vector.extract_strided_slice %691 {offsets = [4, 0, 0], sizes = [1, 8, 64], strides = [1, 1, 1]} : vector<8x8x64xf32> to vector<1x8x64xf32>
    %753 = vector.shape_cast %752 : vector<1x8x64xf32> to vector<8x64xf32>
    %cst_604 = arith.constant 0.266666681 : f32
    %754 = vector.broadcast %cst_604 : f32 to vector<8x64xf32>
    %755 = arith.mulf %753, %754 : vector<8x64xf32>
    %756 = arith.addf %751, %755 : vector<8x64xf32>
    %757 = vector.extract_strided_slice %691 {offsets = [3, 0, 0], sizes = [1, 8, 64], strides = [1, 1, 1]} : vector<8x8x64xf32> to vector<1x8x64xf32>
    %758 = vector.shape_cast %757 : vector<1x8x64xf32> to vector<8x64xf32>
    %cst_605 = arith.constant 0.266666681 : f32
    %759 = vector.broadcast %cst_605 : f32 to vector<8x64xf32>
    %760 = arith.mulf %758, %759 : vector<8x64xf32>
    %761 = vector.extract_strided_slice %691 {offsets = [4, 0, 0], sizes = [1, 8, 64], strides = [1, 1, 1]} : vector<8x8x64xf32> to vector<1x8x64xf32>
    %762 = vector.shape_cast %761 : vector<1x8x64xf32> to vector<8x64xf32>
    %cst_606 = arith.constant 0.733333349 : f32
    %763 = vector.broadcast %cst_606 : f32 to vector<8x64xf32>
    %764 = arith.mulf %762, %763 : vector<8x64xf32>
    %765 = arith.addf %760, %764 : vector<8x64xf32>
    %766 = vector.extract_strided_slice %691 {offsets = [4, 0, 0], sizes = [1, 8, 64], strides = [1, 1, 1]} : vector<8x8x64xf32> to vector<1x8x64xf32>
    %767 = vector.shape_cast %766 : vector<1x8x64xf32> to vector<8x64xf32>
    %cst_607 = arith.constant 8.000000e-01 : f32
    %768 = vector.broadcast %cst_607 : f32 to vector<8x64xf32>
    %769 = arith.mulf %767, %768 : vector<8x64xf32>
    %770 = vector.extract_strided_slice %691 {offsets = [5, 0, 0], sizes = [1, 8, 64], strides = [1, 1, 1]} : vector<8x8x64xf32> to vector<1x8x64xf32>
    %771 = vector.shape_cast %770 : vector<1x8x64xf32> to vector<8x64xf32>
    %cst_608 = arith.constant 2.000000e-01 : f32
    %772 = vector.broadcast %cst_608 : f32 to vector<8x64xf32>
    %773 = arith.mulf %771, %772 : vector<8x64xf32>
    %774 = arith.addf %769, %773 : vector<8x64xf32>
    %775 = vector.extract_strided_slice %691 {offsets = [4, 0, 0], sizes = [1, 8, 64], strides = [1, 1, 1]} : vector<8x8x64xf32> to vector<1x8x64xf32>
    %776 = vector.shape_cast %775 : vector<1x8x64xf32> to vector<8x64xf32>
    %cst_609 = arith.constant 0.333333343 : f32
    %777 = vector.broadcast %cst_609 : f32 to vector<8x64xf32>
    %778 = arith.mulf %776, %777 : vector<8x64xf32>
    %779 = vector.extract_strided_slice %691 {offsets = [5, 0, 0], sizes = [1, 8, 64], strides = [1, 1, 1]} : vector<8x8x64xf32> to vector<1x8x64xf32>
    %780 = vector.shape_cast %779 : vector<1x8x64xf32> to vector<8x64xf32>
    %cst_610 = arith.constant 0.666666686 : f32
    %781 = vector.broadcast %cst_610 : f32 to vector<8x64xf32>
    %782 = arith.mulf %780, %781 : vector<8x64xf32>
    %783 = arith.addf %778, %782 : vector<8x64xf32>
    %784 = vector.extract_strided_slice %691 {offsets = [5, 0, 0], sizes = [1, 8, 64], strides = [1, 1, 1]} : vector<8x8x64xf32> to vector<1x8x64xf32>
    %785 = vector.shape_cast %784 : vector<1x8x64xf32> to vector<8x64xf32>
    %cst_611 = arith.constant 0.866666674 : f32
    %786 = vector.broadcast %cst_611 : f32 to vector<8x64xf32>
    %787 = arith.mulf %785, %786 : vector<8x64xf32>
    %788 = vector.extract_strided_slice %691 {offsets = [6, 0, 0], sizes = [1, 8, 64], strides = [1, 1, 1]} : vector<8x8x64xf32> to vector<1x8x64xf32>
    %789 = vector.shape_cast %788 : vector<1x8x64xf32> to vector<8x64xf32>
    %cst_612 = arith.constant 0.13333334 : f32
    %790 = vector.broadcast %cst_612 : f32 to vector<8x64xf32>
    %791 = arith.mulf %789, %790 : vector<8x64xf32>
    %792 = arith.addf %787, %791 : vector<8x64xf32>
    %793 = vector.extract_strided_slice %691 {offsets = [5, 0, 0], sizes = [1, 8, 64], strides = [1, 1, 1]} : vector<8x8x64xf32> to vector<1x8x64xf32>
    %794 = vector.shape_cast %793 : vector<1x8x64xf32> to vector<8x64xf32>
    %cst_613 = arith.constant 4.000000e-01 : f32
    %795 = vector.broadcast %cst_613 : f32 to vector<8x64xf32>
    %796 = arith.mulf %794, %795 : vector<8x64xf32>
    %797 = vector.extract_strided_slice %691 {offsets = [6, 0, 0], sizes = [1, 8, 64], strides = [1, 1, 1]} : vector<8x8x64xf32> to vector<1x8x64xf32>
    %798 = vector.shape_cast %797 : vector<1x8x64xf32> to vector<8x64xf32>
    %cst_614 = arith.constant 6.000000e-01 : f32
    %799 = vector.broadcast %cst_614 : f32 to vector<8x64xf32>
    %800 = arith.mulf %798, %799 : vector<8x64xf32>
    %801 = arith.addf %796, %800 : vector<8x64xf32>
    %802 = vector.extract_strided_slice %691 {offsets = [6, 0, 0], sizes = [1, 8, 64], strides = [1, 1, 1]} : vector<8x8x64xf32> to vector<1x8x64xf32>
    %803 = vector.shape_cast %802 : vector<1x8x64xf32> to vector<8x64xf32>
    %cst_615 = arith.constant 0.933333337 : f32
    %804 = vector.broadcast %cst_615 : f32 to vector<8x64xf32>
    %805 = arith.mulf %803, %804 : vector<8x64xf32>
    %806 = vector.extract_strided_slice %691 {offsets = [7, 0, 0], sizes = [1, 8, 64], strides = [1, 1, 1]} : vector<8x8x64xf32> to vector<1x8x64xf32>
    %807 = vector.shape_cast %806 : vector<1x8x64xf32> to vector<8x64xf32>
    %cst_616 = arith.constant 0.0666666701 : f32
    %808 = vector.broadcast %cst_616 : f32 to vector<8x64xf32>
    %809 = arith.mulf %807, %808 : vector<8x64xf32>
    %810 = arith.addf %805, %809 : vector<8x64xf32>
    %811 = vector.extract_strided_slice %691 {offsets = [6, 0, 0], sizes = [1, 8, 64], strides = [1, 1, 1]} : vector<8x8x64xf32> to vector<1x8x64xf32>
    %812 = vector.shape_cast %811 : vector<1x8x64xf32> to vector<8x64xf32>
    %cst_617 = arith.constant 0.466666669 : f32
    %813 = vector.broadcast %cst_617 : f32 to vector<8x64xf32>
    %814 = arith.mulf %812, %813 : vector<8x64xf32>
    %815 = vector.extract_strided_slice %691 {offsets = [7, 0, 0], sizes = [1, 8, 64], strides = [1, 1, 1]} : vector<8x8x64xf32> to vector<1x8x64xf32>
    %816 = vector.shape_cast %815 : vector<1x8x64xf32> to vector<8x64xf32>
    %cst_618 = arith.constant 0.533333361 : f32
    %817 = vector.broadcast %cst_618 : f32 to vector<8x64xf32>
    %818 = arith.mulf %816, %817 : vector<8x64xf32>
    %819 = arith.addf %814, %818 : vector<8x64xf32>
    %820 = vector.extract_strided_slice %691 {offsets = [7, 0, 0], sizes = [1, 8, 64], strides = [1, 1, 1]} : vector<8x8x64xf32> to vector<1x8x64xf32>
    %821 = vector.shape_cast %820 : vector<1x8x64xf32> to vector<8x64xf32>
    %822 = vector.shape_cast %693 : vector<8x64xf32> to vector<1x8x64xf32>
    %823 = vector.shape_cast %702 : vector<8x64xf32> to vector<1x8x64xf32>
    %824 = vector.shape_cast %711 : vector<8x64xf32> to vector<1x8x64xf32>
    %825 = vector.shape_cast %720 : vector<8x64xf32> to vector<1x8x64xf32>
    %826 = vector.shape_cast %729 : vector<8x64xf32> to vector<1x8x64xf32>
    %827 = vector.shape_cast %738 : vector<8x64xf32> to vector<1x8x64xf32>
    %828 = vector.shape_cast %747 : vector<8x64xf32> to vector<1x8x64xf32>
    %829 = vector.shape_cast %756 : vector<8x64xf32> to vector<1x8x64xf32>
    %830 = vector.shape_cast %765 : vector<8x64xf32> to vector<1x8x64xf32>
    %831 = vector.shape_cast %774 : vector<8x64xf32> to vector<1x8x64xf32>
    %832 = vector.shape_cast %783 : vector<8x64xf32> to vector<1x8x64xf32>
    %833 = vector.shape_cast %792 : vector<8x64xf32> to vector<1x8x64xf32>
    %834 = vector.shape_cast %801 : vector<8x64xf32> to vector<1x8x64xf32>
    %835 = vector.shape_cast %810 : vector<8x64xf32> to vector<1x8x64xf32>
    %836 = vector.shape_cast %819 : vector<8x64xf32> to vector<1x8x64xf32>
    %837 = vector.shape_cast %821 : vector<8x64xf32> to vector<1x8x64xf32>
    %838 = tpu.concatenate %822, %823, %824, %825, %826, %827, %828, %829, %830, %831, %832, %833, %834, %835, %836, %837 in 0 : vector<1x8x64xf32>, vector<1x8x64xf32>, vector<1x8x64xf32>, vector<1x8x64xf32>, vector<1x8x64xf32>, vector<1x8x64xf32>, vector<1x8x64xf32>, vector<1x8x64xf32>, vector<1x8x64xf32>, vector<1x8x64xf32>, vector<1x8x64xf32>, vector<1x8x64xf32>, vector<1x8x64xf32>, vector<1x8x64xf32>, vector<1x8x64xf32>, vector<1x8x64xf32> -> vector<16x8x64xf32>
    %839 = vector.shape_cast %838 : vector<16x8x64xf32> to vector<128x64xf32>
    %840 = arith.truncf %839 : vector<128x64xf32> to vector<128x64xbf16>
    %c0_619 = arith.constant 0 : index
    %c0_620 = arith.constant 0 : index
    %841 = vector.load %arg63[%c0_619, %c0_620] : memref<64x128xbf16, #tpu.memory_space<vmem>>, vector<64x128xbf16>
    %cst_621 = arith.constant dense<0.000000e+00> : vector<128x128xf32>
    %842 = tpu.matmul %840, %841, %cst_621 {dimension_numbers = #tpu.dot_dimension_numbers<[1], [0], [0], [1], [0, 0, 1, 1], [], []>} : vector<128x64xbf16>, vector<64x128xbf16>, vector<128x128xf32> -> vector<128x128xf32>
    %843 = vector.shape_cast %842 : vector<128x128xf32> to vector<16x8x128xf32>
    %cst_622 = arith.constant 0.000000e+00 : bf16
    %844 = vector.broadcast %cst_622 : bf16 to vector<1x8x128xbf16>
    %c0_623 = arith.constant 0 : index
    %c0_624 = arith.constant 0 : index
    %c0_625 = arith.constant 0 : index
    %845 = vector.load %arg86[%c0_623, %c0_624, %c0_625] : memref<18x8x128xbf16, #tpu.memory_space<vmem>>, vector<1x8x128xbf16>
    tpu.vector_store %arg86[%c0_623, %c0_624, %c0_625], %844 {strides = array<i32>} : memref<18x8x128xbf16, #tpu.memory_space<vmem>>, vector<1x8x128xbf16>,
    %c17_626 = arith.constant 17 : index
    %c0_627 = arith.constant 0 : index
    %c0_628 = arith.constant 0 : index
    %846 = vector.load %arg86[%c17_626, %c0_627, %c0_628] : memref<18x8x128xbf16, #tpu.memory_space<vmem>>, vector<1x8x128xbf16>
    tpu.vector_store %arg86[%c17_626, %c0_627, %c0_628], %844 {strides = array<i32>} : memref<18x8x128xbf16, #tpu.memory_space<vmem>>, vector<1x8x128xbf16>,
    %847 = arith.truncf %843 : vector<16x8x128xf32> to vector<16x8x128xbf16>
    %c1_629 = arith.constant 1 : index
    %c0_630 = arith.constant 0 : index
    %c0_631 = arith.constant 0 : index
    %848 = vector.load %arg86[%c1_629, %c0_630, %c0_631] : memref<18x8x128xbf16, #tpu.memory_space<vmem>>, vector<16x8x128xbf16>
    tpu.vector_store %arg86[%c1_629, %c0_630, %c0_631], %847 {strides = array<i32>} : memref<18x8x128xbf16, #tpu.memory_space<vmem>>, vector<16x8x128xbf16>,
    %c0_632 = arith.constant 0 : index
    %c0_633 = arith.constant 0 : index
    %c0_634 = arith.constant 0 : index
    %849 = vector.load %arg85[%c0_632, %c0_633, %c0_634] : memref<18x8x128xbf16, #tpu.memory_space<vmem>>, vector<18x8x128xbf16>
    %850 = vector.shape_cast %849 : vector<18x8x128xbf16> to vector<144x128xbf16>
    %c0_635 = arith.constant 0 : index
    %c0_636 = arith.constant 0 : index
    %851 = vector.load %arg51[%c0_635, %c0_636] : memref<128x384xbf16, #tpu.memory_space<vmem>>, vector<128x384xbf16>
    %cst_637 = arith.constant dense<0.000000e+00> : vector<144x384xf32>
    %852 = tpu.matmul %850, %851, %cst_637 {dimension_numbers = #tpu.dot_dimension_numbers<[1], [0], [0], [1], [0, 0, 1, 1], [], []>} : vector<144x128xbf16>, vector<128x384xbf16>, vector<144x384xf32> -> vector<144x384xf32>
    %c0_638 = arith.constant 0 : index
    %c0_639 = arith.constant 0 : index
    %c0_640 = arith.constant 0 : index
    %853 = vector.load %arg86[%c0_638, %c0_639, %c0_640] : memref<18x8x128xbf16, #tpu.memory_space<vmem>>, vector<18x8x128xbf16>
    %854 = vector.shape_cast %853 : vector<18x8x128xbf16> to vector<144x128xbf16>
    %c0_641 = arith.constant 0 : index
    %c0_642 = arith.constant 0 : index
    %855 = vector.load %arg52[%c0_641, %c0_642] : memref<128x384xbf16, #tpu.memory_space<vmem>>, vector<128x384xbf16>
    %cst_643 = arith.constant dense<0.000000e+00> : vector<144x384xf32>
    %856 = tpu.matmul %854, %855, %cst_643 {dimension_numbers = #tpu.dot_dimension_numbers<[1], [0], [0], [1], [0, 0, 1, 1], [], []>} : vector<144x128xbf16>, vector<128x384xbf16>, vector<144x384xf32> -> vector<144x384xf32>
    %857 = arith.addf %852, %856 : vector<144x384xf32>
    %858 = vector.shape_cast %857 : vector<144x384xf32> to vector<18x8x384xf32>
    %859 = vector.extract_strided_slice %858 {offsets = [0, 0, 0], sizes = [16, 8, 128], strides = [1, 1, 1]} : vector<18x8x384xf32> to vector<16x8x128xf32>
    %860 = vector.extract_strided_slice %858 {offsets = [1, 0, 128], sizes = [16, 8, 128], strides = [1, 1, 1]} : vector<18x8x384xf32> to vector<16x8x128xf32>
    %861 = arith.addf %859, %860 : vector<16x8x128xf32>
    %862 = vector.extract_strided_slice %858 {offsets = [2, 0, 256], sizes = [16, 8, 128], strides = [1, 1, 1]} : vector<18x8x384xf32> to vector<16x8x128xf32>
    %863 = arith.addf %861, %862 : vector<16x8x128xf32>
    %c0_644 = arith.constant 0 : index
    %c0_645 = arith.constant 0 : index
    %864 = vector.load %arg54[%c0_644, %c0_645] : memref<1x128xf32, #tpu.memory_space<vmem>>, vector<1x128xf32>
    %865 = vector.shape_cast %864 : vector<1x128xf32> to vector<1x1x128xf32>
    %866 = vector.broadcast %865 : vector<1x1x128xf32> to vector<16x8x128xf32>
    %867 = arith.mulf %863, %866 : vector<16x8x128xf32>
    %c0_646 = arith.constant 0 : index
    %c0_647 = arith.constant 0 : index
    %868 = vector.load %arg53[%c0_646, %c0_647] : memref<1x128xf32, #tpu.memory_space<vmem>>, vector<1x128xf32>
    %869 = vector.shape_cast %868 : vector<1x128xf32> to vector<1x1x128xf32>
    %870 = vector.broadcast %869 : vector<1x1x128xf32> to vector<16x8x128xf32>
    %871 = arith.addf %867, %870 : vector<16x8x128xf32>
    %cst_648 = arith.constant 0.000000e+00 : f32
    %872 = vector.broadcast %cst_648 : f32 to vector<16x8x128xf32>
    %873 = arith.maximumf %871, %872 : vector<16x8x128xf32>
    %cst_649 = arith.constant 0.000000e+00 : bf16
    %874 = vector.broadcast %cst_649 : bf16 to vector<1x8x128xbf16>
    %c0_650 = arith.constant 0 : index
    %c0_651 = arith.constant 0 : index
    %c0_652 = arith.constant 0 : index
    %875 = vector.load %arg87[%c0_650, %c0_651, %c0_652] : memref<18x8x128xbf16, #tpu.memory_space<vmem>>, vector<1x8x128xbf16>
    tpu.vector_store %arg87[%c0_650, %c0_651, %c0_652], %874 {strides = array<i32>} : memref<18x8x128xbf16, #tpu.memory_space<vmem>>, vector<1x8x128xbf16>,
    %c17_653 = arith.constant 17 : index
    %c0_654 = arith.constant 0 : index
    %c0_655 = arith.constant 0 : index
    %876 = vector.load %arg87[%c17_653, %c0_654, %c0_655] : memref<18x8x128xbf16, #tpu.memory_space<vmem>>, vector<1x8x128xbf16>
    tpu.vector_store %arg87[%c17_653, %c0_654, %c0_655], %874 {strides = array<i32>} : memref<18x8x128xbf16, #tpu.memory_space<vmem>>, vector<1x8x128xbf16>,
    %877 = arith.truncf %873 : vector<16x8x128xf32> to vector<16x8x128xbf16>
    %c1_656 = arith.constant 1 : index
    %c0_657 = arith.constant 0 : index
    %c0_658 = arith.constant 0 : index
    %878 = vector.load %arg87[%c1_656, %c0_657, %c0_658] : memref<18x8x128xbf16, #tpu.memory_space<vmem>>, vector<16x8x128xbf16>
    tpu.vector_store %arg87[%c1_656, %c0_657, %c0_658], %877 {strides = array<i32>} : memref<18x8x128xbf16, #tpu.memory_space<vmem>>, vector<16x8x128xbf16>,
    %c0_659 = arith.constant 0 : index
    %c0_660 = arith.constant 0 : index
    %c0_661 = arith.constant 0 : index
    %879 = vector.load %arg87[%c0_659, %c0_660, %c0_661] : memref<18x8x128xbf16, #tpu.memory_space<vmem>>, vector<18x8x128xbf16>
    %880 = vector.shape_cast %879 : vector<18x8x128xbf16> to vector<144x128xbf16>
    %c0_662 = arith.constant 0 : index
    %c0_663 = arith.constant 0 : index
    %881 = vector.load %arg55[%c0_662, %c0_663] : memref<128x384xbf16, #tpu.memory_space<vmem>>, vector<128x384xbf16>
    %cst_664 = arith.constant dense<0.000000e+00> : vector<144x384xf32>
    %882 = tpu.matmul %880, %881, %cst_664 {dimension_numbers = #tpu.dot_dimension_numbers<[1], [0], [0], [1], [0, 0, 1, 1], [], []>} : vector<144x128xbf16>, vector<128x384xbf16>, vector<144x384xf32> -> vector<144x384xf32>
    %883 = vector.shape_cast %882 : vector<144x384xf32> to vector<18x8x384xf32>
    %884 = vector.extract_strided_slice %883 {offsets = [0, 0, 0], sizes = [16, 8, 128], strides = [1, 1, 1]} : vector<18x8x384xf32> to vector<16x8x128xf32>
    %885 = vector.extract_strided_slice %883 {offsets = [1, 0, 128], sizes = [16, 8, 128], strides = [1, 1, 1]} : vector<18x8x384xf32> to vector<16x8x128xf32>
    %886 = arith.addf %884, %885 : vector<16x8x128xf32>
    %887 = vector.extract_strided_slice %883 {offsets = [2, 0, 256], sizes = [16, 8, 128], strides = [1, 1, 1]} : vector<18x8x384xf32> to vector<16x8x128xf32>
    %888 = arith.addf %886, %887 : vector<16x8x128xf32>
    %c0_665 = arith.constant 0 : index
    %c0_666 = arith.constant 0 : index
    %889 = vector.load %arg57[%c0_665, %c0_666] : memref<1x128xf32, #tpu.memory_space<vmem>>, vector<1x128xf32>
    %890 = vector.shape_cast %889 : vector<1x128xf32> to vector<1x1x128xf32>
    %891 = vector.broadcast %890 : vector<1x1x128xf32> to vector<16x8x128xf32>
    %892 = arith.mulf %888, %891 : vector<16x8x128xf32>
    %c0_667 = arith.constant 0 : index
    %c0_668 = arith.constant 0 : index
    %893 = vector.load %arg56[%c0_667, %c0_668] : memref<1x128xf32, #tpu.memory_space<vmem>>, vector<1x128xf32>
    %894 = vector.shape_cast %893 : vector<1x128xf32> to vector<1x1x128xf32>
    %895 = vector.broadcast %894 : vector<1x1x128xf32> to vector<16x8x128xf32>
    %896 = arith.addf %892, %895 : vector<16x8x128xf32>
    %cst_669 = arith.constant 0.000000e+00 : f32
    %897 = vector.broadcast %cst_669 : f32 to vector<16x8x128xf32>
    %898 = arith.maximumf %896, %897 : vector<16x8x128xf32>
    %899 = vector.shape_cast %898 : vector<16x8x128xf32> to vector<128x128xf32>
    %900 = arith.truncf %899 : vector<128x128xf32> to vector<128x128xbf16>
    %c0_670 = arith.constant 0 : index
    %c0_671 = arith.constant 0 : index
    %901 = vector.load %arg59[%c0_670, %c0_671] : memref<128x128xbf16, #tpu.memory_space<vmem>>, vector<128x128xbf16>
    %cst_672 = arith.constant dense<0.000000e+00> : vector<128x128xf32>
    %902 = tpu.matmul %900, %901, %cst_672 {dimension_numbers = #tpu.dot_dimension_numbers<[1], [0], [0], [1], [0, 0, 1, 1], [], []>} : vector<128x128xbf16>, vector<128x128xbf16>, vector<128x128xf32> -> vector<128x128xf32>
    %c0_673 = arith.constant 0 : index
    %c0_674 = arith.constant 0 : index
    %903 = vector.load %arg58[%c0_673, %c0_674] : memref<1x128xf32, #tpu.memory_space<vmem>>, vector<1x128xf32>
    %904 = vector.broadcast %903 : vector<1x128xf32> to vector<128x128xf32>
    %905 = arith.addf %902, %904 : vector<128x128xf32>
    %906 = vector.shape_cast %905 : vector<128x128xf32> to vector<16x8x128xf32>
    %c0_675 = arith.constant 0 : index
    %c0_676 = arith.constant 0 : index
    %c0_677 = arith.constant 0 : index
    %907 = vector.load %arg65[%c0_675, %c0_676, %c0_677] : memref<16x8x128xf32, #tpu.memory_space<vmem>>, vector<16x8x128xf32>
    tpu.vector_store %arg65[%c0_675, %c0_676, %c0_677], %906 {strides = array<i32>} : memref<16x8x128xf32, #tpu.memory_space<vmem>>, vector<16x8x128xf32>,
    return
  }
}

</mosaic_0001>

<bundles_post_ra>
// kernel: tpu_custom_call.1
= control target key start
LH: loop header
LB: loop body
LE: loop exit
PB: predicated region body
PF: predicated region fallthrough
CT: control target
= control target key end

     0   :  { %s15764_s6 = smov 1   ;;  %s15765_s10 = smov 2   ;;  %s17786_s0 = inlined_call_operand.smem [shape: u32[66], index: -1, kind: input, shape index: {}] }
   0x1   :  { %s15893_s5 = sld [smem:[%s17786_s0]]   ;;  %s15766_s14 = smov 3  }
   0x2   :  { %s15898_s9 = sld [smem:[%s17786_s0 + %s15764_s6]]   ;;  %s15767_s18 = smov 4  }
   0x3   :  { %s15903_s13 = sld [smem:[%s17786_s0 + %s15765_s10]]   ;;  %s15768_s22 = smov 5  }
   0x4   :  { %s15908_s17 = sld [smem:[%s17786_s0 + %s15766_s14]]   ;;  %s15769_s26 = smov 6  }
   0x5   :  { %s15913_s21 = sld [smem:[%s17786_s0 + %s15767_s18]]   ;;  %s15770_s30 = smov 7  }
   0x6   :  { %s15918_s25 = sld [smem:[%s17786_s0 + %s15768_s22]]   ;;  %s15771_s4 = smov 8  }
   0x7   :  { %17832 = sst [smem:[#allocation114_spill]] %s15893_s5  ;;  %s15772_s10 = smov 9  }
   0x8   :  { %17833 = sst [smem:[#allocation115_spill]] %s15898_s9  ;;  %s15773_s15 = smov 10  }
   0x9   :  { %s15923_s29 = sld [smem:[%s17786_s0 + %s15769_s26]]   ;;  %s15774_s20 = smov 11  }
   0xa   :  { %17834 = sst [smem:[#allocation116_spill]] %s15908_s17  ;;  %s15775_s26 = smov 12  }
   0xb   :  { %17835 = sst [smem:[#allocation117_spill]] %s15913_s21  ;;  %s15776_s1 = smov 13  }
   0xc   :  { %s15928_s3 = sld [smem:[%s17786_s0 + %s15770_s30]]   ;;  %s15777_s7 = smov 14  }
   0xd   :  { %s15933_s8 = sld [smem:[%s17786_s0 + %s15771_s4]]   ;;  %s15779_s22 = smov 16  }
   0xe   :  { %s15938_s14 = sld [smem:[%s17786_s0 + %s15772_s10]]   ;;  %s15780_s28 = smov 17  }
   0xf   :  { %17836 = sst [smem:[#allocation118_spill]] %s15923_s29 }
  0x10   :  { %s15943_s19 = sld [smem:[%s17786_s0 + %s15773_s15]]   ;;  %s15778_s15 = smov 15  }
  0x11   :  { %s15948_s24 = sld [smem:[%s17786_s0 + %s15774_s20]]  }
  0x12   :  { %17837 = sst [smem:[#allocation119_spill]] %s15928_s3 }
  0x13   :  { %17838 = sst [smem:[#allocation120_spill]] %s15933_s8 }
  0x14   :  { %17839 = sst [smem:[#allocation121_spill]] %s15938_s14 }
  0x15   :  { %s15953_s30 = sld [smem:[%s17786_s0 + %s15775_s26]]  }
  0x16   :  { %17840 = sst [smem:[#allocation122_spill]] %s15943_s19 }
  0x17   :  { %s15958_s6 = sld [smem:[%s17786_s0 + %s15776_s1]]  }
  0x18   :  { %s15963_s12 = sld [smem:[%s17786_s0 + %s15777_s7]]   ;;  %s15781_s7 = smov 18  }
  0x19   :  { %s15968_s20 = sld [smem:[%s17786_s0 + %s15778_s15]]   ;;  %s15782_s15 = smov 19  }
  0x1a   :  { %s15973_s27 = sld [smem:[%s17786_s0 + %s15779_s22]]   ;;  %s15783_s22 = smov 20  }
  0x1b   :  { %17841 = sst [smem:[#allocation123_spill]] %s15953_s30 }
  0x1c   :  { %s15978_s4 = sld [smem:[%s17786_s0 + %s15780_s28]]   ;;  %s15784_s28 = smov 21  }
  0x1d   :  { %17842 = sst [smem:[#allocation124_spill]] %s15958_s6 }
  0x1e   :  { %s15983_s30 = sld [smem:[%s17786_s0 + %s15781_s7]]   ;;  %s15785_s7 = smov 22  }
  0x1f   :  { %17843 = sst [smem:[#allocation125_spill]] %s15968_s20 }
  0x20   :  { %17844 = sst [smem:[#allocation126_spill]] %s15973_s27 }
  0x21   :  { %s15988_s20 = sld [smem:[%s17786_s0 + %s15782_s15]]   ;;  %s15786_s15 = smov 23  }
  0x22   :  { %s15993_s3 = sld [smem:[%s17786_s0 + %s15783_s22]]   ;;  %s15787_s22 = smov 24  }
  0x23   :  { %s15998_s8 = sld [smem:[%s17786_s0 + %s15784_s28]]   ;;  %s15788_s28 = smov 25  }
  0x24   :  { %17845 = sst [smem:[#allocation127_spill]] %s15983_s30 }
  0x25   :  { %s16003_s30 = sld [smem:[%s17786_s0 + %s15785_s7]]   ;;  %s15789_s7 = smov 26  }
  0x26   :  { %s16008_s14 = sld [smem:[%s17786_s0 + %s15786_s15]]   ;;  %s15790_s15 = smov 27  }
  0x27   :  { %17846 = sst [smem:[#allocation128_spill]] %s15988_s20 }
  0x28   :  { %s16013_s29 = sld [smem:[%s17786_s0 + %s15787_s22]]   ;;  %s15791_s22 = smov 28  }
  0x29   :  { %17847 = sst [smem:[#allocation129_spill]] %s15998_s8 }
  0x2a   :  { %s16018_s17 = sld [smem:[%s17786_s0 + %s15788_s28]]   ;;  %s15792_s28 = smov 29  }
  0x2b   :  { %s16023_s5 = sld [smem:[%s17786_s0 + %s15789_s7]]   ;;  %s15793_s7 = smov 30  }
  0x2c   :  { %17848 = sst [smem:[#allocation130_spill]] %s16008_s14 }
  0x2d   :  { %s16028_s14 = sld [smem:[%s17786_s0 + %s15790_s15]]   ;;  %s15794_s15 = smov 31  }
  0x2e   :  { %s16033_s8 = sld [smem:[%s17786_s0 + %s15791_s22]]   ;;  %s15795_s22 = smov 32  }
  0x2f   :  { %s16043_s20 = sld [smem:[%s17786_s0 + %s15793_s7]]   ;;  %s15797_s7 = smov 34  }
  0x30   :  { %17849 = sst [smem:[#allocation131_spill]] %s16018_s17 }
  0x31   :  { %s16038_s17 = sld [smem:[%s17786_s0 + %s15792_s28]]   ;;  %s15796_s28 = smov 33  }
  0x32   :  { %s16058_s27 = sld [smem:[%s17786_s0 + %s15796_s28]]   ;;  %s15800_s28 = smov 37  }
  0x33   :  { %17850 = sst [smem:[#allocation132_spill]] %s16028_s14 }
  0x34   :  { %17851 = sst [smem:[#allocation133_spill]] %s16033_s8 }
  0x35   :  { %17852 = sst [smem:[#allocation134_spill]] %s16043_s20 }
  0x36   :  { %s16048_s14 = sld [smem:[%s17786_s0 + %s15794_s15]]   ;;  %s15798_s15 = smov 35  }
  0x37   :  { %s16053_s8 = sld [smem:[%s17786_s0 + %s15795_s22]]   ;;  %s15799_s22 = smov 36  }
  0x38   :  { %17855 = sst [smem:[#allocation137_spill]] %s16058_s27 }
  0x39   :  { %s16063_s20 = sld [smem:[%s17786_s0 + %s15797_s7]]   ;;  %s15801_s7 = smov 38  }
  0x3a   :  { %s16078_s27 = sld [smem:[%s17786_s0 + %s15800_s28]]   ;;  %s15804_s28 = smov 41  }
  0x3b   :  { %s16083_s6 = sld [smem:[%s17786_s0 + %s15801_s7]]   ;;  %s15805_s7 = smov 42  }
  0x3c   :  { %17853 = sst [smem:[#allocation135_spill]] %s16048_s14 }
  0x3d   :  { %17854 = sst [smem:[#allocation136_spill]] %s16053_s8 }
  0x3e   :  { %s16068_s14 = sld [smem:[%s17786_s0 + %s15798_s15]]   ;;  %s15802_s15 = smov 39  }
  0x3f   :  { %s16073_s8 = sld [smem:[%s17786_s0 + %s15799_s22]]   ;;  %s15803_s22 = smov 40  }
  0x40   :  { %17857 = sst [smem:[#allocation139_spill]] %s16078_s27 }
  0x41   :  { %17858 = sst [smem:[#allocation140_spill]] %s16083_s6 }
  0x42   :  { %s16093_s19 = sld [smem:[%s17786_s0 + %s15803_s22]]   ;;  %s15807_s22 = smov 44  }
  0x43   :  { %s16098_s27 = sld [smem:[%s17786_s0 + %s15804_s28]]   ;;  %s15808_s28 = smov 45  }
  0x44   :  { %17856 = sst [smem:[#allocation138_spill]] %s16068_s14 }
  0x45   :  { %s16088_s14 = sld [smem:[%s17786_s0 + %s15802_s15]]   ;;  %s15806_s15 = smov 43  }
  0x46   :  { %s16103_s6 = sld [smem:[%s17786_s0 + %s15805_s7]]   ;;  %s15809_s7 = smov 46  }
  0x47   :  { %s16113_s21 = sld [smem:[%s17786_s0 + %s15807_s22]]   ;;  %s15811_s22 = smov 48  }
  0x48   :  { %s16123_s9 = sld [smem:[%s17786_s0 + %s15809_s7]]   ;;  %s15813_s7 = smov 50  }
  0x49   :  { %17860 = sst [smem:[#allocation142_spill]] %s16098_s27 }
  0x4a   :  { %s16118_s27 = sld [smem:[%s17786_s0 + %s15808_s28]]   ;;  %s15812_s28 = smov 49  }
  0x4b   :  { %17859 = sst [smem:[#allocation141_spill]] %s16088_s14 }
  0x4c   :  { %s16108_s14 = sld [smem:[%s17786_s0 + %s15806_s15]]   ;;  %s15810_s15 = smov 47  }
  0x4d   :  { %17862 = sst [smem:[#allocation144_spill]] %s16113_s21 }
  0x4e   :  { %17864 = sst [smem:[#allocation146_spill]] %s16123_s9 }
  0x4f   :  { %s16133_s21 = sld [smem:[%s17786_s0 + %s15811_s22]]   ;;  %s15815_s22 = smov 52  }
  0x50   :  { %17863 = sst [smem:[#allocation145_spill]] %s16118_s27 }
  0x51   :  { %s16138_s27 = sld [smem:[%s17786_s0 + %s15812_s28]]   ;;  %s15816_s28 = smov 53  }
  0x52   :  { %17861 = sst [smem:[#allocation143_spill]] %s16108_s14 }
  0x53   :  { %s16128_s14 = sld [smem:[%s17786_s0 + %s15810_s15]]   ;;  %s15814_s15 = smov 51  }
  0x54   :  { %s16143_s9 = sld [smem:[%s17786_s0 + %s15813_s7]]   ;;  %s15817_s7 = smov 54  }
  0x55   :  { %17866 = sst [smem:[#allocation148_spill]] %s16133_s21 }
  0x56   :  { %s16153_s21 = sld [smem:[%s17786_s0 + %s15815_s22]]   ;;  %s15819_s22 = smov 56  }
  0x57   :  { %17867 = sst [smem:[#allocation149_spill]] %s16138_s27 }
  0x58   :  { %s16158_s27 = sld [smem:[%s17786_s0 + %s15816_s28]]   ;;  %s15820_s28 = smov 57  }
  0x59   :  { %17865 = sst [smem:[#allocation147_spill]] %s16128_s14 }
  0x5a   :  { %17868 = sst [smem:[#allocation150_spill]] %s16143_s9 }
  0x5b   :  { %s16148_s14 = sld [smem:[%s17786_s0 + %s15814_s15]]   ;;  %s15818_s15 = smov 55  }
  0x5c   :  { %17870 = sst [smem:[#allocation152_spill]] %s16153_s21 }
  0x5d   :  { %s16163_s9 = sld [smem:[%s17786_s0 + %s15817_s7]]   ;;  %s15821_s7 = smov 58  }
  0x5e   :  { %17871 = sst [smem:[#allocation153_spill]] %s16158_s27 }
  0x5f   :  { %s16173_s21 = sld [smem:[%s17786_s0 + %s15819_s22]]   ;;  %s15823_s22 = smov 60  }
  0x60   :  { %s16178_s27 = sld [smem:[%s17786_s0 + %s15820_s28]]   ;;  %s15824_s28 = smov 61  }
  0x61   :  { %17869 = sst [smem:[#allocation151_spill]] %s16148_s14 }
  0x62   :  { %s16168_s14 = sld [smem:[%s17786_s0 + %s15818_s15]]   ;;  %s15822_s15 = smov 59  }
  0x63   :  { %17872 = sst [smem:[#allocation154_spill]] %s16163_s9 }
  0x64   :  { %s16183_s9 = sld [smem:[%s17786_s0 + %s15821_s7]]   ;;  %s15825_s7 = smov 62  }
  0x65   :  { %17874 = sst [smem:[#allocation156_spill]] %s16173_s21 }
  0x66   :  { %17875 = sst [smem:[#allocation157_spill]] %s16178_s27 }
  0x67   :  { %s16193_s21 = sld [smem:[%s17786_s0 + %s15823_s22]]   ;;  %s15827_s22 = smov 64  }
  0x68   :  { %17873 = sst [smem:[#allocation155_spill]] %s16168_s14 }
  0x69   :  { %s16188_s14 = sld [smem:[%s17786_s0 + %s15822_s15]]   ;;  %s15826_s15 = smov 63  }
  0x6a   :  { %17876 = sst [smem:[#allocation158_spill]] %s16183_s9 }
  0x6b   :  { %s16198_s27 = sld [smem:[%s17786_s0 + %s15824_s28]]   ;;  %s15828_s28 = smov 65  }
  0x6c   :  { %s16203_s9 = sld [smem:[%s17786_s0 + %s15825_s7]]  }
  0x6d   :  { %17878 = sst [smem:[#allocation160_spill]] %s16193_s21 }
  0x6e   :  { %s16213_s21 = sld [smem:[%s17786_s0 + %s15827_s22]]  }
  0x6f   :  { %17877 = sst [smem:[#allocation159_spill]] %s16188_s14 }
  0x70   :  { %s16208_s14 = sld [smem:[%s17786_s0 + %s15826_s15]]  }
  0x71   :  { %17879 = sst [smem:[#allocation161_spill]] %s16198_s27 }
  0x72   :  { %s16218_s27 = sld [smem:[%s17786_s0 + %s15828_s28]]  }
  0x73   :  { %136 = vsyncpa [#allocation25], 0 }
  0x74   :  { %137 = vsyncpa [#allocation28], 0 }
  0x75   :  { %138 = vsyncpa [#allocation31], 0 }
  0x76   :  { %139 = vsyncpa [#allocation34], 0 }
  0x77   :  { %140 = vsyncpa [#allocation37], 0 }
  0x78   :  { %141 = vsyncpa [#allocation40], 0 }
  0x79   :  { %142 = vsyncpa [#allocation43], 0 }
  0x7a   :  { %143 = vsyncpa [#allocation46], 0 }
  0x7b   :  { %144 = vsyncpa [#allocation49], 0 }
  0x7c   :  { %145 = vsyncpa [#allocation52], 0 }
  0x7d   :  { %146 = vsyncpa [#allocation55], 0 }
  0x7e   :  { %147 = vsyncpa [#allocation58], 0 }
  0x7f   :  { %148 = vsyncpa [#allocation61], 0 }
  0x80   :  { %149 = vsyncpa [#allocation64], 0 }
  0x81   :  { %150 = vsyncpa [#allocation67], 0 }
  0x82   :  { %151 = vsyncpa [#allocation70], 0 }
  0x83   :  { %152 = vsyncpa [#allocation73], 0 }
  0x84   :  { %153 = vsyncpa [#allocation76], 0 }
  0x85   :  { %154 = vsyncpa [#allocation79], 0 }
  0x86   :  { %155 = vsyncpa [#allocation82], 0 }
  0x87   :  { %156 = vsyncpa [#allocation85], 0 }
  0x88   :  { %157 = vsyncpa [#allocation88], 0 }
  0x89   :  { %158 = vsyncpa [#allocation26], 0  ;;  %s15829_s0 = smov [#allocation27]   ;;  %s15830_s10 = smov [#allocation30]  }
  0x8a   :  { %s177_s7 = sshll.u32 %s15829_s0, 4  ;;  %s199_s11 = sshll.u32 %s15830_s10, 4  ;;  %s178_s7 = int_to_ptr.vmem [resolvable:$true] %s177_s7  ;;  %s200_s11 = int_to_ptr.vmem [resolvable:$true] %s199_s11 }
  0x8b   :  { %s14750_s15 = scalar_lea.hbm %s15903_s13, 16 }
  0x8c   :  { %p14751_p0 = scmp.ne.s32.totalorder %s15903_s13, %s14750_s15  ;;  %p14754_p1 = scmp.lt.u32.totalorder %s14750_s15, %s15903_s13 }
  0x8e   :  { %p14756_p2 = pnand %p14754_p1, %p14751_p0 }
  0x90   :  { %14759 = shalt.err (!%p14756_p2)
}
  0x91   :  { %s14760_s16 = scalar_lea.vmem %s178_s7, 16  ;;  %s14764_s18 = scalar_lea.vmem %s178_s7, 32 }
  0x92   :  { %p14761_p3 = scmp.ne.s32.totalorder %s178_s7, %s14760_s16  ;;  %p14765_p4 = scmp.lt.s32.totalorder %s178_s7, %s178_s7 }
  0x93   :  { %p14766_p5 = scmp.lt.s32.totalorder %s14764_s18, %s14760_s16 }
  0x95   :  { %p14767_p6 = por %p14766_p5, %p14765_p4 }
  0x97   :  { %p14768_p7 = pnand %p14767_p6, %p14761_p3 }
  0x99   :  { %14771 = shalt.err (!%p14768_p7)
}
  0x9a   :  { %180 = dma.hbm_to_vmem [thread:$0]  %s15903_s13, 16, %s178_s7, [#allocation28]  }
  0x9b   :  { %s14772_s22 = scalar_lea.hbm %s15918_s25, 16 }
  0x9c   :  { %p14773_p8 = scmp.ne.s32.totalorder %s15918_s25, %s14772_s22  ;;  %p14776_p9 = scmp.lt.u32.totalorder %s14772_s22, %s15918_s25 }
  0x9e   :  { %p14778_p10 = pnand %p14776_p9, %p14773_p8 }
  0xa0   :  { %14781 = shalt.err (!%p14778_p10)
}
  0xa1   :  { %s14782_s23 = scalar_lea.vmem %s200_s11, 16  ;;  %s14786_s26 = scalar_lea.vmem %s200_s11, 32 }
  0xa2   :  { %p14783_p11 = scmp.ne.s32.totalorder %s200_s11, %s14782_s23  ;;  %p14787_p12 = scmp.lt.s32.totalorder %s200_s11, %s200_s11 }
  0xa3   :  { %p14788_p13 = scmp.lt.s32.totalorder %s14786_s26, %s14782_s23 }
  0xa5   :  { %p14789_p0 = por %p14788_p13, %p14787_p12 }
  0xa7   :  { %p14790_p1 = pnand %p14789_p0, %p14783_p11 }
  0xa9   :  { %14793 = shalt.err (!%p14790_p1)
}
  0xaa   :  { %202 = dma.hbm_to_vmem [thread:$0]  %s15918_s25, 16, %s200_s11, [#allocation31]  }
  0xab   :  { %s15831_s28 = smov [#allocation33]   ;;  %s15832_s1 = smov [#allocation36]  }
  0xac   :  { %s227_s13 = sshll.u32 %s15831_s28, 4  ;;  %s249_s2 = sshll.u32 %s15832_s1, 4  ;;  %s228_s13 = int_to_ptr.vmem [resolvable:$true] %s227_s13  ;;  %s250_s2 = int_to_ptr.vmem [resolvable:$true] %s249_s2 }
  0xad   :  { %s14794_s0 = scalar_lea.hbm %s15948_s24, 16 }
  0xae   :  { %p14795_p2 = scmp.ne.s32.totalorder %s15948_s24, %s14794_s0  ;;  %p14798_p3 = scmp.lt.u32.totalorder %s14794_s0, %s15948_s24 }
  0xb0   :  { %p14800_p4 = pnand %p14798_p3, %p14795_p2 }
  0xb2   :  { %14803 = shalt.err (!%p14800_p4)
}
  0xb3   :  { %s14804_s7 = scalar_lea.vmem %s228_s13, 16  ;;  %s14808_s10 = scalar_lea.vmem %s228_s13, 32 }
  0xb4   :  { %p14805_p5 = scmp.ne.s32.totalorder %s228_s13, %s14804_s7  ;;  %p14809_p6 = scmp.lt.s32.totalorder %s228_s13, %s228_s13 }
  0xb5   :  { %p14810_p7 = scmp.lt.s32.totalorder %s14808_s10, %s14804_s7 }
  0xb7   :  { %p14811_p8 = por %p14810_p7, %p14809_p6 }
  0xb9   :  { %p14812_p9 = pnand %p14811_p8, %p14805_p5 }
  0xbb   :  { %14815 = shalt.err (!%p14812_p9)
}
  0xbc   :  { %230 = dma.hbm_to_vmem [thread:$0]  %s15948_s24, 16, %s228_s13, [#allocation34]  }
  0xbd   :  { %s14816_s25 = scalar_lea.hbm %s15963_s12, 16 }
  0xbe   :  { %p14817_p10 = scmp.ne.s32.totalorder %s15963_s12, %s14816_s25  ;;  %p14820_p11 = scmp.lt.u32.totalorder %s14816_s25, %s15963_s12 }
  0xc0   :  { %p14822_p12 = pnand %p14820_p11, %p14817_p10 }
  0xc2   :  { %14825 = shalt.err (!%p14822_p12)
}
  0xc3   :  { %s14826_s11 = scalar_lea.vmem %s250_s2, 16  ;;  %s14830_s15 = scalar_lea.vmem %s250_s2, 32 }
  0xc4   :  { %p14827_p13 = scmp.ne.s32.totalorder %s250_s2, %s14826_s11  ;;  %p14831_p0 = scmp.lt.s32.totalorder %s250_s2, %s250_s2 }
  0xc5   :  { %p14832_p1 = scmp.lt.s32.totalorder %s14830_s15, %s14826_s11 }
  0xc7   :  { %p14833_p2 = por %p14832_p1, %p14831_p0 }
  0xc9   :  { %p14834_p3 = pnand %p14833_p2, %p14827_p13 }
  0xcb   :  { %14837 = shalt.err (!%p14834_p3)
}
  0xcc   :  { %252 = dma.hbm_to_vmem [thread:$0]  %s15963_s12, 16, %s250_s2, [#allocation37]  }
  0xcd   :  { %s15833_s16 = smov [#allocation39]   ;;  %s15834_s18 = smov [#allocation42]  }
  0xce   :  { %s271_s24 = sshll.u32 %s15833_s16, 4  ;;  %s293_s22 = sshll.u32 %s15834_s18, 4  ;;  %s272_s24 = int_to_ptr.vmem [resolvable:$true] %s271_s24  ;;  %s294_s22 = int_to_ptr.vmem [resolvable:$true] %s293_s22 }
  0xcf   :  { %s14838_s23 = scalar_lea.hbm %s15978_s4, 16 }
  0xd0   :  { %p14839_p4 = scmp.ne.s32.totalorder %s15978_s4, %s14838_s23  ;;  %p14842_p5 = scmp.lt.u32.totalorder %s14838_s23, %s15978_s4 }
  0xd2   :  { %p14844_p6 = pnand %p14842_p5, %p14839_p4 }
  0xd4   :  { %14847 = shalt.err (!%p14844_p6)
}
  0xd5   :  { %s14848_s26 = scalar_lea.vmem %s272_s24, 16  ;;  %s14852_s28 = scalar_lea.vmem %s272_s24, 32 }
  0xd6   :  { %p14849_p7 = scmp.ne.s32.totalorder %s272_s24, %s14848_s26  ;;  %p14853_p8 = scmp.lt.s32.totalorder %s272_s24, %s272_s24 }
  0xd7   :  { %p14854_p9 = scmp.lt.s32.totalorder %s14852_s28, %s14848_s26 }
  0xd9   :  { %p14855_p10 = por %p14854_p9, %p14853_p8 }
  0xdb   :  { %p14856_p11 = pnand %p14855_p10, %p14849_p7 }
  0xdd   :  { %14859 = shalt.err (!%p14856_p11)
}
  0xde   :  { %274 = dma.hbm_to_vmem [thread:$0]  %s15978_s4, 16, %s272_s24, [#allocation40]  }
  0xdf   :  { %s14860_s12 = scalar_lea.hbm %s15993_s3, 16 }
  0xe0   :  { %p14861_p12 = scmp.ne.s32.totalorder %s15993_s3, %s14860_s12  ;;  %p14864_p13 = scmp.lt.u32.totalorder %s14860_s12, %s15993_s3 }
  0xe2   :  { %p14866_p0 = pnand %p14864_p13, %p14861_p12 }
  0xe4   :  { %14869 = shalt.err (!%p14866_p0)
}
  0xe5   :  { %s14870_s13 = scalar_lea.vmem %s294_s22, 16  ;;  %s14874_s1 = scalar_lea.vmem %s294_s22, 32 }
  0xe6   :  { %p14871_p1 = scmp.ne.s32.totalorder %s294_s22, %s14870_s13  ;;  %p14875_p2 = scmp.lt.s32.totalorder %s294_s22, %s294_s22 }
  0xe7   :  { %p14876_p3 = scmp.lt.s32.totalorder %s14874_s1, %s14870_s13 }
  0xe9   :  { %p14877_p4 = por %p14876_p3, %p14875_p2 }
  0xeb   :  { %p14878_p5 = pnand %p14877_p4, %p14871_p1 }
  0xed   :  { %14881 = shalt.err (!%p14878_p5)
}
  0xee   :  { %296 = dma.hbm_to_vmem [thread:$0]  %s15993_s3, 16, %s294_s22, [#allocation43]  }
  0xef   :  { %s15835_s2 = smov [#allocation45]   ;;  %s15836_s0 = smov [#allocation48]  }
  0xf0   :  { %s315_s4 = sshll.u32 %s15835_s2, 4  ;;  %s334_s7 = sshll.u32 %s15836_s0, 4  ;;  %s316_s4 = int_to_ptr.vmem [resolvable:$true] %s315_s4  ;;  %s16244_s7 = int_to_ptr.vmem [resolvable:$true] %s334_s7 }
  0xf1   :  { %s14882_s10 = scalar_lea.hbm %s16003_s30, 16 }
  0xf2   :  { %p14883_p6 = scmp.ne.s32.totalorder %s16003_s30, %s14882_s10  ;;  %p14886_p7 = scmp.lt.u32.totalorder %s14882_s10, %s16003_s30 }
  0xf4   :  { %p14888_p8 = pnand %p14886_p7, %p14883_p6 }
  0xf6   :  { %14891 = shalt.err (!%p14888_p8)
}
  0xf7   :  { %s14892_s25 = scalar_lea.vmem %s316_s4, 16  ;;  %s14896_s11 = scalar_lea.vmem %s316_s4, 32 }
  0xf8   :  { %p14893_p9 = scmp.ne.s32.totalorder %s316_s4, %s14892_s25  ;;  %p14897_p10 = scmp.lt.s32.totalorder %s316_s4, %s316_s4 }
  0xf9   :  { %p14898_p11 = scmp.lt.s32.totalorder %s14896_s11, %s14892_s25 }
  0xfb   :  { %p14899_p12 = por %p14898_p11, %p14897_p10 }
  0xfd   :  { %p14900_p13 = pnand %p14899_p12, %p14893_p9 }
  0xff   :  { %14903 = shalt.err (!%p14900_p13)
}
 0x100   :  { %318 = dma.hbm_to_vmem [thread:$0]  %s16003_s30, 16, %s316_s4, [#allocation46]  }
 0x101   :  { %s14904_s3 = scalar_lea.hbm %s16013_s29, 384 }
 0x102   :  { %p14905_p0 = scmp.ne.s32.totalorder %s16013_s29, %s14904_s3  ;;  %p14908_p1 = scmp.lt.u32.totalorder %s14904_s3, %s16013_s29 }
 0x104   :  { %p14910_p2 = pnand %p14908_p1, %p14905_p0 }
 0x106   :  { %14913 = shalt.err (!%p14910_p2)
}
 0x107   :  { %s14914_s15 = scalar_lea.vmem %s16244_s7, 384  ;;  %p14919_p4 = scmp.lt.s32.totalorder %s16244_s7, %s16244_s7 }
 0x108   :  { %p14915_p3 = scmp.ne.s32.totalorder %s16244_s7, %s14914_s15  ;;  %p14920_p5 = scmp.lt.s32.totalorder %s14914_s15, %s14914_s15 }
 0x10a   :  { %p14921_p6 = por %p14920_p5, %p14919_p4 }
 0x10c   :  { %p14922_p7 = pnand %p14921_p6, %p14915_p3 }
 0x10e   :  { %14925 = shalt.err (!%p14922_p7)
}
 0x10f   :  { %s15837_s16 = smov 192   ;;  %s15838_s30 = smov 12  }
 0x110   :  { %340 = dma.hbm_to_vmem [thread:$0]  %s16013_s29, 384, %s16244_s7, [#allocation49], %s15837_s16, %s15837_s16, %s15838_s30  }
 0x111   :  { %s15839_s24 = smov [#allocation51]   ;;  %s15840_s22 = smov [#allocation54]  }
 0x112   :  { %s357_s18 = sshll.u32 %s15839_s24, 4  ;;  %s379_s23 = sshll.u32 %s15840_s22, 4  ;;  %s358_s18 = int_to_ptr.vmem [resolvable:$true] %s357_s18  ;;  %s380_s23 = int_to_ptr.vmem [resolvable:$true] %s379_s23 }
 0x113   :  { %s14926_s26 = scalar_lea.hbm %s16023_s5, 16 }
 0x114   :  { %p14927_p8 = scmp.ne.s32.totalorder %s16023_s5, %s14926_s26  ;;  %p14930_p9 = scmp.lt.u32.totalorder %s14926_s26, %s16023_s5 }
 0x116   :  { %p14932_p10 = pnand %p14930_p9, %p14927_p8 }
 0x118   :  { %14935 = shalt.err (!%p14932_p10)
}
 0x119   :  { %s14936_s28 = scalar_lea.vmem %s358_s18, 16  ;;  %s14940_s12 = scalar_lea.vmem %s358_s18, 32 }
 0x11a   :  { %p14937_p11 = scmp.ne.s32.totalorder %s358_s18, %s14936_s28  ;;  %p14941_p12 = scmp.lt.s32.totalorder %s358_s18, %s358_s18 }
 0x11b   :  { %p14942_p13 = scmp.lt.s32.totalorder %s14940_s12, %s14936_s28 }
 0x11d   :  { %p14943_p0 = por %p14942_p13, %p14941_p12 }
 0x11f   :  { %p14944_p1 = pnand %p14943_p0, %p14937_p11 }
 0x121   :  { %14947 = shalt.err (!%p14944_p1)
}
 0x122   :  { %360 = dma.hbm_to_vmem [thread:$0]  %s16023_s5, 16, %s358_s18, [#allocation52]  }
 0x123   :  { %s14948_s29 = scalar_lea.hbm %s16038_s17, 16 }
 0x124   :  { %p14949_p2 = scmp.ne.s32.totalorder %s16038_s17, %s14948_s29  ;;  %p14952_p3 = scmp.lt.u32.totalorder %s14948_s29, %s16038_s17 }
 0x126   :  { %p14954_p4 = pnand %p14952_p3, %p14949_p2 }
 0x128   :  { %14957 = shalt.err (!%p14954_p4)
}
 0x129   :  { %s14958_s13 = scalar_lea.vmem %s380_s23, 16  ;;  %s14962_s1 = scalar_lea.vmem %s380_s23, 32 }
 0x12a   :  { %p14959_p5 = scmp.ne.s32.totalorder %s380_s23, %s14958_s13  ;;  %p14963_p6 = scmp.lt.s32.totalorder %s380_s23, %s380_s23 }
 0x12b   :  { %p14964_p7 = scmp.lt.s32.totalorder %s14962_s1, %s14958_s13 }
 0x12d   :  { %p14965_p8 = por %p14964_p7, %p14963_p6 }
 0x12f   :  { %p14966_p9 = pnand %p14965_p8, %p14959_p5 }
 0x131   :  { %14969 = shalt.err (!%p14966_p9)
}
 0x132   :  { %382 = dma.hbm_to_vmem [thread:$0]  %s16038_s17, 16, %s380_s23, [#allocation55]  }
 0x133   :  { %s15841_s2 = smov [#allocation57]   ;;  %s15842_s4 = smov [#allocation60]  }
 0x134   :  { %s404_s5 = sshll.u32 %s15841_s2, 4  ;;  %s427_s0 = sshll.u32 %s15842_s4, 4  ;;  %s405_s5 = int_to_ptr.vmem [resolvable:$true] %s404_s5  ;;  %s16267_s0 = int_to_ptr.vmem [resolvable:$true] %s427_s0 }
 0x135   :  { %s14970_s7 = scalar_lea.hbm %s16063_s20, 1536 }
 0x136   :  { %p14971_p10 = scmp.ne.s32.totalorder %s16063_s20, %s14970_s7  ;;  %p14974_p11 = scmp.lt.u32.totalorder %s14970_s7, %s16063_s20 }
 0x138   :  { %p14976_p12 = pnand %p14974_p11, %p14971_p10 }
 0x13a   :  { %14979 = shalt.err (!%p14976_p12)
}
 0x13b   :  { %s14980_s10 = scalar_lea.vmem %s405_s5, 1536  ;;  %p14985_p0 = scmp.lt.s32.totalorder %s405_s5, %s405_s5 }
 0x13c   :  { %p14981_p13 = scmp.ne.s32.totalorder %s405_s5, %s14980_s10  ;;  %p14986_p1 = scmp.lt.s32.totalorder %s14980_s10, %s14980_s10 }
 0x13e   :  { %p14987_p2 = por %p14986_p1, %p14985_p0 }
 0x140   :  { %p14988_p3 = pnand %p14987_p2, %p14981_p13 }
 0x142   :  { %14991 = shalt.err (!%p14988_p3)
}
 0x143   :  { %s15843_s17 = smov 64   ;;  %s15844_s25 = smov 4  }
 0x144   :  { %410 = dma.hbm_to_vmem [thread:$0]  %s16063_s20, 1536, %s405_s5, [#allocation58], %s15843_s17, %s15843_s17, %s15844_s25  }
 0x145   :  { %s14992_s11 = scalar_lea.hbm %s16073_s8, 16 }
 0x146   :  { %p14993_p4 = scmp.ne.s32.totalorder %s16073_s8, %s14992_s11  ;;  %p14996_p5 = scmp.lt.u32.totalorder %s14992_s11, %s16073_s8 }
 0x148   :  { %p14998_p6 = pnand %p14996_p5, %p14993_p4 }
 0x14a   :  { %15001 = shalt.err (!%p14998_p6)
}
 0x14b   :  { %s15002_s3 = scalar_lea.vmem %s16267_s0, 16  ;;  %s15006_s15 = scalar_lea.vmem %s16267_s0, 32 }
 0x14c   :  { %p15003_p7 = scmp.ne.s32.totalorder %s16267_s0, %s15002_s3  ;;  %p15007_p8 = scmp.lt.s32.totalorder %s16267_s0, %s16267_s0 }
 0x14d   :  { %p15008_p9 = scmp.lt.s32.totalorder %s15006_s15, %s15002_s3 }
 0x14f   :  { %p15009_p10 = por %p15008_p9, %p15007_p8 }
 0x151   :  { %p15010_p11 = pnand %p15009_p10, %p15003_p7 }
 0x153   :  { %15013 = shalt.err (!%p15010_p11)
}
 0x154   :  { %430 = dma.hbm_to_vmem [thread:$0]  %s16073_s8, 16, %s16267_s0, [#allocation61]  }
 0x155   :  { %s15845_s20 = smov [#allocation63]   ;;  %s15846_s30 = smov [#allocation66]  }
 0x156   :  { %s451_s16 = sshll.u32 %s15845_s20, 4  ;;  %s473_s24 = sshll.u32 %s15846_s30, 4  ;;  %s452_s16 = int_to_ptr.vmem [resolvable:$true] %s451_s16  ;;  %s474_s24 = int_to_ptr.vmem [resolvable:$true] %s473_s24 }
 0x157   :  { %s15014_s18 = scalar_lea.hbm %s16093_s19, 16 }
 0x158   :  { %p15015_p12 = scmp.ne.s32.totalorder %s16093_s19, %s15014_s18  ;;  %p15018_p13 = scmp.lt.u32.totalorder %s15014_s18, %s16093_s19 }
 0x15a   :  { %p15020_p0 = pnand %p15018_p13, %p15015_p12 }
 0x15c   :  { %15023 = shalt.err (!%p15020_p0)
}
 0x15d   :  { %s15024_s22 = scalar_lea.vmem %s452_s16, 16  ;;  %s15028_s23 = scalar_lea.vmem %s452_s16, 32 }
 0x15e   :  { %p15025_p1 = scmp.ne.s32.totalorder %s452_s16, %s15024_s22  ;;  %p15029_p2 = scmp.lt.s32.totalorder %s452_s16, %s452_s16 }
 0x15f   :  { %p15030_p3 = scmp.lt.s32.totalorder %s15028_s23, %s15024_s22 }
 0x161   :  { %p15031_p4 = por %p15030_p3, %p15029_p2 }
 0x163   :  { %p15032_p5 = pnand %p15031_p4, %p15025_p1 }
 0x165   :  { %15035 = shalt.err (!%p15032_p5)
}
 0x166   :  { %454 = dma.hbm_to_vmem [thread:$0]  %s16093_s19, 16, %s452_s16, [#allocation64]  }
 0x167   :  { %s15036_s8 = scalar_lea.hbm %s16103_s6, 16 }
 0x168   :  { %p15037_p6 = scmp.ne.s32.totalorder %s16103_s6, %s15036_s8  ;;  %p15040_p7 = scmp.lt.u32.totalorder %s15036_s8, %s16103_s6 }
 0x16a   :  { %p15042_p8 = pnand %p15040_p7, %p15037_p6 }
 0x16c   :  { %15045 = shalt.err (!%p15042_p8)
}
 0x16d   :  { %s15046_s26 = scalar_lea.vmem %s474_s24, 16  ;;  %s15050_s28 = scalar_lea.vmem %s474_s24, 32 }
 0x16e   :  { %p15047_p9 = scmp.ne.s32.totalorder %s474_s24, %s15046_s26  ;;  %p15051_p10 = scmp.lt.s32.totalorder %s474_s24, %s474_s24 }
 0x16f   :  { %p15052_p11 = scmp.lt.s32.totalorder %s15050_s28, %s15046_s26 }
 0x171   :  { %p15053_p12 = por %p15052_p11, %p15051_p10 }
 0x173   :  { %p15054_p13 = pnand %p15053_p12, %p15047_p9 }
 0x175   :  { %15057 = shalt.err (!%p15054_p13)
}
 0x176   :  { %s17880_s12 = sld [smem:[#allocation146_spill]]  ;;  %s15847_s29 = smov [#allocation69]  }
 0x177   :  { %476 = dma.hbm_to_vmem [thread:$0]  %s16103_s6, 16, %s474_s24, [#allocation67]  }
 0x178   :  { %s497_s19 = sshll.u32 %s15847_s29, 4  ;;  %s15848_s13 = smov [#allocation72]   ;;  %s498_s19 = int_to_ptr.vmem [resolvable:$true] %s497_s19 }
 0x179   :  { %s516_s1 = sshll.u32 %s15848_s13, 4  ;;  %s16294_s1 = int_to_ptr.vmem [resolvable:$true] %s516_s1 }
 0x17c   :  { %s15058_s2 = scalar_lea.hbm %s17880_s12, 16 }
 0x17d   :  { %p15059_p0 = scmp.ne.s32.totalorder %s17880_s12, %s15058_s2  ;;  %p15062_p1 = scmp.lt.u32.totalorder %s15058_s2, %s17880_s12 }
 0x17f   :  { %p15064_p2 = pnand %p15062_p1, %p15059_p0 }
 0x181   :  { %15067 = shalt.err (!%p15064_p2)
}
 0x182   :  { %s15068_s5 = scalar_lea.vmem %s498_s19, 16  ;;  %s15072_s4 = scalar_lea.vmem %s498_s19, 32 }
 0x183   :  { %p15069_p3 = scmp.ne.s32.totalorder %s498_s19, %s15068_s5  ;;  %p15073_p4 = scmp.lt.s32.totalorder %s498_s19, %s498_s19 }
 0x184   :  { %p15074_p5 = scmp.lt.s32.totalorder %s15072_s4, %s15068_s5 }
 0x186   :  { %p15075_p6 = por %p15074_p5, %p15073_p4 }
 0x188   :  { %p15076_p7 = pnand %p15075_p6, %p15069_p3 }
 0x18a   :  { %15079 = shalt.err (!%p15076_p7)
}
 0x18b   :  { %s17881_s6 = sld [smem:[#allocation148_spill]] }
 0x18c   :  { %500 = dma.hbm_to_vmem [thread:$0]  %s17880_s12, 16, %s498_s19, [#allocation70]  }
 0x191   :  { %s15080_s0 = scalar_lea.hbm %s17881_s6, 1536 }
 0x192   :  { %p15081_p8 = scmp.ne.s32.totalorder %s17881_s6, %s15080_s0  ;;  %p15084_p9 = scmp.lt.u32.totalorder %s15080_s0, %s17881_s6 }
 0x194   :  { %p15086_p10 = pnand %p15084_p9, %p15081_p8 }
 0x196   :  { %15089 = shalt.err (!%p15086_p10)
}
 0x197   :  { %s15090_s7 = scalar_lea.vmem %s16294_s1, 1536  ;;  %p15095_p12 = scmp.lt.s32.totalorder %s16294_s1, %s16294_s1 }
 0x198   :  { %p15091_p11 = scmp.ne.s32.totalorder %s16294_s1, %s15090_s7  ;;  %p15096_p13 = scmp.lt.s32.totalorder %s15090_s7, %s15090_s7 }
 0x19a   :  { %p15097_p0 = por %p15096_p13, %p15095_p12 }
 0x19c   :  { %p15098_p1 = pnand %p15097_p0, %p15091_p11 }
 0x19e   :  { %15101 = shalt.err (!%p15098_p1)
}
 0x19f   :  { %s17882_s10 = sld [smem:[#allocation150_spill]]  ;;  %s15849_s11 = smov [#allocation75]  }
 0x1a0   :  { %522 = dma.hbm_to_vmem [thread:$0]  %s17881_s6, 1536, %s16294_s1, [#allocation73], %s15843_s17, %s15843_s17, %s15844_s25  }
 0x1a1   :  { %s539_s3 = sshll.u32 %s15849_s11, 4  ;;  %s15850_s15 = smov [#allocation78]   ;;  %s540_s3 = int_to_ptr.vmem [resolvable:$true] %s539_s3 }
 0x1a2   :  { %s563_s20 = sshll.u32 %s15850_s15, 4  ;;  %s564_s20 = int_to_ptr.vmem [resolvable:$true] %s563_s20 }
 0x1a5   :  { %s15102_s16 = scalar_lea.hbm %s17882_s10, 16 }
 0x1a6   :  { %p15103_p2 = scmp.ne.s32.totalorder %s17882_s10, %s15102_s16  ;;  %p15106_p3 = scmp.lt.u32.totalorder %s15102_s16, %s17882_s10 }
 0x1a8   :  { %p15108_p4 = pnand %p15106_p3, %p15103_p2 }
 0x1aa   :  { %15111 = shalt.err (!%p15108_p4)
}
 0x1ab   :  { %s15112_s30 = scalar_lea.vmem %s540_s3, 16  ;;  %s15116_s24 = scalar_lea.vmem %s540_s3, 32 }
 0x1ac   :  { %p15113_p5 = scmp.ne.s32.totalorder %s540_s3, %s15112_s30  ;;  %p15117_p6 = scmp.lt.s32.totalorder %s540_s3, %s540_s3 }
 0x1ad   :  { %p15118_p7 = scmp.lt.s32.totalorder %s15116_s24, %s15112_s30 }
 0x1af   :  { %p15119_p8 = por %p15118_p7, %p15117_p6 }
 0x1b1   :  { %p15120_p9 = pnand %p15119_p8, %p15113_p5 }
 0x1b3   :  { %15123 = shalt.err (!%p15120_p9)
}
 0x1b4   :  { %s17883_s18 = sld [smem:[#allocation154_spill]] }
 0x1b5   :  { %542 = dma.hbm_to_vmem [thread:$0]  %s17882_s10, 16, %s540_s3, [#allocation76]  }
 0x1ba   :  { %s15124_s22 = scalar_lea.hbm %s17883_s18, 16 }
 0x1bb   :  { %p15125_p10 = scmp.ne.s32.totalorder %s17883_s18, %s15124_s22  ;;  %p15128_p11 = scmp.lt.u32.totalorder %s15124_s22, %s17883_s18 }
 0x1bd   :  { %p15130_p12 = pnand %p15128_p11, %p15125_p10 }
 0x1bf   :  { %15133 = shalt.err (!%p15130_p12)
}
 0x1c0   :  { %s15134_s23 = scalar_lea.vmem %s564_s20, 16  ;;  %s15138_s8 = scalar_lea.vmem %s564_s20, 32 }
 0x1c1   :  { %p15135_p13 = scmp.ne.s32.totalorder %s564_s20, %s15134_s23  ;;  %p15139_p0 = scmp.lt.s32.totalorder %s564_s20, %s564_s20 }
 0x1c2   :  { %p15140_p1 = scmp.lt.s32.totalorder %s15138_s8, %s15134_s23 }
 0x1c4   :  { %p15141_p2 = por %p15140_p1, %p15139_p0 }
 0x1c6   :  { %p15142_p3 = pnand %p15141_p2, %p15135_p13 }
 0x1c8   :  { %15145 = shalt.err (!%p15142_p3)
}
 0x1c9   :  { %s17884_s26 = sld [smem:[#allocation157_spill]]  ;;  %s15851_s28 = smov [#allocation81]  }
 0x1ca   :  { %566 = dma.hbm_to_vmem [thread:$0]  %s17883_s18, 16, %s564_s20, [#allocation79]  }
 0x1cb   :  { %s585_s12 = sshll.u32 %s15851_s28, 4  ;;  %s15852_s29 = smov [#allocation84]   ;;  %s586_s12 = int_to_ptr.vmem [resolvable:$true] %s585_s12 }
 0x1cc   :  { %s606_s19 = sshll.u32 %s15852_s29, 4  ;;  %s16320_s19 = int_to_ptr.vmem [resolvable:$true] %s606_s19 }
 0x1cf   :  { %s15146_s13 = scalar_lea.hbm %s17884_s26, 16 }
 0x1d0   :  { %p15147_p4 = scmp.ne.s32.totalorder %s17884_s26, %s15146_s13  ;;  %p15150_p5 = scmp.lt.u32.totalorder %s15146_s13, %s17884_s26 }
 0x1d2   :  { %p15152_p6 = pnand %p15150_p5, %p15147_p4 }
 0x1d4   :  { %15155 = shalt.err (!%p15152_p6)
}
 0x1d5   :  { %s15156_s1 = scalar_lea.vmem %s586_s12, 16  ;;  %s15160_s2 = scalar_lea.vmem %s586_s12, 32 }
 0x1d6   :  { %p15157_p7 = scmp.ne.s32.totalorder %s586_s12, %s15156_s1  ;;  %p15161_p8 = scmp.lt.s32.totalorder %s586_s12, %s586_s12 }
 0x1d7   :  { %p15162_p9 = scmp.lt.s32.totalorder %s15160_s2, %s15156_s1 }
 0x1d9   :  { %p15163_p10 = por %p15162_p9, %p15161_p8 }
 0x1db   :  { %p15164_p11 = pnand %p15163_p10, %p15157_p7 }
 0x1dd   :  { %15167 = shalt.err (!%p15164_p11)
}
 0x1de   :  { %s17885_s5 = sld [smem:[#allocation160_spill]] }
 0x1df   :  { %588 = dma.hbm_to_vmem [thread:$0]  %s17884_s26, 16, %s586_s12, [#allocation82]  }
 0x1e4   :  { %s15168_s4 = scalar_lea.hbm %s17885_s5, 512 }
 0x1e5   :  { %p15169_p12 = scmp.ne.s32.totalorder %s17885_s5, %s15168_s4  ;;  %p15172_p13 = scmp.lt.u32.totalorder %s15168_s4, %s17885_s5 }
 0x1e7   :  { %p15174_p0 = pnand %p15172_p13, %p15169_p12 }
 0x1e9   :  { %15177 = shalt.err (!%p15174_p0)
}
 0x1ea   :  { %s15178_s6 = scalar_lea.vmem %s16320_s19, 512  ;;  %p15183_p2 = scmp.lt.s32.totalorder %s16320_s19, %s16320_s19 }
 0x1eb   :  { %p15179_p1 = scmp.ne.s32.totalorder %s16320_s19, %s15178_s6  ;;  %p15184_p3 = scmp.lt.s32.totalorder %s15178_s6, %s15178_s6 }
 0x1ed   :  { %p15185_p4 = por %p15184_p3, %p15183_p2 }
 0x1ef   :  { %p15186_p5 = pnand %p15185_p4, %p15179_p1 }
 0x1f1   :  { %15189 = shalt.err (!%p15186_p5)
}
 0x1f2   :  { %612 = dma.hbm_to_vmem [thread:$0]  %s17885_s5, 512, %s16320_s19, [#allocation85], %s15843_s17, %s15843_s17, %s15844_s25  }
 0x1f3   :  { %s15853_s0 = smov [#allocation87]   ;;  %s15854_s10 = smov [#allocation24]  }
 0x1f4   :  { %s630_s7 = sshll.u32 %s15853_s0, 4  ;;  %s167_s11 = sshll.u32 %s15854_s10, 4  ;;  %s631_s7 = int_to_ptr.vmem [resolvable:$true] %s630_s7  ;;  %s168_s11 = int_to_ptr.vmem [resolvable:$true] %s167_s11 }
 0x1f5   :  { %s15190_s3 = scalar_lea.hbm %s16203_s9, 512 }
 0x1f6   :  { %p15191_p6 = scmp.ne.s32.totalorder %s16203_s9, %s15190_s3  ;;  %p15194_p7 = scmp.lt.u32.totalorder %s15190_s3, %s16203_s9 }
 0x1f8   :  { %p15196_p8 = pnand %p15194_p7, %p15191_p6 }
 0x1fa   :  { %15199 = shalt.err (!%p15196_p8)
}
 0x1fb   :  { %s15200_s15 = scalar_lea.vmem %s631_s7, 512  ;;  %p15205_p10 = scmp.lt.s32.totalorder %s631_s7, %s631_s7 }
 0x1fc   :  { %p15201_p9 = scmp.ne.s32.totalorder %s631_s7, %s15200_s15  ;;  %p15206_p11 = scmp.lt.s32.totalorder %s15200_s15, %s15200_s15 }
 0x1fe   :  { %p15207_p12 = por %p15206_p11, %p15205_p10 }
 0x200   :  { %p15208_p13 = pnand %p15207_p12, %p15201_p9 }
 0x202   :  { %15211 = shalt.err (!%p15208_p13)
}
 0x203   :  { %s17886_s20 = sld [smem:[#allocation115_spill]] }
 0x204   :  { %636 = dma.hbm_to_vmem [thread:$0]  %s16203_s9, 512, %s631_s7, [#allocation88], %s15843_s17, %s15843_s17, %s15844_s25  }
 0x209   :  { %s15212_s16 = scalar_lea.hbm %s17886_s20, 16 }
 0x20a   :  { %p15213_p0 = scmp.ne.s32.totalorder %s17886_s20, %s15212_s16  ;;  %p15216_p1 = scmp.lt.u32.totalorder %s15212_s16, %s17886_s20 }
 0x20c   :  { %p15218_p2 = pnand %p15216_p1, %p15213_p0 }
 0x20e   :  { %15221 = shalt.err (!%p15218_p2)
}
 0x20f   :  { %s15222_s30 = scalar_lea.vmem %s168_s11, 16  ;;  %s15226_s24 = scalar_lea.vmem %s168_s11, 32 }
 0x210   :  { %p15223_p3 = scmp.ne.s32.totalorder %s168_s11, %s15222_s30  ;;  %p15227_p4 = scmp.lt.s32.totalorder %s168_s11, %s168_s11 }
 0x211   :  { %p15228_p5 = scmp.lt.s32.totalorder %s15226_s24, %s15222_s30 }
 0x213   :  { %p15229_p6 = por %p15228_p5, %p15227_p4 }
 0x215   :  { %p15230_p7 = pnand %p15229_p6, %p15223_p3 }
 0x217   :  { %15233 = shalt.err (!%p15230_p7)
}
 0x218   :  { %s17887_s18 = sld [smem:[#allocation117_spill]]  ;;  %s15855_s22 = smov [#allocation29]  }
 0x219   :  { %170 = dma.hbm_to_vmem [thread:$0]  %s17886_s20, 16, %s168_s11, [#allocation25]  }
 0x21a   :  { %s189_s9 = sshll.u32 %s15855_s22, 4  ;;  %s15856_s23 = smov [#allocation32]   ;;  %s190_s9 = int_to_ptr.vmem [resolvable:$true] %s189_s9 }
 0x21b   :  { %s217_s8 = sshll.u32 %s15856_s23, 4  ;;  %s218_s8 = int_to_ptr.vmem [resolvable:$true] %s217_s8 }
 0x21e   :  { %s15234_s26 = scalar_lea.hbm %s17887_s18, 16 }
 0x21f   :  { %p15235_p8 = scmp.ne.s32.totalorder %s17887_s18, %s15234_s26  ;;  %p15238_p9 = scmp.lt.u32.totalorder %s15234_s26, %s17887_s18 }
 0x221   :  { %p15240_p10 = pnand %p15238_p9, %p15235_p8 }
 0x223   :  { %15243 = shalt.err (!%p15240_p10)
}
 0x224   :  { %s15244_s28 = scalar_lea.vmem %s190_s9, 16  ;;  %s15248_s12 = scalar_lea.vmem %s190_s9, 32 }
 0x225   :  { %p15245_p11 = scmp.ne.s32.totalorder %s190_s9, %s15244_s28  ;;  %p15249_p12 = scmp.lt.s32.totalorder %s190_s9, %s190_s9 }
 0x226   :  { %p15250_p13 = scmp.lt.s32.totalorder %s15248_s12, %s15244_s28 }
 0x228   :  { %p15251_p0 = por %p15250_p13, %p15249_p12 }
 0x22a   :  { %p15252_p1 = pnand %p15251_p0, %p15245_p11 }
 0x22c   :  { %15255 = shalt.err (!%p15252_p1)
}
 0x22d   :  { %s17888_s29 = sld [smem:[#allocation122_spill]] }
 0x22e   :  { %192 = dma.hbm_to_vmem [thread:$0]  %s17887_s18, 16, %s190_s9, [#allocation28]  }
 0x233   :  { %s15256_s19 = scalar_lea.hbm %s17888_s29, 16 }
 0x234   :  { %p15257_p2 = scmp.ne.s32.totalorder %s17888_s29, %s15256_s19  ;;  %p15260_p3 = scmp.lt.u32.totalorder %s15256_s19, %s17888_s29 }
 0x236   :  { %p15262_p4 = pnand %p15260_p3, %p15257_p2 }
 0x238   :  { %15265 = shalt.err (!%p15262_p4)
}
 0x239   :  { %s15266_s13 = scalar_lea.vmem %s218_s8, 16  ;;  %s15270_s1 = scalar_lea.vmem %s218_s8, 32 }
 0x23a   :  { %p15267_p5 = scmp.ne.s32.totalorder %s218_s8, %s15266_s13  ;;  %p15271_p6 = scmp.lt.s32.totalorder %s218_s8, %s218_s8 }
 0x23b   :  { %p15272_p7 = scmp.lt.s32.totalorder %s15270_s1, %s15266_s13 }
 0x23d   :  { %p15273_p8 = por %p15272_p7, %p15271_p6 }
 0x23f   :  { %p15274_p9 = pnand %p15273_p8, %p15267_p5 }
 0x241   :  { %15277 = shalt.err (!%p15274_p9)
}
 0x242   :  { %s17889_s2 = sld [smem:[#allocation124_spill]]  ;;  %s15857_s5 = smov [#allocation35]  }
 0x243   :  { %220 = dma.hbm_to_vmem [thread:$0]  %s17888_s29, 16, %s218_s8, [#allocation31]  }
 0x244   :  { %s239_s4 = sshll.u32 %s15857_s5, 4  ;;  %s15858_s6 = smov [#allocation38]   ;;  %s240_s4 = int_to_ptr.vmem [resolvable:$true] %s239_s4 }
 0x245   :  { %s261_s0 = sshll.u32 %s15858_s6, 4  ;;  %s262_s0 = int_to_ptr.vmem [resolvable:$true] %s261_s0 }
 0x248   :  { %s15278_s7 = scalar_lea.hbm %s17889_s2, 16 }
 0x249   :  { %p15279_p10 = scmp.ne.s32.totalorder %s17889_s2, %s15278_s7  ;;  %p15282_p11 = scmp.lt.u32.totalorder %s15278_s7, %s17889_s2 }
 0x24b   :  { %p15284_p12 = pnand %p15282_p11, %p15279_p10 }
 0x24d   :  { %15287 = shalt.err (!%p15284_p12)
}
 0x24e   :  { %s15288_s10 = scalar_lea.vmem %s240_s4, 16  ;;  %s15292_s11 = scalar_lea.vmem %s240_s4, 32 }
 0x24f   :  { %p15289_p13 = scmp.ne.s32.totalorder %s240_s4, %s15288_s10  ;;  %p15293_p0 = scmp.lt.s32.totalorder %s240_s4, %s240_s4 }
 0x250   :  { %p15294_p1 = scmp.lt.s32.totalorder %s15292_s11, %s15288_s10 }
 0x252   :  { %p15295_p2 = por %p15294_p1, %p15293_p0 }
 0x254   :  { %p15296_p3 = pnand %p15295_p2, %p15289_p13 }
 0x256   :  { %15299 = shalt.err (!%p15296_p3)
}
 0x257   :  { %s17890_s3 = sld [smem:[#allocation126_spill]] }
 0x258   :  { %242 = dma.hbm_to_vmem [thread:$0]  %s17889_s2, 16, %s240_s4, [#allocation34]  }
 0x25d   :  { %s15300_s15 = scalar_lea.hbm %s17890_s3, 16 }
 0x25e   :  { %p15301_p4 = scmp.ne.s32.totalorder %s17890_s3, %s15300_s15  ;;  %p15304_p5 = scmp.lt.u32.totalorder %s15300_s15, %s17890_s3 }
 0x260   :  { %p15306_p6 = pnand %p15304_p5, %p15301_p4 }
 0x262   :  { %15309 = shalt.err (!%p15306_p6)
}
 0x263   :  { %s15310_s20 = scalar_lea.vmem %s262_s0, 16  ;;  %s15314_s16 = scalar_lea.vmem %s262_s0, 32 }
 0x264   :  { %p15311_p7 = scmp.ne.s32.totalorder %s262_s0, %s15310_s20  ;;  %p15315_p8 = scmp.lt.s32.totalorder %s262_s0, %s262_s0 }
 0x265   :  { %p15316_p9 = scmp.lt.s32.totalorder %s15314_s16, %s15310_s20 }
 0x267   :  { %p15317_p10 = por %p15316_p9, %p15315_p8 }
 0x269   :  { %p15318_p11 = pnand %p15317_p10, %p15311_p7 }
 0x26b   :  { %15321 = shalt.err (!%p15318_p11)
}
 0x26c   :  { %s17891_s30 = sld [smem:[#allocation128_spill]]  ;;  %s15859_s24 = smov [#allocation41]  }
 0x26d   :  { %264 = dma.hbm_to_vmem [thread:$0]  %s17890_s3, 16, %s262_s0, [#allocation37]  }
 0x26e   :  { %s283_s18 = sshll.u32 %s15859_s24, 4  ;;  %s15860_s22 = smov [#allocation44]   ;;  %s284_s18 = int_to_ptr.vmem [resolvable:$true] %s283_s18 }
 0x26f   :  { %s302_s9 = sshll.u32 %s15860_s22, 4  ;;  %s16365_s9 = int_to_ptr.vmem [resolvable:$true] %s302_s9 }
 0x272   :  { %s15322_s23 = scalar_lea.hbm %s17891_s30, 16 }
 0x273   :  { %p15323_p12 = scmp.ne.s32.totalorder %s17891_s30, %s15322_s23  ;;  %p15326_p13 = scmp.lt.u32.totalorder %s15322_s23, %s17891_s30 }
 0x275   :  { %p15328_p0 = pnand %p15326_p13, %p15323_p12 }
 0x277   :  { %15331 = shalt.err (!%p15328_p0)
}
 0x278   :  { %s15332_s8 = scalar_lea.vmem %s284_s18, 16  ;;  %s15336_s26 = scalar_lea.vmem %s284_s18, 32 }
 0x279   :  { %p15333_p1 = scmp.ne.s32.totalorder %s284_s18, %s15332_s8  ;;  %p15337_p2 = scmp.lt.s32.totalorder %s284_s18, %s284_s18 }
 0x27a   :  { %p15338_p3 = scmp.lt.s32.totalorder %s15336_s26, %s15332_s8 }
 0x27c   :  { %p15339_p4 = por %p15338_p3, %p15337_p2 }
 0x27e   :  { %p15340_p5 = pnand %p15339_p4, %p15333_p1 }
 0x280   :  { %15343 = shalt.err (!%p15340_p5)
}
 0x281   :  { %s17892_s28 = sld [smem:[#allocation129_spill]] }
 0x282   :  { %286 = dma.hbm_to_vmem [thread:$0]  %s17891_s30, 16, %s284_s18, [#allocation40]  }
 0x287   :  { %s15344_s12 = scalar_lea.hbm %s17892_s28, 1536 }
 0x288   :  { %p15345_p6 = scmp.ne.s32.totalorder %s17892_s28, %s15344_s12  ;;  %p15348_p7 = scmp.lt.u32.totalorder %s15344_s12, %s17892_s28 }
 0x28a   :  { %p15350_p8 = pnand %p15348_p7, %p15345_p6 }
 0x28c   :  { %15353 = shalt.err (!%p15350_p8)
}
 0x28d   :  { %s15354_s29 = scalar_lea.vmem %s16365_s9, 1536  ;;  %p15359_p10 = scmp.lt.s32.totalorder %s16365_s9, %s16365_s9 }
 0x28e   :  { %p15355_p9 = scmp.ne.s32.totalorder %s16365_s9, %s15354_s29  ;;  %p15360_p11 = scmp.lt.s32.totalorder %s15354_s29, %s15354_s29 }
 0x290   :  { %p15361_p12 = por %p15360_p11, %p15359_p10 }
 0x292   :  { %p15362_p13 = pnand %p15361_p12, %p15355_p9 }
 0x294   :  { %15365 = shalt.err (!%p15362_p13)
}
 0x295   :  { %s17893_s19 = sld [smem:[#allocation130_spill]]  ;;  %s15861_s13 = smov [#allocation47]  }
 0x296   :  { %308 = dma.hbm_to_vmem [thread:$0]  %s17892_s28, 1536, %s16365_s9, [#allocation43], %s15843_s17, %s15843_s17, %s15844_s25  }
 0x297   :  { %s325_s1 = sshll.u32 %s15861_s13, 4  ;;  %s15862_s2 = smov [#allocation50]   ;;  %s326_s1 = int_to_ptr.vmem [resolvable:$true] %s325_s1 }
 0x298   :  { %s347_s5 = sshll.u32 %s15862_s2, 4  ;;  %s348_s5 = int_to_ptr.vmem [resolvable:$true] %s347_s5 }
 0x29b   :  { %s15366_s4 = scalar_lea.hbm %s17893_s19, 16 }
 0x29c   :  { %p15367_p0 = scmp.ne.s32.totalorder %s17893_s19, %s15366_s4  ;;  %p15370_p1 = scmp.lt.u32.totalorder %s15366_s4, %s17893_s19 }
 0x29e   :  { %p15372_p2 = pnand %p15370_p1, %p15367_p0 }
 0x2a0   :  { %15375 = shalt.err (!%p15372_p2)
}
 0x2a1   :  { %s15376_s6 = scalar_lea.vmem %s326_s1, 16  ;;  %s15380_s0 = scalar_lea.vmem %s326_s1, 32 }
 0x2a2   :  { %p15377_p3 = scmp.ne.s32.totalorder %s326_s1, %s15376_s6  ;;  %p15381_p4 = scmp.lt.s32.totalorder %s326_s1, %s326_s1 }
 0x2a3   :  { %p15382_p5 = scmp.lt.s32.totalorder %s15380_s0, %s15376_s6 }
 0x2a5   :  { %p15383_p6 = por %p15382_p5, %p15381_p4 }
 0x2a7   :  { %p15384_p7 = pnand %p15383_p6, %p15377_p3 }
 0x2a9   :  { %15387 = shalt.err (!%p15384_p7)
}
 0x2aa   :  { %s17894_s7 = sld [smem:[#allocation131_spill]] }
 0x2ab   :  { %328 = dma.hbm_to_vmem [thread:$0]  %s17893_s19, 16, %s326_s1, [#allocation46]  }
 0x2b0   :  { %s15388_s10 = scalar_lea.hbm %s17894_s7, 16 }
 0x2b1   :  { %p15389_p8 = scmp.ne.s32.totalorder %s17894_s7, %s15388_s10  ;;  %p15392_p9 = scmp.lt.u32.totalorder %s15388_s10, %s17894_s7 }
 0x2b3   :  { %p15394_p10 = pnand %p15392_p9, %p15389_p8 }
 0x2b5   :  { %15397 = shalt.err (!%p15394_p10)
}
 0x2b6   :  { %s15398_s11 = scalar_lea.vmem %s348_s5, 16  ;;  %s15402_s3 = scalar_lea.vmem %s348_s5, 32 }
 0x2b7   :  { %p15399_p11 = scmp.ne.s32.totalorder %s348_s5, %s15398_s11  ;;  %p15403_p12 = scmp.lt.s32.totalorder %s348_s5, %s348_s5 }
 0x2b8   :  { %p15404_p13 = scmp.lt.s32.totalorder %s15402_s3, %s15398_s11 }
 0x2ba   :  { %p15405_p0 = por %p15404_p13, %p15403_p12 }
 0x2bc   :  { %p15406_p1 = pnand %p15405_p0, %p15399_p11 }
 0x2be   :  { %15409 = shalt.err (!%p15406_p1)
}
 0x2bf   :  { %s17895_s15 = sld [smem:[#allocation133_spill]]  ;;  %s15863_s20 = smov [#allocation53]  }
 0x2c0   :  { %350 = dma.hbm_to_vmem [thread:$0]  %s17894_s7, 16, %s348_s5, [#allocation49]  }
 0x2c1   :  { %s369_s16 = sshll.u32 %s15863_s20, 4  ;;  %s15864_s30 = smov [#allocation56]   ;;  %s370_s16 = int_to_ptr.vmem [resolvable:$true] %s369_s16 }
 0x2c2   :  { %s395_s24 = sshll.u32 %s15864_s30, 4  ;;  %s396_s24 = int_to_ptr.vmem [resolvable:$true] %s395_s24 }
 0x2c5   :  { %s15410_s18 = scalar_lea.hbm %s17895_s15, 16 }
 0x2c6   :  { %p15411_p2 = scmp.ne.s32.totalorder %s17895_s15, %s15410_s18  ;;  %p15414_p3 = scmp.lt.u32.totalorder %s15410_s18, %s17895_s15 }
 0x2c8   :  { %p15416_p4 = pnand %p15414_p3, %p15411_p2 }
 0x2ca   :  { %15419 = shalt.err (!%p15416_p4)
}
 0x2cb   :  { %s15420_s22 = scalar_lea.vmem %s370_s16, 16  ;;  %s15424_s9 = scalar_lea.vmem %s370_s16, 32 }
 0x2cc   :  { %p15421_p5 = scmp.ne.s32.totalorder %s370_s16, %s15420_s22  ;;  %p15425_p6 = scmp.lt.s32.totalorder %s370_s16, %s370_s16 }
 0x2cd   :  { %p15426_p7 = scmp.lt.s32.totalorder %s15424_s9, %s15420_s22 }
 0x2cf   :  { %p15427_p8 = por %p15426_p7, %p15425_p6 }
 0x2d1   :  { %p15428_p9 = pnand %p15427_p8, %p15421_p5 }
 0x2d3   :  { %15431 = shalt.err (!%p15428_p9)
}
 0x2d4   :  { %s17896_s23 = sld [smem:[#allocation137_spill]] }
 0x2d5   :  { %372 = dma.hbm_to_vmem [thread:$0]  %s17895_s15, 16, %s370_s16, [#allocation52]  }
 0x2da   :  { %s15432_s8 = scalar_lea.hbm %s17896_s23, 16 }
 0x2db   :  { %p15433_p10 = scmp.ne.s32.totalorder %s17896_s23, %s15432_s8  ;;  %p15436_p11 = scmp.lt.u32.totalorder %s15432_s8, %s17896_s23 }
 0x2dd   :  { %p15438_p12 = pnand %p15436_p11, %p15433_p10 }
 0x2df   :  { %15441 = shalt.err (!%p15438_p12)
}
 0x2e0   :  { %s15442_s26 = scalar_lea.vmem %s396_s24, 16  ;;  %s15446_s28 = scalar_lea.vmem %s396_s24, 32 }
 0x2e1   :  { %p15443_p13 = scmp.ne.s32.totalorder %s396_s24, %s15442_s26  ;;  %p15447_p0 = scmp.lt.s32.totalorder %s396_s24, %s396_s24 }
 0x2e2   :  { %p15448_p1 = scmp.lt.s32.totalorder %s15446_s28, %s15442_s26 }
 0x2e4   :  { %p15449_p2 = por %p15448_p1, %p15447_p0 }
 0x2e6   :  { %p15450_p3 = pnand %p15449_p2, %p15443_p13 }
 0x2e8   :  { %15453 = shalt.err (!%p15450_p3)
}
 0x2e9   :  { %s17897_s12 = sld [smem:[#allocation138_spill]]  ;;  %s15865_s29 = smov [#allocation59]  }
 0x2ea   :  { %398 = dma.hbm_to_vmem [thread:$0]  %s17896_s23, 16, %s396_s24, [#allocation55]  }
 0x2eb   :  { %s417_s19 = sshll.u32 %s15865_s29, 4  ;;  %s15866_s13 = smov [#allocation62]   ;;  %s418_s19 = int_to_ptr.vmem [resolvable:$true] %s417_s19 }
 0x2ec   :  { %s441_s1 = sshll.u32 %s15866_s13, 4  ;;  %s442_s1 = int_to_ptr.vmem [resolvable:$true] %s441_s1 }
 0x2ef   :  { %s15454_s2 = scalar_lea.hbm %s17897_s12, 16 }
 0x2f0   :  { %p15455_p4 = scmp.ne.s32.totalorder %s17897_s12, %s15454_s2  ;;  %p15458_p5 = scmp.lt.u32.totalorder %s15454_s2, %s17897_s12 }
 0x2f2   :  { %p15460_p6 = pnand %p15458_p5, %p15455_p4 }
 0x2f4   :  { %15463 = shalt.err (!%p15460_p6)
}
 0x2f5   :  { %s15464_s5 = scalar_lea.vmem %s418_s19, 16  ;;  %s15468_s4 = scalar_lea.vmem %s418_s19, 32 }
 0x2f6   :  { %p15465_p7 = scmp.ne.s32.totalorder %s418_s19, %s15464_s5  ;;  %p15469_p8 = scmp.lt.s32.totalorder %s418_s19, %s418_s19 }
 0x2f7   :  { %p15470_p9 = scmp.lt.s32.totalorder %s15468_s4, %s15464_s5 }
 0x2f9   :  { %p15471_p10 = por %p15470_p9, %p15469_p8 }
 0x2fb   :  { %p15472_p11 = pnand %p15471_p10, %p15465_p7 }
 0x2fd   :  { %15475 = shalt.err (!%p15472_p11)
}
 0x2fe   :  { %s17898_s6 = sld [smem:[#allocation141_spill]] }
 0x2ff   :  { %420 = dma.hbm_to_vmem [thread:$0]  %s17897_s12, 16, %s418_s19, [#allocation58]  }
 0x304   :  { %s15476_s0 = scalar_lea.hbm %s17898_s6, 16 }
 0x305   :  { %p15477_p12 = scmp.ne.s32.totalorder %s17898_s6, %s15476_s0  ;;  %p15480_p13 = scmp.lt.u32.totalorder %s15476_s0, %s17898_s6 }
 0x307   :  { %p15482_p0 = pnand %p15480_p13, %p15477_p12 }
 0x309   :  { %15485 = shalt.err (!%p15482_p0)
}
 0x30a   :  { %s15486_s7 = scalar_lea.vmem %s442_s1, 16  ;;  %s15490_s10 = scalar_lea.vmem %s442_s1, 32 }
 0x30b   :  { %p15487_p1 = scmp.ne.s32.totalorder %s442_s1, %s15486_s7  ;;  %p15491_p2 = scmp.lt.s32.totalorder %s442_s1, %s442_s1 }
 0x30c   :  { %p15492_p3 = scmp.lt.s32.totalorder %s15490_s10, %s15486_s7 }
 0x30e   :  { %p15493_p4 = por %p15492_p3, %p15491_p2 }
 0x310   :  { %p15494_p5 = pnand %p15493_p4, %p15487_p1 }
 0x312   :  { %15497 = shalt.err (!%p15494_p5)
}
 0x313   :  { %s17899_s11 = sld [smem:[#allocation142_spill]]  ;;  %s15867_s3 = smov [#allocation65]  }
 0x314   :  { %444 = dma.hbm_to_vmem [thread:$0]  %s17898_s6, 16, %s442_s1, [#allocation61]  }
 0x315   :  { %s460_s15 = sshll.u32 %s15867_s3, 4  ;;  %s15868_s20 = smov [#allocation68]   ;;  %s461_s15 = int_to_ptr.vmem [resolvable:$true] %s460_s15 }
 0x316   :  { %s483_s16 = sshll.u32 %s15868_s20, 4  ;;  %s484_s16 = int_to_ptr.vmem [resolvable:$true] %s483_s16 }
 0x319   :  { %s15498_s30 = scalar_lea.hbm %s17899_s11, 1536 }
 0x31a   :  { %p15499_p6 = scmp.ne.s32.totalorder %s17899_s11, %s15498_s30  ;;  %p15502_p7 = scmp.lt.u32.totalorder %s15498_s30, %s17899_s11 }
 0x31c   :  { %p15504_p8 = pnand %p15502_p7, %p15499_p6 }
 0x31e   :  { %15507 = shalt.err (!%p15504_p8)
}
 0x31f   :  { %s15508_s24 = scalar_lea.vmem %s461_s15, 1536  ;;  %p15513_p10 = scmp.lt.s32.totalorder %s461_s15, %s461_s15 }
 0x320   :  { %p15509_p9 = scmp.ne.s32.totalorder %s461_s15, %s15508_s24  ;;  %p15514_p11 = scmp.lt.s32.totalorder %s15508_s24, %s15508_s24 }
 0x322   :  { %p15515_p12 = por %p15514_p11, %p15513_p10 }
 0x324   :  { %p15516_p13 = pnand %p15515_p12, %p15509_p9 }
 0x326   :  { %15519 = shalt.err (!%p15516_p13)
}
 0x327   :  { %s17900_s18 = sld [smem:[#allocation143_spill]] }
 0x328   :  { %466 = dma.hbm_to_vmem [thread:$0]  %s17899_s11, 1536, %s461_s15, [#allocation64], %s15843_s17, %s15843_s17, %s15844_s25  }
 0x32d   :  { %s15520_s22 = scalar_lea.hbm %s17900_s18, 16 }
 0x32e   :  { %p15521_p0 = scmp.ne.s32.totalorder %s17900_s18, %s15520_s22  ;;  %p15524_p1 = scmp.lt.u32.totalorder %s15520_s22, %s17900_s18 }
 0x330   :  { %p15526_p2 = pnand %p15524_p1, %p15521_p0 }
 0x332   :  { %15529 = shalt.err (!%p15526_p2)
}
 0x333   :  { %s15530_s9 = scalar_lea.vmem %s484_s16, 16  ;;  %s15534_s23 = scalar_lea.vmem %s484_s16, 32 }
 0x334   :  { %p15531_p3 = scmp.ne.s32.totalorder %s484_s16, %s15530_s9  ;;  %p15535_p4 = scmp.lt.s32.totalorder %s484_s16, %s484_s16 }
 0x335   :  { %p15536_p5 = scmp.lt.s32.totalorder %s15534_s23, %s15530_s9 }
 0x337   :  { %p15537_p6 = por %p15536_p5, %p15535_p4 }
 0x339   :  { %p15538_p7 = pnand %p15537_p6, %p15531_p3 }
 0x33b   :  { %15541 = shalt.err (!%p15538_p7)
}
 0x33c   :  { %s17901_s8 = sld [smem:[#allocation147_spill]]  ;;  %s15869_s26 = smov [#allocation71]  }
 0x33d   :  { %486 = dma.hbm_to_vmem [thread:$0]  %s17900_s18, 16, %s484_s16, [#allocation67]  }
 0x33e   :  { %s507_s28 = sshll.u32 %s15869_s26, 4  ;;  %s15870_s12 = smov [#allocation74]   ;;  %s508_s28 = int_to_ptr.vmem [resolvable:$true] %s507_s28 }
 0x33f   :  { %s529_s29 = sshll.u32 %s15870_s12, 4  ;;  %s530_s29 = int_to_ptr.vmem [resolvable:$true] %s529_s29 }
 0x342   :  { %s15542_s19 = scalar_lea.hbm %s17901_s8, 16 }
 0x343   :  { %p15543_p8 = scmp.ne.s32.totalorder %s17901_s8, %s15542_s19  ;;  %p15546_p9 = scmp.lt.u32.totalorder %s15542_s19, %s17901_s8 }
 0x345   :  { %p15548_p10 = pnand %p15546_p9, %p15543_p8 }
 0x347   :  { %15551 = shalt.err (!%p15548_p10)
}
 0x348   :  { %s15552_s13 = scalar_lea.vmem %s508_s28, 16  ;;  %s15556_s1 = scalar_lea.vmem %s508_s28, 32 }
 0x349   :  { %p15553_p11 = scmp.ne.s32.totalorder %s508_s28, %s15552_s13  ;;  %p15557_p12 = scmp.lt.s32.totalorder %s508_s28, %s508_s28 }
 0x34a   :  { %p15558_p13 = scmp.lt.s32.totalorder %s15556_s1, %s15552_s13 }
 0x34c   :  { %p15559_p0 = por %p15558_p13, %p15557_p12 }
 0x34e   :  { %p15560_p1 = pnand %p15559_p0, %p15553_p11 }
 0x350   :  { %15563 = shalt.err (!%p15560_p1)
}
 0x351   :  { %s17902_s2 = sld [smem:[#allocation149_spill]] }
 0x352   :  { %510 = dma.hbm_to_vmem [thread:$0]  %s17901_s8, 16, %s508_s28, [#allocation70]  }
 0x357   :  { %s15564_s5 = scalar_lea.hbm %s17902_s2, 16 }
 0x358   :  { %p15565_p2 = scmp.ne.s32.totalorder %s17902_s2, %s15564_s5  ;;  %p15568_p3 = scmp.lt.u32.totalorder %s15564_s5, %s17902_s2 }
 0x35a   :  { %p15570_p4 = pnand %p15568_p3, %p15565_p2 }
 0x35c   :  { %15573 = shalt.err (!%p15570_p4)
}
 0x35d   :  { %s15574_s4 = scalar_lea.vmem %s530_s29, 16  ;;  %s15578_s6 = scalar_lea.vmem %s530_s29, 32 }
 0x35e   :  { %p15575_p5 = scmp.ne.s32.totalorder %s530_s29, %s15574_s4  ;;  %p15579_p6 = scmp.lt.s32.totalorder %s530_s29, %s530_s29 }
 0x35f   :  { %p15580_p7 = scmp.lt.s32.totalorder %s15578_s6, %s15574_s4 }
 0x361   :  { %p15581_p8 = por %p15580_p7, %p15579_p6 }
 0x363   :  { %p15582_p9 = pnand %p15581_p8, %p15575_p5 }
 0x365   :  { %15585 = shalt.err (!%p15582_p9)
}
 0x366   :  { %s17903_s0 = sld [smem:[#allocation153_spill]]  ;;  %s15871_s7 = smov [#allocation77]  }
 0x367   :  { %532 = dma.hbm_to_vmem [thread:$0]  %s17902_s2, 16, %s530_s29, [#allocation73]  }
 0x368   :  { %s553_s10 = sshll.u32 %s15871_s7, 4  ;;  %s15872_s11 = smov [#allocation80]   ;;  %s554_s10 = int_to_ptr.vmem [resolvable:$true] %s553_s10 }
 0x369   :  { %s575_s3 = sshll.u32 %s15872_s11, 4  ;;  %s576_s3 = int_to_ptr.vmem [resolvable:$true] %s575_s3 }
 0x36c   :  { %s15586_s15 = scalar_lea.hbm %s17903_s0, 16 }
 0x36d   :  { %p15587_p10 = scmp.ne.s32.totalorder %s17903_s0, %s15586_s15  ;;  %p15590_p11 = scmp.lt.u32.totalorder %s15586_s15, %s17903_s0 }
 0x36f   :  { %p15592_p12 = pnand %p15590_p11, %p15587_p10 }
 0x371   :  { %15595 = shalt.err (!%p15592_p12)
}
 0x372   :  { %s15596_s20 = scalar_lea.vmem %s554_s10, 16  ;;  %s15600_s16 = scalar_lea.vmem %s554_s10, 32 }
 0x373   :  { %p15597_p13 = scmp.ne.s32.totalorder %s554_s10, %s15596_s20  ;;  %p15601_p0 = scmp.lt.s32.totalorder %s554_s10, %s554_s10 }
 0x374   :  { %p15602_p1 = scmp.lt.s32.totalorder %s15600_s16, %s15596_s20 }
 0x376   :  { %p15603_p2 = por %p15602_p1, %p15601_p0 }
 0x378   :  { %p15604_p3 = pnand %p15603_p2, %p15597_p13 }
 0x37a   :  { %15607 = shalt.err (!%p15604_p3)
}
 0x37b   :  { %s17904_s30 = sld [smem:[#allocation156_spill]] }
 0x37c   :  { %556 = dma.hbm_to_vmem [thread:$0]  %s17903_s0, 16, %s554_s10, [#allocation76]  }
 0x381   :  { %s15608_s24 = scalar_lea.hbm %s17904_s30, 16 }
 0x382   :  { %p15609_p4 = scmp.ne.s32.totalorder %s17904_s30, %s15608_s24  ;;  %p15612_p5 = scmp.lt.u32.totalorder %s15608_s24, %s17904_s30 }
 0x384   :  { %p15614_p6 = pnand %p15612_p5, %p15609_p4 }
 0x386   :  { %15617 = shalt.err (!%p15614_p6)
}
 0x387   :  { %s15618_s18 = scalar_lea.vmem %s576_s3, 16  ;;  %s15622_s22 = scalar_lea.vmem %s576_s3, 32 }
 0x388   :  { %p15619_p7 = scmp.ne.s32.totalorder %s576_s3, %s15618_s18  ;;  %p15623_p8 = scmp.lt.s32.totalorder %s576_s3, %s576_s3 }
 0x389   :  { %p15624_p9 = scmp.lt.s32.totalorder %s15622_s22, %s15618_s18 }
 0x38b   :  { %p15625_p10 = por %p15624_p9, %p15623_p8 }
 0x38d   :  { %p15626_p11 = pnand %p15625_p10, %p15619_p7 }
 0x38f   :  { %15629 = shalt.err (!%p15626_p11)
}
 0x390   :  { %s17905_s9 = sld [smem:[#allocation158_spill]]  ;;  %s15873_s23 = smov [#allocation83]  }
 0x391   :  { %578 = dma.hbm_to_vmem [thread:$0]  %s17904_s30, 16, %s576_s3, [#allocation79]  }
 0x392   :  { %s595_s8 = sshll.u32 %s15873_s23, 4  ;;  %s15874_s26 = smov [#allocation86]   ;;  %s596_s8 = int_to_ptr.vmem [resolvable:$true] %s595_s8 }
 0x393   :  { %s618_s28 = sshll.u32 %s15874_s26, 4  ;;  %s16434_s28 = int_to_ptr.vmem [resolvable:$true] %s618_s28 }
 0x396   :  { %s15630_s12 = scalar_lea.hbm %s17905_s9, 16 }
 0x397   :  { %p15631_p12 = scmp.ne.s32.totalorder %s17905_s9, %s15630_s12  ;;  %p15634_p13 = scmp.lt.u32.totalorder %s15630_s12, %s17905_s9 }
 0x399   :  { %p15636_p0 = pnand %p15634_p13, %p15631_p12 }
 0x39b   :  { %15639 = shalt.err (!%p15636_p0)
}
 0x39c   :  { %s15640_s29 = scalar_lea.vmem %s596_s8, 16  ;;  %s15644_s19 = scalar_lea.vmem %s596_s8, 32 }
 0x39d   :  { %p15641_p1 = scmp.ne.s32.totalorder %s596_s8, %s15640_s29  ;;  %p15645_p2 = scmp.lt.s32.totalorder %s596_s8, %s596_s8 }
 0x39e   :  { %p15646_p3 = scmp.lt.s32.totalorder %s15644_s19, %s15640_s29 }
 0x3a0   :  { %p15647_p4 = por %p15646_p3, %p15645_p2 }
 0x3a2   :  { %p15648_p5 = pnand %p15647_p4, %p15641_p1 }
 0x3a4   :  { %15651 = shalt.err (!%p15648_p5)
}
 0x3a5   :  { %s17906_s13 = sld [smem:[#allocation161_spill]] }
 0x3a6   :  { %598 = dma.hbm_to_vmem [thread:$0]  %s17905_s9, 16, %s596_s8, [#allocation82]  }
 0x3ab   :  { %s15652_s1 = scalar_lea.hbm %s17906_s13, 512 }
 0x3ac   :  { %p15653_p6 = scmp.ne.s32.totalorder %s17906_s13, %s15652_s1  ;;  %p15656_p7 = scmp.lt.u32.totalorder %s15652_s1, %s17906_s13 }
 0x3ae   :  { %p15658_p8 = pnand %p15656_p7, %p15653_p6 }
 0x3b0   :  { %15661 = shalt.err (!%p15658_p8)
}
 0x3b1   :  { %s15662_s2 = scalar_lea.vmem %s16434_s28, 512  ;;  %p15667_p10 = scmp.lt.s32.totalorder %s16434_s28, %s16434_s28 }
 0x3b2   :  { %p15663_p9 = scmp.ne.s32.totalorder %s16434_s28, %s15662_s2  ;;  %p15668_p11 = scmp.lt.s32.totalorder %s15662_s2, %s15662_s2 }
 0x3b4   :  { %p15669_p12 = por %p15668_p11, %p15667_p10 }
 0x3b6   :  { %p15670_p13 = pnand %p15669_p12, %p15663_p9 }
 0x3b8   :  { %15673 = shalt.err (!%p15670_p13)
}
 0x3b9   :  { %624 = dma.hbm_to_vmem [thread:$0]  %s17906_s13, 512, %s16434_s28, [#allocation85], %s15843_s17, %s15843_s17, %s15844_s25  }
 0x3ba   :  { %s15875_s5 = smov [#allocation89]   ;;  %s15674_s6 = scalar_lea.hbm %s16208_s14, 512 }
 0x3bb   :  { %s642_s4 = sshll.u32 %s15875_s5, 4  ;;  %p15675_p0 = scmp.ne.s32.totalorder %s16208_s14, %s15674_s6  ;;  %s643_s4 = int_to_ptr.vmem [resolvable:$true] %s642_s4 }
 0x3bc   :  { %p15678_p1 = scmp.lt.u32.totalorder %s15674_s6, %s16208_s14 }
 0x3be   :  { %p15680_p2 = pnand %p15678_p1, %p15675_p0 }
 0x3c0   :  { %15683 = shalt.err (!%p15680_p2)
}
 0x3c1   :  { %s15684_s0 = scalar_lea.vmem %s643_s4, 512  ;;  %p15689_p4 = scmp.lt.s32.totalorder %s643_s4, %s643_s4 }
 0x3c2   :  { %p15685_p3 = scmp.ne.s32.totalorder %s643_s4, %s15684_s0  ;;  %p15690_p5 = scmp.lt.s32.totalorder %s15684_s0, %s15684_s0 }
 0x3c4   :  { %p15691_p6 = por %p15690_p5, %p15689_p4 }
 0x3c6   :  { %p15692_p7 = pnand %p15691_p6, %p15685_p3 }
 0x3c8   :  { %15695 = shalt.err (!%p15692_p7)
}
 0x3c9   :  { %648 = dma.hbm_to_vmem [thread:$0]  %s16208_s14, 512, %s643_s4, [#allocation88], %s15843_s17, %s15843_s17, %s15844_s25  }
 0x3ca   :  { %15718 = dma.done.wait [#allocation25], 16  }
 0x3cb   :  { %15719 = vsyncadd [#allocation25], 4294967280 }
 0x3cc   :  { %15720 = dma.done.wait [#allocation28], 32  }
 0x3cd   :  { %15721 = vsyncadd [#allocation28], 4294967264 }
 0x3ce   :  { %15722 = dma.done.wait [#allocation31], 32  }
 0x3cf   :  { %15723 = vsyncadd [#allocation31], 4294967264 }
 0x3d0   :  { %15724 = dma.done.wait [#allocation34], 32  }
 0x3d1   :  { %15725 = vsyncadd [#allocation34], 4294967264 }
 0x3d2   :  { %15726 = dma.done.wait [#allocation37], 32  }
 0x3d3   :  { %15727 = vsyncadd [#allocation37], 4294967264 }
 0x3d4   :  { %15728 = dma.done.wait [#allocation40], 32  }
 0x3d5   :  { %15729 = vsyncadd [#allocation40], 4294967264 }
 0x3d6   :  { %15730 = dma.done.wait [#allocation43], 1552  }
 0x3d7   :  { %15731 = vsyncadd [#allocation43], 4294965744 }
 0x3d8   :  { %15732 = dma.done.wait [#allocation46], 32  }
 0x3d9   :  { %15733 = vsyncadd [#allocation46], 4294967264 }
 0x3da   :  { %15734 = dma.done.wait [#allocation49], 400  }
 0x3db   :  { %15735 = vsyncadd [#allocation49], 4294966896 }
 0x3dc   :  { %15736 = dma.done.wait [#allocation52], 32  }
 0x3dd   :  { %15737 = vsyncadd [#allocation52], 4294967264 }
 0x3de   :  { %15738 = dma.done.wait [#allocation55], 32  }
 0x3df   :  { %15739 = vsyncadd [#allocation55], 4294967264 }
 0x3e0   :  { %15740 = dma.done.wait [#allocation58], 1552  }
 0x3e1   :  { %15741 = vsyncadd [#allocation58], 4294965744 }
 0x3e2   :  { %15742 = dma.done.wait [#allocation61], 32  }
 0x3e3   :  { %15743 = vsyncadd [#allocation61], 4294967264 }
 0x3e4   :  { %15744 = dma.done.wait [#allocation64], 1552  }
 0x3e5   :  { %15745 = vsyncadd [#allocation64], 4294965744 }
 0x3e6   :  { %15746 = dma.done.wait [#allocation67], 32  }
 0x3e7   :  { %15747 = vsyncadd [#allocation67], 4294967264 }
 0x3e8   :  { %15748 = dma.done.wait [#allocation70], 32  }
 0x3e9   :  { %15749 = vsyncadd [#allocation70], 4294967264 }
 0x3ea   :  { %15750 = dma.done.wait [#allocation73], 1552  }
 0x3eb   :  { %15751 = vsyncadd [#allocation73], 4294965744 }
 0x3ec   :  { %15752 = dma.done.wait [#allocation76], 32  }
 0x3ed   :  { %15753 = vsyncadd [#allocation76], 4294967264 }
 0x3ee   :  { %15754 = dma.done.wait [#allocation79], 32  }
 0x3ef   :  { %15755 = vsyncadd [#allocation79], 4294967264 }
 0x3f0   :  { %15756 = dma.done.wait [#allocation82], 32  }
 0x3f1   :  { %15757 = vsyncadd [#allocation82], 4294967264 }
 0x3f2   :  { %15758 = dma.done.wait [#allocation85], 1024  }
 0x3f3   :  { %15759 = vsyncadd [#allocation85], 4294966272 }
 0x3f4   :  { %15760 = dma.done.wait [#allocation88], 1024  }
 0x3f5   :  { %15761 = vsyncadd [#allocation88], 4294966272  ;;  %vm797_vm0 = vcmask 125952   ;;  %v15876_v0 = vmov 0   ;;  %v14058_v1 = vld [vmem:[#allocation48 + $0x4] ss:$12 sps:$4 sm:$0xff]  }
 0x3f6   :  { %961 = vmatprep.mubr.bf16.mxu0 %v15876_v0  ;;  %1245 = vst [vmem:[#allocation3] sm:$0xf] %v15876_v0  ;;  %1247 = vst [vmem:[#allocation3 + $0x44] sm:$0xf] %v15876_v0  ;;  %1040 = vmatprep.mubr.bf16.mxu1 %v15876_v0  ;;  %v14060_v2 = vld [vmem:[#allocation48] ss:$12 sps:$4 sm:$0xff]  }
 0x3f7   :  { %1829 = vst [vmem:[#allocation21] sm:$0xf] %v15876_v0  ;;  %1831 = vst [vmem:[#allocation21 + $0x44] sm:$0xf] %v15876_v0  ;;  %v781_v3 = vld [vmem:[%s16213_s21] sm:$0xf]  ;;  %13751 = vmatprep.subr.bf16.mxu1 %v14058_v1  ;;  %929 = vmatprep.subr.bf16.mxu0 %v14058_v1 }
 0x3f8   :  { %1929 = vst [vmem:[#allocation4] sm:$0xf] %v15876_v0  ;;  %1931 = vst [vmem:[#allocation4 + $0x24] sm:$0xf] %v15876_v0  ;;  %v796_v4 = vld [vmem:[%s16213_s21 + $0x3c] sm:$0xf]  ;;  %13752 = vmatpush1.bf16.msra.mxu1 %v14060_v2  ;;  %930 = vmatpush1.bf16.msra.mxu0 %v14060_v2 }
 0x3f9   :  { %2353 = vst [vmem:[#allocation5] sm:$0xf] %v15876_v0  ;;  %2355 = vst [vmem:[#allocation5 + $0x24] sm:$0xf] %v15876_v0  ;;  %vm901_vm1 = vcmask 130048   ;;  %v15877_v6 = vmov 0.0  }
 0x3fa   :  { %2777 = vst [vmem:[#allocation18] sm:$0xf] %v15876_v0  ;;  %2779 = vst [vmem:[#allocation18 + $0x24] sm:$0xf] %v15876_v0  ;;  %v782_v5 = vld [vmem:[%s16213_s21 + $0x4] sm:$0xf]  ;;  %12641 = vmatprep.subr.bf16.mxu1 %v15877_v6 }
 0x3fb   :  { %2829 = vst [vmem:[#allocation6] sm:$0xf] %v15876_v0  ;;  %2831 = vst [vmem:[#allocation6 + $0x14] sm:$0xf] %v15876_v0  ;;  %v783_v7 = vld [vmem:[%s16213_s21 + $0x8] sm:$0xf] }
 0x3fc   :  { %3173 = vst [vmem:[#allocation7] sm:$0xf] %v15876_v0  ;;  %3175 = vst [vmem:[#allocation7 + $0x14] sm:$0xf] %v15876_v0  ;;  %v784_v8 = vld [vmem:[%s16213_s21 + $0xc] sm:$0xf] }
 0x3fd   :  { %3517 = vst [vmem:[#allocation15] sm:$0xf] %v15876_v0  ;;  %3519 = vst [vmem:[#allocation15 + $0x14] sm:$0xf] %v15876_v0  ;;  %v785_v9 = vld [vmem:[%s16213_s21 + $0x10] sm:$0xf] }
 0x3fe   :  { %3545 = vst [vmem:[#allocation8] sm:$0xf] %v15876_v0  ;;  %3547 = vst [vmem:[#allocation8 + $0xc] sm:$0xf] %v15876_v0  ;;  %v786_v10 = vld [vmem:[%s16213_s21 + $0x14] sm:$0xf] }
 0x3ff   :  { %3849 = vst [vmem:[#allocation9] sm:$0xf] %v15876_v0  ;;  %3851 = vst [vmem:[#allocation9 + $0xc] sm:$0xf] %v15876_v0  ;;  %v787_v11 = vld [vmem:[%s16213_s21 + $0x18] sm:$0xf] }
 0x400   :  { %4153 = vst [vmem:[#allocation12] sm:$0xf] %v15876_v0  ;;  %4155 = vst [vmem:[#allocation12 + $0xc] sm:$0xf] %v15876_v0  ;;  %v788_v12 = vld [vmem:[%s16213_s21 + $0x1c] sm:$0xf] }
 0x401   :  { %4169 = vst [vmem:[#allocation10] sm:$0xf] %v15876_v0  ;;  %4171 = vst [vmem:[#allocation10 + $0x8] sm:$0xf] %v15876_v0  ;;  %v789_v13 = vld [vmem:[%s16213_s21 + $0x20] sm:$0xf] }
 0x402   :  { %4843 = vst [vmem:[#allocation13] sm:$0xf] %v15876_v0  ;;  %4845 = vst [vmem:[#allocation13 + $0xc] sm:$0xf] %v15876_v0  ;;  %v790_v14 = vld [vmem:[%s16213_s21 + $0x24] sm:$0xf] }
 0x403   :  { %5940 = vst [vmem:[#allocation16] sm:$0xf] %v15876_v0  ;;  %5942 = vst [vmem:[#allocation16 + $0x14] sm:$0xf] %v15876_v0  ;;  %v791_v15 = vld [vmem:[%s16213_s21 + $0x28] sm:$0xf] }
 0x404   :  { %7253 = vst [vmem:[#allocation19] sm:$0xf] %v15876_v0  ;;  %7255 = vst [vmem:[#allocation19 + $0x24] sm:$0xf] %v15876_v0  ;;  %v792_v16 = vld [vmem:[%s16213_s21 + $0x2c] sm:$0xf] }
 0x405   :  { %8998 = vst [vmem:[#allocation22] sm:$0xf] %v15876_v0  ;;  %9000 = vst [vmem:[#allocation22 + $0x44] sm:$0xf] %v15876_v0  ;;  %v793_v17 = vld [vmem:[%s16213_s21 + $0x30] sm:$0xf] }
 0x406   :  { %10036 = vst [vmem:[#allocation23] sm:$0xf] %v15876_v0  ;;  %10038 = vst [vmem:[#allocation23 + $0x44] sm:$0xf] %v15876_v0  ;;  %v794_v18 = vld [vmem:[%s16213_s21 + $0x34] sm:$0xf] }
 0x407   :  { %798 = vst.msk [vmem:[#allocation2] sm:$0xf] %vm797_vm0, %v15876_v0  ;;  %800 = vst.msk [vmem:[#allocation2 + $0x44] sm:$0xf] %vm797_vm0, %v15876_v0  ;;  %s17907_s14 = sld [smem:[#allocation132_spill]]  ;;  %vm15878_vm2 = vmmov 0  }
 0x408   :  { %802 = vst.msk [vmem:[#allocation2 + $0x4] sm:$0xf] %vm797_vm0, %v781_v3  ;;  %817 = vst.msk [vmem:[#allocation2 + $0x40] sm:$0xf] %vm797_vm0, %v796_v4  ;;  %v795_v19 = vld [vmem:[%s16213_s21 + $0x38] sm:$0xf] }
 0x409   :  { %803 = vst.msk [vmem:[#allocation2 + $0x8] sm:$0xf] %vm797_vm0, %v782_v5  ;;  %804 = vst.msk [vmem:[#allocation2 + $0xc] sm:$0xf] %vm797_vm0, %v783_v7  ;;  %v14063_v21 = vld [vmem:[#allocation48 + $0x8] ss:$12 sps:$4 sm:$0xff]  }
 0x40a   :  { %805 = vst.msk [vmem:[#allocation2 + $0x10] sm:$0xf] %vm797_vm0, %v784_v8  ;;  %806 = vst.msk [vmem:[#allocation2 + $0x14] sm:$0xf] %vm797_vm0, %v785_v9  ;;  %s17908_s21 = sld [smem:[#allocation114_spill]]  ;;  %s15879_s25 = smov 120  }
 0x40b   :  { %807 = vst.msk [vmem:[#allocation2 + $0x18] sm:$0xf] %vm797_vm0, %v786_v10  ;;  %808 = vst.msk [vmem:[#allocation2 + $0x1c] sm:$0xf] %vm797_vm0, %v787_v11  ;;  %v16617_v11 = vld [vmem:[#allocation51] ss:$0 sm:$0xff] }
 0x40c   :  { %809 = vst.msk [vmem:[#allocation2 + $0x20] sm:$0xf] %vm797_vm0, %v788_v12  ;;  %810 = vst.msk [vmem:[#allocation2 + $0x24] sm:$0xf] %vm797_vm0, %v789_v13  ;;  %s17909_s7 = sld [smem:[#allocation116_spill]]  ;;  %s17910_s10 = sld [smem:[#allocation118_spill]] }
 0x40d   :  { %811 = vst.msk [vmem:[#allocation2 + $0x28] sm:$0xf] %vm797_vm0, %v790_v14  ;;  %812 = vst.msk [vmem:[#allocation2 + $0x2c] sm:$0xf] %vm797_vm0, %v791_v15  ;;  %v14071_v24 = vld [vmem:[%s17907_s14 + $0x8] ss:$12 sps:$4 sm:$0xff]  }
 0x40e   :  { %813 = vst.msk [vmem:[#allocation2 + $0x30] sm:$0xf] %vm797_vm0, %v792_v16  ;;  %814 = vst.msk [vmem:[#allocation2 + $0x34] sm:$0xf] %vm797_vm0, %v793_v17  ;;  %v14073_v25 = vld [vmem:[%s17907_s14] ss:$12 sps:$4 sm:$0xff]  }
 0x40f   :  { %815 = vst.msk [vmem:[#allocation2 + $0x38] sm:$0xf] %vm797_vm0, %v794_v18  ;;  %v14061_v20 = vld [vmem:[#allocation2] sm:$0xff]   ;;  %816 = vst.msk [vmem:[#allocation2 + $0x3c] sm:$0xf] %vm797_vm0, %v795_v19  ;;  %s15880_s11 = smov 112  }
 0x410   :  { %v16532_v22 = vld [vmem:[#allocation2 + $0x40] sm:$0xff]   ;;  %10927 = vmatmul.mubr.msk.bf16.vlgmr.msra.gmra.mrb[0].mxu0 %vm901_vm1, %v14061_v20  ;;  %v14064_v23 = vld [vmem:[#allocation2 + $0x8] sm:$0xff]   ;;  %v14083_v33 = vld [vmem:[%s17907_s14 + $0x50] ss:$12 sps:$4 sm:$0xff]   ;;  %s17911_s3 = sld [smem:[#allocation121_spill]]  ;;  %s17912_s15 = sld [smem:[#allocation120_spill]] }
 0x411   :  { %10935 = vmatmul.mubr.msk.bf16.vlgmr.msra.gmra.mrb[0].mxu1 %vm901_vm1, %v16532_v22  ;;  %970 = vmatprep.mubr.bf16.mxu0 %v15876_v0  ;;  %v14075_v26 = vld [vmem:[%s17907_s14 + $0x4] ss:$12 sps:$4 sm:$0xff]   ;;  %v14072_v27 = vld [vmem:[%s17907_s14 + $0x20] ss:$12 sps:$4 sm:$0xff]   ;;  %v14078_v28 = vld [vmem:[%s17907_s14 + $0x1c] ss:$12 sps:$4 sm:$0xff]  }
 0x412   :  { %12642 = vmatpush3.bf16.msra.mxu1 %v14063_v21  ;;  %12643 = vmatprep.mubr.msk.bf16.mxu1 %vm15878_vm2, %v15877_v6  ;;  %v14065_v29 = vld [vmem:[#allocation2 + $0x10] sm:$0xff]   ;;  %v14076_v30 = vld [vmem:[%s17907_s14 + $0x18] ss:$12 sps:$4 sm:$0xff]   ;;  %v14088_v43 = vld [vmem:[%s17907_s14 + $0x60] ss:$12 sps:$4 sm:$0xff]   ;;  %s17913_s20 = sld [smem:[#allocation119_spill]] }
 0x413   :  { %12679 = vmatprep.subr.bf16.mxu1 %v15877_v6  ;;  %1513 = vmatprep.subr.bf16.mxu0 %v14075_v26  ;;  %v14079_v31 = vld [vmem:[%s17907_s14 + $0x38] ss:$12 sps:$4 sm:$0xff]   ;;  %v14082_v32 = vld [vmem:[%s17907_s14 + $0x34] ss:$12 sps:$4 sm:$0xff]   ;;  %v14080_v34 = vld [vmem:[%s17907_s14 + $0x30] ss:$12 sps:$4 sm:$0xff]  }
 0x414   :  { %1514 = vmatpush1.bf16.msra.mxu0 %v14073_v25  ;;  %v14066_v35 = vld [vmem:[#allocation2 + $0x18] sm:$0xff]   ;;  %v14084_v37 = vld [vmem:[%s17907_s14 + $0x48] ss:$12 sps:$4 sm:$0xff]   ;;  %v14067_v38 = vld [vmem:[#allocation2 + $0x20] sm:$0xff]   ;;  %s17914_s16 = sld [smem:[#allocation123_spill]]  ;;  %s17915_s30 = sld [smem:[#allocation125_spill]] }
 0x415   :  { %1515 = vmatprep.subr.bf16.mxu0 %v14078_v28  ;;  %v14086_v36 = vld [vmem:[%s17907_s14 + $0x4c] ss:$12 sps:$4 sm:$0xff]   ;;  %v14069_v40 = vld [vmem:[#allocation2 + $0x30] sm:$0xff]   ;;  %v14094_v47 = vld [vmem:[%s17907_s14 + $0x7c] ss:$12 sps:$4 sm:$0xff]   ;;  %s15881_s24 = smov 96  }
 0x416   :  { %v14068_v39 = vld [vmem:[#allocation2 + $0x28] sm:$0xff]   ;;  %v14070_v41 = vld [vmem:[#allocation2 + $0x38] sm:$0xff]   ;;  %v14090_v44 = vld [vmem:[%s17907_s14 + $0x64] ss:$12 sps:$4 sm:$0xff]   ;;  %s17916_s18 = sld [smem:[#allocation127_spill]]  ;;  %vm4510_vm3 = vcmask 519168  }
 0x417   :  { %v14087_v42 = vld [vmem:[%s17907_s14 + $0x68] ss:$12 sps:$4 sm:$0xff]   ;;  %v14091_v45 = vld [vmem:[%s17907_s14 + $0x80] ss:$12 sps:$4 sm:$0xff]   ;;  %v14092_v46 = vld [vmem:[%s17907_s14 + $0x78] ss:$12 sps:$4 sm:$0xff]  }
 0x418   :  { %10928 = vmatmul.mubr.msk.bf16.gmra.mrb[4].mxu0 %vm901_vm1, %v14064_v23  ;;  %v14098_v48 = vld [vmem:[%s17907_s14 + $0x94] ss:$12 sps:$4 sm:$0xff]   ;;  %v14095_v49 = vld [vmem:[%s17907_s14 + $0x98] ss:$12 sps:$4 sm:$0xff]   ;;  %v14096_v50 = vld [vmem:[%s17907_s14 + $0x90] ss:$12 sps:$4 sm:$0xff]  }
 0x419   :  { %12644 = vmatmul.mubr.msk.bf16.vlgmr.msra.gmra.mrb[4].mxu1 %vm901_vm1, %v14061_v20  ;;  %980 = vmatprep.mubr.bf16.mxu0 %v15876_v0  ;;  %v14102_v51 = vld [vmem:[%s17907_s14 + $0xac] ss:$12 sps:$4 sm:$0xff]   ;;  %v14099_v52 = vld [vmem:[%s17907_s14 + $0xb0] ss:$12 sps:$4 sm:$0xff]   ;;  %v14100_v53 = vld [vmem:[%s17907_s14 + $0xa8] ss:$12 sps:$4 sm:$0xff]  }
 0x41a   :  { %12647 = vmatprep.mubr.msk.bf16.mxu1 %vm15878_vm2, %v15877_v6  ;;  %12680 = vmatpush3.bf16.msra.mxu1 %v14071_v24  ;;  %v16619_v14 = vld [vmem:[#allocation50] ss:$0 sm:$0xff]  ;;  %4511 = vst.msk [vmem:[#allocation11] sm:$0xf] %vm4510_vm3, %v15876_v0  ;;  %4513 = vst.msk [vmem:[#allocation11 + $0x8] sm:$0xf] %vm4510_vm3, %v15876_v0 }
 0x41b   :  { %12681 = vmatprep.subr.bf16.mxu1 %v15877_v6  ;;  %1516 = vmatpush1.bf16.msra.mxu0 %v14076_v30  ;;  %5563 = vst.msk [vmem:[#allocation14] sm:$0xf] %vm4510_vm3, %v15876_v0  ;;  %5565 = vst.msk [vmem:[#allocation14 + $0xc] sm:$0xf] %vm4510_vm3, %v15876_v0  ;;  %vm4560_vm4 = vcmask 523264   ;;  %s17918_s22 = sld [smem:[#allocation135_spill]] }
 0x41c   :  { %1517 = vmatprep.subr.bf16.mxu0 %v14082_v32  ;;  %6774 = vst.msk [vmem:[#allocation17] sm:$0xf] %vm4510_vm3, %v15876_v0  ;;  %6776 = vst.msk [vmem:[#allocation17 + $0x14] sm:$0xf] %vm4510_vm3, %v15876_v0  ;;  %s17919_s9 = sld [smem:[#allocation136_spill]]  ;;  %s17920_s23 = sld [smem:[#allocation139_spill]] }
 0x41d   :  { %8315 = vst.msk [vmem:[#allocation20] sm:$0xf] %vm4510_vm3, %v15876_v0  ;;  %8317 = vst.msk [vmem:[#allocation20 + $0x24] sm:$0xf] %vm4510_vm3, %v15876_v0  ;;  %s17921_s8 = sld [smem:[#allocation140_spill]]  ;;  %s17922_s26 = sld [smem:[#allocation144_spill]] }
 0x41e   :  { %12682 = vmatpush3.bf16.msra.mxu1 %v14072_v27  ;;  %s17923_s28 = sld [smem:[#allocation145_spill]]  ;;  %s17924_s12 = sld [smem:[#allocation151_spill]] }
 0x41f   :  { %12683 = vmatprep.subr.bf16.mxu1 %v15877_v6  ;;  %1518 = vmatpush1.bf16.msra.mxu0 %v14080_v34  ;;  %s17925_s29 = sld [smem:[#allocation152_spill]]  ;;  %s17926_s19 = sld [smem:[#allocation155_spill]] }
 0x420   :  { %10929 = vmatmul.mubr.msk.bf16.gmra.mrb[8].mxu0 %vm901_vm1, %v14065_v29  ;;  %1519 = vmatprep.subr.bf16.mxu0 %v14086_v36  ;;  %s17927_s13 = sld [smem:[#allocation159_spill]]  ;;  %s15882_s1 = smov [#allocation90]  }
 0x421   :  { %12648 = vmatmul.mubr.msk.bf16.gmra.mrb[8].mxu1 %vm901_vm1, %v14064_v23  ;;  %990 = vmatprep.mubr.bf16.mxu0 %v15876_v0  ;;  %s10817_s2 = sshll.u32 %s15882_s1, 4  ;;  %s10818_s2 = int_to_ptr.vmem [resolvable:$true] %s10817_s2 }
 0x422   :  { %12651 = vmatprep.mubr.msk.bf16.mxu1 %vm15878_vm2, %v15877_v6  ;;  %12684 = vmatpush3.bf16.msra.mxu1 %v14079_v31  ;;  %s15696_s5 = scalar_lea.vmem %s10818_s2, 2048  ;;  %p15701_p9 = scmp.lt.s32.totalorder %s10818_s2, %s10818_s2 }
 0x423   :  { %12685 = vmatprep.subr.bf16.mxu1 %v15877_v6  ;;  %1520 = vmatpush1.bf16.msra.mxu0 %v14084_v37  ;;  %p15697_p8 = scmp.ne.s32.totalorder %s10818_s2, %s15696_s5  ;;  %p15702_p10 = scmp.lt.s32.totalorder %s15696_s5, %s15696_s5 }
 0x424   :  { %1521 = vmatprep.subr.bf16.mxu0 %v14090_v44 }
 0x425   :  { %p15703_p11 = por %p15702_p10, %p15701_p9 }
 0x426   :  { %12686 = vmatpush3.bf16.msra.mxu1 %v14083_v33 }
 0x427   :  { %12687 = vmatprep.subr.bf16.mxu1 %v15877_v6  ;;  %1522 = vmatpush1.bf16.msra.mxu0 %v14088_v43  ;;  %p15704_p12 = pnand %p15703_p11, %p15697_p8 }
 0x428   :  { %10930 = vmatmul.mubr.msk.bf16.gmra.mrb[12].mxu0 %vm901_vm1, %v14066_v35  ;;  %1523 = vmatprep.subr.bf16.mxu0 %v14094_v47 }
 0x429   :  { %12652 = vmatmul.mubr.msk.bf16.gmra.mrb[12].mxu1 %vm901_vm1, %v14065_v29  ;;  %1000 = vmatprep.mubr.bf16.mxu0 %v15876_v0 }
 0x42a   :  { %12655 = vmatprep.mubr.msk.bf16.mxu1 %vm15878_vm2, %v15877_v6  ;;  %12688 = vmatpush3.bf16.msra.mxu1 %v14087_v42 }
 0x42b   :  { %12689 = vmatprep.subr.bf16.mxu1 %v15877_v6  ;;  %1524 = vmatpush1.bf16.msra.mxu0 %v14092_v46 }
 0x42c   :  { %1525 = vmatprep.subr.bf16.mxu0 %v14098_v48 }
 0x42e   :  { %12690 = vmatpush3.bf16.msra.mxu1 %v14091_v45 }
 0x42f   :  { %12691 = vmatprep.subr.bf16.mxu1 %v15877_v6  ;;  %1526 = vmatpush1.bf16.msra.mxu0 %v14096_v50 }
 0x430   :  { %10931 = vmatmul.mubr.msk.bf16.gmra.mrb[16].mxu0 %vm901_vm1, %v14067_v38  ;;  %1527 = vmatprep.subr.bf16.mxu0 %v14102_v51 }
 0x431   :  { %12656 = vmatmul.mubr.msk.bf16.gmra.mrb[16].mxu1 %vm901_vm1, %v14066_v35  ;;  %1010 = vmatprep.mubr.bf16.mxu0 %v15876_v0 }
 0x432   :  { %12659 = vmatprep.mubr.msk.bf16.mxu1 %vm15878_vm2, %v15877_v6  ;;  %12692 = vmatpush3.bf16.msra.mxu1 %v14095_v49 }
 0x433   :  { %12693 = vmatprep.subr.bf16.mxu1 %v15877_v6  ;;  %1528 = vmatpush1.bf16.msra.mxu0 %v14100_v53 }
 0x436   :  { %12694 = vmatpush3.bf16.msra.mxu1 %v14099_v52 }
 0x437   :  { %12731 = vmatprep.subr.bf16.mxu1 %v15877_v6 }
 0x438   :  { %10932 = vmatmul.mubr.msk.bf16.gmra.mrb[20].mxu0 %vm901_vm1, %v14068_v39 }
 0x439   :  { %12660 = vmatmul.mubr.msk.bf16.gmra.mrb[20].mxu1 %vm901_vm1, %v14067_v38  ;;  %1020 = vmatprep.mubr.bf16.mxu0 %v15876_v0 }
 0x43a   :  { %12663 = vmatprep.mubr.msk.bf16.mxu1 %vm15878_vm2, %v15877_v6 }
 0x440   :  { %10933 = vmatmul.mubr.msk.bf16.gmra.mrb[24].mxu0 %vm901_vm1, %v14069_v40 }
 0x441   :  { %12664 = vmatmul.mubr.msk.bf16.gmra.mrb[24].mxu1 %vm901_vm1, %v14068_v39  ;;  %1030 = vmatprep.mubr.bf16.mxu0 %v15876_v0 }
 0x442   :  { %12667 = vmatprep.mubr.msk.bf16.mxu1 %vm15878_vm2, %v15877_v6 }
 0x448   :  { %10934 = vmatmul.mubr.msk.bf16.gmra.mrb[28].mxu0 %vm901_vm1, %v14070_v41 }
 0x449   :  { %12668 = vmatmul.mubr.msk.bf16.gmra.mrb[28].mxu1 %vm901_vm1, %v14069_v40  ;;  %1545 = vmatprep.mubr.bf16.mxu0 %v15876_v0 }
 0x44a   :  { %12671 = vmatprep.mubr.msk.bf16.mxu1 %vm15878_vm2, %v15877_v6 }
 0x451   :  { %12672 = vmatmul.mubr.msk.bf16.gmra.mrb[32].mxu1 %vm901_vm1, %v14070_v41 }
 0x452   :  { %12675 = vmatprep.mubr.msk.bf16.mxu1 %vm15878_vm2, %v15877_v6 }
 0x459   :  { %12676 = vmatmul.mubr.msk.bf16.gmra.mrb[36].mxu1 %vm901_vm1, %v16532_v22 }
 0x45a   :  { %12695 = vmatprep.mubr.msk.bf16.mxu1 %vm15878_vm2, %v15877_v6 }
 0x4e3   :  { %v963_v54 = vpop.f32.mrb[0].mxu0 }
 0x4e4   :  { %v1042_v55 = vpop.f32.mrb[0].mxu1  ;;  %v965_v56 = vpop.f32.mrb[1].mxu0 }
 0x4e5   :  { %v16615_v57 = vpop.f32.mrb[1].mxu1  ;;  %v966_v58 = vpop.f32.mrb[2].mxu0 }
 0x4e6   :  { %v1045_v59 = vpop.f32.mrb[2].mxu1  ;;  %v968_v60 = vpop.f32.mrb[3].mxu0 }
 0x4e7   :  { %v1046_v61 = vpop.f32.mrb[3].mxu1  ;;  %v1151_v62 = vadd.f32 %v968_v60, %v963_v54 }
 0x4eb   :  { %v972_v63 = vpop.f32.mrb[4].mxu0 }
 0x4ec   :  { %v1082_v1 = vpop.f32.mrb[4].mxu1  ;;  %v974_v2 = vpop.f32.mrb[5].mxu0 }
 0x4ed   :  { %v12645_v3 = vpop.f32.mrb[5].mxu1  ;;  %v1152_v4 = vadd.f32 %v974_v2, %v966_v58  ;;  %v976_v5 = vpop.f32.mrb[6].mxu0 }
 0x4ee   :  { %v1084_v7 = vpop.f32.mrb[6].mxu1  ;;  %v978_v8 = vpop.f32.mrb[7].mxu0 }
 0x4ef   :  { %v12646_v9 = vpop.f32.mrb[7].mxu1  ;;  %v1153_v10 = vadd.f32 %v978_v8, %v972_v63 }
 0x4f3   :  { %v982_v12 = vpop.f32.mrb[8].mxu0 }
 0x4f4   :  { %v1088_v13 = vpop.f32.mrb[8].mxu1  ;;  %v984_v15 = vpop.f32.mrb[9].mxu0 }
 0x4f5   :  { %v1167_v16 = vadd.f32 %v1151_v62, %v1088_v13  ;;  %v12649_v17 = vpop.f32.mrb[9].mxu1  ;;  %v986_v18 = vpop.f32.mrb[10].mxu0  ;;  %v1154_v19 = vadd.f32 %v984_v15, %v976_v5 }
 0x4f6   :  { %v1091_v20 = vpop.f32.mrb[10].mxu1  ;;  %v988_v21 = vpop.f32.mrb[11].mxu0 }
 0x4f7   :  { %v1190_v22 = vmul.f32 %v16617_v11, %v1167_v16  ;;  %v1168_v23 = vadd.f32 %v1152_v4, %v1091_v20  ;;  %v12650_v24 = vpop.f32.mrb[11].mxu1  ;;  %v1155_v25 = vadd.f32 %v988_v21, %v982_v12 }
 0x4f9   :  { %v1213_v26 = vadd.f32 %v16619_v14, %v1190_v22  ;;  %v1191_v27 = vmul.f32 %v16617_v11, %v1168_v23 }
 0x4fb   :  { %v1229_v28 = vmax.f32 %v1213_v26, 0.0  ;;  %v1214_v29 = vadd.f32 %v16619_v14, %v1191_v27  ;;  %v992_v30 = vpop.f32.mrb[12].mxu0 }
 0x4fc   :  { %v1096_v31 = vpop.f32.mrb[12].mxu1  ;;  %v994_v32 = vpop.f32.mrb[13].mxu0 }
 0x4fd   :  { %v1248_v33 = vpack.c.bf16 %v1229_v28, %v1229_v28  ;;  %v1230_v34 = vmax.f32 %v1214_v29, 0.0  ;;  %v1169_v35 = vadd.f32 %v1153_v10, %v1096_v31  ;;  %v12653_v36 = vpop.f32.mrb[13].mxu1  ;;  %v996_v37 = vpop.f32.mrb[14].mxu0  ;;  %v1156_v38 = vadd.f32 %v994_v32, %v986_v18 }
 0x4fe   :  { %v1099_v39 = vpop.f32.mrb[14].mxu1  ;;  %v998_v40 = vpop.f32.mrb[15].mxu0 }
 0x4ff   :  { %1265 = vst [vmem:[#allocation3 + $0x4] sm:$0xf] %v1248_v33  ;;  %v1192_v41 = vmul.f32 %v16617_v11, %v1169_v35  ;;  %v1170_v42 = vadd.f32 %v1154_v19, %v1099_v39  ;;  %v12654_v43 = vpop.f32.mrb[15].mxu1  ;;  %v1157_v44 = vadd.f32 %v998_v40, %v992_v30 }
 0x501   :  { %v1215_v45 = vadd.f32 %v16619_v14, %v1192_v41  ;;  %v1193_v46 = vmul.f32 %v16617_v11, %v1170_v42 }
 0x503   :  { %v1231_v47 = vmax.f32 %v1215_v45, 0.0  ;;  %v1216_v48 = vadd.f32 %v16619_v14, %v1193_v46  ;;  %v1002_v49 = vpop.f32.mrb[16].mxu0 }
 0x504   :  { %v1104_v50 = vpop.f32.mrb[16].mxu1  ;;  %v1004_v51 = vpop.f32.mrb[17].mxu0 }
 0x505   :  { %v11847_v52 = vpack.c.bf16 %v1231_v47, %v1230_v34  ;;  %v1232_v53 = vmax.f32 %v1216_v48, 0.0  ;;  %v1171_v54 = vadd.f32 %v1155_v25, %v1104_v50  ;;  %v12657_v55 = vpop.f32.mrb[17].mxu1  ;;  %v1006_v56 = vpop.f32.mrb[18].mxu0  ;;  %v1158_v58 = vadd.f32 %v1004_v51, %v996_v37 }
 0x506   :  { %v1107_v59 = vpop.f32.mrb[18].mxu1  ;;  %v14103_v60 = vld [vmem:[#allocation3] sm:$0xff]   ;;  %v1008_v61 = vpop.f32.mrb[19].mxu0 }
 0x507   :  { %12108 = vst [vmem:[#allocation3 + $0x8] sm:$0xff] %v11847_v52   ;;  %v1194_v62 = vmul.f32 %v16617_v11, %v1171_v54  ;;  %v1172_v63 = vadd.f32 %v1156_v38, %v1107_v59  ;;  %v12658_v1 = vpop.f32.mrb[19].mxu1  ;;  %v1159_v2 = vadd.f32 %v1008_v61, %v1002_v49  ;;  %1546 = vmatmul.mubr.bf16.vlgmr.msra.gmra.mrb[32].mxu0 %v14103_v60 }
 0x508   :  { %12696 = vmatmul.mubr.bf16.vlgmr.msra.gmra.mrb[40].mxu1 %v14103_v60  ;;  %1554 = vmatprep.mubr.bf16.mxu0 %v15876_v0 }
 0x509   :  { %v1217_v3 = vadd.f32 %v16619_v14, %v1194_v62  ;;  %v1195_v4 = vmul.f32 %v16617_v11, %v1172_v63  ;;  %12699 = vmatprep.mubr.msk.bf16.mxu1 %vm15878_vm2, %v15877_v6 }
 0x50b   :  { %v1233_v5 = vmax.f32 %v1217_v3, 0.0  ;;  %v1218_v7 = vadd.f32 %v16619_v14, %v1195_v4  ;;  %v1012_v8 = vpop.f32.mrb[20].mxu0 }
 0x50c   :  { %v1112_v9 = vpop.f32.mrb[20].mxu1  ;;  %v1014_v10 = vpop.f32.mrb[21].mxu0 }
 0x50d   :  { %v11852_v12 = vpack.c.bf16 %v1233_v5, %v1232_v53  ;;  %v1234_v13 = vmax.f32 %v1218_v7, 0.0  ;;  %v1173_v15 = vadd.f32 %v1157_v44, %v1112_v9  ;;  %v12661_v16 = vpop.f32.mrb[21].mxu1  ;;  %v1016_v17 = vpop.f32.mrb[22].mxu0  ;;  %v1160_v18 = vadd.f32 %v1014_v10, %v1006_v56 }
 0x50e   :  { %v1115_v19 = vpop.f32.mrb[22].mxu1  ;;  %v14104_v20 = vld [vmem:[#allocation3 + $0x8] sm:$0xff]   ;;  %v1018_v24 = vpop.f32.mrb[23].mxu0 }
 0x50f   :  { %12109 = vst [vmem:[#allocation3 + $0x10] sm:$0xff] %v11852_v12   ;;  %v1196_v21 = vmul.f32 %v16617_v11, %v1173_v15  ;;  %v1174_v22 = vadd.f32 %v1158_v58, %v1115_v19  ;;  %v12662_v23 = vpop.f32.mrb[23].mxu1  ;;  %1555 = vmatmul.mubr.bf16.gmra.mrb[36].mxu0 %v14104_v20  ;;  %v1161_v25 = vadd.f32 %v1018_v24, %v1012_v8 }
 0x510   :  { %12700 = vmatmul.mubr.bf16.gmra.mrb[44].mxu1 %v14104_v20  ;;  %1564 = vmatprep.mubr.bf16.mxu0 %v15876_v0 }
 0x511   :  { %v1219_v26 = vadd.f32 %v16619_v14, %v1196_v21  ;;  %v1197_v27 = vmul.f32 %v16617_v11, %v1174_v22  ;;  %12703 = vmatprep.mubr.msk.bf16.mxu1 %vm15878_vm2, %v15877_v6 }
 0x513   :  { %v1235_v28 = vmax.f32 %v1219_v26, 0.0  ;;  %v1220_v29 = vadd.f32 %v16619_v14, %v1197_v27  ;;  %v1022_v30 = vpop.f32.mrb[24].mxu0 }
 0x514   :  { %v1120_v31 = vpop.f32.mrb[24].mxu1  ;;  %v1024_v32 = vpop.f32.mrb[25].mxu0 }
 0x515   :  { %v11857_v33 = vpack.c.bf16 %v1235_v28, %v1234_v13  ;;  %v1236_v34 = vmax.f32 %v1220_v29, 0.0  ;;  %v1175_v35 = vadd.f32 %v1159_v2, %v1120_v31  ;;  %v12665_v36 = vpop.f32.mrb[25].mxu1  ;;  %v1026_v37 = vpop.f32.mrb[26].mxu0  ;;  %v1162_v38 = vadd.f32 %v1024_v32, %v1016_v17 }
 0x516   :  { %v1123_v39 = vpop.f32.mrb[26].mxu1  ;;  %v14105_v40 = vld [vmem:[#allocation3 + $0x10] sm:$0xff]   ;;  %v1028_v44 = vpop.f32.mrb[27].mxu0 }
 0x517   :  { %12110 = vst [vmem:[#allocation3 + $0x18] sm:$0xff] %v11857_v33   ;;  %v1198_v41 = vmul.f32 %v16617_v11, %v1175_v35  ;;  %v1176_v42 = vadd.f32 %v1160_v18, %v1123_v39  ;;  %v12666_v43 = vpop.f32.mrb[27].mxu1  ;;  %1565 = vmatmul.mubr.bf16.gmra.mrb[40].mxu0 %v14105_v40  ;;  %v1163_v45 = vadd.f32 %v1028_v44, %v1022_v30  ;;  %v14113_v44 = vld [vmem:[%s17908_s21] ss:$12 sps:$4 sm:$0xff]  }
 0x518   :  { %12704 = vmatmul.mubr.bf16.gmra.mrb[48].mxu1 %v14105_v40  ;;  %1574 = vmatprep.mubr.bf16.mxu0 %v15876_v0  ;;  %v14112_v43 = vld [vmem:[%s17908_s21 + $0x8] ss:$12 sps:$4 sm:$0xff]  }
 0x519   :  { %v1221_v46 = vadd.f32 %v16619_v14, %v1198_v41  ;;  %v1199_v47 = vmul.f32 %v16617_v11, %v1176_v42  ;;  %12707 = vmatprep.mubr.msk.bf16.mxu1 %vm15878_vm2, %v15877_v6  ;;  %12732 = vmatpush3.bf16.msra.mxu1 %v14112_v43  ;;  %v14136_v43 = vld [vmem:[%s17908_s21 + $0x90] ss:$12 sps:$4 sm:$0xff]  }
 0x51a   :  { %12733 = vmatprep.subr.bf16.mxu1 %v15877_v6 }
 0x51b   :  { %v1237_v48 = vmax.f32 %v1221_v46, 0.0  ;;  %v1222_v49 = vadd.f32 %v16619_v14, %v1199_v47  ;;  %v1032_v50 = vpop.f32.mrb[28].mxu0  ;;  %v14119_v46 = vld [vmem:[%s17908_s21 + $0x1c] ss:$12 sps:$4 sm:$0xff]   ;;  %v14116_v47 = vld [vmem:[%s17908_s21 + $0x20] ss:$12 sps:$4 sm:$0xff]  }
 0x51c   :  { %v1128_v51 = vpop.f32.mrb[28].mxu1  ;;  %v1034_v52 = vpop.f32.mrb[29].mxu0 }
 0x51d   :  { %v11862_v53 = vpack.c.bf16 %v1237_v48, %v1236_v34  ;;  %v1238_v54 = vmax.f32 %v1222_v49, 0.0  ;;  %v1177_v55 = vadd.f32 %v1161_v25, %v1128_v51  ;;  %v12669_v56 = vpop.f32.mrb[29].mxu1  ;;  %v1036_v58 = vpop.f32.mrb[30].mxu0  ;;  %v1164_v59 = vadd.f32 %v1034_v52, %v1026_v37  ;;  %v14117_v48 = vld [vmem:[%s17908_s21 + $0x18] ss:$12 sps:$4 sm:$0xff]   ;;  %12734 = vmatpush3.bf16.msra.mxu1 %v14116_v47 }
 0x51e   :  { %v1131_v60 = vpop.f32.mrb[30].mxu1  ;;  %v14106_v61 = vld [vmem:[#allocation3 + $0x18] sm:$0xff]   ;;  %v1166_v62 = vadd.f32 %v16615_v57, %v1036_v58  ;;  %v1038_v3 = vpop.f32.mrb[31].mxu0  ;;  %12735 = vmatprep.subr.bf16.mxu1 %v15877_v6  ;;  %v14121_v51 = vld [vmem:[%s17908_s21 + $0x30] ss:$12 sps:$4 sm:$0xff]  }
 0x51f   :  { %12111 = vst [vmem:[#allocation3 + $0x20] sm:$0xff] %v11862_v53   ;;  %v1200_v63 = vmul.f32 %v16617_v11, %v1177_v55  ;;  %v1178_v1 = vadd.f32 %v1162_v38, %v1131_v60  ;;  %v12670_v2 = vpop.f32.mrb[31].mxu1  ;;  %1575 = vmatmul.mubr.bf16.gmra.mrb[44].mxu0 %v14106_v61  ;;  %v1165_v4 = vadd.f32 %v1038_v3, %v1032_v50  ;;  %v14123_v49 = vld [vmem:[%s17908_s21 + $0x34] ss:$12 sps:$4 sm:$0xff]   ;;  %v14120_v50 = vld [vmem:[%s17908_s21 + $0x38] ss:$12 sps:$4 sm:$0xff]  }
 0x520   :  { %12708 = vmatmul.mubr.bf16.gmra.mrb[52].mxu1 %v14106_v61  ;;  %1584 = vmatprep.mubr.bf16.mxu0 %v15876_v0  ;;  %v14126_v52 = vld [vmem:[%s17908_s21 + $0x4c] ss:$12 sps:$4 sm:$0xff]   ;;  %v14127_v53 = vld [vmem:[%s17908_s21 + $0x50] ss:$12 sps:$4 sm:$0xff]   ;;  %v14131_v56 = vld [vmem:[%s17908_s21 + $0x68] ss:$12 sps:$4 sm:$0xff]  }
 0x521   :  { %v1223_v5 = vadd.f32 %v16619_v14, %v1200_v63  ;;  %v1201_v7 = vmul.f32 %v16617_v11, %v1178_v1  ;;  %12711 = vmatprep.mubr.msk.bf16.mxu1 %vm15878_vm2, %v15877_v6  ;;  %12736 = vmatpush3.bf16.msra.mxu1 %v14120_v50  ;;  %v14130_v55 = vld [vmem:[%s17908_s21 + $0x64] ss:$12 sps:$4 sm:$0xff]   ;;  %v14128_v58 = vld [vmem:[%s17908_s21 + $0x60] ss:$12 sps:$4 sm:$0xff]  }
 0x522   :  { %12737 = vmatprep.subr.bf16.mxu1 %v15877_v6 }
 0x523   :  { %v1239_v8 = vmax.f32 %v1223_v5, 0.0  ;;  %v1224_v57 = vadd.f32 %v16619_v14, %v1201_v7 }
 0x524   :  { %v1136_v9 = vpop.f32.mrb[32].mxu1 }
 0x525   :  { %v11867_v10 = vpack.c.bf16 %v1239_v8, %v1238_v54  ;;  %v1240_v12 = vmax.f32 %v1224_v57, 0.0  ;;  %v1179_v13 = vadd.f32 %v1163_v45, %v1136_v9  ;;  %v12673_v15 = vpop.f32.mrb[33].mxu1  ;;  %v14115_v45 = vld [vmem:[%s17908_s21 + $0x4] ss:$12 sps:$4 sm:$0xff]   ;;  %v14124_v54 = vld [vmem:[%s17908_s21 + $0x48] ss:$12 sps:$4 sm:$0xff]   ;;  %12738 = vmatpush3.bf16.msra.mxu1 %v14127_v53 }
 0x526   :  { %v1139_v16 = vpop.f32.mrb[34].mxu1  ;;  %v14107_v17 = vld [vmem:[#allocation3 + $0x20] sm:$0xff]   ;;  %2149 = vmatprep.subr.bf16.mxu0 %v14115_v45  ;;  %12739 = vmatprep.subr.bf16.mxu1 %v15877_v6 }
 0x527   :  { %12112 = vst [vmem:[#allocation3 + $0x28] sm:$0xff] %v11867_v10   ;;  %v1202_v18 = vmul.f32 %v16617_v11, %v1179_v13  ;;  %v1180_v19 = vadd.f32 %v1164_v59, %v1139_v16  ;;  %v12674_v20 = vpop.f32.mrb[35].mxu1  ;;  %1585 = vmatmul.mubr.bf16.gmra.mrb[48].mxu0 %v14107_v17  ;;  %v16701_v8 = vld [vmem:[#allocation54] ss:$0 sm:$0xff] }
 0x528   :  { %12712 = vmatmul.mubr.bf16.gmra.mrb[56].mxu1 %v14107_v17  ;;  %1594 = vmatprep.mubr.bf16.mxu0 %v15876_v0 }
 0x529   :  { %v1225_v21 = vadd.f32 %v16619_v14, %v1202_v18  ;;  %12715 = vmatprep.mubr.msk.bf16.mxu1 %vm15878_vm2, %v15877_v6  ;;  %v1203_v22 = vmul.f32 %v16617_v11, %v1180_v19  ;;  %2150 = vmatpush1.bf16.msra.mxu0 %v14113_v44  ;;  %v14139_v44 = vld [vmem:[%s17908_s21 + $0x98] ss:$12 sps:$4 sm:$0xff]  }
 0x52a   :  { %2151 = vmatprep.subr.bf16.mxu0 %v14119_v46  ;;  %12740 = vmatpush3.bf16.msra.mxu1 %v14131_v56  ;;  %v14143_v56 = vld [vmem:[%s17908_s21 + $0xb0] ss:$12 sps:$4 sm:$0xff]  }
 0x52b   :  { %v1241_v23 = vmax.f32 %v1225_v21, 0.0  ;;  %v1226_v28 = vadd.f32 %v16619_v14, %v1203_v22  ;;  %12741 = vmatprep.subr.bf16.mxu1 %v15877_v6 }
 0x52c   :  { %v1144_v24 = vpop.f32.mrb[36].mxu1 }
 0x52d   :  { %v11872_v25 = vpack.c.bf16 %v1241_v23, %v1240_v12  ;;  %v1181_v26 = vadd.f32 %v1165_v4, %v1144_v24  ;;  %v12677_v27 = vpop.f32.mrb[37].mxu1  ;;  %v1242_v36 = vmax.f32 %v1226_v28, 0.0  ;;  %2152 = vmatpush1.bf16.msra.mxu0 %v14117_v48  ;;  %v16703_v12 = vld [vmem:[#allocation53] ss:$0 sm:$0xff]  ;;  %v14142_v48 = vld [vmem:[%s17908_s21 + $0xac] ss:$12 sps:$4 sm:$0xff]  }
 0x52e   :  { %v1147_v29 = vpop.f32.mrb[38].mxu1  ;;  %v14108_v30 = vld [vmem:[#allocation3 + $0x28] sm:$0xff]   ;;  %2153 = vmatprep.subr.bf16.mxu0 %v14123_v49 }
 0x52f   :  { %12113 = vst [vmem:[#allocation3 + $0x30] sm:$0xff] %v11872_v25   ;;  %v1204_v31 = vmul.f32 %v16617_v11, %v1181_v26  ;;  %v1182_v32 = vadd.f32 %v1166_v62, %v1147_v29  ;;  %v12678_v33 = vpop.f32.mrb[39].mxu1  ;;  %1595 = vmatmul.mubr.bf16.gmra.mrb[52].mxu0 %v14108_v30 }
 0x530   :  { %12716 = vmatmul.mubr.bf16.gmra.mrb[60].mxu1 %v14108_v30  ;;  %1604 = vmatprep.mubr.bf16.mxu0 %v15876_v0 }
 0x531   :  { %v1227_v34 = vadd.f32 %v16619_v14, %v1204_v31  ;;  %v1205_v35 = vmul.f32 %v16617_v11, %v1182_v32  ;;  %12719 = vmatprep.mubr.msk.bf16.mxu1 %vm15878_vm2, %v15877_v6  ;;  %2154 = vmatpush1.bf16.msra.mxu0 %v14121_v51  ;;  %v14134_v31 = vld [vmem:[%s17908_s21 + $0x7c] ss:$12 sps:$4 sm:$0xff]  }
 0x532   :  { %2155 = vmatprep.subr.bf16.mxu0 %v14126_v52  ;;  %v14140_v51 = vld [vmem:[%s17908_s21 + $0xa8] ss:$12 sps:$4 sm:$0xff]  }
 0x533   :  { %v1243_v37 = vmax.f32 %v1227_v34, 0.0  ;;  %v1228_v38 = vadd.f32 %v16619_v14, %v1205_v35  ;;  %v14132_v35 = vld [vmem:[%s17908_s21 + $0x78] ss:$12 sps:$4 sm:$0xff]  }
 0x535   :  { %v11877_v39 = vpack.c.bf16 %v1243_v37, %v1242_v36  ;;  %v1244_v40 = vmax.f32 %v1228_v38, 0.0  ;;  %2156 = vmatpush1.bf16.msra.mxu0 %v14124_v54 }
 0x536   :  { %v14109_v41 = vld [vmem:[#allocation3 + $0x30] sm:$0xff]   ;;  %2157 = vmatprep.subr.bf16.mxu0 %v14130_v55 }
 0x537   :  { %12114 = vst [vmem:[#allocation3 + $0x38] sm:$0xff] %v11877_v39   ;;  %v1263_v42 = vpack.c.bf16 %v1244_v40, %v1244_v40  ;;  %1605 = vmatmul.mubr.bf16.gmra.mrb[56].mxu0 %v14109_v41  ;;  %v14135_v40 = vld [vmem:[%s17908_s21 + $0x80] ss:$12 sps:$4 sm:$0xff]  }
 0x538   :  { %12720 = vmatmul.mubr.bf16.gmra.mrb[64].mxu1 %v14109_v41  ;;  %1614 = vmatprep.mubr.bf16.mxu0 %v15876_v0 }
 0x539   :  { %1280 = vst [vmem:[#allocation3 + $0x40] sm:$0xf] %v1263_v42  ;;  %12723 = vmatprep.mubr.msk.bf16.mxu1 %vm15878_vm2, %v15877_v6  ;;  %2158 = vmatpush1.bf16.msra.mxu0 %v14128_v58 }
 0x53a   :  { %2159 = vmatprep.subr.bf16.mxu0 %v14134_v31  ;;  %12742 = vmatpush3.bf16.msra.mxu1 %v14135_v40 }
 0x53b   :  { %12743 = vmatprep.subr.bf16.mxu1 %v15877_v6 }
 0x53d   :  { %2160 = vmatpush1.bf16.msra.mxu0 %v14132_v35 }
 0x53e   :  { %v14110_v11 = vld [vmem:[#allocation3 + $0x38] sm:$0xff]   ;;  %12744 = vmatpush3.bf16.msra.mxu1 %v14139_v44 }
 0x53f   :  { %1615 = vmatmul.mubr.bf16.gmra.mrb[60].mxu0 %v14110_v11  ;;  %12745 = vmatprep.subr.bf16.mxu1 %v15877_v6 }
 0x540   :  { %12724 = vmatmul.mubr.bf16.gmra.mrb[68].mxu1 %v14110_v11  ;;  %1624 = vmatprep.mubr.bf16.mxu0 %v15876_v0  ;;  %v14111_v14 = vld [vmem:[#allocation3 + $0x40] sm:$0xff]  }
 0x541   :  { %12727 = vmatprep.mubr.msk.bf16.mxu1 %vm15878_vm2, %v15877_v6 }
 0x542   :  { %12746 = vmatpush3.bf16.msra.mxu1 %v14143_v56 }
 0x543   :  { %12767 = vmatprep.subr.bf16.mxu1 %v15877_v6 }
 0x547   :  { %1625 = vmatmul.mubr.bf16.gmra.mrb[64].mxu0 %v14111_v14 }
 0x548   :  { %12728 = vmatmul.mubr.bf16.gmra.mrb[72].mxu1 %v14111_v14  ;;  %2181 = vmatprep.mubr.bf16.mxu0 %v15876_v0  ;;  %v14138_v14 = vld [vmem:[%s17908_s21 + $0x94] ss:$12 sps:$4 sm:$0xff]  }
 0x549   :  { %12747 = vmatprep.mubr.msk.bf16.mxu1 %vm15878_vm2, %v15877_v6  ;;  %2161 = vmatprep.subr.bf16.mxu0 %v14138_v14 }
 0x54a   :  { %2162 = vmatpush1.bf16.msra.mxu0 %v14136_v43 }
 0x54b   :  { %2163 = vmatprep.subr.bf16.mxu0 %v14142_v48 }
 0x54e   :  { %2164 = vmatpush1.bf16.msra.mxu0 %v14140_v51 }
 0x5da   :  { %v1547_v59 = vpop.f32.mrb[32].mxu0 }
 0x5db   :  { %v1666_v60 = vpop.f32.mrb[40].mxu1  ;;  %v1549_v61 = vpop.f32.mrb[33].mxu0 }
 0x5dc   :  { %v12697_v62 = vpop.f32.mrb[41].mxu1  ;;  %v1550_v63 = vpop.f32.mrb[34].mxu0 }
 0x5dd   :  { %v1668_v1 = vpop.f32.mrb[42].mxu1  ;;  %v1552_v2 = vpop.f32.mrb[35].mxu0 }
 0x5de   :  { %v12698_v3 = vpop.f32.mrb[43].mxu1  ;;  %v1735_v4 = vadd.f32 %v1552_v2, %v1547_v59 }
 0x5e2   :  { %v1556_v5 = vpop.f32.mrb[36].mxu0 }
 0x5e3   :  { %v1672_v7 = vpop.f32.mrb[44].mxu1  ;;  %v1558_v9 = vpop.f32.mrb[37].mxu0 }
 0x5e4   :  { %v1751_v57 = vadd.f32 %v1735_v4, %v1672_v7  ;;  %v12701_v10 = vpop.f32.mrb[45].mxu1  ;;  %v1560_v13 = vpop.f32.mrb[38].mxu0  ;;  %v1736_v16 = vadd.f32 %v1558_v9, %v1550_v63 }
 0x5e5   :  { %v1675_v15 = vpop.f32.mrb[46].mxu1  ;;  %v1562_v18 = vpop.f32.mrb[39].mxu0 }
 0x5e6   :  { %v1774_v17 = vmul.f32 %v16701_v8, %v1751_v57  ;;  %v12702_v19 = vpop.f32.mrb[47].mxu1  ;;  %v1752_v20 = vadd.f32 %v1736_v16, %v1675_v15  ;;  %v1737_v21 = vadd.f32 %v1562_v18, %v1556_v5 }
 0x5e8   :  { %v1797_v22 = vadd.f32 %v16703_v12, %v1774_v17  ;;  %v1775_v24 = vmul.f32 %v16701_v8, %v1752_v20 }
 0x5ea   :  { %v1813_v23 = vmax.f32 %v1797_v22, 0.0  ;;  %v1566_v25 = vpop.f32.mrb[40].mxu0  ;;  %v1798_v36 = vadd.f32 %v16703_v12, %v1775_v24 }
 0x5eb   :  { %v1680_v26 = vpop.f32.mrb[48].mxu1  ;;  %v1568_v29 = vpop.f32.mrb[41].mxu0 }
 0x5ec   :  { %v1832_v27 = vpack.c.bf16 %v1813_v23, %v1813_v23  ;;  %v1753_v28 = vadd.f32 %v1737_v21, %v1680_v26  ;;  %v12705_v30 = vpop.f32.mrb[49].mxu1  ;;  %v1738_v32 = vadd.f32 %v1568_v29, %v1560_v13  ;;  %v1570_v33 = vpop.f32.mrb[42].mxu0  ;;  %v1814_v45 = vmax.f32 %v1798_v36, 0.0 }
 0x5ed   :  { %v1683_v34 = vpop.f32.mrb[50].mxu1  ;;  %v1572_v38 = vpop.f32.mrb[43].mxu0 }
 0x5ee   :  { %1849 = vst [vmem:[#allocation21 + $0x4] sm:$0xf] %v1832_v27  ;;  %v1776_v37 = vmul.f32 %v16701_v8, %v1753_v28  ;;  %v12706_v39 = vpop.f32.mrb[51].mxu1  ;;  %v1754_v41 = vadd.f32 %v1738_v32, %v1683_v34  ;;  %v1739_v42 = vadd.f32 %v1572_v38, %v1566_v25 }
 0x5f0   :  { %v16714_v11 = vadd.f32 %v16703_v12, %v1776_v37  ;;  %v1777_v47 = vmul.f32 %v16701_v8, %v1754_v41 }
 0x5f2   :  { %v1815_v46 = vmax.f32 %v16714_v11, 0.0  ;;  %v1576_v49 = vpop.f32.mrb[44].mxu0  ;;  %v1800_v62 = vadd.f32 %v16703_v12, %v1777_v47 }
 0x5f3   :  { %v1688_v50 = vpop.f32.mrb[52].mxu1  ;;  %v1578_v54 = vpop.f32.mrb[45].mxu0 }
 0x5f4   :  { %v11882_v52 = vpack.c.bf16 %v1815_v46, %v1814_v45  ;;  %v1755_v53 = vadd.f32 %v1739_v42, %v1688_v50  ;;  %v12709_v55 = vpop.f32.mrb[53].mxu1  ;;  %v1740_v58 = vadd.f32 %v1578_v54, %v1570_v33  ;;  %v1580_v59 = vpop.f32.mrb[46].mxu0  ;;  %v1816_v10 = vmax.f32 %v1800_v62, 0.0 }
 0x5f5   :  { %v1691_v60 = vpop.f32.mrb[54].mxu1  ;;  %v1865_v61 = vld [vmem:[#allocation21 + $0x4] sm:$0xf]  ;;  %v1582_v1 = vpop.f32.mrb[47].mxu0 }
 0x5f6   :  { %12115 = vst [vmem:[#allocation21 + $0x8] sm:$0xff] %v11882_v52   ;;  %v1778_v63 = vmul.f32 %v16701_v8, %v1755_v53  ;;  %v12710_v2 = vpop.f32.mrb[55].mxu1  ;;  %v11916_v3 = vunpack.c.l.bf16 %v11882_v52  ;;  %v1881_v4 = vunpack.c.l.bf16 %v1865_v61  ;;  %v1756_v5 = vadd.f32 %v1740_v58, %v1691_v60 }
 0x5f7   :  { %v1741_v7 = vadd.f32 %v1582_v1, %v1576_v49  ;;  %v16738_v32 = vmax.f32 %v1815_v46, %v1816_v10 }
 0x5f8   :  { %v1801_v57 = vadd.f32 %v16703_v12, %v1778_v63  ;;  %v16729_v9 = vmax.f32 %v1881_v4, %v11916_v3  ;;  %v1779_v15 = vmul.f32 %v16701_v8, %v1756_v5 }
 0x5fa   :  { %v1817_v13 = vmax.f32 %v1801_v57, 0.0  ;;  %1905 = vrot.lane.b32.xlu0 %v16729_v9, %s15879_s25  ;;  %v1586_v16 = vpop.f32.mrb[48].mxu0  ;;  %v1802_v25 = vadd.f32 %v16703_v12, %v1779_v15 }
 0x5fb   :  { %v1696_v17 = vpop.f32.mrb[56].mxu1  ;;  %v1588_v20 = vpop.f32.mrb[49].mxu0 }
 0x5fc   :  { %v11887_v18 = vpack.c.bf16 %v1817_v13, %v1816_v10  ;;  %v1757_v19 = vadd.f32 %v1741_v7, %v1696_v17  ;;  %v12713_v21 = vpop.f32.mrb[57].mxu1  ;;  %v1742_v22 = vadd.f32 %v1588_v20, %v1580_v59  ;;  %v1590_v23 = vpop.f32.mrb[50].mxu0  ;;  %v1818_v33 = vmax.f32 %v1802_v25, 0.0 }
 0x5fd   :  { %v1699_v24 = vpop.f32.mrb[58].mxu1  ;;  %v1592_v27 = vpop.f32.mrb[51].mxu0 }
 0x5fe   :  { %12116 = vst [vmem:[#allocation21 + $0x10] sm:$0xff] %v11887_v18   ;;  %v1780_v26 = vmul.f32 %v16701_v8, %v1757_v19  ;;  %v12714_v28 = vpop.f32.mrb[59].mxu1  ;;  %v1758_v29 = vadd.f32 %v1742_v22, %v1699_v24  ;;  %v1743_v30 = vadd.f32 %v1592_v27, %v1586_v16  ;;  %v16744_v50 = vmax.f32 %v1817_v13, %v1818_v33 }
 0x600   :  { %v1803_v31 = vadd.f32 %v16703_v12, %v1780_v26  ;;  %v1781_v35 = vmul.f32 %v16701_v8, %v1758_v29  ;;  %v14038_v54 = vpack.i.bf16 %v16744_v50, %v16738_v32 }
 0x602   :  { %v1819_v34 = vmax.f32 %v1803_v31, 0.0  ;;  %v1596_v36 = vpop.f32.mrb[52].mxu0  ;;  %v1804_v43 = vadd.f32 %v16703_v12, %v1781_v35  ;;  %14039 = vrot.lane.b32.xlu0 %v14038_v54, %s15879_s25 }
 0x603   :  { %v1704_v37 = vpop.f32.mrb[60].mxu1  ;;  %v1598_v40 = vpop.f32.mrb[53].mxu0 }
 0x604   :  { %v11892_v38 = vpack.c.bf16 %v1819_v34, %v1818_v33  ;;  %v1759_v39 = vadd.f32 %v1743_v30, %v1704_v37  ;;  %v12717_v41 = vpop.f32.mrb[61].mxu1  ;;  %v1744_v42 = vadd.f32 %v1598_v40, %v1590_v23  ;;  %v1600_v11 = vpop.f32.mrb[54].mxu0  ;;  %v1820_v51 = vmax.f32 %v1804_v43, 0.0 }
 0x605   :  { %v1707_v14 = vpop.f32.mrb[62].mxu1  ;;  %v1602_v45 = vpop.f32.mrb[55].mxu0 }
 0x606   :  { %12117 = vst [vmem:[#allocation21 + $0x18] sm:$0xff] %v11892_v38   ;;  %v1782_v44 = vmul.f32 %v16701_v8, %v1759_v39  ;;  %v12718_v46 = vpop.f32.mrb[63].mxu1  ;;  %v1760_v47 = vadd.f32 %v1744_v42, %v1707_v14  ;;  %v1745_v48 = vadd.f32 %v1602_v45, %v1596_v36  ;;  %v16753_v13 = vmax.f32 %v1819_v34, %v1820_v51 }
 0x608   :  { %v1805_v49 = vadd.f32 %v16703_v12, %v1782_v44  ;;  %v1783_v53 = vmul.f32 %v16701_v8, %v1760_v47 }
 0x60a   :  { %v1821_v52 = vmax.f32 %v1805_v49, 0.0  ;;  %v1606_v55 = vpop.f32.mrb[56].mxu0  ;;  %v1806_v2 = vadd.f32 %v16703_v12, %v1783_v53 }
 0x60b   :  { %v1712_v56 = vpop.f32.mrb[64].mxu1  ;;  %v1608_v60 = vpop.f32.mrb[57].mxu0 }
 0x60c   :  { %v11897_v58 = vpack.c.bf16 %v1821_v52, %v1820_v51  ;;  %v1761_v59 = vadd.f32 %v1745_v48, %v1712_v56  ;;  %v12721_v61 = vpop.f32.mrb[65].mxu1  ;;  %v1746_v62 = vadd.f32 %v1608_v60, %v1600_v11  ;;  %v1610_v63 = vpop.f32.mrb[58].mxu0  ;;  %v1822_v15 = vmax.f32 %v1806_v2, 0.0 }
 0x60d   :  { %v1715_v1 = vpop.f32.mrb[66].mxu1  ;;  %v1612_v4 = vpop.f32.mrb[59].mxu0 }
 0x60e   :  { %12118 = vst [vmem:[#allocation21 + $0x20] sm:$0xff] %v11897_v58   ;;  %v1784_v3 = vmul.f32 %v16701_v8, %v1761_v59  ;;  %v12722_v5 = vpop.f32.mrb[67].mxu1  ;;  %v1762_v7 = vadd.f32 %v1746_v62, %v1715_v1  ;;  %v1747_v57 = vadd.f32 %v1612_v4, %v1606_v55  ;;  %v16759_v35 = vmax.f32 %v1821_v52, %v1822_v15 }
 0x610   :  { %v1807_v10 = vadd.f32 %v16703_v12, %v1784_v3  ;;  %v1785_v17 = vmul.f32 %v16701_v8, %v1762_v7  ;;  %v14043_v39 = vpack.i.bf16 %v16759_v35, %v16753_v13 }
 0x612   :  { %v1823_v16 = vmax.f32 %v1807_v10, 0.0  ;;  %v1616_v18 = vpop.f32.mrb[60].mxu0  ;;  %v1808_v27 = vadd.f32 %v16703_v12, %v1785_v17  ;;  %14044 = vrot.lane.b32.xlu1 %v14043_v39, %s15879_s25  ;;  %v14155_v39 = vld [vmem:[%s17909_s7 + $0x1c] ss:$12 sps:$4 sm:$0xff]  }
 0x613   :  { %v1720_v19 = vpop.f32.mrb[68].mxu1  ;;  %v1618_v22 = vpop.f32.mrb[61].mxu0 }
 0x614   :  { %v11902_v20 = vpack.c.bf16 %v1823_v16, %v1822_v15  ;;  %v1763_v21 = vadd.f32 %v1747_v57, %v1720_v19  ;;  %v12725_v23 = vpop.f32.mrb[69].mxu1  ;;  %v1748_v24 = vadd.f32 %v1618_v22, %v1610_v63  ;;  %v1620_v25 = vpop.f32.mrb[62].mxu0  ;;  %v1824_v36 = vmax.f32 %v1808_v27, 0.0 }
 0x615   :  { %v1723_v26 = vpop.f32.mrb[70].mxu1  ;;  %v1622_v29 = vpop.f32.mrb[63].mxu0 }
 0x616   :  { %12119 = vst [vmem:[#allocation21 + $0x28] sm:$0xff] %v11902_v20   ;;  %v1786_v28 = vmul.f32 %v16701_v8, %v1763_v21  ;;  %v12726_v30 = vpop.f32.mrb[71].mxu1  ;;  %v1764_v31 = vadd.f32 %v1748_v24, %v1723_v26  ;;  %v1749_v33 = vadd.f32 %v1622_v29, %v1616_v18  ;;  %v1902_v54 = vmax.f32 %v1823_v16, %v1824_v36 }
 0x618   :  { %v1809_v34 = vadd.f32 %v16703_v12, %v1786_v28  ;;  %v1787_v38 = vmul.f32 %v16701_v8, %v1764_v31 }
 0x61a   :  { %v1825_v37 = vmax.f32 %v1809_v34, 0.0  ;;  %v1626_v40 = vpop.f32.mrb[64].mxu0  ;;  %v1810_v47 = vadd.f32 %v16703_v12, %v1787_v38  ;;  %v14152_v38 = vld [vmem:[%s17909_s7 + $0x8] ss:$12 sps:$4 sm:$0xff]  }
 0x61b   :  { %v1728_v41 = vpop.f32.mrb[72].mxu1  ;;  %v1627_v14 = vpop.f32.mrb[65].mxu0  ;;  %v14156_v40 = vld [vmem:[%s17909_s7 + $0x20] ss:$12 sps:$4 sm:$0xff]  }
 0x61c   :  { %v11907_v42 = vpack.c.bf16 %v1825_v37, %v1824_v36  ;;  %v1765_v11 = vadd.f32 %v1749_v33, %v1728_v41  ;;  %v12729_v43 = vpop.f32.mrb[73].mxu1  ;;  %v1750_v44 = vadd.f32 %v1627_v14, %v1620_v25  ;;  %v1629_v45 = vpop.f32.mrb[66].mxu0  ;;  %v1826_v56 = vmax.f32 %v1810_v47, 0.0  ;;  %v14149_v36 = vld [vmem:[%s17909_s7] ss:$12 sps:$4 sm:$0xff]  }
 0x61d   :  { %v1731_v46 = vpop.f32.mrb[74].mxu1  ;;  %v1630_v49 = vpop.f32.mrb[67].mxu0  ;;  %v14153_v41 = vld [vmem:[%s17909_s7 + $0x18] ss:$12 sps:$4 sm:$0xff]   ;;  %v14157_v14 = vld [vmem:[%s17909_s7 + $0x30] ss:$12 sps:$4 sm:$0xff]  }
 0x61e   :  { %12120 = vst [vmem:[#allocation21 + $0x30] sm:$0xff] %v11907_v42   ;;  %v1788_v48 = vmul.f32 %v16701_v8, %v1765_v11  ;;  %v12730_v51 = vpop.f32.mrb[75].mxu1  ;;  %v1766_v52 = vadd.f32 %v1750_v44, %v1731_v46  ;;  %v1903_v63 = vmax.f32 %v1825_v37, %v1826_v56  ;;  %v14151_v37 = vld [vmem:[%s17909_s7 + $0x4] ss:$12 sps:$4 sm:$0xff]   ;;  %v14159_v42 = vld [vmem:[%s17909_s7 + $0x34] ss:$12 sps:$4 sm:$0xff]  }
 0x61f   :  { %2573 = vmatprep.subr.bf16.mxu0 %v14151_v37  ;;  %v14160_v11 = vld [vmem:[%s17909_s7 + $0x38] ss:$12 sps:$4 sm:$0xff]   ;;  %v14161_v44 = vld [vmem:[%s17909_s7 + $0x48] ss:$12 sps:$4 sm:$0xff]   ;;  %v14164_v45 = vld [vmem:[%s17909_s7 + $0x50] ss:$12 sps:$4 sm:$0xff]  }
 0x620   :  { %v1811_v53 = vadd.f32 %v16703_v12, %v1788_v48  ;;  %v1789_v55 = vmul.f32 %v16701_v8, %v1766_v52  ;;  %v14048_v1 = vpack.i.bf16 %v1903_v63, %v1902_v54  ;;  %v14163_v43 = vld [vmem:[%s17909_s7 + $0x4c] ss:$12 sps:$4 sm:$0xff]   ;;  %v14167_v46 = vld [vmem:[%s17909_s7 + $0x64] ss:$12 sps:$4 sm:$0xff]   ;;  %v14168_v48 = vld [vmem:[%s17909_s7 + $0x68] ss:$12 sps:$4 sm:$0xff]  }
 0x621   :  { %v14165_v47 = vld [vmem:[%s17909_s7 + $0x60] ss:$12 sps:$4 sm:$0xff]   ;;  %v14171_v49 = vld [vmem:[%s17909_s7 + $0x7c] ss:$12 sps:$4 sm:$0xff]   ;;  %v14169_v51 = vld [vmem:[%s17909_s7 + $0x78] ss:$12 sps:$4 sm:$0xff]  }
 0x622   :  { %v1827_v58 = vmax.f32 %v1811_v53, 0.0  ;;  %v1812_v59 = vadd.f32 %v16703_v12, %v1789_v55  ;;  %14049 = vrot.lane.b32.xlu1 %v14048_v1, %s15879_s25  ;;  %v14172_v52 = vld [vmem:[%s17909_s7 + $0x80] ss:$12 sps:$4 sm:$0xff]   ;;  %v14176_v55 = vld [vmem:[%s17909_s7 + $0x98] ss:$12 sps:$4 sm:$0xff]  }
 0x623   :  { %v14175_v53 = vld [vmem:[%s17909_s7 + $0x94] ss:$12 sps:$4 sm:$0xff]  }
 0x624   :  { %v11912_v60 = vpack.c.bf16 %v1827_v58, %v1826_v56  ;;  %v1828_v61 = vmax.f32 %v1812_v59, 0.0  ;;  %v14179_v56 = vld [vmem:[%s17909_s7 + $0xac] ss:$12 sps:$4 sm:$0xff]   ;;  %v14177_v58 = vld [vmem:[%s17909_s7 + $0xa8] ss:$12 sps:$4 sm:$0xff]  }
 0x625   :  { %v14180_v59 = vld [vmem:[%s17909_s7 + $0xb0] ss:$12 sps:$4 sm:$0xff]  }
 0x626   :  { %12121 = vst [vmem:[#allocation21 + $0x38] sm:$0xff] %v11912_v60   ;;  %v1847_v62 = vpack.c.bf16 %v1828_v61, %v1828_v61  ;;  %v11941_v3 = vunpack.c.h.bf16 %v11912_v60 }
 0x628   :  { %1864 = vst [vmem:[#allocation21 + $0x40] sm:$0xf] %v1847_v62 }
 0x62f   :  { %v1880_v2 = vld [vmem:[#allocation21 + $0x40] sm:$0xf] }
 0x630   :  { %v1896_v4 = vunpack.c.l.bf16 %v1880_v2 }
 0x632   :  { %v1904_v5 = vmax.f32 %v11941_v3, %v1896_v4 }
 0x634   :  { %1919 = vrot.lane.b32.xlu0 %v1904_v5, %s15879_s25 }
 0x66c   :  { %v1906_v8 = vpop.permute.xlu0 %1905 }
 0x66d   :  { %v1921_v7 = vmax.f32 %v16729_v9, %v1906_v8 }
 0x66f   :  { %v1932_v57 = vpack.c.bf16 %v1921_v7, %v1921_v7 }
 0x671   :  { %1941 = vst [vmem:[#allocation4 + $0x4] sm:$0xf] %v1932_v57  ;;  %v16824_v57 = vld [vmem:[#allocation27] ss:$0 sm:$0xff] }
 0x674   :  { %v14040_v10 = vpop.permute.xlu0 %14039 }
 0x675   :  { %v14042_v15 = vunpack.i.h.bf16 %v14040_v10  ;;  %v14041_v16 = vunpack.i.l.bf16 %v14040_v10 }
 0x677   :  { %v1923_v17 = vmax.f32 %v16744_v50, %v14042_v15  ;;  %v1922_v18 = vmax.f32 %v16738_v32, %v14041_v16  ;;  %v16826_v16 = vld [vmem:[#allocation24] ss:$0 sm:$0xff] }
 0x678   :  { %v14144_v12 = vld [vmem:[#allocation4] sm:$0xff]  }
 0x679   :  { %2182 = vmatmul.mubr.bf16.vlgmr.msra.gmra.mrb[68].mxu0 %v14144_v12  ;;  %12748 = vmatmul.mubr.bf16.vlgmr.msra.gmra.mrb[76].mxu1 %v14144_v12  ;;  %v11945_v19 = vpack.c.bf16 %v1923_v17, %v1922_v18 }
 0x67a   :  { %2190 = vmatprep.mubr.bf16.mxu0 %v15876_v0  ;;  %12751 = vmatprep.mubr.msk.bf16.mxu1 %vm15878_vm2, %v15877_v6 }
 0x67b   :  { %12129 = vst [vmem:[#allocation4 + $0x8] sm:$0xff] %v11945_v19   ;;  %12768 = vmatpush3.bf16.msra.mxu1 %v14152_v38  ;;  %2574 = vmatpush1.bf16.msra.mxu0 %v14149_v36 }
 0x67c   :  { %12769 = vmatprep.subr.bf16.mxu1 %v15877_v6  ;;  %2575 = vmatprep.subr.bf16.mxu0 %v14155_v39 }
 0x67f   :  { %12770 = vmatpush3.bf16.msra.mxu1 %v14156_v40  ;;  %2576 = vmatpush1.bf16.msra.mxu0 %v14153_v41 }
 0x680   :  { %12771 = vmatprep.subr.bf16.mxu1 %v15877_v6  ;;  %2577 = vmatprep.subr.bf16.mxu0 %v14159_v42 }
 0x682   :  { %v14145_v9 = vld [vmem:[#allocation4 + $0x8] sm:$0xff]  }
 0x683   :  { %2191 = vmatmul.mubr.bf16.gmra.mrb[72].mxu0 %v14145_v9  ;;  %12752 = vmatmul.mubr.bf16.gmra.mrb[80].mxu1 %v14145_v9 }
 0x684   :  { %v14045_v20 = vpop.permute.xlu1 %14044  ;;  %2200 = vmatprep.mubr.bf16.mxu0 %v15876_v0  ;;  %12755 = vmatprep.mubr.msk.bf16.mxu1 %vm15878_vm2, %v15877_v6 }
 0x685   :  { %v14047_v21 = vunpack.i.h.bf16 %v14045_v20  ;;  %v14046_v22 = vunpack.i.l.bf16 %v14045_v20  ;;  %12772 = vmatpush3.bf16.msra.mxu1 %v14160_v11  ;;  %2578 = vmatpush1.bf16.msra.mxu0 %v14157_v14 }
 0x686   :  { %12773 = vmatprep.subr.bf16.mxu1 %v15877_v6  ;;  %2579 = vmatprep.subr.bf16.mxu0 %v14163_v43 }
 0x687   :  { %v1925_v23 = vmax.f32 %v16759_v35, %v14047_v21  ;;  %v1924_v24 = vmax.f32 %v16753_v13, %v14046_v22 }
 0x689   :  { %v11950_v50 = vpack.c.bf16 %v1925_v23, %v1924_v24  ;;  %2580 = vmatpush1.bf16.msra.mxu0 %v14161_v44  ;;  %12774 = vmatpush3.bf16.msra.mxu1 %v14164_v45 }
 0x68a   :  { %12775 = vmatprep.subr.bf16.mxu1 %v15877_v6  ;;  %2581 = vmatprep.subr.bf16.mxu0 %v14167_v46 }
 0x68b   :  { %12130 = vst [vmem:[#allocation4 + $0x10] sm:$0xff] %v11950_v50  }
 0x68d   :  { %2582 = vmatpush1.bf16.msra.mxu0 %v14165_v47  ;;  %12776 = vmatpush3.bf16.msra.mxu1 %v14168_v48 }
 0x68e   :  { %12777 = vmatprep.subr.bf16.mxu1 %v15877_v6  ;;  %2583 = vmatprep.subr.bf16.mxu0 %v14171_v49 }
 0x691   :  { %2584 = vmatpush1.bf16.msra.mxu0 %v14169_v51  ;;  %12778 = vmatpush3.bf16.msra.mxu1 %v14172_v52 }
 0x692   :  { %v14146_v32 = vld [vmem:[#allocation4 + $0x10] sm:$0xff]   ;;  %12779 = vmatprep.subr.bf16.mxu1 %v15877_v6  ;;  %2585 = vmatprep.subr.bf16.mxu0 %v14175_v53 }
 0x693   :  { %2201 = vmatmul.mubr.bf16.gmra.mrb[76].mxu0 %v14146_v32  ;;  %12756 = vmatmul.mubr.bf16.gmra.mrb[84].mxu1 %v14146_v32 }
 0x694   :  { %v14050_v25 = vpop.permute.xlu1 %14049  ;;  %2210 = vmatprep.mubr.bf16.mxu0 %v15876_v0  ;;  %12759 = vmatprep.mubr.msk.bf16.mxu1 %vm15878_vm2, %v15877_v6 }
 0x695   :  { %v14052_v26 = vunpack.i.h.bf16 %v14050_v25  ;;  %v14051_v27 = vunpack.i.l.bf16 %v14050_v25  ;;  %12780 = vmatpush3.bf16.msra.mxu1 %v14176_v55 }
 0x696   :  { %12781 = vmatprep.subr.bf16.mxu1 %v15877_v6 }
 0x697   :  { %v1927_v28 = vmax.f32 %v1903_v63, %v14052_v26  ;;  %v1926_v29 = vmax.f32 %v1902_v54, %v14051_v27  ;;  %v14173_v54 = vld [vmem:[%s17909_s7 + $0x90] ss:$12 sps:$4 sm:$0xff]  }
 0x698   :  { %2586 = vmatpush1.bf16.msra.mxu0 %v14173_v54 }
 0x699   :  { %v11955_v30 = vpack.c.bf16 %v1927_v28, %v1926_v29  ;;  %2587 = vmatprep.subr.bf16.mxu0 %v14179_v56  ;;  %12782 = vmatpush3.bf16.msra.mxu1 %v14180_v59 }
 0x69a   :  { %12803 = vmatprep.subr.bf16.mxu1 %v15877_v6 }
 0x69b   :  { %12131 = vst [vmem:[#allocation4 + $0x18] sm:$0xff] %v11955_v30  }
 0x69c   :  { %2588 = vmatpush1.bf16.msra.mxu0 %v14177_v58 }
 0x6a2   :  { %v14147_v34 = vld [vmem:[#allocation4 + $0x18] sm:$0xff]  }
 0x6a3   :  { %2211 = vmatmul.mubr.bf16.gmra.mrb[80].mxu0 %v14147_v34  ;;  %12760 = vmatmul.mubr.bf16.gmra.mrb[88].mxu1 %v14147_v34 }
 0x6a4   :  { %2220 = vmatprep.mubr.bf16.mxu0 %v15876_v0  ;;  %12763 = vmatprep.mubr.msk.bf16.mxu1 %vm15878_vm2, %v15877_v6 }
 0x6a6   :  { %v1920_v13 = vpop.permute.xlu0 %1919 }
 0x6a7   :  { %v1928_v31 = vmax.f32 %v1904_v5, %v1920_v13 }
 0x6a9   :  { %v1939_v33 = vpack.c.bf16 %v1928_v31, %v1928_v31 }
 0x6ab   :  { %1948 = vst [vmem:[#allocation4 + $0x20] sm:$0xf] %v1939_v33 }
 0x6b2   :  { %v14148_v35 = vld [vmem:[#allocation4 + $0x20] sm:$0xff]  }
 0x6b3   :  { %2221 = vmatmul.mubr.bf16.gmra.mrb[84].mxu0 %v14148_v35  ;;  %12764 = vmatmul.mubr.bf16.gmra.mrb[92].mxu1 %v14148_v35 }
 0x6b4   :  { %2605 = vmatprep.mubr.bf16.mxu0 %v15876_v0  ;;  %12783 = vmatprep.mubr.msk.bf16.mxu1 %vm15878_vm2, %v15877_v6 }
 0x74c   :  { %v2183_v60 = vpop.f32.mrb[68].mxu0  ;;  %v2262_v61 = vpop.f32.mrb[76].mxu1 }
 0x74d   :  { %v2185_v62 = vpop.f32.mrb[69].mxu0  ;;  %v12749_v63 = vpop.f32.mrb[77].mxu1 }
 0x74e   :  { %v2186_v1 = vpop.f32.mrb[70].mxu0  ;;  %v2264_v2 = vpop.f32.mrb[78].mxu1 }
 0x74f   :  { %v2188_v3 = vpop.f32.mrb[71].mxu0  ;;  %v12750_v4 = vpop.f32.mrb[79].mxu1 }
 0x750   :  { %v2299_v5 = vadd.f32 %v2188_v3, %v2183_v60 }
 0x756   :  { %v2192_v8 = vpop.f32.mrb[72].mxu0  ;;  %v2268_v7 = vpop.f32.mrb[80].mxu1 }
 0x757   :  { %v2307_v12 = vadd.f32 %v2299_v5, %v2268_v7  ;;  %v2194_v10 = vpop.f32.mrb[73].mxu0  ;;  %v12753_v15 = vpop.f32.mrb[81].mxu1 }
 0x758   :  { %v2300_v17 = vadd.f32 %v2194_v10, %v2186_v1  ;;  %v2196_v18 = vpop.f32.mrb[74].mxu0  ;;  %v2271_v19 = vpop.f32.mrb[82].mxu1 }
 0x759   :  { %v2322_v9 = vmul.f32 %v16824_v57, %v2307_v12  ;;  %v2198_v20 = vpop.f32.mrb[75].mxu0  ;;  %v12754_v21 = vpop.f32.mrb[83].mxu1 }
 0x75a   :  { %v2308_v22 = vadd.f32 %v2300_v17, %v2271_v19  ;;  %v2301_v23 = vadd.f32 %v2198_v20, %v2192_v8 }
 0x75b   :  { %v2337_v24 = vadd.f32 %v16826_v16, %v2322_v9 }
 0x75c   :  { %v2323_v25 = vmul.f32 %v16824_v57, %v2308_v22 }
 0x75d   :  { %v2345_v50 = vmax.f32 %v2337_v24, 0.0 }
 0x75e   :  { %v2338_v35 = vadd.f32 %v16826_v16, %v2323_v25 }
 0x75f   :  { %v2356_v32 = vpack.c.bf16 %v2345_v50, %v2345_v50 }
 0x760   :  { %v2346_v42 = vmax.f32 %v2338_v35, 0.0  ;;  %v14197_v35 = vld [vmem:[%s17910_s10 + $0x38] ss:$12 sps:$4 sm:$0xff]  }
 0x761   :  { %2365 = vst [vmem:[#allocation5 + $0x4] sm:$0xf] %v2356_v32 }
 0x766   :  { %v2202_v26 = vpop.f32.mrb[76].mxu0  ;;  %v2276_v27 = vpop.f32.mrb[84].mxu1 }
 0x767   :  { %v2309_v28 = vadd.f32 %v2301_v23, %v2276_v27  ;;  %v2204_v29 = vpop.f32.mrb[77].mxu0  ;;  %v12757_v30 = vpop.f32.mrb[85].mxu1 }
 0x768   :  { %v2302_v13 = vadd.f32 %v2204_v29, %v2196_v18  ;;  %v2206_v31 = vpop.f32.mrb[78].mxu0  ;;  %v2279_v33 = vpop.f32.mrb[86].mxu1  ;;  %v14181_v34 = vld [vmem:[#allocation5] sm:$0xff]   ;;  %v14188_v29 = vld [vmem:[%s17910_s10 + $0x4] ss:$12 sps:$4 sm:$0xff]  }
 0x769   :  { %v2324_v36 = vmul.f32 %v16824_v57, %v2309_v28  ;;  %v2208_v37 = vpop.f32.mrb[79].mxu0  ;;  %v12758_v38 = vpop.f32.mrb[87].mxu1  ;;  %2606 = vmatmul.mubr.bf16.vlgmr.msra.gmra.mrb[88].mxu0 %v14181_v34  ;;  %12784 = vmatmul.mubr.bf16.vlgmr.msra.gmra.mrb[96].mxu1 %v14181_v34  ;;  %v14186_v28 = vld [vmem:[%s17910_s10] ss:$12 sps:$4 sm:$0xff]   ;;  %v14189_v30 = vld [vmem:[%s17910_s10 + $0x8] ss:$12 sps:$4 sm:$0xff]  }
 0x76a   :  { %v2310_v39 = vadd.f32 %v2302_v13, %v2279_v33  ;;  %v2303_v40 = vadd.f32 %v2208_v37, %v2202_v26  ;;  %2614 = vmatprep.mubr.bf16.mxu0 %v15876_v0  ;;  %12787 = vmatprep.mubr.msk.bf16.mxu1 %vm15878_vm2, %v15877_v6  ;;  %v14192_v13 = vld [vmem:[%s17910_s10 + $0x1c] ss:$12 sps:$4 sm:$0xff]   ;;  %v14190_v33 = vld [vmem:[%s17910_s10 + $0x18] ss:$12 sps:$4 sm:$0xff]   ;;  %v14196_v34 = vld [vmem:[%s17910_s10 + $0x34] ss:$12 sps:$4 sm:$0xff]  }
 0x76b   :  { %v2339_v41 = vadd.f32 %v16826_v16, %v2324_v36  ;;  %3025 = vmatprep.subr.bf16.mxu0 %v14188_v29  ;;  %12804 = vmatpush3.bf16.msra.mxu1 %v14189_v30  ;;  %v14194_v36 = vld [vmem:[%s17910_s10 + $0x30] ss:$12 sps:$4 sm:$0xff]   ;;  %v14200_v37 = vld [vmem:[%s17910_s10 + $0x4c] ss:$12 sps:$4 sm:$0xff]  }
 0x76c   :  { %v2325_v43 = vmul.f32 %v16824_v57, %v2310_v39  ;;  %3026 = vmatpush1.bf16.msra.mxu0 %v14186_v28  ;;  %12805 = vmatprep.subr.bf16.mxu1 %v15877_v6  ;;  %v14201_v38 = vld [vmem:[%s17910_s10 + $0x50] ss:$12 sps:$4 sm:$0xff]   ;;  %v14198_v39 = vld [vmem:[%s17910_s10 + $0x48] ss:$12 sps:$4 sm:$0xff]  }
 0x76d   :  { %v2347_v11 = vmax.f32 %v2339_v41, 0.0  ;;  %3027 = vmatprep.subr.bf16.mxu0 %v14192_v13  ;;  %v14205_v41 = vld [vmem:[%s17910_s10 + $0x68] ss:$12 sps:$4 sm:$0xff]  }
 0x76e   :  { %v2340_v53 = vadd.f32 %v16826_v16, %v2325_v43 }
 0x76f   :  { %v11960_v14 = vpack.c.bf16 %v2347_v11, %v2346_v42  ;;  %v14202_v42 = vld [vmem:[%s17910_s10 + $0x60] ss:$12 sps:$4 sm:$0xff]  }
 0x770   :  { %v2348_v62 = vmax.f32 %v2340_v53, 0.0  ;;  %3028 = vmatpush1.bf16.msra.mxu0 %v14190_v33  ;;  %v16879_v53 = vld [vmem:[#allocation30] ss:$0 sm:$0xff] }
 0x771   :  { %12132 = vst [vmem:[#allocation5 + $0x8] sm:$0xff] %v11960_v14   ;;  %3029 = vmatprep.subr.bf16.mxu0 %v14196_v34 }
 0x774   :  { %3030 = vmatpush1.bf16.msra.mxu0 %v14194_v36 }
 0x775   :  { %3031 = vmatprep.subr.bf16.mxu0 %v14200_v37 }
 0x776   :  { %v2212_v44 = vpop.f32.mrb[80].mxu0  ;;  %v2284_v45 = vpop.f32.mrb[88].mxu1 }
 0x777   :  { %v2311_v46 = vadd.f32 %v2303_v40, %v2284_v45  ;;  %v2214_v47 = vpop.f32.mrb[81].mxu0  ;;  %v12761_v48 = vpop.f32.mrb[89].mxu1  ;;  %v14204_v40 = vld [vmem:[%s17910_s10 + $0x64] ss:$12 sps:$4 sm:$0xff]  }
 0x778   :  { %v2304_v49 = vadd.f32 %v2214_v47, %v2206_v31  ;;  %v2216_v51 = vpop.f32.mrb[82].mxu0  ;;  %v2287_v52 = vpop.f32.mrb[90].mxu1  ;;  %v14182_v58 = vld [vmem:[#allocation5 + $0x8] sm:$0xff]   ;;  %3032 = vmatpush1.bf16.msra.mxu0 %v14198_v39 }
 0x779   :  { %v2326_v54 = vmul.f32 %v16824_v57, %v2311_v46  ;;  %v2218_v55 = vpop.f32.mrb[83].mxu0  ;;  %v12762_v56 = vpop.f32.mrb[91].mxu1  ;;  %2615 = vmatmul.mubr.bf16.gmra.mrb[92].mxu0 %v14182_v58  ;;  %12788 = vmatmul.mubr.bf16.gmra.mrb[100].mxu1 %v14182_v58  ;;  %v14193_v31 = vld [vmem:[%s17910_s10 + $0x20] ss:$12 sps:$4 sm:$0xff]   ;;  %v16881_v58 = vld [vmem:[#allocation29] ss:$0 sm:$0xff] }
 0x77a   :  { %v2312_v59 = vadd.f32 %v2304_v49, %v2287_v52  ;;  %v2305_v60 = vadd.f32 %v2218_v55, %v2212_v44  ;;  %2624 = vmatprep.mubr.bf16.mxu0 %v15876_v0  ;;  %12791 = vmatprep.mubr.msk.bf16.mxu1 %vm15878_vm2, %v15877_v6 }
 0x77b   :  { %v2341_v61 = vadd.f32 %v16826_v16, %v2326_v54  ;;  %12806 = vmatpush3.bf16.msra.mxu1 %v14193_v31  ;;  %3033 = vmatprep.subr.bf16.mxu0 %v14204_v40 }
 0x77c   :  { %v2327_v1 = vmul.f32 %v16824_v57, %v2312_v59  ;;  %12807 = vmatprep.subr.bf16.mxu1 %v15877_v6  ;;  %3034 = vmatpush1.bf16.msra.mxu0 %v14202_v42 }
 0x77d   :  { %v2349_v63 = vmax.f32 %v2341_v61, 0.0 }
 0x77e   :  { %v2342_v17 = vadd.f32 %v16826_v16, %v2327_v1 }
 0x77f   :  { %v11965_v4 = vpack.c.bf16 %v2349_v63, %v2348_v62  ;;  %12808 = vmatpush3.bf16.msra.mxu1 %v14197_v35 }
 0x780   :  { %v2350_v23 = vmax.f32 %v2342_v17, 0.0  ;;  %12809 = vmatprep.subr.bf16.mxu1 %v15877_v6 }
 0x781   :  { %12133 = vst [vmem:[#allocation5 + $0x10] sm:$0xff] %v11965_v4  }
 0x783   :  { %12810 = vmatpush3.bf16.msra.mxu1 %v14201_v38 }
 0x784   :  { %12811 = vmatprep.subr.bf16.mxu1 %v15877_v6 }
 0x786   :  { %v2222_v2 = vpop.f32.mrb[84].mxu0  ;;  %v2292_v3 = vpop.f32.mrb[92].mxu1 }
 0x787   :  { %v2313_v5 = vadd.f32 %v2305_v60, %v2292_v3  ;;  %v2223_v8 = vpop.f32.mrb[85].mxu0  ;;  %v12765_v7 = vpop.f32.mrb[93].mxu1  ;;  %12812 = vmatpush3.bf16.msra.mxu1 %v14205_v41 }
 0x788   :  { %v2306_v12 = vadd.f32 %v2223_v8, %v2216_v51  ;;  %v2225_v10 = vpop.f32.mrb[86].mxu0  ;;  %v2295_v15 = vpop.f32.mrb[94].mxu1  ;;  %v14183_v26 = vld [vmem:[#allocation5 + $0x10] sm:$0xff]   ;;  %12813 = vmatprep.subr.bf16.mxu1 %v15877_v6 }
 0x789   :  { %v2328_v18 = vmul.f32 %v16824_v57, %v2313_v5  ;;  %v2226_v19 = vpop.f32.mrb[87].mxu0  ;;  %v12766_v9 = vpop.f32.mrb[95].mxu1  ;;  %2625 = vmatmul.mubr.bf16.gmra.mrb[96].mxu0 %v14183_v26  ;;  %12792 = vmatmul.mubr.bf16.gmra.mrb[104].mxu1 %v14183_v26 }
 0x78a   :  { %v2314_v20 = vadd.f32 %v2306_v12, %v2295_v15  ;;  %2634 = vmatprep.mubr.bf16.mxu0 %v15876_v0  ;;  %12795 = vmatprep.mubr.msk.bf16.mxu1 %vm15878_vm2, %v15877_v6 }
 0x78b   :  { %v2343_v21 = vadd.f32 %v16826_v16, %v2328_v18 }
 0x78c   :  { %v2329_v22 = vmul.f32 %v16824_v57, %v2314_v20 }
 0x78d   :  { %v2351_v24 = vmax.f32 %v2343_v21, 0.0 }
 0x78e   :  { %v2344_v50 = vadd.f32 %v16826_v16, %v2329_v22 }
 0x78f   :  { %v11970_v32 = vpack.c.bf16 %v2351_v24, %v2350_v23 }
 0x790   :  { %v2352_v25 = vmax.f32 %v2344_v50, 0.0 }
 0x791   :  { %12134 = vst [vmem:[#allocation5 + $0x18] sm:$0xff] %v11970_v32  }
 0x792   :  { %v2363_v27 = vpack.c.bf16 %v2352_v25, %v2352_v25 }
 0x794   :  { %2372 = vst [vmem:[#allocation5 + $0x20] sm:$0xf] %v2363_v27 }
 0x798   :  { %v14184_v57 = vld [vmem:[#allocation5 + $0x18] sm:$0xff]  }
 0x799   :  { %2635 = vmatmul.mubr.bf16.gmra.mrb[100].mxu0 %v14184_v57  ;;  %12796 = vmatmul.mubr.bf16.gmra.mrb[108].mxu1 %v14184_v57 }
 0x79a   :  { %2644 = vmatprep.mubr.bf16.mxu0 %v15876_v0  ;;  %12799 = vmatprep.mubr.msk.bf16.mxu1 %vm15878_vm2, %v15877_v6 }
 0x79b   :  { %v14185_v16 = vld [vmem:[#allocation5 + $0x20] sm:$0xff]  }
 0x7a1   :  { %2645 = vmatmul.mubr.bf16.gmra.mrb[104].mxu0 %v14185_v16  ;;  %12800 = vmatmul.mubr.bf16.gmra.mrb[112].mxu1 %v14185_v16 }
 0x7a2   :  { %3057 = vmatprep.mubr.bf16.mxu0 %v15876_v0  ;;  %12819 = vmatprep.mubr.msk.bf16.mxu1 %vm15878_vm2, %v15877_v6 }
 0x83c   :  { %v2607_v11 = vpop.f32.mrb[88].mxu0  ;;  %v2686_v14 = vpop.f32.mrb[96].mxu1 }
 0x83d   :  { %v2609_v43 = vpop.f32.mrb[89].mxu0  ;;  %v12785_v44 = vpop.f32.mrb[97].mxu1 }
 0x83e   :  { %v2610_v45 = vpop.f32.mrb[90].mxu0  ;;  %v2688_v46 = vpop.f32.mrb[98].mxu1 }
 0x83f   :  { %v2612_v47 = vpop.f32.mrb[91].mxu0  ;;  %v12786_v48 = vpop.f32.mrb[99].mxu1 }
 0x840   :  { %v2723_v49 = vadd.f32 %v2612_v47, %v2607_v11 }
 0x84c   :  { %v2616_v51 = vpop.f32.mrb[92].mxu0  ;;  %v2692_v52 = vpop.f32.mrb[100].mxu1 }
 0x84d   :  { %v2731_v54 = vadd.f32 %v2723_v49, %v2692_v52  ;;  %v2618_v55 = vpop.f32.mrb[93].mxu0  ;;  %v12789_v56 = vpop.f32.mrb[101].mxu1 }
 0x84e   :  { %v2724_v59 = vadd.f32 %v2618_v55, %v2610_v45  ;;  %v2620_v60 = vpop.f32.mrb[94].mxu0  ;;  %v2695_v61 = vpop.f32.mrb[102].mxu1 }
 0x84f   :  { %v2746_v62 = vmul.f32 %v16879_v53, %v2731_v54  ;;  %v2622_v63 = vpop.f32.mrb[95].mxu0  ;;  %v12790_v1 = vpop.f32.mrb[103].mxu1 }
 0x850   :  { %v2732_v2 = vadd.f32 %v2724_v59, %v2695_v61  ;;  %v2725_v3 = vadd.f32 %v2622_v63, %v2616_v51 }
 0x851   :  { %v2761_v4 = vadd.f32 %v16881_v58, %v2746_v62 }
 0x852   :  { %v2747_v7 = vmul.f32 %v16879_v53, %v2732_v2 }
 0x853   :  { %v2769_v5 = vmax.f32 %v2761_v4, 0.0 }
 0x854   :  { %v2762_v21 = vadd.f32 %v16881_v58, %v2747_v7 }
 0x855   :  { %v2780_v8 = vpack.c.bf16 %v2769_v5, %v2769_v5 }
 0x856   :  { %v2770_v26 = vmax.f32 %v2762_v21, 0.0  ;;  %v14217_v21 = vld [vmem:[%s17910_s10 + $0xb0] ss:$12 sps:$4 sm:$0xff]  }
 0x857   :  { %2789 = vst [vmem:[#allocation18 + $0x4] sm:$0xf] %v2780_v8 }
 0x85c   :  { %v2626_v12 = vpop.f32.mrb[96].mxu0  ;;  %v2700_v10 = vpop.f32.mrb[104].mxu1 }
 0x85d   :  { %v2733_v15 = vadd.f32 %v2725_v3, %v2700_v10  ;;  %v2628_v17 = vpop.f32.mrb[97].mxu0  ;;  %v12793_v18 = vpop.f32.mrb[105].mxu1  ;;  %v14208_v10 = vld [vmem:[%s17910_s10 + $0x7c] ss:$12 sps:$4 sm:$0xff]  }
 0x85e   :  { %v2726_v19 = vadd.f32 %v2628_v17, %v2620_v60  ;;  %v2630_v9 = vpop.f32.mrb[98].mxu0  ;;  %v2703_v20 = vpop.f32.mrb[106].mxu1  ;;  %v14209_v17 = vld [vmem:[%s17910_s10 + $0x80] ss:$12 sps:$4 sm:$0xff]   ;;  %3035 = vmatprep.subr.bf16.mxu0 %v14208_v10 }
 0x85f   :  { %v2748_v22 = vmul.f32 %v16879_v53, %v2733_v15  ;;  %v2632_v23 = vpop.f32.mrb[99].mxu0  ;;  %v12794_v24 = vpop.f32.mrb[107].mxu1  ;;  %v14206_v15 = vld [vmem:[%s17910_s10 + $0x78] ss:$12 sps:$4 sm:$0xff]   ;;  %12814 = vmatpush3.bf16.msra.mxu1 %v14209_v17  ;;  %v14212_v18 = vld [vmem:[%s17910_s10 + $0x94] ss:$12 sps:$4 sm:$0xff]  }
 0x860   :  { %v2734_v50 = vadd.f32 %v2726_v19, %v2703_v20  ;;  %v2727_v32 = vadd.f32 %v2632_v23, %v2626_v12  ;;  %3036 = vmatpush1.bf16.msra.mxu0 %v14206_v15  ;;  %12815 = vmatprep.subr.bf16.mxu1 %v15877_v6  ;;  %v14213_v19 = vld [vmem:[%s17910_s10 + $0x98] ss:$12 sps:$4 sm:$0xff]   ;;  %v14214_v20 = vld [vmem:[%s17910_s10 + $0xa8] ss:$12 sps:$4 sm:$0xff]  }
 0x861   :  { %v2763_v25 = vadd.f32 %v16881_v58, %v2748_v22  ;;  %3037 = vmatprep.subr.bf16.mxu0 %v14212_v18  ;;  %v11071_v18 = vld [vmem:[%s17912_s15] ss:$0 sm:$0xff] }
 0x862   :  { %v2749_v57 = vmul.f32 %v16879_v53, %v2734_v50 }
 0x863   :  { %v2771_v27 = vmax.f32 %v2763_v25, 0.0  ;;  %12816 = vmatpush3.bf16.msra.mxu1 %v14213_v19 }
 0x864   :  { %v2764_v36 = vadd.f32 %v16881_v58, %v2749_v57  ;;  %12817 = vmatprep.subr.bf16.mxu1 %v15877_v6 }
 0x865   :  { %v16890_v29 = vpack.c.bf16 %v2771_v27, %v2770_v26 }
 0x866   :  { %v2772_v11 = vmax.f32 %v2764_v36, 0.0 }
 0x867   :  { %12135 = vst [vmem:[#allocation18 + $0x8] sm:$0xff] %v16890_v29   ;;  %v11989_v23 = vunpack.c.l.bf16 %v16890_v29  ;;  %12818 = vmatpush3.bf16.msra.mxu1 %v14217_v21  ;;  %v11072_v21 = vld [vmem:[%s17913_s20] ss:$0 sm:$0xff] }
 0x868   :  { %v2814_v63 = vmax.f32 %v2771_v27, %v2772_v11  ;;  %12831 = vmatprep.subr.bf16.mxu1 %v15877_v6 }
 0x86c   :  { %v2636_v16 = vpop.f32.mrb[100].mxu0  ;;  %v2708_v28 = vpop.f32.mrb[108].mxu1 }
 0x86d   :  { %v2735_v30 = vadd.f32 %v2727_v32, %v2708_v28  ;;  %v2638_v13 = vpop.f32.mrb[101].mxu0  ;;  %v12797_v31 = vpop.f32.mrb[109].mxu1 }
 0x86e   :  { %v2728_v33 = vadd.f32 %v2638_v13, %v2630_v9  ;;  %v2640_v34 = vpop.f32.mrb[102].mxu0  ;;  %v2711_v35 = vpop.f32.mrb[110].mxu1  ;;  %v14216_v9 = vld [vmem:[%s17910_s10 + $0xac] ss:$12 sps:$4 sm:$0xff]  }
 0x86f   :  { %v2750_v37 = vmul.f32 %v16879_v53, %v2735_v30  ;;  %v2642_v38 = vpop.f32.mrb[103].mxu0  ;;  %v12798_v39 = vpop.f32.mrb[111].mxu1 }
 0x870   :  { %v2736_v40 = vadd.f32 %v2728_v33, %v2711_v35  ;;  %v2729_v41 = vadd.f32 %v2642_v38, %v2636_v16 }
 0x871   :  { %v2765_v42 = vadd.f32 %v16881_v58, %v2750_v37 }
 0x872   :  { %v2751_v43 = vmul.f32 %v16879_v53, %v2736_v40  ;;  %v14223_v40 = vld [vmem:[%s17911_s3 + $0x4] ss:$12 sps:$4 sm:$0xff]  }
 0x873   :  { %v2773_v14 = vmax.f32 %v2765_v42, 0.0  ;;  %v14224_v42 = vld [vmem:[%s17911_s3 + $0x8] ss:$12 sps:$4 sm:$0xff]  }
 0x874   :  { %v2646_v44 = vpop.f32.mrb[104].mxu0  ;;  %v2716_v45 = vpop.f32.mrb[112].mxu1  ;;  %v2766_v55 = vadd.f32 %v16881_v58, %v2751_v43  ;;  %v14228_v43 = vld [vmem:[%s17911_s3 + $0x20] ss:$12 sps:$4 sm:$0xff]  }
 0x875   :  { %v11980_v46 = vpack.c.bf16 %v2773_v14, %v2772_v11  ;;  %v2737_v47 = vadd.f32 %v2729_v41, %v2716_v45  ;;  %v2647_v48 = vpop.f32.mrb[105].mxu0  ;;  %v12801_v49 = vpop.f32.mrb[113].mxu1  ;;  %v14221_v41 = vld [vmem:[%s17911_s3] ss:$12 sps:$4 sm:$0xff]   ;;  %v14227_v11 = vld [vmem:[%s17911_s3 + $0x1c] ss:$12 sps:$4 sm:$0xff]  }
 0x876   :  { %v2730_v51 = vadd.f32 %v2647_v48, %v2640_v34  ;;  %v2649_v52 = vpop.f32.mrb[106].mxu0  ;;  %v2719_v54 = vpop.f32.mrb[114].mxu1  ;;  %v2774_v2 = vmax.f32 %v2766_v55, 0.0  ;;  %v14231_v44 = vld [vmem:[%s17911_s3 + $0x34] ss:$12 sps:$4 sm:$0xff]  }
 0x877   :  { %12136 = vst [vmem:[#allocation18 + $0x10] sm:$0xff] %v11980_v46   ;;  %v2752_v56 = vmul.f32 %v16879_v53, %v2737_v47  ;;  %v2650_v59 = vpop.f32.mrb[107].mxu0  ;;  %v12802_v60 = vpop.f32.mrb[115].mxu1  ;;  %v14229_v45 = vld [vmem:[%s17911_s3 + $0x30] ss:$12 sps:$4 sm:$0xff]  }
 0x878   :  { %v2738_v61 = vadd.f32 %v2730_v51, %v2719_v54  ;;  %v2815_v12 = vmax.f32 %v2773_v14, %v2774_v2  ;;  %v14225_v14 = vld [vmem:[%s17911_s3 + $0x18] ss:$12 sps:$4 sm:$0xff]   ;;  %v14233_v48 = vld [vmem:[%s17911_s3 + $0x48] ss:$12 sps:$4 sm:$0xff]   ;;  %v14236_v49 = vld [vmem:[%s17911_s3 + $0x50] ss:$12 sps:$4 sm:$0xff]  }
 0x879   :  { %v2767_v62 = vadd.f32 %v16881_v58, %v2752_v56  ;;  %v14232_v46 = vld [vmem:[%s17911_s3 + $0x38] ss:$12 sps:$4 sm:$0xff]   ;;  %v14237_v52 = vld [vmem:[%s17911_s3 + $0x60] ss:$12 sps:$4 sm:$0xff]   ;;  %v14240_v54 = vld [vmem:[%s17911_s3 + $0x68] ss:$12 sps:$4 sm:$0xff]  }
 0x87a   :  { %v2753_v1 = vmul.f32 %v16879_v53, %v2738_v61  ;;  %v14053_v53 = vpack.i.bf16 %v2815_v12, %v2814_v63  ;;  %v14235_v47 = vld [vmem:[%s17911_s3 + $0x4c] ss:$12 sps:$4 sm:$0xff]   ;;  %v14239_v51 = vld [vmem:[%s17911_s3 + $0x64] ss:$12 sps:$4 sm:$0xff]   ;;  %v14243_v55 = vld [vmem:[%s17911_s3 + $0x7c] ss:$12 sps:$4 sm:$0xff]  }
 0x87b   :  { %v2775_v3 = vmax.f32 %v2767_v62, 0.0  ;;  %v14241_v56 = vld [vmem:[%s17911_s3 + $0x78] ss:$12 sps:$4 sm:$0xff]   ;;  %v14244_v59 = vld [vmem:[%s17911_s3 + $0x80] ss:$12 sps:$4 sm:$0xff]  }
 0x87c   :  { %v2768_v4 = vadd.f32 %v16881_v58, %v2753_v1  ;;  %14054 = vrot.lane.b32.xlu0 %v14053_v53, %s15880_s11  ;;  %v14210_v58 = vld [vmem:[%s17910_s10 + $0x90] ss:$12 sps:$4 sm:$0xff]   ;;  %v14247_v60 = vld [vmem:[%s17911_s3 + $0x94] ss:$12 sps:$4 sm:$0xff]   ;;  %v14248_v62 = vld [vmem:[%s17911_s3 + $0x98] ss:$12 sps:$4 sm:$0xff]  }
 0x87d   :  { %v11985_v5 = vpack.c.bf16 %v2775_v3, %v2774_v2  ;;  %3038 = vmatpush1.bf16.msra.mxu0 %v14210_v58  ;;  %v14245_v61 = vld [vmem:[%s17911_s3 + $0x90] ss:$12 sps:$4 sm:$0xff]   ;;  %v14249_v1 = vld [vmem:[%s17911_s3 + $0xa8] ss:$12 sps:$4 sm:$0xff]  }
 0x87e   :  { %v2776_v8 = vmax.f32 %v2768_v4, 0.0  ;;  %3039 = vmatprep.subr.bf16.mxu0 %v14216_v9  ;;  %v14252_v2 = vld [vmem:[%s17911_s3 + $0xb0] ss:$12 sps:$4 sm:$0xff]  }
 0x87f   :  { %12137 = vst [vmem:[#allocation18 + $0x18] sm:$0xff] %v11985_v5   ;;  %v11998_v25 = vunpack.c.h.bf16 %v11985_v5 }
 0x880   :  { %v2787_v7 = vpack.c.bf16 %v2776_v8, %v2776_v8 }
 0x881   :  { %3040 = vmatpush1.bf16.msra.mxu0 %v14214_v20 }
 0x882   :  { %2796 = vst [vmem:[#allocation18 + $0x20] sm:$0xf] %v2787_v7  ;;  %3369 = vmatprep.subr.bf16.mxu0 %v14223_v40 }
 0x889   :  { %v2797_v22 = vld [vmem:[#allocation18 + $0x4] ss:$28 sps:$4 sm:$0xff]  }
 0x88a   :  { %v2805_v24 = vunpack.c.l.bf16 %v2797_v22  ;;  %v2812_v32 = vunpack.c.h.bf16 %v2797_v22 }
 0x88c   :  { %v2813_v50 = vmax.f32 %v2805_v24, %v11989_v23  ;;  %v2816_v26 = vmax.f32 %v11998_v25, %v2812_v32 }
 0x88e   :  { %2817 = vrot.lane.b32.xlu1 %v2813_v50, %s15880_s11 }
 0x892   :  { %2823 = vrot.lane.b32.xlu1 %v2816_v26, %s15880_s11 }
 0x8ee   :  { %v14055_v27 = vpop.permute.xlu0 %14054 }
 0x8ef   :  { %v14057_v57 = vunpack.i.h.bf16 %v14055_v27  ;;  %v14056_v16 = vunpack.i.l.bf16 %v14055_v27 }
 0x8f1   :  { %v2827_v28 = vmax.f32 %v2815_v12, %v14057_v57  ;;  %v2826_v30 = vmax.f32 %v2814_v63, %v14056_v16  ;;  %v14251_v63 = vld [vmem:[%s17911_s3 + $0xac] ss:$12 sps:$4 sm:$0xff]  }
 0x8f3   :  { %v12002_v13 = vpack.c.bf16 %v2827_v28, %v2826_v30 }
 0x8f5   :  { %12141 = vst [vmem:[#allocation6 + $0x8] sm:$0xff] %v12002_v13  }
 0x8fc   :  { %v14219_v38 = vld [vmem:[#allocation6 + $0x8] sm:$0xff]  }
 0x900   :  { %v2818_v31 = vpop.permute.xlu1 %2817 }
 0x901   :  { %v2825_v29 = vmax.f32 %v2813_v50, %v2818_v31 }
 0x903   :  { %v2832_v33 = vpack.c.bf16 %v2825_v29, %v2825_v29 }
 0x904   :  { %v2824_v34 = vpop.permute.xlu1 %2823 }
 0x905   :  { %2837 = vst [vmem:[#allocation6 + $0x4] sm:$0xf] %v2832_v33  ;;  %v2828_v35 = vmax.f32 %v2816_v26, %v2824_v34 }
 0x907   :  { %v2835_v36 = vpack.c.bf16 %v2828_v35, %v2828_v35 }
 0x909   :  { %2840 = vst [vmem:[#allocation6 + $0x10] sm:$0xf] %v2835_v36 }
 0x90c   :  { %v14218_v37 = vld [vmem:[#allocation6] sm:$0xff]  }
 0x90d   :  { %3058 = vmatmul.mubr.bf16.vlgmr.msra.gmra.mrb[108].mxu0 %v14218_v37  ;;  %12820 = vmatmul.mubr.bf16.vlgmr.msra.gmra.mrb[116].mxu1 %v14218_v37 }
 0x90e   :  { %3066 = vmatprep.mubr.bf16.mxu0 %v15876_v0  ;;  %12823 = vmatprep.mubr.msk.bf16.mxu1 %vm15878_vm2, %v15877_v6 }
 0x90f   :  { %3370 = vmatpush1.bf16.msra.mxu0 %v14221_v41  ;;  %12832 = vmatpush3.bf16.msra.mxu1 %v14224_v42 }
 0x910   :  { %v14220_v39 = vld [vmem:[#allocation6 + $0x10] sm:$0xff]   ;;  %12833 = vmatprep.subr.bf16.mxu1 %v15877_v6  ;;  %3371 = vmatprep.subr.bf16.mxu0 %v14227_v11 }
 0x913   :  { %3372 = vmatpush1.bf16.msra.mxu0 %v14225_v14  ;;  %12834 = vmatpush3.bf16.msra.mxu1 %v14228_v43 }
 0x914   :  { %12835 = vmatprep.subr.bf16.mxu1 %v15877_v6  ;;  %3373 = vmatprep.subr.bf16.mxu0 %v14231_v44 }
 0x915   :  { %3067 = vmatmul.mubr.bf16.gmra.mrb[112].mxu0 %v14219_v38  ;;  %12824 = vmatmul.mubr.bf16.gmra.mrb[120].mxu1 %v14219_v38 }
 0x916   :  { %3076 = vmatprep.mubr.bf16.mxu0 %v15876_v0  ;;  %12827 = vmatprep.mubr.msk.bf16.mxu1 %vm15878_vm2, %v15877_v6 }
 0x917   :  { %3374 = vmatpush1.bf16.msra.mxu0 %v14229_v45  ;;  %12836 = vmatpush3.bf16.msra.mxu1 %v14232_v46 }
 0x918   :  { %12837 = vmatprep.subr.bf16.mxu1 %v15877_v6  ;;  %3375 = vmatprep.subr.bf16.mxu0 %v14235_v47 }
 0x91b   :  { %3376 = vmatpush1.bf16.msra.mxu0 %v14233_v48  ;;  %12838 = vmatpush3.bf16.msra.mxu1 %v14236_v49 }
 0x91c   :  { %12839 = vmatprep.subr.bf16.mxu1 %v15877_v6  ;;  %3377 = vmatprep.subr.bf16.mxu0 %v14239_v51 }
 0x91d   :  { %3077 = vmatmul.mubr.bf16.gmra.mrb[116].mxu0 %v14220_v39  ;;  %12828 = vmatmul.mubr.bf16.gmra.mrb[124].mxu1 %v14220_v39 }
 0x91e   :  { %3401 = vmatprep.mubr.bf16.mxu0 %v15876_v0  ;;  %12847 = vmatprep.mubr.msk.bf16.mxu1 %vm15878_vm2, %v15877_v6 }
 0x91f   :  { %3378 = vmatpush1.bf16.msra.mxu0 %v14237_v52  ;;  %12840 = vmatpush3.bf16.msra.mxu1 %v14240_v54  ;;  %v14256_v54 = vld [vmem:[%s17914_s16] ss:$12 sps:$4 sm:$0xff]  }
 0x920   :  { %12841 = vmatprep.subr.bf16.mxu1 %v15877_v6  ;;  %3379 = vmatprep.subr.bf16.mxu0 %v14243_v55  ;;  %v14258_v55 = vld [vmem:[%s17914_s16 + $0x4] ss:$12 sps:$4 sm:$0xff]  }
 0x923   :  { %3380 = vmatpush1.bf16.msra.mxu0 %v14241_v56  ;;  %12842 = vmatpush3.bf16.msra.mxu1 %v14244_v59  ;;  %v14259_v56 = vld [vmem:[%s17914_s16 + $0x8] ss:$12 sps:$4 sm:$0xff]  }
 0x924   :  { %12843 = vmatprep.subr.bf16.mxu1 %v15877_v6  ;;  %3381 = vmatprep.subr.bf16.mxu0 %v14247_v60  ;;  %v14262_v59 = vld [vmem:[%s17914_s16 + $0x1c] ss:$12 sps:$4 sm:$0xff]   ;;  %v14263_v60 = vld [vmem:[%s17914_s16 + $0x20] ss:$12 sps:$4 sm:$0xff]  }
 0x927   :  { %3382 = vmatpush1.bf16.msra.mxu0 %v14245_v61  ;;  %12844 = vmatpush3.bf16.msra.mxu1 %v14248_v62  ;;  %v14260_v61 = vld [vmem:[%s17914_s16 + $0x18] ss:$12 sps:$4 sm:$0xff]   ;;  %v14266_v62 = vld [vmem:[%s17914_s16 + $0x34] ss:$12 sps:$4 sm:$0xff]  }
 0x928   :  { %12845 = vmatprep.subr.bf16.mxu1 %v15877_v6  ;;  %3383 = vmatprep.subr.bf16.mxu0 %v14251_v63  ;;  %v14267_v63 = vld [vmem:[%s17914_s16 + $0x38] ss:$12 sps:$4 sm:$0xff]  }
 0x92b   :  { %3384 = vmatpush1.bf16.msra.mxu0 %v14249_v1  ;;  %12846 = vmatpush3.bf16.msra.mxu1 %v14252_v2  ;;  %v14264_v1 = vld [vmem:[%s17914_s16 + $0x30] ss:$12 sps:$4 sm:$0xff]   ;;  %v14270_v2 = vld [vmem:[%s17914_s16 + $0x4c] ss:$12 sps:$4 sm:$0xff]  }
 0x92c   :  { %3729 = vmatprep.subr.bf16.mxu0 %v14258_v55  ;;  %12859 = vmatprep.subr.bf16.mxu1 %v14259_v56 }
 0x9e0   :  { %v3059_v3 = vpop.f32.mrb[108].mxu0  ;;  %v3118_v4 = vpop.f32.mrb[116].mxu1 }
 0x9e1   :  { %v3061_v5 = vpop.f32.mrb[109].mxu0  ;;  %v12821_v8 = vpop.f32.mrb[117].mxu1  ;;  %v14268_v4 = vld [vmem:[%s17914_s16 + $0x48] ss:$12 sps:$4 sm:$0xff]  }
 0x9e2   :  { %v3062_v7 = vpop.f32.mrb[110].mxu0  ;;  %v3120_v12 = vpop.f32.mrb[118].mxu1  ;;  %v14274_v5 = vld [vmem:[%s17914_s16 + $0x64] ss:$12 sps:$4 sm:$0xff]   ;;  %v14272_v8 = vld [vmem:[%s17914_s16 + $0x60] ss:$12 sps:$4 sm:$0xff]  }
 0x9e3   :  { %v3064_v10 = vpop.f32.mrb[111].mxu0  ;;  %v12822_v15 = vpop.f32.mrb[119].mxu1 }
 0x9e4   :  { %v3139_v17 = vadd.f32 %v3064_v10, %v3059_v3  ;;  %v14271_v3 = vld [vmem:[%s17914_s16 + $0x50] ss:$12 sps:$4 sm:$0xff]  }
 0x9e8   :  { %v3068_v53 = vpop.f32.mrb[112].mxu0  ;;  %v3124_v58 = vpop.f32.mrb[120].mxu1 }
 0x9e9   :  { %v3143_v19 = vadd.f32 %v3139_v17, %v3124_v58  ;;  %v3070_v9 = vpop.f32.mrb[113].mxu0  ;;  %v12825_v20 = vpop.f32.mrb[121].mxu1 }
 0x9ea   :  { %v3140_v22 = vadd.f32 %v3070_v9, %v3062_v7  ;;  %v3072_v23 = vpop.f32.mrb[114].mxu0  ;;  %v3127_v24 = vpop.f32.mrb[122].mxu1 }
 0x9eb   :  { %v3154_v50 = vmul.f32 %v11071_v18, %v3143_v19  ;;  %v3074_v32 = vpop.f32.mrb[115].mxu0  ;;  %v12826_v25 = vpop.f32.mrb[123].mxu1 }
 0x9ec   :  { %v3144_v26 = vadd.f32 %v3140_v22, %v3127_v24  ;;  %v3141_v27 = vadd.f32 %v3074_v32, %v3068_v53 }
 0x9ed   :  { %v3165_v57 = vadd.f32 %v11072_v21, %v3154_v50  ;;  %v11101_v50 = vld [vmem:[#allocation32] ss:$0 sm:$0xff] }
 0x9ee   :  { %v3155_v28 = vmul.f32 %v11071_v18, %v3144_v26 }
 0x9ef   :  { %v3169_v16 = vmax.f32 %v3165_v57, 0.0 }
 0x9f0   :  { %v3078_v30 = vpop.f32.mrb[116].mxu0  ;;  %v3132_v13 = vpop.f32.mrb[124].mxu1  ;;  %v3166_v38 = vadd.f32 %v11072_v21, %v3155_v28 }
 0x9f1   :  { %v3176_v31 = vpack.c.bf16 %v3169_v16, %v3169_v16  ;;  %v3145_v29 = vadd.f32 %v3141_v27, %v3132_v13  ;;  %v3079_v33 = vpop.f32.mrb[117].mxu0  ;;  %v12829_v34 = vpop.f32.mrb[125].mxu1 }
 0x9f2   :  { %v3142_v35 = vadd.f32 %v3079_v33, %v3072_v23  ;;  %v3081_v36 = vpop.f32.mrb[118].mxu0  ;;  %v3135_v37 = vpop.f32.mrb[126].mxu1  ;;  %v3170_v43 = vmax.f32 %v3166_v38, 0.0 }
 0x9f3   :  { %3181 = vst [vmem:[#allocation7 + $0x4] sm:$0xf] %v3176_v31  ;;  %v3156_v39 = vmul.f32 %v11071_v18, %v3145_v29  ;;  %v3082_v40 = vpop.f32.mrb[119].mxu0  ;;  %v12830_v41 = vpop.f32.mrb[127].mxu1 }
 0x9f4   :  { %v3146_v42 = vadd.f32 %v3142_v35, %v3135_v37 }
 0x9f5   :  { %v3167_v11 = vadd.f32 %v11072_v21, %v3156_v39 }
 0x9f6   :  { %v3157_v14 = vmul.f32 %v11071_v18, %v3146_v42 }
 0x9f7   :  { %v3171_v44 = vmax.f32 %v3167_v11, 0.0 }
 0x9f8   :  { %v3168_v45 = vadd.f32 %v11072_v21, %v3157_v14  ;;  %v11100_v21 = vld [vmem:[#allocation33] ss:$0 sm:$0xff] }
 0x9f9   :  { %v12007_v46 = vpack.c.bf16 %v3171_v44, %v3170_v43 }
 0x9fa   :  { %v3172_v47 = vmax.f32 %v3168_v45, 0.0  ;;  %v14253_v48 = vld [vmem:[#allocation7] sm:$0xff]  }
 0x9fb   :  { %12142 = vst [vmem:[#allocation7 + $0x8] sm:$0xff] %v12007_v46   ;;  %3402 = vmatmul.mubr.bf16.vlgmr.msra.gmra.mrb[120].mxu0 %v14253_v48  ;;  %12848 = vmatmul.mubr.bf16.vlgmr.msra.gmra.mrb[128].mxu1 %v14253_v48 }
 0x9fc   :  { %v3179_v49 = vpack.c.bf16 %v3172_v47, %v3172_v47  ;;  %3410 = vmatprep.mubr.bf16.mxu0 %v15876_v0  ;;  %12851 = vmatprep.mubr.msk.bf16.mxu1 %vm15878_vm2, %v15877_v6 }
 0x9fd   :  { %3730 = vmatpush1.bf16.msra.mxu0 %v14256_v54  ;;  %12860 = vmatpush3.bf16.msra.mxu1 %v14259_v56  ;;  %v14275_v54 = vld [vmem:[%s17914_s16 + $0x68] ss:$12 sps:$4 sm:$0xff]  }
 0x9fe   :  { %3184 = vst [vmem:[#allocation7 + $0x10] sm:$0xf] %v3179_v49  ;;  %3731 = vmatprep.subr.bf16.mxu0 %v14262_v59  ;;  %12861 = vmatprep.subr.bf16.mxu1 %v14263_v60  ;;  %v14278_v56 = vld [vmem:[%s17914_s16 + $0x7c] ss:$12 sps:$4 sm:$0xff]   ;;  %v14276_v59 = vld [vmem:[%s17914_s16 + $0x78] ss:$12 sps:$4 sm:$0xff]  }
 0xa01   :  { %3732 = vmatpush1.bf16.msra.mxu0 %v14260_v61  ;;  %12862 = vmatpush3.bf16.msra.mxu1 %v14263_v60  ;;  %v14279_v60 = vld [vmem:[%s17914_s16 + $0x80] ss:$12 sps:$4 sm:$0xff]   ;;  %v14280_v61 = vld [vmem:[%s17914_s16 + $0x90] ss:$12 sps:$4 sm:$0xff]  }
 0xa02   :  { %v14254_v51 = vld [vmem:[#allocation7 + $0x8] sm:$0xff]   ;;  %3733 = vmatprep.subr.bf16.mxu0 %v14266_v62  ;;  %12863 = vmatprep.subr.bf16.mxu1 %v14267_v63 }
 0xa03   :  { %3411 = vmatmul.mubr.bf16.gmra.mrb[124].mxu0 %v14254_v51  ;;  %12852 = vmatmul.mubr.bf16.gmra.mrb[132].mxu1 %v14254_v51  ;;  %v14282_v62 = vld [vmem:[%s17914_s16 + $0x94] ss:$12 sps:$4 sm:$0xff]  }
 0xa04   :  { %3420 = vmatprep.mubr.bf16.mxu0 %v15876_v0  ;;  %12855 = vmatprep.mubr.msk.bf16.mxu1 %vm15878_vm2, %v15877_v6 }
 0xa05   :  { %v14255_v52 = vld [vmem:[#allocation7 + $0x10] sm:$0xff]   ;;  %3734 = vmatpush1.bf16.msra.mxu0 %v14264_v1  ;;  %12864 = vmatpush3.bf16.msra.mxu1 %v14267_v63  ;;  %v14283_v63 = vld [vmem:[%s17914_s16 + $0x98] ss:$12 sps:$4 sm:$0xff]  }
 0xa06   :  { %3735 = vmatprep.subr.bf16.mxu0 %v14270_v2  ;;  %12865 = vmatprep.subr.bf16.mxu1 %v14271_v3  ;;  %v14286_v1 = vld [vmem:[%s17914_s16 + $0xac] ss:$12 sps:$4 sm:$0xff]   ;;  %v14287_v2 = vld [vmem:[%s17914_s16 + $0xb0] ss:$12 sps:$4 sm:$0xff]  }
 0xa09   :  { %3736 = vmatpush1.bf16.msra.mxu0 %v14268_v4  ;;  %12866 = vmatpush3.bf16.msra.mxu1 %v14271_v3  ;;  %v14284_v3 = vld [vmem:[%s17914_s16 + $0xa8] ss:$12 sps:$4 sm:$0xff]  }
 0xa0a   :  { %3737 = vmatprep.subr.bf16.mxu0 %v14274_v5  ;;  %12867 = vmatprep.subr.bf16.mxu1 %v14275_v54 }
 0xa0b   :  { %3421 = vmatmul.mubr.bf16.gmra.mrb[128].mxu0 %v14255_v52  ;;  %12856 = vmatmul.mubr.bf16.gmra.mrb[136].mxu1 %v14255_v52 }
 0xa0c   :  { %3761 = vmatprep.mubr.bf16.mxu0 %v15876_v0 }
 0xa0d   :  { %3738 = vmatpush1.bf16.msra.mxu0 %v14272_v8  ;;  %12868 = vmatpush3.bf16.msra.mxu1 %v14275_v54 }
 0xa0e   :  { %3739 = vmatprep.subr.bf16.mxu0 %v14278_v56  ;;  %12869 = vmatprep.subr.bf16.mxu1 %v14279_v60 }
 0xa11   :  { %3740 = vmatpush1.bf16.msra.mxu0 %v14276_v59  ;;  %12870 = vmatpush3.bf16.msra.mxu1 %v14279_v60 }
 0xa12   :  { %3741 = vmatprep.subr.bf16.mxu0 %v14282_v62  ;;  %12871 = vmatprep.subr.bf16.mxu1 %v14283_v63 }
 0xa15   :  { %3742 = vmatpush1.bf16.msra.mxu0 %v14280_v61  ;;  %12872 = vmatpush3.bf16.msra.mxu1 %v14283_v63 }
 0xa16   :  { %3743 = vmatprep.subr.bf16.mxu0 %v14286_v1  ;;  %12873 = vmatprep.subr.bf16.mxu1 %v14287_v2 }
 0xa19   :  { %3744 = vmatpush1.bf16.msra.mxu0 %v14284_v3  ;;  %12874 = vmatpush3.bf16.msra.mxu1 %v14287_v2 }
 0xace   :  { %v3403_v7 = vpop.f32.mrb[120].mxu0  ;;  %v3462_v12 = vpop.f32.mrb[128].mxu1 }
 0xacf   :  { %v3405_v10 = vpop.f32.mrb[121].mxu0  ;;  %v12849_v15 = vpop.f32.mrb[129].mxu1 }
 0xad0   :  { %v3406_v17 = vpop.f32.mrb[122].mxu0  ;;  %v3464_v53 = vpop.f32.mrb[130].mxu1 }
 0xad1   :  { %v3408_v58 = vpop.f32.mrb[123].mxu0  ;;  %v12850_v18 = vpop.f32.mrb[131].mxu1 }
 0xad2   :  { %v3483_v19 = vadd.f32 %v3408_v58, %v3403_v7 }
 0xad6   :  { %v3412_v9 = vpop.f32.mrb[124].mxu0  ;;  %v3468_v20 = vpop.f32.mrb[132].mxu1 }
 0xad7   :  { %v3487_v22 = vadd.f32 %v3483_v19, %v3468_v20  ;;  %v3414_v23 = vpop.f32.mrb[125].mxu0  ;;  %v12853_v24 = vpop.f32.mrb[133].mxu1 }
 0xad8   :  { %v3484_v32 = vadd.f32 %v3414_v23, %v3406_v17  ;;  %v3416_v25 = vpop.f32.mrb[126].mxu0  ;;  %v3471_v26 = vpop.f32.mrb[134].mxu1  ;;  %v14292_v17 = vld [vmem:[%s17915_s30 + $0x4] ss:$12 sps:$4 sm:$0xff]   ;;  %v14295_v24 = vld [vmem:[%s17915_s30 + $0x1c] ss:$12 sps:$4 sm:$0xff]  }
 0xad9   :  { %v3498_v27 = vmul.f32 %v11100_v21, %v3487_v22  ;;  %v3418_v57 = vpop.f32.mrb[127].mxu0  ;;  %v12854_v16 = vpop.f32.mrb[135].mxu1  ;;  %4033 = vmatprep.subr.bf16.mxu0 %v14292_v17  ;;  %v14326_v17 = vld [vmem:[%s17916_s18 + $0x50] sm:$0xff]  }
 0xada   :  { %v3488_v28 = vadd.f32 %v3484_v32, %v3471_v26  ;;  %v3485_v30 = vadd.f32 %v3418_v57, %v3412_v9  ;;  %v14296_v32 = vld [vmem:[%s17915_s30 + $0x8] ss:$12 sps:$4 sm:$0xff]   ;;  %v14297_v26 = vld [vmem:[%s17915_s30 + $0x30] ss:$12 sps:$4 sm:$0xff]   ;;  %v14303_v57 = vld [vmem:[%s17915_s30 + $0x4c] ss:$12 sps:$4 sm:$0xff]  }
 0xadb   :  { %v3509_v13 = vadd.f32 %v11101_v50, %v3498_v27  ;;  %12879 = vmatprep.subr.bf16.mxu1 %v14296_v32  ;;  %v14300_v27 = vld [vmem:[%s17915_s30 + $0x20] ss:$12 sps:$4 sm:$0xff]   ;;  %v14301_v16 = vld [vmem:[%s17915_s30 + $0x48] ss:$12 sps:$4 sm:$0xff]  }
 0xadc   :  { %v3499_v29 = vmul.f32 %v11100_v21, %v3488_v28  ;;  %v14304_v28 = vld [vmem:[%s17915_s30 + $0x38] ss:$12 sps:$4 sm:$0xff]  }
 0xadd   :  { %v3513_v31 = vmax.f32 %v3509_v13, 0.0  ;;  %v14305_v13 = vld [vmem:[%s17915_s30 + $0x60] ss:$12 sps:$4 sm:$0xff]  }
 0xade   :  { %v3422_v33 = vpop.f32.mrb[128].mxu0  ;;  %v3476_v34 = vpop.f32.mrb[136].mxu1  ;;  %v3510_v42 = vadd.f32 %v11101_v50, %v3499_v29  ;;  %v14311_v29 = vld [vmem:[%s17915_s30 + $0x7c] ss:$12 sps:$4 sm:$0xff]  }
 0xadf   :  { %v3520_v35 = vpack.c.bf16 %v3513_v31, %v3513_v31  ;;  %v3489_v36 = vadd.f32 %v3485_v30, %v3476_v34  ;;  %v3423_v37 = vpop.f32.mrb[129].mxu0  ;;  %v12857_v38 = vpop.f32.mrb[137].mxu1  ;;  %v14307_v30 = vld [vmem:[%s17915_s30 + $0x64] ss:$12 sps:$4 sm:$0xff]   ;;  %v14312_v34 = vld [vmem:[%s17915_s30 + $0x68] ss:$12 sps:$4 sm:$0xff]  }
 0xae0   :  { %v3486_v39 = vadd.f32 %v3423_v37, %v3416_v25  ;;  %v3425_v40 = vpop.f32.mrb[130].mxu0  ;;  %v3479_v41 = vpop.f32.mrb[138].mxu1  ;;  %v3514_v47 = vmax.f32 %v3510_v42, 0.0  ;;  %v14299_v25 = vld [vmem:[%s17915_s30 + $0x34] ss:$12 sps:$4 sm:$0xff]  }
 0xae1   :  { %3525 = vst [vmem:[#allocation15 + $0x4] sm:$0xf] %v3520_v35  ;;  %v3500_v11 = vmul.f32 %v11100_v21, %v3489_v36  ;;  %v3426_v14 = vpop.f32.mrb[131].mxu0  ;;  %v12858_v43 = vpop.f32.mrb[139].mxu1  ;;  %v14308_v31 = vld [vmem:[%s17915_s30 + $0x50] ss:$12 sps:$4 sm:$0xff]  }
 0xae2   :  { %v3490_v44 = vadd.f32 %v3486_v39, %v3479_v41  ;;  %v14309_v33 = vld [vmem:[%s17915_s30 + $0x78] ss:$12 sps:$4 sm:$0xff]   ;;  %v14315_v35 = vld [vmem:[%s17915_s30 + $0x94] ss:$12 sps:$4 sm:$0xff]   ;;  %v14313_v36 = vld [vmem:[%s17915_s30 + $0x90] ss:$12 sps:$4 sm:$0xff]  }
 0xae3   :  { %v3511_v45 = vadd.f32 %v11101_v50, %v3500_v11  ;;  %v14316_v37 = vld [vmem:[%s17915_s30 + $0x80] ss:$12 sps:$4 sm:$0xff]   ;;  %v14317_v39 = vld [vmem:[%s17915_s30 + $0xa8] ss:$12 sps:$4 sm:$0xff]   ;;  %v14320_v40 = vld [vmem:[%s17915_s30 + $0x98] ss:$12 sps:$4 sm:$0xff]  }
 0xae4   :  { %v3501_v46 = vmul.f32 %v11100_v21, %v3490_v44  ;;  %v14290_v21 = vld [vmem:[%s17915_s30] ss:$12 sps:$4 sm:$0xff]   ;;  %v14322_v41 = vld [vmem:[%s17915_s30 + $0xb0] ss:$12 sps:$4 sm:$0xff]  }
 0xae5   :  { %v3515_v48 = vmax.f32 %v3511_v45, 0.0  ;;  %v14319_v38 = vld [vmem:[%s17915_s30 + $0xac] ss:$12 sps:$4 sm:$0xff]  }
 0xae6   :  { %v3512_v49 = vadd.f32 %v11101_v50, %v3501_v46  ;;  %v14293_v50 = vld [vmem:[%s17915_s30 + $0x18] ss:$12 sps:$4 sm:$0xff]  }
 0xae7   :  { %v12012_v51 = vpack.c.bf16 %v3515_v48, %v3514_v47 }
 0xae8   :  { %v3516_v52 = vmax.f32 %v3512_v49, 0.0  ;;  %v11128_v49 = vld [vmem:[#allocation36] ss:$0 sm:$0xff] }
 0xae9   :  { %12143 = vst [vmem:[#allocation15 + $0x8] sm:$0xff] %v12012_v51   ;;  %v12016_v5 = vunpack.c.l.bf16 %v12012_v51  ;;  %v12017_v7 = vunpack.c.h.bf16 %v12012_v51 }
 0xaea   :  { %v3523_v55 = vpack.c.bf16 %v3516_v52, %v3516_v52  ;;  %v11129_v52 = vld [vmem:[#allocation35] ss:$0 sm:$0xff] }
 0xaec   :  { %3528 = vst [vmem:[#allocation15 + $0x10] sm:$0xf] %v3523_v55 }
 0xaf3   :  { %v3529_v4 = vld [vmem:[#allocation15 + $0x4] ss:$12 sps:$4 sm:$0xff]  }
 0xaf4   :  { %v3533_v8 = vunpack.c.l.bf16 %v3529_v4  ;;  %v3536_v12 = vunpack.c.h.bf16 %v3529_v4 }
 0xaf6   :  { %v3537_v10 = vmax.f32 %v3533_v8, %v12016_v5  ;;  %v3538_v15 = vmax.f32 %v12017_v7, %v3536_v12 }
 0xaf8   :  { %3539 = vrot.lane.b32.xlu0 %v3537_v10, %s15881_s24  ;;  %3541 = vrot.lane.b32.xlu1 %v3538_v15, %s15881_s24 }
 0xb6a   :  { %v3540_v53 = vpop.permute.xlu0 %3539  ;;  %v3542_v58 = vpop.permute.xlu1 %3541 }
 0xb6b   :  { %v3543_v18 = vmax.f32 %v3537_v10, %v3540_v53  ;;  %v3544_v19 = vmax.f32 %v3538_v15, %v3542_v58  ;;  %v14324_v10 = vld [vmem:[%s17916_s18 + $0x40] sm:$0xff]   ;;  %v14325_v15 = vld [vmem:[%s17916_s18 + $0x48] sm:$0xff]   ;;  %v14327_v53 = vld [vmem:[%s17916_s18 + $0x58] sm:$0xff]  }
 0xb6c   :  { %v14328_v58 = vld [vmem:[%s17916_s18 + $0x60] sm:$0xff]  }
 0xb6d   :  { %v3548_v9 = vpack.c.bf16 %v3543_v18, %v3543_v18  ;;  %v3549_v20 = vpack.c.bf16 %v3544_v19, %v3544_v19 }
 0xb6f   :  { %3551 = vst [vmem:[#allocation8 + $0x4] sm:$0xf] %v3548_v9  ;;  %3552 = vst [vmem:[#allocation8 + $0x8] sm:$0xf] %v3549_v20 }
 0xb76   :  { %v14288_v22 = vld [vmem:[#allocation8] sm:$0xff]   ;;  %v14289_v23 = vld [vmem:[#allocation8 + $0x8] sm:$0xff]  }
 0xb77   :  { %3762 = vmatmul.mubr.bf16.vlgmr.msra.gmra.mrb[132].mxu0 %v14288_v22  ;;  %12875 = vmatprep.mubr.bf16.mxu1 %v14288_v22 }
 0xb78   :  { %12876 = vmatmul.mubr.bf16.vlgmr.msra.gmra.mrb[140].mxu1 %v14289_v23  ;;  %3770 = vmatprep.mubr.bf16.mxu0 %v15876_v0 }
 0xb79   :  { %4034 = vmatpush1.bf16.msra.mxu0 %v14290_v21  ;;  %12880 = vmatpush3.bf16.msra.mxu1 %v14296_v32  ;;  %v11157_v32 = vld [vmem:[#allocation38] ss:$0 sm:$0xff] }
 0xb7a   :  { %4035 = vmatprep.subr.bf16.mxu0 %v14295_v24  ;;  %12881 = vmatprep.subr.bf16.mxu1 %v14300_v27 }
 0xb7d   :  { %4036 = vmatpush1.bf16.msra.mxu0 %v14293_v50  ;;  %12882 = vmatpush3.bf16.msra.mxu1 %v14300_v27 }
 0xb7e   :  { %4037 = vmatprep.subr.bf16.mxu0 %v14299_v25  ;;  %12883 = vmatprep.subr.bf16.mxu1 %v14304_v28 }
 0xb7f   :  { %3771 = vmatmul.mubr.bf16.gmra.mrb[136].mxu0 %v14289_v23  ;;  %v11156_v23 = vld [vmem:[#allocation39] ss:$0 sm:$0xff] }
 0xb80   :  { %4065 = vmatprep.mubr.bf16.mxu0 %v15876_v0 }
 0xb81   :  { %4038 = vmatpush1.bf16.msra.mxu0 %v14297_v26  ;;  %12884 = vmatpush3.bf16.msra.mxu1 %v14304_v28 }
 0xb82   :  { %4039 = vmatprep.subr.bf16.mxu0 %v14303_v57  ;;  %12885 = vmatprep.subr.bf16.mxu1 %v14308_v31 }
 0xb85   :  { %4040 = vmatpush1.bf16.msra.mxu0 %v14301_v16  ;;  %12886 = vmatpush3.bf16.msra.mxu1 %v14308_v31 }
 0xb86   :  { %4041 = vmatprep.subr.bf16.mxu0 %v14307_v30  ;;  %12887 = vmatprep.subr.bf16.mxu1 %v14312_v34 }
 0xb89   :  { %4042 = vmatpush1.bf16.msra.mxu0 %v14305_v13  ;;  %12888 = vmatpush3.bf16.msra.mxu1 %v14312_v34 }
 0xb8a   :  { %4043 = vmatprep.subr.bf16.mxu0 %v14311_v29  ;;  %12889 = vmatprep.subr.bf16.mxu1 %v14316_v37 }
 0xb8d   :  { %4044 = vmatpush1.bf16.msra.mxu0 %v14309_v33  ;;  %12890 = vmatpush3.bf16.msra.mxu1 %v14316_v37 }
 0xb8e   :  { %4045 = vmatprep.subr.bf16.mxu0 %v14315_v35  ;;  %12891 = vmatprep.subr.bf16.mxu1 %v14320_v40 }
 0xb91   :  { %4046 = vmatpush1.bf16.msra.mxu0 %v14313_v36  ;;  %12892 = vmatpush3.bf16.msra.mxu1 %v14320_v40  ;;  %v14330_v40 = vld [vmem:[%s17916_s18 + $0x70] sm:$0xff]  }
 0xb92   :  { %4047 = vmatprep.subr.bf16.mxu0 %v14319_v38  ;;  %12893 = vmatprep.subr.bf16.mxu1 %v14322_v41 }
 0xb95   :  { %4048 = vmatpush1.bf16.msra.mxu0 %v14317_v39  ;;  %12894 = vmatpush3.bf16.msra.mxu1 %v14322_v41  ;;  %v14329_v39 = vld [vmem:[%s17916_s18 + $0x68] sm:$0xff]   ;;  %v14331_v41 = vld [vmem:[%s17916_s18 + $0x78] sm:$0xff]  }
 0xb96   :  { %12899 = vmatprep.subr.bf16.mxu0 %v15877_v6  ;;  %12959 = vmatprep.subr.bf16.mxu1 %v15877_v6 }
 0xc4a   :  { %v3763_v42 = vpop.f32.mrb[132].mxu0 }
 0xc4b   :  { %v3765_v11 = vpop.f32.mrb[133].mxu0  ;;  %v12877_v14 = vpop.f32.mrb[140].mxu1 }
 0xc4c   :  { %v3766_v43 = vpop.f32.mrb[134].mxu0  ;;  %v3812_v44 = vpop.f32.mrb[141].mxu1 }
 0xc4d   :  { %v3768_v45 = vpop.f32.mrb[135].mxu0  ;;  %v12878_v46 = vpop.f32.mrb[142].mxu1 }
 0xc4e   :  { %v3825_v47 = vadd.f32 %v3768_v45, %v3763_v42  ;;  %v3814_v48 = vpop.f32.mrb[143].mxu1 }
 0xc50   :  { %v3827_v51 = vadd.f32 %v12877_v14, %v3825_v47  ;;  %v14332_v47 = vld [vmem:[%s17916_s18] sm:$0xff]  }
 0xc52   :  { %v3836_v54 = vmul.f32 %v11128_v49, %v3827_v51  ;;  %v3772_v55 = vpop.f32.mrb[136].mxu0  ;;  %v14334_v51 = vld [vmem:[%s17916_s18 + $0x10] sm:$0xff]  }
 0xc53   :  { %v3773_v56 = vpop.f32.mrb[137].mxu0  ;;  %v14337_v55 = vld [vmem:[%s17916_s18 + $0x28] sm:$0xff]  }
 0xc54   :  { %v3845_v59 = vadd.f32 %v11129_v52, %v3836_v54  ;;  %v3826_v60 = vadd.f32 %v3773_v56, %v3766_v43  ;;  %v3775_v61 = vpop.f32.mrb[138].mxu0  ;;  %v14336_v54 = vld [vmem:[%s17916_s18 + $0x20] sm:$0xff]   ;;  %v14338_v56 = vld [vmem:[%s17916_s18 + $0x30] sm:$0xff]  }
 0xc55   :  { %v3776_v62 = vpop.f32.mrb[139].mxu0  ;;  %v14340_v61 = vld [vmem:[%s17916_s18 + $0x80] sm:$0xff]  }
 0xc56   :  { %v3847_v63 = vmax.f32 %v3845_v59, 0.0  ;;  %v3828_v1 = vadd.f32 %v12878_v46, %v3826_v60  ;;  %v14339_v59 = vld [vmem:[%s17916_s18 + $0x38] sm:$0xff]   ;;  %v4175_v60 = vld [vmem:[#allocation10] sm:$0xf]  ;;  %v14341_v62 = vld [vmem:[%s17916_s18 + $0x88] sm:$0xff]  }
 0xc58   :  { %v3852_v2 = vpack.c.bf16 %v3847_v63, %v3847_v63  ;;  %v3837_v3 = vmul.f32 %v11128_v49, %v3828_v1  ;;  %v14333_v49 = vld [vmem:[%s17916_s18 + $0x8] sm:$0xff]   ;;  %v14342_v63 = vld [vmem:[%s17916_s18 + $0x90] sm:$0xff]   ;;  %v14343_v1 = vld [vmem:[%s17916_s18 + $0x98] sm:$0xff]  }
 0xc5a   :  { %3855 = vst [vmem:[#allocation9 + $0x4] sm:$0xf] %v3852_v2  ;;  %v3846_v4 = vadd.f32 %v11129_v52, %v3837_v3  ;;  %v14335_v52 = vld [vmem:[%s17916_s18 + $0x18] sm:$0xff]   ;;  %v14344_v2 = vld [vmem:[%s17916_s18 + $0xa0] sm:$0xff]   ;;  %v14345_v3 = vld [vmem:[%s17916_s18 + $0xa8] sm:$0xff]  }
 0xc5c   :  { %v3848_v5 = vmax.f32 %v3846_v4, 0.0  ;;  %v14346_v4 = vld [vmem:[%s17916_s18 + $0xb0] sm:$0xff]  }
 0xc5e   :  { %v3853_v8 = vpack.c.bf16 %v3848_v5, %v3848_v5  ;;  %v14347_v5 = vld [vmem:[%s17916_s18 + $0xb8] sm:$0xff]  }
 0xc60   :  { %3856 = vst [vmem:[#allocation9 + $0x8] sm:$0xf] %v3853_v8  ;;  %v4386_v8 = vld [vmem:[#allocation10 + $0x8] sm:$0xf] }
 0xc61   :  { %v14321_v7 = vld [vmem:[#allocation9] sm:$0xff]  }
 0xc62   :  { %4066 = vmatmul.mubr.bf16.vlgmr.msra.gmra.mrb[140].mxu0 %v14321_v7  ;;  %12895 = vmatprep.mubr.bf16.mxu1 %v14321_v7  ;;  %v14348_v7 = vld [vmem:[#allocation44 + $0x20] sm:$0xff]  }
 0xc63   :  { %4074 = vmatprep.mubr.bf16.mxu0 %v15876_v0  ;;  %12900 = vmatpush3.bf16.msra.mxu0 %v14324_v10  ;;  %v14350_v10 = vld [vmem:[#allocation44 + $0x30] sm:$0xff]  }
 0xc64   :  { %12901 = vmatprep.subr.bf16.mxu0 %v15877_v6 }
 0xc67   :  { %v14323_v12 = vld [vmem:[#allocation9 + $0x8] sm:$0xff]   ;;  %12902 = vmatpush3.bf16.msra.mxu0 %v14325_v15  ;;  %v14351_v15 = vld [vmem:[#allocation44 + $0x38] sm:$0xff]  }
 0xc68   :  { %12896 = vmatmul.mubr.bf16.vlgmr.msra.gmra.mrb[144].mxu1 %v14323_v12  ;;  %12903 = vmatprep.subr.bf16.mxu0 %v15877_v6 }
 0xc69   :  { %12967 = vmatprep.mubr.msk.bf16.mxu1 %vm15878_vm2, %v15877_v6  ;;  %12960 = vmatpush3.bf16.msra.mxu1 %v14348_v7 }
 0xc6a   :  { %4075 = vmatmul.mubr.bf16.gmra.mrb[144].mxu0 %v14323_v12  ;;  %12961 = vmatprep.subr.bf16.mxu1 %v15877_v6  ;;  %v14349_v12 = vld [vmem:[#allocation44 + $0x28] sm:$0xff]  }
 0xc6b   :  { %12915 = vmatprep.mubr.msk.bf16.mxu0 %vm15878_vm2, %v15877_v6  ;;  %12904 = vmatpush3.bf16.msra.mxu0 %v14326_v17  ;;  %v11214_v17 = vld [vmem:[#allocation42] ss:$0 sm:$0xff] }
 0xc6c   :  { %12905 = vmatprep.subr.bf16.mxu0 %v15877_v6 }
 0xc6d   :  { %12962 = vmatpush3.bf16.msra.mxu1 %v14349_v12 }
 0xc6e   :  { %12963 = vmatprep.subr.bf16.mxu1 %v15877_v6 }
 0xc6f   :  { %12906 = vmatpush3.bf16.msra.mxu0 %v14327_v53 }
 0xc70   :  { %12907 = vmatprep.subr.bf16.mxu0 %v15877_v6 }
 0xc71   :  { %12964 = vmatpush3.bf16.msra.mxu1 %v14350_v10 }
 0xc72   :  { %12965 = vmatprep.subr.bf16.mxu1 %v15877_v6 }
 0xc73   :  { %12908 = vmatpush3.bf16.msra.mxu0 %v14328_v58  ;;  %v11215_v58 = vld [vmem:[#allocation41] ss:$0 sm:$0xff] }
 0xc74   :  { %12909 = vmatprep.subr.bf16.mxu0 %v15877_v6 }
 0xc75   :  { %12966 = vmatpush3.bf16.msra.mxu1 %v14351_v15  ;;  %v14391_v15 = vld [vmem:[%s17918_s22] sm:$0xff]  }
 0xc76   :  { %12971 = vmatprep.subr.bf16.mxu1 %v15877_v6 }
 0xc77   :  { %12910 = vmatpush3.bf16.msra.mxu0 %v14329_v39 }
 0xc78   :  { %12911 = vmatprep.subr.bf16.mxu0 %v15877_v6 }
 0xc7b   :  { %12912 = vmatpush3.bf16.msra.mxu0 %v14330_v40 }
 0xc7c   :  { %12913 = vmatprep.subr.bf16.mxu0 %v15877_v6 }
 0xc7f   :  { %12914 = vmatpush3.bf16.msra.mxu0 %v14331_v41 }
 0xc80   :  { %12919 = vmatprep.subr.bf16.mxu0 %v15877_v6 }
 0xd35   :  { %v4067_v18 = vpop.f32.mrb[140].mxu0 }
 0xd36   :  { %v4069_v19 = vpop.f32.mrb[141].mxu0 }
 0xd37   :  { %v4070_v9 = vpop.f32.mrb[142].mxu0 }
 0xd38   :  { %v4072_v20 = vpop.f32.mrb[143].mxu0 }
 0xd39   :  { %v4129_v21 = vadd.f32 %v4072_v20, %v4067_v18 }
 0xd3b   :  { %v12897_v22 = vpop.f32.mrb[144].mxu1 }
 0xd3c   :  { %v4131_v24 = vadd.f32 %v12897_v22, %v4129_v21  ;;  %v4116_v50 = vpop.f32.mrb[145].mxu1 }
 0xd3d   :  { %v4076_v25 = vpop.f32.mrb[144].mxu0  ;;  %v12898_v26 = vpop.f32.mrb[146].mxu1 }
 0xd3e   :  { %v4140_v27 = vmul.f32 %v11156_v23, %v4131_v24  ;;  %v4077_v57 = vpop.f32.mrb[145].mxu0  ;;  %v4118_v16 = vpop.f32.mrb[147].mxu1  ;;  %v14352_v24 = vld [vmem:[#allocation44] sm:$0xff]   ;;  %v14354_v25 = vld [vmem:[#allocation44 + $0x10] sm:$0xff]  }
 0xd3f   :  { %v4130_v28 = vadd.f32 %v4077_v57, %v4070_v9  ;;  %v4079_v30 = vpop.f32.mrb[146].mxu0  ;;  %v14356_v57 = vld [vmem:[#allocation44 + $0x40] sm:$0xff]   ;;  %v14357_v16 = vld [vmem:[#allocation44 + $0x48] sm:$0xff]  }
 0xd40   :  { %v4149_v13 = vadd.f32 %v11157_v32, %v4140_v27  ;;  %v4080_v31 = vpop.f32.mrb[147].mxu0  ;;  %v4517_v27 = vld [vmem:[#allocation11] sm:$0xf]  ;;  %v14359_v30 = vld [vmem:[#allocation44 + $0x58] sm:$0xff]  }
 0xd41   :  { %v4132_v29 = vadd.f32 %v12898_v26, %v4130_v28  ;;  %v14355_v26 = vld [vmem:[#allocation44 + $0x18] sm:$0xff]   ;;  %v14358_v28 = vld [vmem:[#allocation44 + $0x50] sm:$0xff]   ;;  %v14360_v31 = vld [vmem:[#allocation84] sm:$0xff]  }
 0xd42   :  { %v4151_v33 = vmax.f32 %v4149_v13, 0.0  ;;  %v4671_v13 = vld [vmem:[#allocation11 + $0x8] sm:$0xf] }
 0xd43   :  { %v4141_v34 = vmul.f32 %v11156_v23, %v4132_v29  ;;  %v14361_v29 = vld [vmem:[#allocation84 + $0x8] sm:$0xff]  }
 0xd44   :  { %v4156_v35 = vpack.c.bf16 %v4151_v33, %v4151_v33  ;;  %v14362_v33 = vld [vmem:[#allocation84 + $0x10] sm:$0xff]  }
 0xd45   :  { %v4150_v36 = vadd.f32 %v11157_v32, %v4141_v34  ;;  %v14353_v32 = vld [vmem:[#allocation44 + $0x8] sm:$0xff]   ;;  %v14363_v34 = vld [vmem:[#allocation84 + $0x18] sm:$0xff]  }
 0xd46   :  { %4159 = vst [vmem:[#allocation12 + $0x4] sm:$0xf] %v4156_v35  ;;  %v11231_v35 = vld [vmem:[#allocation47] ss:$0 sm:$0xff] }
 0xd47   :  { %v4152_v37 = vmax.f32 %v4150_v36, 0.0 }
 0xd49   :  { %v4157_v38 = vpack.c.bf16 %v4152_v37, %v4152_v37  ;;  %v11232_v37 = vld [vmem:[#allocation45] ss:$0 sm:$0xff] }
 0xd4b   :  { %4160 = vst [vmem:[#allocation12 + $0x8] sm:$0xf] %v4157_v38 }
 0xd52   :  { %v4161_v42 = vld [vmem:[#allocation12 + $0x4] sm:$0xff]  }
 0xd53   :  { %v4163_v11 = vunpack.c.l.bf16 %v4161_v42  ;;  %v4164_v14 = vunpack.c.h.bf16 %v4161_v42 }
 0xd55   :  { %v4165_v43 = vmax.f32 %v4163_v11, %v4164_v14 }
 0xd57   :  { %4166 = vrot.lane.b32.xlu0 %v4165_v43, %s15843_s17  ;;  %s17917_s17 = sld [smem:[#allocation134_spill]] }
 0xd5d   :  { %v14364_v14 = vld [vmem:[%s17917_s17 + $0x40] sm:$0xff]   ;;  %v14387_v7 = vld [vmem:[%s17917_s17 + $0xa8] sm:$0xff]   ;;  %v14388_v12 = vld [vmem:[%s17917_s17 + $0xb0] sm:$0xff]  }
 0xd5e   :  { %v14389_v10 = vld [vmem:[%s17917_s17 + $0xb8] sm:$0xff]  }
 0xdc9   :  { %v4167_v44 = vpop.permute.xlu0 %4166 }
 0xdca   :  { %v4168_v45 = vmax.f32 %v4165_v43, %v4167_v44  ;;  %v14365_v44 = vld [vmem:[%s17917_s17 + $0x48] sm:$0xff]  }
 0xdcc   :  { %v4172_v46 = vpack.c.bf16 %v4168_v45, %v4168_v45  ;;  %v14366_v45 = vld [vmem:[%s17917_s17 + $0x50] sm:$0xff]  }
 0xdce   :  { %4174 = vst [vmem:[#allocation10 + $0x4] sm:$0xf] %v4172_v46  ;;  %v14367_v46 = vld [vmem:[%s17917_s17 + $0x58] sm:$0xff]  }
 0xdd5   :  { %v4192_v48 = vld [vmem:[#allocation10 + $0x4] sm:$0xf] }
 0xdd6   :  { %12916 = vmatmul.mubr.bf16.vlgmr.msra.gmra.mrb[148].mxu0 %v4192_v48  ;;  %v14369_v48 = vld [vmem:[%s17917_s17 + $0x68] sm:$0xff]  }
 0xdd7   :  { %12920 = vmatpush3.bf16.msra.mxu0 %v14332_v47  ;;  %12935 = vmatprep.mubr.msk.bf16.mxu0 %vm15878_vm2, %v15877_v6  ;;  %v14368_v47 = vld [vmem:[%s17917_s17 + $0x60] sm:$0xff]  }
 0xdd8   :  { %12921 = vmatprep.subr.bf16.mxu0 %v15877_v6 }
 0xddb   :  { %12922 = vmatpush3.bf16.msra.mxu0 %v14333_v49  ;;  %v14370_v49 = vld [vmem:[%s17917_s17 + $0x70] sm:$0xff]  }
 0xddc   :  { %12923 = vmatprep.subr.bf16.mxu0 %v15877_v6 }
 0xddf   :  { %12924 = vmatpush3.bf16.msra.mxu0 %v14334_v51  ;;  %v14371_v51 = vld [vmem:[%s17917_s17 + $0x78] sm:$0xff]  }
 0xde0   :  { %12925 = vmatprep.subr.bf16.mxu0 %v15877_v6 }
 0xde3   :  { %12926 = vmatpush3.bf16.msra.mxu0 %v14335_v52  ;;  %v14373_v52 = vld [vmem:[%s17917_s17] sm:$0xff]  }
 0xde4   :  { %12927 = vmatprep.subr.bf16.mxu0 %v15877_v6 }
 0xde7   :  { %12928 = vmatpush3.bf16.msra.mxu0 %v14336_v54  ;;  %v14372_v54 = vld [vmem:[#allocation12 + $0x4] sm:$0xff]  }
 0xde8   :  { %12929 = vmatprep.subr.bf16.mxu0 %v15877_v6 }
 0xdeb   :  { %12930 = vmatpush3.bf16.msra.mxu0 %v14337_v55  ;;  %v14374_v55 = vld [vmem:[%s17917_s17 + $0x8] sm:$0xff]  }
 0xdec   :  { %12931 = vmatprep.subr.bf16.mxu0 %v15877_v6 }
 0xdef   :  { %12932 = vmatpush3.bf16.msra.mxu0 %v14338_v56  ;;  %v14375_v56 = vld [vmem:[%s17917_s17 + $0x10] sm:$0xff]  }
 0xdf0   :  { %12933 = vmatprep.subr.bf16.mxu0 %v15877_v6 }
 0xdf3   :  { %12934 = vmatpush3.bf16.msra.mxu0 %v14339_v59  ;;  %v14376_v59 = vld [vmem:[%s17917_s17 + $0x18] sm:$0xff]  }
 0xdf4   :  { %12939 = vmatprep.subr.bf16.mxu0 %v15877_v6 }
 0xdf6   :  { %12936 = vmatmul.mubr.bf16.vlgmr.msra.gmra.mrb[148].mxu0 %v4175_v60  ;;  %v14377_v60 = vld [vmem:[%s17917_s17 + $0x20] sm:$0xff]  }
 0xdf7   :  { %12940 = vmatpush3.bf16.msra.mxu0 %v14340_v61  ;;  %12955 = vmatprep.mubr.msk.bf16.mxu0 %vm15878_vm2, %v15877_v6  ;;  %v14378_v61 = vld [vmem:[%s17917_s17 + $0x28] sm:$0xff]  }
 0xdf8   :  { %12941 = vmatprep.subr.bf16.mxu0 %v15877_v6 }
 0xdfb   :  { %12942 = vmatpush3.bf16.msra.mxu0 %v14341_v62  ;;  %v14379_v62 = vld [vmem:[%s17917_s17 + $0x30] sm:$0xff]  }
 0xdfc   :  { %12943 = vmatprep.subr.bf16.mxu0 %v15877_v6 }
 0xdff   :  { %12944 = vmatpush3.bf16.msra.mxu0 %v14342_v63  ;;  %v14380_v63 = vld [vmem:[%s17917_s17 + $0x38] sm:$0xff]  }
 0xe00   :  { %12945 = vmatprep.subr.bf16.mxu0 %v15877_v6 }
 0xe03   :  { %12946 = vmatpush3.bf16.msra.mxu0 %v14343_v1  ;;  %v14382_v1 = vld [vmem:[%s17917_s17 + $0x80] sm:$0xff]  }
 0xe04   :  { %12947 = vmatprep.subr.bf16.mxu0 %v15877_v6 }
 0xe07   :  { %12948 = vmatpush3.bf16.msra.mxu0 %v14344_v2  ;;  %v14381_v2 = vld [vmem:[#allocation12] sm:$0xff]  }
 0xe08   :  { %12949 = vmatprep.subr.bf16.mxu0 %v15877_v6 }
 0xe0b   :  { %12950 = vmatpush3.bf16.msra.mxu0 %v14345_v3  ;;  %v14383_v3 = vld [vmem:[%s17917_s17 + $0x88] sm:$0xff]  }
 0xe0c   :  { %12951 = vmatprep.subr.bf16.mxu0 %v15877_v6 }
 0xe0f   :  { %12952 = vmatpush3.bf16.msra.mxu0 %v14346_v4  ;;  %v14384_v4 = vld [vmem:[%s17917_s17 + $0x90] sm:$0xff]  }
 0xe10   :  { %12953 = vmatprep.subr.bf16.mxu0 %v15877_v6 }
 0xe13   :  { %12954 = vmatpush3.bf16.msra.mxu0 %v14347_v5  ;;  %v14385_v5 = vld [vmem:[%s17917_s17 + $0x98] sm:$0xff]  }
 0xe14   :  { %13127 = vmatprep.subr.bf16.mxu0 %v15877_v6 }
 0xe16   :  { %12956 = vmatmul.mubr.bf16.vlgmr.msra.gmra.mrb[148].mxu0 %v4386_v8  ;;  %v14386_v8 = vld [vmem:[%s17917_s17 + $0xa0] sm:$0xff]  }
 0xe17   :  { %13135 = vmatprep.mubr.msk.bf16.mxu0 %vm15878_vm2, %v15877_v6 }
 0xee9   :  { %v4486_v53 = vpop.f32.mrb[148].mxu0 }
 0xeea   :  { %v4500_v18 = vmul.f32 %v11214_v17, %v4486_v53  ;;  %v12957_v19 = vpop.f32.mrb[149].mxu0  ;;  %v14390_v17 = vld [vmem:[#allocation12 + $0x8] sm:$0xff]   ;;  %v14392_v53 = vld [vmem:[%s17918_s22 + $0x8] sm:$0xff]  }
 0xeeb   :  { %v4489_v9 = vpop.f32.mrb[150].mxu0  ;;  %v14395_v19 = vld [vmem:[%s17918_s22 + $0x20] sm:$0xff]  }
 0xeec   :  { %v4508_v20 = vadd.f32 %v11215_v58, %v4500_v18  ;;  %v12958_v21 = vpop.f32.mrb[151].mxu0  ;;  %v14393_v58 = vld [vmem:[%s17918_s22 + $0x10] sm:$0xff]   ;;  %v14394_v18 = vld [vmem:[%s17918_s22 + $0x18] sm:$0xff]   ;;  %v14396_v9 = vld [vmem:[%s17918_s22 + $0x28] sm:$0xff]  }
 0xeed   :  { %v14398_v21 = vld [vmem:[%s17918_s22 + $0x38] sm:$0xff]  }
 0xeee   :  { %v4509_v22 = vmax.f32 %v4508_v20, 0.0  ;;  %v14397_v20 = vld [vmem:[%s17918_s22 + $0x30] sm:$0xff]  }
 0xef0   :  { %v4514_v23 = vpack.c.bf16 %v4509_v22, %v4509_v22 }
 0xef2   :  { %4516 = vst.msk [vmem:[#allocation11 + $0x4] sm:$0xf] %vm4510_vm3, %v4514_v23 }
 0xef9   :  { %v4526_v50 = vld [vmem:[#allocation11 + $0x4] sm:$0xf] }
 0xefa   :  { %12968 = vmatmul.mubr.msk.bf16.vlgmr.msra.gmra.mrb[148].mxu1 %vm4560_vm4, %v4526_v50 }
 0xefb   :  { %12972 = vmatpush3.bf16.msra.mxu1 %v14352_v24  ;;  %12979 = vmatprep.mubr.msk.bf16.mxu1 %vm15878_vm2, %v15877_v6 }
 0xefc   :  { %12973 = vmatprep.subr.bf16.mxu1 %v15877_v6 }
 0xeff   :  { %12974 = vmatpush3.bf16.msra.mxu1 %v14353_v32 }
 0xf00   :  { %12975 = vmatprep.subr.bf16.mxu1 %v15877_v6 }
 0xf03   :  { %12976 = vmatpush3.bf16.msra.mxu1 %v14354_v25 }
 0xf04   :  { %12977 = vmatprep.subr.bf16.mxu1 %v15877_v6 }
 0xf07   :  { %12978 = vmatpush3.bf16.msra.mxu1 %v14355_v26  ;;  %v14400_v26 = vld [vmem:[%s17918_s22 + $0x40] sm:$0xff]  }
 0xf08   :  { %12983 = vmatprep.subr.bf16.mxu1 %v15877_v6 }
 0xf0a   :  { %12980 = vmatmul.mubr.msk.bf16.vlgmr.msra.gmra.mrb[148].mxu1 %vm4560_vm4, %v4517_v27 }
 0xf0b   :  { %12984 = vmatpush3.bf16.msra.mxu1 %v14356_v57  ;;  %12991 = vmatprep.mubr.msk.bf16.mxu1 %vm15878_vm2, %v15877_v6  ;;  %v14401_v57 = vld [vmem:[%s17918_s22 + $0x48] sm:$0xff]  }
 0xf0c   :  { %12985 = vmatprep.subr.bf16.mxu1 %v15877_v6 }
 0xf0f   :  { %12986 = vmatpush3.bf16.msra.mxu1 %v14357_v16  ;;  %v14402_v16 = vld [vmem:[%s17918_s22 + $0x50] sm:$0xff]  }
 0xf10   :  { %12987 = vmatprep.subr.bf16.mxu1 %v15877_v6 }
 0xf13   :  { %12988 = vmatpush3.bf16.msra.mxu1 %v14358_v28  ;;  %v14403_v28 = vld [vmem:[%s17918_s22 + $0x58] sm:$0xff]  }
 0xf14   :  { %12989 = vmatprep.subr.bf16.mxu1 %v15877_v6 }
 0xf17   :  { %12990 = vmatpush3.bf16.msra.mxu1 %v14359_v30  ;;  %v14404_v30 = vld [vmem:[%s17918_s22 + $0x60] sm:$0xff]  }
 0xf18   :  { %12995 = vmatprep.subr.bf16.mxu1 %v15877_v6 }
 0xf1a   :  { %12992 = vmatmul.mubr.msk.bf16.vlgmr.msra.gmra.mrb[148].mxu1 %vm4560_vm4, %v4671_v13  ;;  %v14405_v13 = vld [vmem:[%s17918_s22 + $0x68] sm:$0xff]  }
 0xf1b   :  { %12996 = vmatpush3.bf16.msra.mxu1 %v14360_v31  ;;  %13003 = vmatprep.mubr.msk.bf16.mxu1 %vm15878_vm2, %v15877_v6  ;;  %v14406_v31 = vld [vmem:[%s17918_s22 + $0x70] sm:$0xff]  }
 0xf1c   :  { %12997 = vmatprep.subr.bf16.mxu1 %v15877_v6 }
 0xf1f   :  { %12998 = vmatpush3.bf16.msra.mxu1 %v14361_v29  ;;  %v14407_v29 = vld [vmem:[%s17918_s22 + $0x78] sm:$0xff]  }
 0xf20   :  { %12999 = vmatprep.subr.bf16.mxu1 %v15877_v6 }
 0xf23   :  { %13000 = vmatpush3.bf16.msra.mxu1 %v14362_v33  ;;  %v14409_v33 = vld [vmem:[%s17918_s22 + $0x80] sm:$0xff]  }
 0xf24   :  { %13001 = vmatprep.subr.bf16.mxu1 %v15877_v6 }
 0xf27   :  { %13002 = vmatpush3.bf16.msra.mxu1 %v14363_v34 }
 0xf28   :  { %13007 = vmatprep.subr.bf16.mxu1 %v15877_v6 }
 0xfed   :  { %v4742_v36 = vpop.f32.mrb[148].mxu1 }
 0xfee   :  { %v4756_v38 = vmul.f32 %v11231_v35, %v4742_v36  ;;  %v12993_v39 = vpop.f32.mrb[149].mxu1  ;;  %v14410_v35 = vld [vmem:[%s17918_s22 + $0x88] sm:$0xff]   ;;  %v14411_v36 = vld [vmem:[%s17918_s22 + $0x90] sm:$0xff]  }
 0xfef   :  { %v4745_v40 = vpop.f32.mrb[150].mxu1  ;;  %v14414_v39 = vld [vmem:[%s17918_s22 + $0xa8] sm:$0xff]  }
 0xff0   :  { %v4764_v41 = vadd.f32 %v11232_v37, %v4756_v38  ;;  %v12994_v42 = vpop.f32.mrb[151].mxu1  ;;  %v14412_v37 = vld [vmem:[%s17918_s22 + $0x98] sm:$0xff]   ;;  %v14413_v38 = vld [vmem:[%s17918_s22 + $0xa0] sm:$0xff]   ;;  %v14415_v40 = vld [vmem:[%s17918_s22 + $0xb0] sm:$0xff]  }
 0xff2   :  { %v4765_v11 = vmax.f32 %v4764_v41, 0.0  ;;  %v14416_v41 = vld [vmem:[%s17918_s22 + $0xb8] sm:$0xff]  }
 0xff4   :  { %v4766_v43 = vpack.c.bf16 %v4765_v11, %v4765_v11  ;;  %v14418_v11 = vld [vmem:[#allocation57 + $0x20] sm:$0xff]  }
 0xff5   :  { %13128 = vmatpush3.bf16.msra.mxu0 %v14418_v11  ;;  %v14447_v11 = vld [vmem:[%s17920_s23] sm:$0xff]  }
 0xff6   :  { %13004 = vmatmul.mubr.msk.bf16.vlgmr.msra.gmra.mrb[152].mxu1 %vm4560_vm4, %v4766_v43  ;;  %13129 = vmatprep.subr.bf16.mxu0 %v15877_v6  ;;  %v14420_v43 = vld [vmem:[#allocation57 + $0x30] sm:$0xff]  }
 0xff7   :  { %13008 = vmatpush3.bf16.msra.mxu1 %v14364_v14  ;;  %13023 = vmatprep.mubr.msk.bf16.mxu1 %vm15878_vm2, %v15877_v6  ;;  %v14419_v14 = vld [vmem:[#allocation57 + $0x28] sm:$0xff]  }
 0xff8   :  { %13009 = vmatprep.subr.bf16.mxu1 %v15877_v6 }
 0xff9   :  { %13130 = vmatpush3.bf16.msra.mxu0 %v14419_v14  ;;  %v14446_v14 = vld [vmem:[#allocation15 + $0xc] sm:$0xff]  }
 0xffa   :  { %13131 = vmatprep.subr.bf16.mxu0 %v15877_v6 }
 0xffb   :  { %13010 = vmatpush3.bf16.msra.mxu1 %v14365_v44  ;;  %v14421_v44 = vld [vmem:[#allocation57 + $0x38] sm:$0xff]  }
 0xffc   :  { %13011 = vmatprep.subr.bf16.mxu1 %v15877_v6 }
 0xffd   :  { %13132 = vmatpush3.bf16.msra.mxu0 %v14420_v43  ;;  %v14449_v43 = vld [vmem:[%s17920_s23 + $0x8] sm:$0xff]  }
 0xffe   :  { %13133 = vmatprep.subr.bf16.mxu0 %v15877_v6 }
 0xfff   :  { %13012 = vmatpush3.bf16.msra.mxu1 %v14366_v45  ;;  %v11356_v45 = vld [vmem:[#allocation56] ss:$0 sm:$0xff] }
0x1000   :  { %13013 = vmatprep.subr.bf16.mxu1 %v15877_v6 }
0x1001   :  { %13134 = vmatpush3.bf16.msra.mxu0 %v14421_v44  ;;  %v14448_v44 = vld [vmem:[#allocation15] sm:$0xff]  }
0x1002   :  { %13139 = vmatprep.subr.bf16.mxu0 %v15877_v6 }
0x1003   :  { %13014 = vmatpush3.bf16.msra.mxu1 %v14367_v46 }
0x1004   :  { %13015 = vmatprep.subr.bf16.mxu1 %v15877_v6 }
0x1007   :  { %13016 = vmatpush3.bf16.msra.mxu1 %v14368_v47  ;;  %v11357_v47 = vld [vmem:[%s17919_s9] ss:$0 sm:$0xff] }
0x1008   :  { %13017 = vmatprep.subr.bf16.mxu1 %v15877_v6 }
0x100b   :  { %13018 = vmatpush3.bf16.msra.mxu1 %v14369_v48 }
0x100c   :  { %13019 = vmatprep.subr.bf16.mxu1 %v15877_v6 }
0x100f   :  { %13020 = vmatpush3.bf16.msra.mxu1 %v14370_v49 }
0x1010   :  { %13021 = vmatprep.subr.bf16.mxu1 %v15877_v6 }
0x1013   :  { %13022 = vmatpush3.bf16.msra.mxu1 %v14371_v51 }
0x1014   :  { %13027 = vmatprep.subr.bf16.mxu1 %v15877_v6 }
0x1016   :  { %13024 = vmatmul.mubr.bf16.vlgmr.msra.gmra.mrb[156].mxu1 %v14372_v54 }
0x1017   :  { %13028 = vmatpush3.bf16.msra.mxu1 %v14373_v52  ;;  %13043 = vmatprep.mubr.msk.bf16.mxu1 %vm15878_vm2, %v15877_v6 }
0x1018   :  { %13029 = vmatprep.subr.bf16.mxu1 %v15877_v6 }
0x101b   :  { %13030 = vmatpush3.bf16.msra.mxu1 %v14374_v55 }
0x101c   :  { %13031 = vmatprep.subr.bf16.mxu1 %v15877_v6 }
0x101f   :  { %13032 = vmatpush3.bf16.msra.mxu1 %v14375_v56 }
0x1020   :  { %13033 = vmatprep.subr.bf16.mxu1 %v15877_v6 }
0x1023   :  { %13034 = vmatpush3.bf16.msra.mxu1 %v14376_v59 }
0x1024   :  { %13035 = vmatprep.subr.bf16.mxu1 %v15877_v6 }
0x1027   :  { %13036 = vmatpush3.bf16.msra.mxu1 %v14377_v60 }
0x1028   :  { %13037 = vmatprep.subr.bf16.mxu1 %v15877_v6 }
0x102b   :  { %13038 = vmatpush3.bf16.msra.mxu1 %v14378_v61 }
0x102c   :  { %13039 = vmatprep.subr.bf16.mxu1 %v15877_v6 }
0x102f   :  { %13040 = vmatpush3.bf16.msra.mxu1 %v14379_v62 }
0x1030   :  { %13041 = vmatprep.subr.bf16.mxu1 %v15877_v6 }
0x1033   :  { %13042 = vmatpush3.bf16.msra.mxu1 %v14380_v63  ;;  %v14423_v63 = vld [vmem:[#allocation57] sm:$0xff]  }
0x1034   :  { %13047 = vmatprep.subr.bf16.mxu1 %v15877_v6 }
0x1036   :  { %13044 = vmatmul.mubr.bf16.vlgmr.msra.gmra.mrb[156].mxu1 %v14381_v2  ;;  %v14424_v2 = vld [vmem:[#allocation57 + $0x8] sm:$0xff]  }
0x1037   :  { %13048 = vmatpush3.bf16.msra.mxu1 %v14382_v1  ;;  %13063 = vmatprep.mubr.msk.bf16.mxu1 %vm15878_vm2, %v15877_v6 }
0x1038   :  { %13049 = vmatprep.subr.bf16.mxu1 %v15877_v6 }
0x103b   :  { %13050 = vmatpush3.bf16.msra.mxu1 %v14383_v3  ;;  %v14425_v3 = vld [vmem:[#allocation57 + $0x10] sm:$0xff]  }
0x103c   :  { %13051 = vmatprep.subr.bf16.mxu1 %v15877_v6 }
0x103f   :  { %13052 = vmatpush3.bf16.msra.mxu1 %v14384_v4  ;;  %v14426_v4 = vld [vmem:[#allocation57 + $0x18] sm:$0xff]  }
0x1040   :  { %13053 = vmatprep.subr.bf16.mxu1 %v15877_v6 }
0x1043   :  { %13054 = vmatpush3.bf16.msra.mxu1 %v14385_v5  ;;  %v14428_v5 = vld [vmem:[#allocation57 + $0x40] sm:$0xff]  }
0x1044   :  { %13055 = vmatprep.subr.bf16.mxu1 %v15877_v6 }
0x1047   :  { %13056 = vmatpush3.bf16.msra.mxu1 %v14386_v8 }
0x1048   :  { %13057 = vmatprep.subr.bf16.mxu1 %v15877_v6 }
0x104b   :  { %13058 = vmatpush3.bf16.msra.mxu1 %v14387_v7  ;;  %v14429_v7 = vld [vmem:[#allocation57 + $0x48] sm:$0xff]  }
0x104c   :  { %13059 = vmatprep.subr.bf16.mxu1 %v15877_v6 }
0x104f   :  { %13060 = vmatpush3.bf16.msra.mxu1 %v14388_v12  ;;  %v14430_v12 = vld [vmem:[#allocation57 + $0x50] sm:$0xff]  }
0x1050   :  { %13061 = vmatprep.subr.bf16.mxu1 %v15877_v6 }
0x1053   :  { %13062 = vmatpush3.bf16.msra.mxu1 %v14389_v10  ;;  %v14431_v10 = vld [vmem:[#allocation57 + $0x58] sm:$0xff]  }
0x1054   :  { %13067 = vmatprep.subr.bf16.mxu1 %v15877_v6 }
0x1056   :  { %13064 = vmatmul.mubr.bf16.vlgmr.msra.gmra.mrb[156].mxu1 %v14390_v17 }
0x1057   :  { %13068 = vmatpush3.bf16.msra.mxu1 %v14391_v15  ;;  %13083 = vmatprep.mubr.msk.bf16.mxu1 %vm15878_vm2, %v15877_v6  ;;  %v14433_v15 = vld [vmem:[#allocation86] sm:$0xff]  }
0x1058   :  { %13069 = vmatprep.subr.bf16.mxu1 %v15877_v6 }
0x105b   :  { %13070 = vmatpush3.bf16.msra.mxu1 %v14392_v53  ;;  %v14434_v53 = vld [vmem:[#allocation86 + $0x8] sm:$0xff]  }
0x105c   :  { %13071 = vmatprep.subr.bf16.mxu1 %v15877_v6 }
0x105f   :  { %13072 = vmatpush3.bf16.msra.mxu1 %v14393_v58  ;;  %v14435_v58 = vld [vmem:[#allocation86 + $0x10] sm:$0xff]  }
0x1060   :  { %13073 = vmatprep.subr.bf16.mxu1 %v15877_v6 }
0x1063   :  { %13074 = vmatpush3.bf16.msra.mxu1 %v14394_v18  ;;  %v14436_v18 = vld [vmem:[#allocation86 + $0x18] sm:$0xff]  }
0x1064   :  { %13075 = vmatprep.subr.bf16.mxu1 %v15877_v6 }
0x1067   :  { %13076 = vmatpush3.bf16.msra.mxu1 %v14395_v19  ;;  %v14437_v19 = vld [vmem:[%s17920_s23 + $0x40] sm:$0xff]  }
0x1068   :  { %13077 = vmatprep.subr.bf16.mxu1 %v15877_v6 }
0x106b   :  { %13078 = vmatpush3.bf16.msra.mxu1 %v14396_v9  ;;  %v11376_v9 = vld [vmem:[#allocation60] ss:$0 sm:$0xff] }
0x106c   :  { %13079 = vmatprep.subr.bf16.mxu1 %v15877_v6 }
0x106f   :  { %13080 = vmatpush3.bf16.msra.mxu1 %v14397_v20 }
0x1070   :  { %13081 = vmatprep.subr.bf16.mxu1 %v15877_v6 }
0x1073   :  { %13082 = vmatpush3.bf16.msra.mxu1 %v14398_v21  ;;  %v11377_v21 = vld [vmem:[#allocation59] ss:$0 sm:$0xff] }
0x1074   :  { %13087 = vmatprep.subr.bf16.mxu1 %v15877_v6 }
0x10c9   :  { %v4836_v22 = vpop.f32.mrb[152].mxu1 }
0x10ca   :  { %v4846_v23 = vpack.c.bf16 %v4836_v22, %v4836_v22  ;;  %v13005_v24 = vpop.f32.mrb[153].mxu1 }
0x10cb   :  { %v4839_v50 = vpop.f32.mrb[154].mxu1 }
0x10cc   :  { %4849 = vst [vmem:[#allocation13 + $0x4] sm:$0xf] %v4846_v23  ;;  %v4847_v32 = vpack.c.bf16 %v4839_v50, %v4839_v50  ;;  %v13006_v25 = vpop.f32.mrb[155].mxu1 }
0x10ce   :  { %4850 = vst [vmem:[#allocation13 + $0x8] sm:$0xf] %v4847_v32 }
0x10d3   :  { %v14399_v27 = vld [vmem:[#allocation13] sm:$0xff]  }
0x10d4   :  { %13084 = vmatmul.mubr.bf16.vlgmr.msra.gmra.mrb[156].mxu1 %v14399_v27 }
0x10d5   :  { %13088 = vmatpush3.bf16.msra.mxu1 %v14400_v26  ;;  %13103 = vmatprep.mubr.msk.bf16.mxu1 %vm15878_vm2, %v15877_v6  ;;  %v14408_v34 = vld [vmem:[#allocation13 + $0x4] sm:$0xff]  }
0x10d6   :  { %13089 = vmatprep.subr.bf16.mxu1 %v15877_v6  ;;  %v14417_v42 = vld [vmem:[#allocation13 + $0x8] sm:$0xff]  }
0x10d9   :  { %13090 = vmatpush3.bf16.msra.mxu1 %v14401_v57 }
0x10da   :  { %13091 = vmatprep.subr.bf16.mxu1 %v15877_v6 }
0x10dd   :  { %13092 = vmatpush3.bf16.msra.mxu1 %v14402_v16 }
0x10de   :  { %13093 = vmatprep.subr.bf16.mxu1 %v15877_v6 }
0x10e1   :  { %13094 = vmatpush3.bf16.msra.mxu1 %v14403_v28 }
0x10e2   :  { %13095 = vmatprep.subr.bf16.mxu1 %v15877_v6 }
0x10e5   :  { %13096 = vmatpush3.bf16.msra.mxu1 %v14404_v30 }
0x10e6   :  { %13097 = vmatprep.subr.bf16.mxu1 %v15877_v6 }
0x10e9   :  { %13098 = vmatpush3.bf16.msra.mxu1 %v14405_v13 }
0x10ea   :  { %13099 = vmatprep.subr.bf16.mxu1 %v15877_v6 }
0x10ed   :  { %13100 = vmatpush3.bf16.msra.mxu1 %v14406_v31 }
0x10ee   :  { %13101 = vmatprep.subr.bf16.mxu1 %v15877_v6 }
0x10f1   :  { %13102 = vmatpush3.bf16.msra.mxu1 %v14407_v29 }
0x10f2   :  { %13107 = vmatprep.subr.bf16.mxu1 %v15877_v6 }
0x10f4   :  { %13104 = vmatmul.mubr.bf16.vlgmr.msra.gmra.mrb[156].mxu1 %v14408_v34 }
0x10f5   :  { %13108 = vmatpush3.bf16.msra.mxu1 %v14409_v33  ;;  %13123 = vmatprep.mubr.msk.bf16.mxu1 %vm15878_vm2, %v15877_v6 }
0x10f6   :  { %13109 = vmatprep.subr.bf16.mxu1 %v15877_v6 }
0x10f9   :  { %13110 = vmatpush3.bf16.msra.mxu1 %v14410_v35  ;;  %v14439_v35 = vld [vmem:[%s17920_s23 + $0x48] sm:$0xff]  }
0x10fa   :  { %13111 = vmatprep.subr.bf16.mxu1 %v15877_v6 }
0x10fd   :  { %13112 = vmatpush3.bf16.msra.mxu1 %v14411_v36  ;;  %v14438_v36 = vld [vmem:[#allocation15 + $0x4] sm:$0xff]  }
0x10fe   :  { %13113 = vmatprep.subr.bf16.mxu1 %v15877_v6 }
0x1101   :  { %13114 = vmatpush3.bf16.msra.mxu1 %v14412_v37  ;;  %v14440_v37 = vld [vmem:[%s17920_s23 + $0x50] sm:$0xff]  }
0x1102   :  { %13115 = vmatprep.subr.bf16.mxu1 %v15877_v6 }
0x1105   :  { %13116 = vmatpush3.bf16.msra.mxu1 %v14413_v38  ;;  %v14441_v38 = vld [vmem:[%s17920_s23 + $0x58] sm:$0xff]  }
0x1106   :  { %13117 = vmatprep.subr.bf16.mxu1 %v15877_v6 }
0x1109   :  { %13118 = vmatpush3.bf16.msra.mxu1 %v14414_v39  ;;  %v14442_v39 = vld [vmem:[%s17920_s23 + $0x60] sm:$0xff]  }
0x110a   :  { %13119 = vmatprep.subr.bf16.mxu1 %v15877_v6 }
0x110d   :  { %13120 = vmatpush3.bf16.msra.mxu1 %v14415_v40  ;;  %v14443_v40 = vld [vmem:[%s17920_s23 + $0x68] sm:$0xff]  }
0x110e   :  { %13121 = vmatprep.subr.bf16.mxu1 %v15877_v6 }
0x1111   :  { %13122 = vmatpush3.bf16.msra.mxu1 %v14416_v41  ;;  %v14444_v41 = vld [vmem:[%s17920_s23 + $0x70] sm:$0xff]  }
0x1114   :  { %13124 = vmatmul.mubr.bf16.vlgmr.msra.gmra.mrb[156].mxu1 %v14417_v42  ;;  %v14445_v42 = vld [vmem:[%s17920_s23 + $0x78] sm:$0xff]  }
0x11e7   :  { %v5534_v46 = vpop.f32.mrb[156].mxu1 }
0x11e8   :  { %v5550_v48 = vmul.f32 %v11356_v45, %v5534_v46  ;;  %v13125_v49 = vpop.f32.mrb[157].mxu1  ;;  %v14451_v46 = vld [vmem:[%s17920_s23 + $0x18] sm:$0xff]  }
0x11e9   :  { %v5537_v51 = vpop.f32.mrb[158].mxu1  ;;  %v14454_v49 = vld [vmem:[%s17920_s23 + $0x30] sm:$0xff]  }
0x11ea   :  { %v5559_v52 = vadd.f32 %v11357_v47, %v5550_v48  ;;  %v5551_v54 = vmul.f32 %v11356_v45, %v5537_v51  ;;  %v13126_v55 = vpop.f32.mrb[159].mxu1  ;;  %v14450_v45 = vld [vmem:[%s17920_s23 + $0x10] sm:$0xff]   ;;  %v14453_v48 = vld [vmem:[%s17920_s23 + $0x28] sm:$0xff]   ;;  %v14455_v51 = vld [vmem:[%s17920_s23 + $0x38] sm:$0xff]  }
0x11eb   :  { %v14459_v55 = vld [vmem:[%s17920_s23 + $0x88] sm:$0xff]  }
0x11ec   :  { %v5561_v56 = vmax.f32 %v5559_v52, 0.0  ;;  %v5560_v59 = vadd.f32 %v11357_v47, %v5551_v54  ;;  %v14452_v47 = vld [vmem:[%s17920_s23 + $0x20] sm:$0xff]  }
0x11ed   :  { %v14457_v52 = vld [vmem:[%s17920_s23 + $0x80] sm:$0xff]  }
0x11ee   :  { %v5566_v60 = vpack.c.bf16 %v5561_v56, %v5561_v56  ;;  %v5562_v61 = vmax.f32 %v5560_v59, 0.0  ;;  %v14456_v54 = vld [vmem:[#allocation15 + $0x8] sm:$0xff]   ;;  %v14460_v59 = vld [vmem:[%s17920_s23 + $0x90] sm:$0xff]  }
0x11ef   :  { %v14458_v56 = vld [vmem:[#allocation15 + $0x8] sm:$0xff]  }
0x11f0   :  { %5569 = vst.msk [vmem:[#allocation14 + $0x4] sm:$0xf] %vm4510_vm3, %v5566_v60  ;;  %v5567_v62 = vpack.c.bf16 %v5562_v61, %v5562_v61  ;;  %v14461_v60 = vld [vmem:[%s17920_s23 + $0x98] sm:$0xff]   ;;  %v14462_v61 = vld [vmem:[%s17920_s23 + $0xa0] sm:$0xff]  }
0x11f2   :  { %5570 = vst.msk [vmem:[#allocation14 + $0x8] sm:$0xf] %vm4510_vm3, %v5567_v62  ;;  %v14463_v62 = vld [vmem:[%s17920_s23 + $0xa8] sm:$0xff]  }
0x11f7   :  { %v14427_v8 = vld [vmem:[#allocation14] sm:$0xff]  }
0x11f9   :  { %v14422_v1 = vld [vmem:[#allocation14 + $0x4] sm:$0xff]  }
0x11fa   :  { %13136 = vmatmul.mubr.msk.bf16.vlgmr.msra.gmra.mrb[152].mxu0 %vm4560_vm4, %v14422_v1  ;;  %v14432_v17 = vld [vmem:[#allocation14 + $0x8] sm:$0xff]   ;;  %v14465_v1 = vld [vmem:[%s17920_s23 + $0xb8] sm:$0xff]  }
0x11fb   :  { %13140 = vmatpush3.bf16.msra.mxu0 %v14423_v63  ;;  %13147 = vmatprep.mubr.msk.bf16.mxu0 %vm15878_vm2, %v15877_v6  ;;  %v14464_v63 = vld [vmem:[%s17920_s23 + $0xb0] sm:$0xff]  }
0x11fc   :  { %13141 = vmatprep.subr.bf16.mxu0 %v15877_v6 }
0x11ff   :  { %13142 = vmatpush3.bf16.msra.mxu0 %v14424_v2  ;;  %v14467_v2 = vld [vmem:[%s17921_s8] sm:$0xff]  }
0x1200   :  { %13143 = vmatprep.subr.bf16.mxu0 %v15877_v6 }
0x1203   :  { %13144 = vmatpush3.bf16.msra.mxu0 %v14425_v3  ;;  %v14466_v3 = vld [vmem:[#allocation15 + $0x10] sm:$0xff]  }
0x1204   :  { %13145 = vmatprep.subr.bf16.mxu0 %v15877_v6 }
0x1207   :  { %13146 = vmatpush3.bf16.msra.mxu0 %v14426_v4  ;;  %v14468_v4 = vld [vmem:[%s17921_s8 + $0x8] sm:$0xff]  }
0x1208   :  { %13151 = vmatprep.subr.bf16.mxu0 %v15877_v6 }
0x120a   :  { %13148 = vmatmul.mubr.msk.bf16.vlgmr.msra.gmra.mrb[152].mxu0 %vm4560_vm4, %v14427_v8  ;;  %v14470_v8 = vld [vmem:[%s17921_s8 + $0x18] sm:$0xff]  }
0x120b   :  { %13152 = vmatpush3.bf16.msra.mxu0 %v14428_v5  ;;  %13159 = vmatprep.mubr.msk.bf16.mxu0 %vm15878_vm2, %v15877_v6  ;;  %v14469_v5 = vld [vmem:[%s17921_s8 + $0x10] sm:$0xff]  }
0x120c   :  { %13153 = vmatprep.subr.bf16.mxu0 %v15877_v6 }
0x120f   :  { %13154 = vmatpush3.bf16.msra.mxu0 %v14429_v7  ;;  %v14471_v7 = vld [vmem:[%s17921_s8 + $0x20] sm:$0xff]  }
0x1210   :  { %13155 = vmatprep.subr.bf16.mxu0 %v15877_v6 }
0x1213   :  { %13156 = vmatpush3.bf16.msra.mxu0 %v14430_v12  ;;  %v14472_v12 = vld [vmem:[%s17921_s8 + $0x28] sm:$0xff]  }
0x1214   :  { %13157 = vmatprep.subr.bf16.mxu0 %v15877_v6 }
0x1217   :  { %13158 = vmatpush3.bf16.msra.mxu0 %v14431_v10  ;;  %v14473_v10 = vld [vmem:[%s17921_s8 + $0x30] sm:$0xff]  }
0x1218   :  { %13163 = vmatprep.subr.bf16.mxu0 %v14433_v15 }
0x121a   :  { %13160 = vmatmul.mubr.msk.bf16.vlgmr.msra.gmra.mrb[152].mxu0 %vm4560_vm4, %v14432_v17  ;;  %v14476_v17 = vld [vmem:[%s17921_s8 + $0x40] sm:$0xff]  }
0x121b   :  { %13164 = vmatpush3.bf16.msra.mxu0 %v14433_v15  ;;  %v14474_v15 = vld [vmem:[%s17921_s8 + $0x38] sm:$0xff]  }
0x121c   :  { %13165 = vmatprep.subr.bf16.mxu0 %v14434_v53 }
0x121f   :  { %13166 = vmatpush3.bf16.msra.mxu0 %v14434_v53 }
0x1220   :  { %13167 = vmatprep.subr.bf16.mxu0 %v14435_v58 }
0x1223   :  { %13168 = vmatpush3.bf16.msra.mxu0 %v14435_v58 }
0x1224   :  { %13169 = vmatprep.subr.bf16.mxu0 %v14436_v18 }
0x1227   :  { %13170 = vmatpush3.bf16.msra.mxu0 %v14436_v18 }
0x1228   :  { %13175 = vmatprep.subr.bf16.mxu0 %v14437_v19 }
0x12ed   :  { %v5816_v20 = vpop.f32.mrb[152].mxu0 }
0x12ee   :  { %v5832_v22 = vmul.f32 %v11376_v9, %v5816_v20  ;;  %v13161_v23 = vpop.f32.mrb[153].mxu0 }
0x12ef   :  { %v5819_v24 = vpop.f32.mrb[154].mxu0  ;;  %v14479_v23 = vld [vmem:[%s17921_s8 + $0x48] sm:$0xff]  }
0x12f0   :  { %v5841_v50 = vadd.f32 %v11377_v21, %v5832_v22  ;;  %v5833_v32 = vmul.f32 %v11376_v9, %v5819_v24  ;;  %v13162_v25 = vpop.f32.mrb[155].mxu0 }
0x12f1   :  { %v14481_v25 = vld [vmem:[%s17921_s8 + $0x58] sm:$0xff]  }
0x12f2   :  { %v5843_v26 = vmax.f32 %v5841_v50, 0.0  ;;  %v5842_v27 = vadd.f32 %v11377_v21, %v5833_v32  ;;  %v14480_v32 = vld [vmem:[%s17921_s8 + $0x50] sm:$0xff]  }
0x12f4   :  { %v5844_v57 = vmax.f32 %v5842_v27, 0.0  ;;  %v5845_v16 = vmul.f32 0.6666667, %v5843_v26  ;;  %v5848_v28 = vmul.f32 0.33333334, %v5843_v26  ;;  %v14483_v27 = vld [vmem:[%s17921_s8 + $0x68] sm:$0xff]  }
0x12f6   :  { %v5846_v30 = vmul.f32 0.33333334, %v5844_v57  ;;  %v5849_v13 = vmul.f32 0.6666667, %v5844_v57 }
0x12f8   :  { %v5850_v31 = vadd.f32 %v5849_v13, %v5848_v28  ;;  %v5847_v29 = vadd.f32 %v5846_v30, %v5845_v16  ;;  %v14485_v16 = vld [vmem:[%s17921_s8 + $0x78] sm:$0xff]   ;;  %v14487_v28 = vld [vmem:[%s17921_s8 + $0x80] sm:$0xff]   ;;  %v14489_v13 = vld [vmem:[%s17921_s8 + $0x88] sm:$0xff]  }
0x12fa   :  { %v5852_v33 = vpack.c.bf16 %v5844_v57, %v5850_v31  ;;  %v5851_v34 = vpack.c.bf16 %v5847_v29, %v5843_v26  ;;  %v14482_v26 = vld [vmem:[%s17921_s8 + $0x60] sm:$0xff]   ;;  %v14484_v57 = vld [vmem:[%s17921_s8 + $0x70] sm:$0xff]  }
0x12fb   :  { %v14490_v29 = vld [vmem:[%s17921_s8 + $0x90] sm:$0xff]  }
0x12fc   :  { %13171 = vmatprep.mubr.msk.bf16.mxu0 %vm4560_vm4, %v5851_v34  ;;  %v14492_v34 = vld [vmem:[%s17921_s8 + $0xa0] sm:$0xff]  }
0x12fd   :  { %13172 = vmatmul.mubr.msk.bf16.vlgmr.msra.gmra.mrb[156].mxu0 %vm4560_vm4, %v5852_v33  ;;  %v14491_v33 = vld [vmem:[%s17921_s8 + $0x98] sm:$0xff]  }
0x12fe   :  { %13176 = vmatpush3.bf16.msra.mxu0 %v14437_v19  ;;  %13191 = vmatprep.mubr.bf16.mxu0 %v14438_v36  ;;  %v14494_v36 = vld [vmem:[%s17921_s8 + $0xb0] sm:$0xff]  }
0x12ff   :  { %13177 = vmatprep.subr.bf16.mxu0 %v14439_v35 }
0x1302   :  { %13178 = vmatpush3.bf16.msra.mxu0 %v14439_v35  ;;  %v14493_v35 = vld [vmem:[%s17921_s8 + $0xa8] sm:$0xff]  }
0x1303   :  { %13179 = vmatprep.subr.bf16.mxu0 %v14440_v37 }
0x1306   :  { %13180 = vmatpush3.bf16.msra.mxu0 %v14440_v37  ;;  %v14495_v37 = vld [vmem:[%s17921_s8 + $0xb8] sm:$0xff]  }
0x1307   :  { %13181 = vmatprep.subr.bf16.mxu0 %v14441_v38 }
0x130a   :  { %13182 = vmatpush3.bf16.msra.mxu0 %v14441_v38 }
0x130b   :  { %13183 = vmatprep.subr.bf16.mxu0 %v14442_v39 }
0x130e   :  { %13184 = vmatpush3.bf16.msra.mxu0 %v14442_v39  ;;  %v14497_v39 = vld [vmem:[#allocation65 + $0x20] sm:$0xff]  }
0x130f   :  { %13185 = vmatprep.subr.bf16.mxu0 %v14443_v40  ;;  %13295 = vmatprep.subr.bf16.mxu1 %v14497_v39 }
0x1310   :  { %13296 = vmatpush3.bf16.msra.mxu1 %v14497_v39 }
0x1312   :  { %13186 = vmatpush3.bf16.msra.mxu0 %v14443_v40  ;;  %v14498_v40 = vld [vmem:[#allocation65 + $0x28] sm:$0xff]  }
0x1313   :  { %13187 = vmatprep.subr.bf16.mxu0 %v14444_v41  ;;  %13297 = vmatprep.subr.bf16.mxu1 %v14498_v40 }
0x1314   :  { %13298 = vmatpush3.bf16.msra.mxu1 %v14498_v40 }
0x1316   :  { %13188 = vmatpush3.bf16.msra.mxu0 %v14444_v41  ;;  %v14499_v41 = vld [vmem:[#allocation65 + $0x30] sm:$0xff]  }
0x1317   :  { %13189 = vmatprep.subr.bf16.mxu0 %v14445_v42  ;;  %13299 = vmatprep.subr.bf16.mxu1 %v14499_v41 }
0x1318   :  { %13300 = vmatpush3.bf16.msra.mxu1 %v14499_v41 }
0x131a   :  { %13190 = vmatpush3.bf16.msra.mxu0 %v14445_v42  ;;  %v14500_v42 = vld [vmem:[#allocation65 + $0x38] sm:$0xff]  }
0x131b   :  { %13195 = vmatprep.subr.bf16.mxu0 %v14447_v11  ;;  %13301 = vmatprep.subr.bf16.mxu1 %v14500_v42 }
0x131c   :  { %13302 = vmatpush3.bf16.msra.mxu1 %v14500_v42 }
0x131d   :  { %13192 = vmatmul.mubr.bf16.vlgmr.msra.gmra.mrb[160].mxu0 %v14446_v14  ;;  %v11508_v14 = vld [vmem:[#allocation63] ss:$0 sm:$0xff] }
0x131e   :  { %13196 = vmatpush3.bf16.msra.mxu0 %v14447_v11  ;;  %13211 = vmatprep.mubr.bf16.mxu0 %v14448_v44  ;;  %v14502_v11 = vld [vmem:[#allocation65] sm:$0xff]   ;;  %v11509_v44 = vld [vmem:[#allocation62] ss:$0 sm:$0xff] }
0x131f   :  { %13197 = vmatprep.subr.bf16.mxu0 %v14449_v43  ;;  %13307 = vmatprep.subr.bf16.mxu1 %v14502_v11 }
0x1322   :  { %13198 = vmatpush3.bf16.msra.mxu0 %v14449_v43 }
0x1323   :  { %13199 = vmatprep.subr.bf16.mxu0 %v14450_v45 }
0x1326   :  { %13200 = vmatpush3.bf16.msra.mxu0 %v14450_v45 }
0x1327   :  { %13201 = vmatprep.subr.bf16.mxu0 %v14451_v46 }
0x132a   :  { %13202 = vmatpush3.bf16.msra.mxu0 %v14451_v46 }
0x132b   :  { %13203 = vmatprep.subr.bf16.mxu0 %v14452_v47 }
0x132e   :  { %13204 = vmatpush3.bf16.msra.mxu0 %v14452_v47 }
0x132f   :  { %13205 = vmatprep.subr.bf16.mxu0 %v14453_v48 }
0x1332   :  { %13206 = vmatpush3.bf16.msra.mxu0 %v14453_v48 }
0x1333   :  { %13207 = vmatprep.subr.bf16.mxu0 %v14454_v49 }
0x1336   :  { %13208 = vmatpush3.bf16.msra.mxu0 %v14454_v49 }
0x1337   :  { %13209 = vmatprep.subr.bf16.mxu0 %v14455_v51 }
0x133a   :  { %13210 = vmatpush3.bf16.msra.mxu0 %v14455_v51 }
0x133b   :  { %13215 = vmatprep.subr.bf16.mxu0 %v14457_v52 }
0x133d   :  { %13212 = vmatmul.mubr.bf16.vlgmr.msra.gmra.mrb[160].mxu0 %v14456_v54 }
0x133e   :  { %13216 = vmatpush3.bf16.msra.mxu0 %v14457_v52  ;;  %13231 = vmatprep.mubr.bf16.mxu0 %v14458_v56 }
0x133f   :  { %13217 = vmatprep.subr.bf16.mxu0 %v14459_v55 }
0x1342   :  { %13218 = vmatpush3.bf16.msra.mxu0 %v14459_v55 }
0x1343   :  { %13219 = vmatprep.subr.bf16.mxu0 %v14460_v59 }
0x1346   :  { %13220 = vmatpush3.bf16.msra.mxu0 %v14460_v59 }
0x1347   :  { %13221 = vmatprep.subr.bf16.mxu0 %v14461_v60 }
0x134a   :  { %13222 = vmatpush3.bf16.msra.mxu0 %v14461_v60 }
0x134b   :  { %13223 = vmatprep.subr.bf16.mxu0 %v14462_v61 }
0x134e   :  { %13224 = vmatpush3.bf16.msra.mxu0 %v14462_v61 }
0x134f   :  { %13225 = vmatprep.subr.bf16.mxu0 %v14463_v62 }
0x1352   :  { %13226 = vmatpush3.bf16.msra.mxu0 %v14463_v62 }
0x1353   :  { %13227 = vmatprep.subr.bf16.mxu0 %v14464_v63 }
0x1356   :  { %13228 = vmatpush3.bf16.msra.mxu0 %v14464_v63 }
0x1357   :  { %13229 = vmatprep.subr.bf16.mxu0 %v14465_v1 }
0x135a   :  { %13230 = vmatpush3.bf16.msra.mxu0 %v14465_v1 }
0x135b   :  { %13235 = vmatprep.subr.bf16.mxu0 %v14467_v2 }
0x135d   :  { %13232 = vmatmul.mubr.bf16.vlgmr.msra.gmra.mrb[160].mxu0 %v14466_v3 }
0x135e   :  { %13236 = vmatpush3.bf16.msra.mxu0 %v14467_v2 }
0x135f   :  { %13237 = vmatprep.subr.bf16.mxu0 %v14468_v4 }
0x1362   :  { %13238 = vmatpush3.bf16.msra.mxu0 %v14468_v4 }
0x1363   :  { %13239 = vmatprep.subr.bf16.mxu0 %v14469_v5 }
0x1366   :  { %13240 = vmatpush3.bf16.msra.mxu0 %v14469_v5 }
0x1367   :  { %13241 = vmatprep.subr.bf16.mxu0 %v14470_v8 }
0x136a   :  { %13242 = vmatpush3.bf16.msra.mxu0 %v14470_v8 }
0x136b   :  { %13243 = vmatprep.subr.bf16.mxu0 %v14471_v7 }
0x136e   :  { %13244 = vmatpush3.bf16.msra.mxu0 %v14471_v7  ;;  %v14505_v7 = vld [vmem:[#allocation65 + $0x8] sm:$0xff]  }
0x136f   :  { %13245 = vmatprep.subr.bf16.mxu0 %v14472_v12 }
0x1372   :  { %13246 = vmatpush3.bf16.msra.mxu0 %v14472_v12 }
0x1373   :  { %13247 = vmatprep.subr.bf16.mxu0 %v14473_v10 }
0x1376   :  { %13248 = vmatpush3.bf16.msra.mxu0 %v14473_v10  ;;  %v14506_v10 = vld [vmem:[#allocation65 + $0x10] sm:$0xff]  }
0x1377   :  { %13249 = vmatprep.subr.bf16.mxu0 %v14474_v15 }
0x137a   :  { %13250 = vmatpush3.bf16.msra.mxu0 %v14474_v15  ;;  %v14507_v15 = vld [vmem:[#allocation65 + $0x18] sm:$0xff]  }
0x137b   :  { %13255 = vmatprep.subr.bf16.mxu0 %v14476_v17 }
0x13d0   :  { %v13173_v53 = vpop.f32.mrb[156].mxu0 }
0x13d1   :  { %v5925_v58 = vpop.f32.mrb[157].mxu0 }
0x13d2   :  { %v5943_v18 = vpack.c.bf16 %v5925_v58, %v5925_v58  ;;  %v13174_v19 = vpop.f32.mrb[158].mxu0  ;;  %v14511_v58 = vld [vmem:[#allocation65 + $0x48] sm:$0xff]  }
0x13d3   :  { %v5946_v9 = vpack.c.bf16 %v13174_v19, %v13174_v19  ;;  %v5928_v20 = vpop.f32.mrb[159].mxu0  ;;  %v14512_v19 = vld [vmem:[#allocation65 + $0x50] sm:$0xff]  }
0x13d4   :  { %5948 = vst [vmem:[#allocation16 + $0x4] sm:$0xf] %v5943_v18  ;;  %v12021_v21 = vpack.c.bf16 %v13173_v53, %v5928_v20 }
0x13d5   :  { %5951 = vst [vmem:[#allocation16 + $0x10] sm:$0xf] %v5946_v9  ;;  %v14513_v9 = vld [vmem:[#allocation65 + $0x58] sm:$0xff]  }
0x13d6   :  { %12145 = vst [vmem:[#allocation16 + $0x8] sm:$0xff] %v12021_v21   ;;  %v14515_v21 = vld [vmem:[#allocation87] sm:$0xff]  }
0x13db   :  { %v14475_v22 = vld [vmem:[#allocation16] sm:$0xff]  }
0x13dc   :  { %13251 = vmatprep.mubr.bf16.mxu0 %v14475_v22  ;;  %v14496_v38 = vld [vmem:[#allocation16 + $0x10] sm:$0xff]   ;;  %v14516_v22 = vld [vmem:[#allocation87 + $0x8] sm:$0xff]  }
0x13dd   :  { %v14477_v24 = vld [vmem:[#allocation16 + $0x8] sm:$0xff]  }
0x13de   :  { %v14478_v50 = vld [vmem:[#allocation16 + $0x4] sm:$0xff]   ;;  %13252 = vmatmul.mubr.bf16.vlgmr.msra.gmra.mrb[160].mxu0 %v14477_v24  ;;  %v14486_v30 = vld [vmem:[#allocation16 + $0xc] sm:$0xff]   ;;  %v14518_v24 = vld [vmem:[#allocation87 + $0x18] sm:$0xff]  }
0x13df   :  { %13256 = vmatpush3.bf16.msra.mxu0 %v14476_v17  ;;  %13271 = vmatprep.mubr.bf16.mxu0 %v14478_v50  ;;  %v14488_v31 = vld [vmem:[#allocation16 + $0x8] sm:$0xff]   ;;  %v14519_v50 = vld [vmem:[%s17922_s26 + $0x40] sm:$0xff]  }
0x13e0   :  { %13257 = vmatprep.subr.bf16.mxu0 %v14479_v23  ;;  %v14509_v17 = vld [vmem:[#allocation65 + $0x40] sm:$0xff]  }
0x13e3   :  { %13258 = vmatpush3.bf16.msra.mxu0 %v14479_v23  ;;  %v14517_v23 = vld [vmem:[#allocation87 + $0x10] sm:$0xff]  }
0x13e4   :  { %13259 = vmatprep.subr.bf16.mxu0 %v14480_v32 }
0x13e7   :  { %13260 = vmatpush3.bf16.msra.mxu0 %v14480_v32  ;;  %v11534_v32 = vld [vmem:[#allocation68] ss:$0 sm:$0xff] }
0x13e8   :  { %13261 = vmatprep.subr.bf16.mxu0 %v14481_v25 }
0x13eb   :  { %13262 = vmatpush3.bf16.msra.mxu0 %v14481_v25 }
0x13ec   :  { %13263 = vmatprep.subr.bf16.mxu0 %v14482_v26 }
0x13ef   :  { %13264 = vmatpush3.bf16.msra.mxu0 %v14482_v26  ;;  %v11535_v26 = vld [vmem:[#allocation66] ss:$0 sm:$0xff] }
0x13f0   :  { %13265 = vmatprep.subr.bf16.mxu0 %v14483_v27 }
0x13f3   :  { %13266 = vmatpush3.bf16.msra.mxu0 %v14483_v27 }
0x13f4   :  { %13267 = vmatprep.subr.bf16.mxu0 %v14484_v57 }
0x13f7   :  { %13268 = vmatpush3.bf16.msra.mxu0 %v14484_v57 }
0x13f8   :  { %13269 = vmatprep.subr.bf16.mxu0 %v14485_v16 }
0x13fb   :  { %13270 = vmatpush3.bf16.msra.mxu0 %v14485_v16 }
0x13fc   :  { %13275 = vmatprep.subr.bf16.mxu0 %v14487_v28 }
0x13fe   :  { %13272 = vmatmul.mubr.bf16.vlgmr.msra.gmra.mrb[160].mxu0 %v14486_v30 }
0x13ff   :  { %13276 = vmatpush3.bf16.msra.mxu0 %v14487_v28  ;;  %13291 = vmatprep.mubr.bf16.mxu0 %v14488_v31 }
0x1400   :  { %13277 = vmatprep.subr.bf16.mxu0 %v14489_v13 }
0x1403   :  { %13278 = vmatpush3.bf16.msra.mxu0 %v14489_v13 }
0x1404   :  { %13279 = vmatprep.subr.bf16.mxu0 %v14490_v29 }
0x1407   :  { %13280 = vmatpush3.bf16.msra.mxu0 %v14490_v29 }
0x1408   :  { %13281 = vmatprep.subr.bf16.mxu0 %v14491_v33 }
0x140b   :  { %13282 = vmatpush3.bf16.msra.mxu0 %v14491_v33 }
0x140c   :  { %13283 = vmatprep.subr.bf16.mxu0 %v14492_v34 }
0x140f   :  { %13284 = vmatpush3.bf16.msra.mxu0 %v14492_v34 }
0x1410   :  { %13285 = vmatprep.subr.bf16.mxu0 %v14493_v35 }
0x1413   :  { %13286 = vmatpush3.bf16.msra.mxu0 %v14493_v35 }
0x1414   :  { %13287 = vmatprep.subr.bf16.mxu0 %v14494_v36 }
0x1417   :  { %13288 = vmatpush3.bf16.msra.mxu0 %v14494_v36 }
0x1418   :  { %13289 = vmatprep.subr.bf16.mxu0 %v14495_v37 }
0x141b   :  { %13290 = vmatpush3.bf16.msra.mxu0 %v14495_v37 }
0x141e   :  { %13292 = vmatmul.mubr.bf16.vlgmr.msra.gmra.mrb[160].mxu0 %v14496_v38 }
0x14f1   :  { %v13293_v43 = vpop.f32.mrb[160].mxu0 }
0x14f2   :  { %v6757_v45 = vmul.f32 %v13293_v43, %v11508_v14  ;;  %v6729_v46 = vpop.f32.mrb[161].mxu0 }
0x14f3   :  { %v6755_v47 = vmul.f32 %v11508_v14, %v6729_v46  ;;  %v13294_v48 = vpop.f32.mrb[162].mxu0 }
0x14f4   :  { %v6768_v49 = vadd.f32 %v11509_v44, %v6757_v45  ;;  %v6758_v51 = vmul.f32 %v13294_v48, %v11508_v14  ;;  %v6732_v52 = vpop.f32.mrb[163].mxu0 }
0x14f5   :  { %v6766_v54 = vadd.f32 %v11509_v44, %v6755_v47  ;;  %v6756_v55 = vmul.f32 %v11508_v14, %v6732_v52 }
0x14f6   :  { %v6772_v56 = vmax.f32 %v6768_v49, 0.0  ;;  %v6769_v59 = vadd.f32 %v11509_v44, %v6758_v51 }
0x14f7   :  { %v6770_v60 = vmax.f32 %v6766_v54, 0.0  ;;  %v6767_v61 = vadd.f32 %v11509_v44, %v6756_v55 }
0x14f8   :  { %v6779_v62 = vpack.c.bf16 %v6772_v56, %v6772_v56  ;;  %v6773_v63 = vmax.f32 %v6769_v59, 0.0 }
0x14f9   :  { %v6777_v1 = vpack.c.bf16 %v6770_v60, %v6770_v60  ;;  %v6771_v2 = vmax.f32 %v6767_v61, 0.0 }
0x14fa   :  { %6784 = vst.msk [vmem:[#allocation17 + $0xc] sm:$0xf] %vm4510_vm3, %v6779_v62  ;;  %v6780_v3 = vpack.c.bf16 %v6773_v63, %v6773_v63 }
0x14fb   :  { %6782 = vst.msk [vmem:[#allocation17 + $0x4] sm:$0xf] %vm4510_vm3, %v6777_v1  ;;  %v6778_v4 = vpack.c.bf16 %v6771_v2, %v6771_v2  ;;  %v14520_v1 = vld [vmem:[%s17922_s26 + $0x48] sm:$0xff]   ;;  %v14521_v2 = vld [vmem:[%s17922_s26 + $0x50] sm:$0xff]  }
0x14fc   :  { %6785 = vst.msk [vmem:[#allocation17 + $0x10] sm:$0xf] %vm4510_vm3, %v6780_v3  ;;  %v14523_v3 = vld [vmem:[%s17922_s26 + $0x58] sm:$0xff]  }
0x14fd   :  { %6783 = vst.msk [vmem:[#allocation17 + $0x8] sm:$0xf] %vm4510_vm3, %v6778_v4  ;;  %v14522_v4 = vld [vmem:[#allocation18 + $0x4] sm:$0xff]  }
0x1502   :  { %v14504_v12 = vld [vmem:[#allocation17] sm:$0xff]  }
0x1503   :  { %v14503_v8 = vld [vmem:[#allocation17 + $0xc] sm:$0xff]  }
0x1504   :  { %v14501_v5 = vld [vmem:[#allocation17 + $0x4] sm:$0xff]   ;;  %v14514_v20 = vld [vmem:[#allocation17 + $0x10] sm:$0xff]  }
0x1505   :  { %13303 = vmatprep.mubr.msk.bf16.mxu1 %vm4560_vm4, %v14501_v5  ;;  %v14508_v53 = vld [vmem:[#allocation17 + $0x8] sm:$0xff]   ;;  %v14524_v5 = vld [vmem:[%s17922_s26 + $0x60] sm:$0xff]  }
0x1506   :  { %13304 = vmatmul.mubr.msk.bf16.vlgmr.msra.gmra.mrb[160].mxu1 %vm4560_vm4, %v14503_v8  ;;  %v14510_v18 = vld [vmem:[#allocation17 + $0x8] sm:$0xff]   ;;  %v14525_v8 = vld [vmem:[%s17922_s26 + $0x68] sm:$0xff]  }
0x1507   :  { %13308 = vmatpush3.bf16.msra.mxu1 %v14502_v11  ;;  %13315 = vmatprep.mubr.msk.bf16.mxu1 %vm4560_vm4, %v14504_v12  ;;  %v14527_v12 = vld [vmem:[%s17922_s26 + $0x78] sm:$0xff]  }
0x1508   :  { %13309 = vmatprep.subr.bf16.mxu1 %v14505_v7 }
0x150b   :  { %13310 = vmatpush3.bf16.msra.mxu1 %v14505_v7  ;;  %v14526_v7 = vld [vmem:[%s17922_s26 + $0x70] sm:$0xff]  }
0x150c   :  { %13311 = vmatprep.subr.bf16.mxu1 %v14506_v10 }
0x150f   :  { %13312 = vmatpush3.bf16.msra.mxu1 %v14506_v10  ;;  %v14529_v10 = vld [vmem:[%s17922_s26] sm:$0xff]  }
0x1510   :  { %13313 = vmatprep.subr.bf16.mxu1 %v14507_v15 }
0x1513   :  { %13314 = vmatpush3.bf16.msra.mxu1 %v14507_v15  ;;  %v14528_v15 = vld [vmem:[#allocation18 + $0xc] sm:$0xff]  }
0x1514   :  { %13319 = vmatprep.subr.bf16.mxu1 %v14509_v17 }
0x1516   :  { %13316 = vmatmul.mubr.msk.bf16.vlgmr.msra.gmra.mrb[160].mxu1 %vm4560_vm4, %v14508_v53  ;;  %v14530_v53 = vld [vmem:[#allocation18 + $0x14] sm:$0xff]  }
0x1517   :  { %13320 = vmatpush3.bf16.msra.mxu1 %v14509_v17  ;;  %13327 = vmatprep.mubr.msk.bf16.mxu1 %vm4560_vm4, %v14510_v18  ;;  %v14531_v17 = vld [vmem:[%s17922_s26 + $0x8] sm:$0xff]   ;;  %v14532_v18 = vld [vmem:[#allocation18 + $0x1c] sm:$0xff]  }
0x1518   :  { %13321 = vmatprep.subr.bf16.mxu1 %v14511_v58 }
0x151b   :  { %13322 = vmatpush3.bf16.msra.mxu1 %v14511_v58  ;;  %v14533_v58 = vld [vmem:[%s17922_s26 + $0x10] sm:$0xff]  }
0x151c   :  { %13323 = vmatprep.subr.bf16.mxu1 %v14512_v19 }
0x151f   :  { %13324 = vmatpush3.bf16.msra.mxu1 %v14512_v19  ;;  %v14535_v19 = vld [vmem:[%s17922_s26 + $0x18] sm:$0xff]  }
0x1520   :  { %13325 = vmatprep.subr.bf16.mxu1 %v14513_v9 }
0x1523   :  { %13326 = vmatpush3.bf16.msra.mxu1 %v14513_v9  ;;  %v14534_v9 = vld [vmem:[#allocation18] sm:$0xff]  }
0x1524   :  { %13331 = vmatprep.subr.bf16.mxu1 %v14515_v21 }
0x1526   :  { %13328 = vmatmul.mubr.msk.bf16.vlgmr.msra.gmra.mrb[160].mxu1 %vm4560_vm4, %v14514_v20  ;;  %v14536_v20 = vld [vmem:[%s17922_s26 + $0x20] sm:$0xff]  }
0x1527   :  { %13332 = vmatpush3.bf16.msra.mxu1 %v14515_v21  ;;  %v14537_v21 = vld [vmem:[%s17922_s26 + $0x28] sm:$0xff]  }
0x1528   :  { %13333 = vmatprep.subr.bf16.mxu1 %v14516_v22 }
0x152b   :  { %13334 = vmatpush3.bf16.msra.mxu1 %v14516_v22  ;;  %v14538_v22 = vld [vmem:[%s17922_s26 + $0x30] sm:$0xff]  }
0x152c   :  { %13335 = vmatprep.subr.bf16.mxu1 %v14517_v23 }
0x152f   :  { %13336 = vmatpush3.bf16.msra.mxu1 %v14517_v23  ;;  %v14539_v23 = vld [vmem:[%s17922_s26 + $0x38] sm:$0xff]  }
0x1530   :  { %13337 = vmatprep.subr.bf16.mxu1 %v14518_v24 }
0x1533   :  { %13338 = vmatpush3.bf16.msra.mxu1 %v14518_v24  ;;  %v14541_v24 = vld [vmem:[%s17922_s26 + $0x80] sm:$0xff]  }
0x1534   :  { %13347 = vmatprep.subr.bf16.mxu1 %v14519_v50 }
0x15f9   :  { %v13329_v25 = vpop.f32.mrb[160].mxu1 }
0x15fa   :  { %v7105_v27 = vmul.f32 %v13329_v25, %v11534_v32  ;;  %v7077_v57 = vpop.f32.mrb[161].mxu1  ;;  %v14542_v25 = vld [vmem:[#allocation18 + $0x10] sm:$0xff]  }
0x15fb   :  { %v7103_v16 = vmul.f32 %v11534_v32, %v7077_v57  ;;  %v13330_v28 = vpop.f32.mrb[162].mxu1  ;;  %v14547_v57 = vld [vmem:[%s17922_s26 + $0x98] sm:$0xff]  }
0x15fc   :  { %v7116_v30 = vadd.f32 %v11535_v26, %v7105_v27  ;;  %v7106_v13 = vmul.f32 %v13330_v28, %v11534_v32  ;;  %v7080_v31 = vpop.f32.mrb[163].mxu1  ;;  %v14544_v27 = vld [vmem:[#allocation18 + $0x18] sm:$0xff]   ;;  %v14548_v28 = vld [vmem:[%s17922_s26 + $0xa0] sm:$0xff]  }
0x15fd   :  { %v7114_v29 = vadd.f32 %v11535_v26, %v7103_v16  ;;  %v7104_v33 = vmul.f32 %v11534_v32, %v7080_v31  ;;  %v14543_v32 = vld [vmem:[%s17922_s26 + $0x88] sm:$0xff]   ;;  %v14551_v31 = vld [vmem:[%s17922_s26 + $0xb8] sm:$0xff]  }
0x15fe   :  { %v7120_v34 = vmax.f32 %v7116_v30, 0.0  ;;  %v7117_v35 = vadd.f32 %v11535_v26, %v7106_v13  ;;  %v14546_v16 = vld [vmem:[#allocation18 + $0x8] sm:$0xff]   ;;  %v14550_v13 = vld [vmem:[%s17922_s26 + $0xb0] sm:$0xff]  }
0x15ff   :  { %v7118_v36 = vmax.f32 %v7114_v29, 0.0  ;;  %v7115_v37 = vadd.f32 %v11535_v26, %v7104_v33  ;;  %v14545_v26 = vld [vmem:[%s17922_s26 + $0x90] sm:$0xff]   ;;  %v14549_v30 = vld [vmem:[%s17922_s26 + $0xa8] sm:$0xff]   ;;  %v14555_v29 = vld [vmem:[%s17923_s28] sm:$0xff]  }
0x1600   :  { %v7129_v38 = vmul.f32 0.2857143, %v7120_v34  ;;  %v7132_v39 = vmul.f32 0.71428573, %v7120_v34  ;;  %v7134_v40 = vmul.f32 0.85714287, %v7120_v34 }
0x1601   :  { %v7121_v41 = vmax.f32 %v7117_v35, 0.0  ;;  %v7119_v42 = vmax.f32 %v7115_v37, 0.0  ;;  %v7137_v11 = vmul.f32 0.42857143, %v7120_v34  ;;  %v7122_v14 = vmul.f32 0.5714286, %v7118_v36 }
0x1602   :  { %v7125_v43 = vmul.f32 0.14285715, %v7118_v36  ;;  %v14552_v33 = vld [vmem:[#allocation18 + $0x10] sm:$0xff]   ;;  %v14556_v34 = vld [vmem:[%s17923_s28 + $0x8] sm:$0xff]   ;;  %v14553_v35 = vld [vmem:[#allocation18 + $0x18] sm:$0xff]  }
0x1603   :  { %v7135_v44 = vmul.f32 0.14285715, %v7121_v41  ;;  %v7138_v45 = vmul.f32 0.5714286, %v7121_v41  ;;  %v7123_v46 = vmul.f32 0.42857143, %v7119_v42 }
0x1604   :  { %v7126_v47 = vmul.f32 0.85714287, %v7119_v42  ;;  %v7128_v48 = vmul.f32 0.71428573, %v7119_v42  ;;  %v7131_v49 = vmul.f32 0.2857143, %v7119_v42 }
0x1605   :  { %v7124_v51 = vadd.f32 %v7123_v46, %v7122_v14  ;;  %v7136_v52 = vadd.f32 %v7135_v44, %v7134_v40  ;;  %v7139_v54 = vadd.f32 %v7138_v45, %v7137_v11  ;;  %v14554_v37 = vld [vmem:[#allocation18 + $0x20] sm:$0xff]   ;;  %v14560_v40 = vld [vmem:[%s17923_s28 + $0x28] sm:$0xff]   ;;  %v14562_v42 = vld [vmem:[%s17923_s28 + $0x38] sm:$0xff]  }
0x1606   :  { %v7127_v55 = vadd.f32 %v7126_v47, %v7125_v43  ;;  %v7130_v56 = vadd.f32 %v7129_v38, %v7128_v48  ;;  %v7133_v59 = vadd.f32 %v7132_v39, %v7131_v49  ;;  %v14558_v38 = vld [vmem:[%s17923_s28 + $0x18] sm:$0xff]   ;;  %v14559_v39 = vld [vmem:[%s17923_s28 + $0x20] sm:$0xff]  }
0x1607   :  { %v7140_v60 = vpack.c.bf16 %v7124_v51, %v7118_v36  ;;  %v7143_v61 = vpack.c.bf16 %v7121_v41, %v7139_v54  ;;  %v14557_v36 = vld [vmem:[%s17923_s28 + $0x10] sm:$0xff]   ;;  %v14564_v11 = vld [vmem:[%s17923_s28 + $0x40] sm:$0xff]  }
0x1608   :  { %v7141_v62 = vpack.c.bf16 %v7130_v56, %v7127_v55  ;;  %v7142_v63 = vpack.c.bf16 %v7136_v52, %v7133_v59  ;;  %v14561_v41 = vld [vmem:[%s17923_s28 + $0x30] sm:$0xff]  }
0x1609   :  { %13339 = vmatprep.mubr.msk.bf16.mxu1 %vm4560_vm4, %v7140_v60  ;;  %v14566_v60 = vld [vmem:[%s17923_s28 + $0x48] sm:$0xff]  }
0x160a   :  { %13340 = vmatmul.mubr.msk.bf16.vlgmr.msra.gmra.mrb[164].mxu1 %vm4560_vm4, %v7141_v62  ;;  %v14568_v62 = vld [vmem:[%s17923_s28 + $0x50] sm:$0xff]  }
0x160b   :  { %13348 = vmatpush3.bf16.msra.mxu1 %v14519_v50  ;;  %13343 = vmatprep.mubr.msk.bf16.mxu1 %vm4560_vm4, %v7142_v63  ;;  %v14540_v50 = vld [vmem:[#allocation18 + $0x8] sm:$0xff]  }
0x160c   :  { %13349 = vmatprep.subr.bf16.mxu1 %v14520_v1 }
0x160f   :  { %13350 = vmatpush3.bf16.msra.mxu1 %v14520_v1  ;;  %v14571_v1 = vld [vmem:[%s17923_s28 + $0x58] sm:$0xff]  }
0x1610   :  { %13351 = vmatprep.subr.bf16.mxu1 %v14521_v2 }
0x1612   :  { %13344 = vmatmul.mubr.msk.bf16.gmra.mrb[168].mxu1 %vm4560_vm4, %v7143_v61 }
0x1613   :  { %13352 = vmatpush3.bf16.msra.mxu1 %v14521_v2  ;;  %13363 = vmatprep.mubr.bf16.mxu1 %v14522_v4  ;;  %v14572_v4 = vld [vmem:[%s17923_s28 + $0x60] sm:$0xff]  }
0x1614   :  { %13353 = vmatprep.subr.bf16.mxu1 %v14523_v3 }
0x1617   :  { %13354 = vmatpush3.bf16.msra.mxu1 %v14523_v3 }
0x1618   :  { %13355 = vmatprep.subr.bf16.mxu1 %v14524_v5 }
0x161b   :  { %13356 = vmatpush3.bf16.msra.mxu1 %v14524_v5  ;;  %v14573_v5 = vld [vmem:[%s17923_s28 + $0x68] sm:$0xff]  }
0x161c   :  { %13357 = vmatprep.subr.bf16.mxu1 %v14525_v8 }
0x161f   :  { %13358 = vmatpush3.bf16.msra.mxu1 %v14525_v8  ;;  %v14574_v8 = vld [vmem:[%s17923_s28 + $0x70] sm:$0xff]  }
0x1620   :  { %13359 = vmatprep.subr.bf16.mxu1 %v14526_v7 }
0x1623   :  { %13360 = vmatpush3.bf16.msra.mxu1 %v14526_v7  ;;  %v14575_v7 = vld [vmem:[%s17923_s28 + $0x78] sm:$0xff]  }
0x1624   :  { %13361 = vmatprep.subr.bf16.mxu1 %v14527_v12 }
0x1627   :  { %13362 = vmatpush3.bf16.msra.mxu1 %v14527_v12  ;;  %v14577_v12 = vld [vmem:[%s17923_s28 + $0x80] sm:$0xff]  }
0x1628   :  { %13371 = vmatprep.subr.bf16.mxu1 %v14529_v10 }
0x162a   :  { %13364 = vmatmul.mubr.bf16.vlgmr.msra.gmra.mrb[172].mxu1 %v14528_v15  ;;  %v14579_v15 = vld [vmem:[%s17923_s28 + $0x88] sm:$0xff]  }
0x162b   :  { %13367 = vmatprep.mubr.bf16.mxu1 %v14530_v53  ;;  %13372 = vmatpush3.bf16.msra.mxu1 %v14529_v10  ;;  %v14581_v53 = vld [vmem:[%s17923_s28 + $0x90] sm:$0xff]  }
0x162c   :  { %13373 = vmatprep.subr.bf16.mxu1 %v14531_v17 }
0x162f   :  { %13374 = vmatpush3.bf16.msra.mxu1 %v14531_v17 }
0x1630   :  { %13375 = vmatprep.subr.bf16.mxu1 %v14533_v58 }
0x1632   :  { %13368 = vmatmul.mubr.bf16.gmra.mrb[176].mxu1 %v14532_v18  ;;  %v14583_v18 = vld [vmem:[%s17923_s28 + $0x98] sm:$0xff]  }
0x1633   :  { %13376 = vmatpush3.bf16.msra.mxu1 %v14533_v58  ;;  %13387 = vmatprep.mubr.bf16.mxu1 %v14534_v9  ;;  %v14584_v9 = vld [vmem:[%s17923_s28 + $0xa0] sm:$0xff]  }
0x1634   :  { %13377 = vmatprep.subr.bf16.mxu1 %v14535_v19 }
0x1637   :  { %13378 = vmatpush3.bf16.msra.mxu1 %v14535_v19 }
0x1638   :  { %13379 = vmatprep.subr.bf16.mxu1 %v14536_v20 }
0x163b   :  { %13380 = vmatpush3.bf16.msra.mxu1 %v14536_v20  ;;  %v14585_v20 = vld [vmem:[%s17923_s28 + $0xa8] sm:$0xff]  }
0x163c   :  { %13381 = vmatprep.subr.bf16.mxu1 %v14537_v21 }
0x163f   :  { %13382 = vmatpush3.bf16.msra.mxu1 %v14537_v21  ;;  %v14586_v21 = vld [vmem:[%s17923_s28 + $0xb0] sm:$0xff]  }
0x1640   :  { %13383 = vmatprep.subr.bf16.mxu1 %v14538_v22 }
0x1643   :  { %13384 = vmatpush3.bf16.msra.mxu1 %v14538_v22  ;;  %v14587_v22 = vld [vmem:[%s17923_s28 + $0xb8] sm:$0xff]  }
0x1644   :  { %13385 = vmatprep.subr.bf16.mxu1 %v14539_v23 }
0x1647   :  { %13386 = vmatpush3.bf16.msra.mxu1 %v14539_v23  ;;  %v14590_v23 = vld [vmem:[%s17924_s12 + $0x8] ss:$12 sps:$4 sm:$0xff]  }
0x1648   :  { %13395 = vmatprep.subr.bf16.mxu1 %v14541_v24 }
0x164a   :  { %13388 = vmatmul.mubr.bf16.vlgmr.msra.gmra.mrb[172].mxu1 %v14540_v50 }
0x164b   :  { %13391 = vmatprep.mubr.bf16.mxu1 %v14542_v25  ;;  %13396 = vmatpush3.bf16.msra.mxu1 %v14541_v24  ;;  %v14593_v25 = vld [vmem:[%s17924_s12 + $0x38] ss:$12 sps:$4 sm:$0xff]  }
0x164c   :  { %13397 = vmatprep.subr.bf16.mxu1 %v14543_v32 }
0x164f   :  { %13398 = vmatpush3.bf16.msra.mxu1 %v14543_v32  ;;  %v14591_v32 = vld [vmem:[%s17924_s12 + $0x20] ss:$12 sps:$4 sm:$0xff]  }
0x1650   :  { %13399 = vmatprep.subr.bf16.mxu1 %v14545_v26 }
0x1652   :  { %13392 = vmatmul.mubr.bf16.gmra.mrb[176].mxu1 %v14544_v27  ;;  %v14594_v27 = vld [vmem:[%s17924_s12 + $0x50] ss:$12 sps:$4 sm:$0xff]  }
0x1653   :  { %13400 = vmatpush3.bf16.msra.mxu1 %v14545_v26  ;;  %13411 = vmatprep.mubr.bf16.mxu1 %v14546_v16  ;;  %v14596_v16 = vld [vmem:[%s17924_s12 + $0x80] ss:$12 sps:$4 sm:$0xff]  }
0x1654   :  { %13401 = vmatprep.subr.bf16.mxu1 %v14547_v57 }
0x1657   :  { %13402 = vmatpush3.bf16.msra.mxu1 %v14547_v57  ;;  %v14595_v57 = vld [vmem:[%s17924_s12 + $0x68] ss:$12 sps:$4 sm:$0xff]  }
0x1658   :  { %13403 = vmatprep.subr.bf16.mxu1 %v14548_v28 }
0x165b   :  { %13404 = vmatpush3.bf16.msra.mxu1 %v14548_v28  ;;  %v14597_v28 = vld [vmem:[%s17924_s12 + $0x98] ss:$12 sps:$4 sm:$0xff]  }
0x165c   :  { %13405 = vmatprep.subr.bf16.mxu1 %v14549_v30 }
0x165f   :  { %13406 = vmatpush3.bf16.msra.mxu1 %v14549_v30  ;;  %v14598_v30 = vld [vmem:[%s17924_s12 + $0xb0] ss:$12 sps:$4 sm:$0xff]  }
0x1660   :  { %13407 = vmatprep.subr.bf16.mxu1 %v14550_v13 }
0x1663   :  { %13408 = vmatpush3.bf16.msra.mxu1 %v14550_v13  ;;  %v17377_v13 = vld [vmem:[#allocation21] sm:$0xff]  }
0x1664   :  { %13409 = vmatprep.subr.bf16.mxu1 %v14551_v31 }
0x1667   :  { %13410 = vmatpush3.bf16.msra.mxu1 %v14551_v31  ;;  %v17382_v31 = vld [vmem:[#allocation21 + $0x8] sm:$0xff]  }
0x1668   :  { %13419 = vmatprep.subr.bf16.mxu1 %v14555_v29 }
0x166a   :  { %13412 = vmatmul.mubr.bf16.vlgmr.msra.gmra.mrb[172].mxu1 %v14552_v33  ;;  %v17392_v33 = vld [vmem:[#allocation21 + $0x18] sm:$0xff]  }
0x166b   :  { %13415 = vmatprep.mubr.bf16.mxu1 %v14553_v35  ;;  %13420 = vmatpush3.bf16.msra.mxu1 %v14555_v29  ;;  %v17387_v29 = vld [vmem:[#allocation21 + $0x10] sm:$0xff]   ;;  %v17402_v35 = vld [vmem:[#allocation21 + $0x28] sm:$0xff]  }
0x166c   :  { %13421 = vmatprep.subr.bf16.mxu1 %v14556_v34 }
0x166f   :  { %13422 = vmatpush3.bf16.msra.mxu1 %v14556_v34  ;;  %v17397_v34 = vld [vmem:[#allocation21 + $0x20] sm:$0xff]  }
0x1670   :  { %13423 = vmatprep.subr.bf16.mxu1 %v14557_v36 }
0x1672   :  { %13416 = vmatmul.mubr.bf16.gmra.mrb[176].mxu1 %v14554_v37  ;;  %v17412_v37 = vld [vmem:[#allocation21 + $0x38] sm:$0xff]  }
0x1673   :  { %13424 = vmatpush3.bf16.msra.mxu1 %v14557_v36  ;;  %v17407_v36 = vld [vmem:[#allocation21 + $0x30] sm:$0xff]  }
0x1674   :  { %13425 = vmatprep.subr.bf16.mxu1 %v14558_v38 }
0x1677   :  { %13426 = vmatpush3.bf16.msra.mxu1 %v14558_v38  ;;  %v14608_v38 = vld [vmem:[#allocation72 + $0x20] sm:$0xff]  }
0x1678   :  { %13427 = vmatprep.subr.bf16.mxu1 %v14559_v39  ;;  %13491 = vmatprep.subr.bf16.mxu0 %v14608_v38 }
0x1679   :  { %13492 = vmatpush3.bf16.msra.mxu0 %v14608_v38  ;;  %v14620_v38 = vld [vmem:[#allocation72 + $0x18] sm:$0xff]  }
0x167b   :  { %13428 = vmatpush3.bf16.msra.mxu1 %v14559_v39  ;;  %v17417_v39 = vld [vmem:[#allocation21 + $0x40] sm:$0xff]  }
0x167c   :  { %13429 = vmatprep.subr.bf16.mxu1 %v14560_v40 }
0x167f   :  { %13430 = vmatpush3.bf16.msra.mxu1 %v14560_v40  ;;  %v14609_v40 = vld [vmem:[#allocation72 + $0x28] sm:$0xff]  }
0x1680   :  { %13431 = vmatprep.subr.bf16.mxu1 %v14561_v41  ;;  %13493 = vmatprep.subr.bf16.mxu0 %v14609_v40 }
0x1681   :  { %13494 = vmatpush3.bf16.msra.mxu0 %v14609_v40 }
0x1683   :  { %13432 = vmatpush3.bf16.msra.mxu1 %v14561_v41  ;;  %v14610_v41 = vld [vmem:[#allocation72 + $0x30] sm:$0xff]  }
0x1684   :  { %13433 = vmatprep.subr.bf16.mxu1 %v14562_v42  ;;  %13495 = vmatprep.subr.bf16.mxu0 %v14610_v41 }
0x1685   :  { %13496 = vmatpush3.bf16.msra.mxu0 %v14610_v41 }
0x1687   :  { %13434 = vmatpush3.bf16.msra.mxu1 %v14562_v42  ;;  %v14611_v42 = vld [vmem:[#allocation72 + $0x38] sm:$0xff]  }
0x1688   :  { %13443 = vmatprep.subr.bf16.mxu1 %v14564_v11  ;;  %13497 = vmatprep.subr.bf16.mxu0 %v14611_v42 }
0x1689   :  { %13498 = vmatpush3.bf16.msra.mxu0 %v14611_v42  ;;  %v14621_v42 = vld [vmem:[#allocation72 + $0x40] sm:$0xff]  }
0x16dd   :  { %v13341_v14 = vpop.f32.mrb[164].mxu1 }
0x16de   :  { %v7222_v43 = vpop.f32.mrb[165].mxu1 }
0x16df   :  { %v7256_v44 = vpack.c.bf16 %v7222_v43, %v7222_v43  ;;  %v13342_v45 = vpop.f32.mrb[166].mxu1 }
0x16e0   :  { %v7225_v46 = vpop.f32.mrb[167].mxu1 }
0x16e1   :  { %7265 = vst [vmem:[#allocation19 + $0x4] sm:$0xf] %v7256_v44  ;;  %v12026_v47 = vpack.c.bf16 %v13341_v14, %v7225_v46  ;;  %v11680_v14 = vld [vmem:[#allocation71] ss:$0 sm:$0xff]  ;;  %v11681_v44 = vld [vmem:[#allocation69] ss:$0 sm:$0xff] }
0x16e3   :  { %12146 = vst [vmem:[#allocation19 + $0x8] sm:$0xff] %v12026_v47  }
0x16e5   :  { %v13345_v48 = vpop.f32.mrb[168].mxu1 }
0x16e6   :  { %v7238_v49 = vpop.f32.mrb[169].mxu1 }
0x16e7   :  { %v12031_v51 = vpack.c.bf16 %v7238_v49, %v13342_v45  ;;  %v13346_v52 = vpop.f32.mrb[170].mxu1 }
0x16e8   :  { %v7263_v54 = vpack.c.bf16 %v13346_v52, %v13346_v52  ;;  %v7241_v55 = vpop.f32.mrb[171].mxu1  ;;  %v14563_v56 = vld [vmem:[#allocation19] sm:$0xff]  }
0x16e9   :  { %12147 = vst [vmem:[#allocation19 + $0x10] sm:$0xff] %v12031_v51   ;;  %v12036_v59 = vpack.c.bf16 %v13345_v48, %v7241_v55  ;;  %13435 = vmatprep.mubr.bf16.mxu1 %v14563_v56 }
0x16ea   :  { %7272 = vst [vmem:[#allocation19 + $0x20] sm:$0xf] %v7263_v54  ;;  %v14565_v61 = vld [vmem:[#allocation19 + $0x8] sm:$0xff]  }
0x16eb   :  { %12148 = vst [vmem:[#allocation19 + $0x18] sm:$0xff] %v12036_v59   ;;  %13436 = vmatmul.mubr.bf16.vlgmr.msra.gmra.mrb[172].mxu1 %v14565_v61  ;;  %v14570_v3 = vld [vmem:[#allocation19 + $0x4] sm:$0xff]  }
0x16ec   :  { %13444 = vmatpush3.bf16.msra.mxu1 %v14564_v11  ;;  %v14582_v19 = vld [vmem:[#allocation19 + $0x8] sm:$0xff]   ;;  %v14613_v11 = vld [vmem:[#allocation72] sm:$0xff]  }
0x16ed   :  { %13445 = vmatprep.subr.bf16.mxu1 %v14566_v60  ;;  %13507 = vmatprep.subr.bf16.mxu0 %v14613_v11 }
0x16f0   :  { %v14567_v63 = vld [vmem:[#allocation19 + $0x10] sm:$0xff]   ;;  %13446 = vmatpush3.bf16.msra.mxu1 %v14566_v60 }
0x16f1   :  { %13439 = vmatprep.mubr.bf16.mxu1 %v14567_v63  ;;  %13447 = vmatprep.subr.bf16.mxu1 %v14568_v62  ;;  %v14576_v10 = vld [vmem:[#allocation19 + $0xc] sm:$0xff]   ;;  %v14592_v26 = vld [vmem:[#allocation19 + $0x20] sm:$0xff]  }
0x16f2   :  { %v14569_v2 = vld [vmem:[#allocation19 + $0x18] sm:$0xff]   ;;  %v14588_v24 = vld [vmem:[#allocation19 + $0x10] sm:$0xff]  }
0x16f3   :  { %13440 = vmatmul.mubr.bf16.gmra.mrb[176].mxu1 %v14569_v2  ;;  %v14578_v17 = vld [vmem:[#allocation19 + $0x14] sm:$0xff]   ;;  %v14580_v58 = vld [vmem:[#allocation19 + $0x1c] sm:$0xff]  }
0x16f4   :  { %13448 = vmatpush3.bf16.msra.mxu1 %v14568_v62  ;;  %13459 = vmatprep.mubr.bf16.mxu1 %v14570_v3  ;;  %v14589_v50 = vld [vmem:[#allocation19 + $0x18] sm:$0xff]  }
0x16f5   :  { %13449 = vmatprep.subr.bf16.mxu1 %v14571_v1 }
0x16f8   :  { %13450 = vmatpush3.bf16.msra.mxu1 %v14571_v1 }
0x16f9   :  { %13451 = vmatprep.subr.bf16.mxu1 %v14572_v4 }
0x16fc   :  { %13452 = vmatpush3.bf16.msra.mxu1 %v14572_v4 }
0x16fd   :  { %13453 = vmatprep.subr.bf16.mxu1 %v14573_v5 }
0x1700   :  { %13454 = vmatpush3.bf16.msra.mxu1 %v14573_v5 }
0x1701   :  { %13455 = vmatprep.subr.bf16.mxu1 %v14574_v8 }
0x1704   :  { %13456 = vmatpush3.bf16.msra.mxu1 %v14574_v8 }
0x1705   :  { %13457 = vmatprep.subr.bf16.mxu1 %v14575_v7 }
0x1708   :  { %13458 = vmatpush3.bf16.msra.mxu1 %v14575_v7 }
0x1709   :  { %13467 = vmatprep.subr.bf16.mxu1 %v14577_v12 }
0x170b   :  { %13460 = vmatmul.mubr.bf16.vlgmr.msra.gmra.mrb[172].mxu1 %v14576_v10 }
0x170c   :  { %13463 = vmatprep.mubr.bf16.mxu1 %v14578_v17  ;;  %13468 = vmatpush3.bf16.msra.mxu1 %v14577_v12 }
0x170d   :  { %13469 = vmatprep.subr.bf16.mxu1 %v14579_v15 }
0x1710   :  { %13470 = vmatpush3.bf16.msra.mxu1 %v14579_v15 }
0x1711   :  { %13471 = vmatprep.subr.bf16.mxu1 %v14581_v53 }
0x1713   :  { %13464 = vmatmul.mubr.bf16.gmra.mrb[176].mxu1 %v14580_v58 }
0x1714   :  { %13472 = vmatpush3.bf16.msra.mxu1 %v14581_v53  ;;  %13483 = vmatprep.mubr.bf16.mxu1 %v14582_v19 }
0x1715   :  { %13473 = vmatprep.subr.bf16.mxu1 %v14583_v18 }
0x1718   :  { %13474 = vmatpush3.bf16.msra.mxu1 %v14583_v18 }
0x1719   :  { %13475 = vmatprep.subr.bf16.mxu1 %v14584_v9 }
0x171c   :  { %13476 = vmatpush3.bf16.msra.mxu1 %v14584_v9 }
0x171d   :  { %13477 = vmatprep.subr.bf16.mxu1 %v14585_v20 }
0x1720   :  { %13478 = vmatpush3.bf16.msra.mxu1 %v14585_v20 }
0x1721   :  { %13479 = vmatprep.subr.bf16.mxu1 %v14586_v21 }
0x1724   :  { %13480 = vmatpush3.bf16.msra.mxu1 %v14586_v21 }
0x1725   :  { %13481 = vmatprep.subr.bf16.mxu1 %v14587_v22 }
0x1728   :  { %13482 = vmatpush3.bf16.msra.mxu1 %v14587_v22 }
0x1729   :  { %13615 = vmatprep.subr.bf16.mxu1 %v15877_v6 }
0x172b   :  { %13484 = vmatmul.mubr.bf16.vlgmr.msra.gmra.mrb[172].mxu1 %v14588_v24 }
0x172c   :  { %13487 = vmatprep.mubr.bf16.mxu1 %v14589_v50  ;;  %13616 = vmatpush3.bf16.msra.mxu1 %v14590_v23 }
0x172d   :  { %13617 = vmatprep.subr.bf16.mxu1 %v15877_v6 }
0x1730   :  { %13618 = vmatpush3.bf16.msra.mxu1 %v14591_v32 }
0x1731   :  { %13619 = vmatprep.subr.bf16.mxu1 %v15877_v6 }
0x1733   :  { %13488 = vmatmul.mubr.bf16.gmra.mrb[176].mxu1 %v14592_v26  ;;  %v14615_v26 = vld [vmem:[#allocation72 + $0x8] sm:$0xff]  }
0x1734   :  { %13620 = vmatpush3.bf16.msra.mxu1 %v14593_v25  ;;  %13631 = vmatprep.mubr.msk.bf16.mxu1 %vm15878_vm2, %v15877_v6 }
0x1735   :  { %13621 = vmatprep.subr.bf16.mxu1 %v15877_v6 }
0x1738   :  { %13622 = vmatpush3.bf16.msra.mxu1 %v14594_v27 }
0x1739   :  { %13623 = vmatprep.subr.bf16.mxu1 %v15877_v6 }
0x173c   :  { %13624 = vmatpush3.bf16.msra.mxu1 %v14595_v57 }
0x173d   :  { %13625 = vmatprep.subr.bf16.mxu1 %v15877_v6 }
0x1740   :  { %13626 = vmatpush3.bf16.msra.mxu1 %v14596_v16  ;;  %v14617_v16 = vld [vmem:[#allocation72 + $0x10] sm:$0xff]  }
0x1741   :  { %13627 = vmatprep.subr.bf16.mxu1 %v15877_v6 }
0x1744   :  { %13628 = vmatpush3.bf16.msra.mxu1 %v14597_v28 }
0x1745   :  { %13629 = vmatprep.subr.bf16.mxu1 %v15877_v6 }
0x1748   :  { %13630 = vmatpush3.bf16.msra.mxu1 %v14598_v30 }
0x174b   :  { %13632 = vmatmul.mubr.bf16.vlgmr.msra.gmra.mrb[180].mxu1 %v17377_v13 }
0x174c   :  { %13635 = vmatprep.mubr.msk.bf16.mxu1 %vm15878_vm2, %v15877_v6 }
0x1753   :  { %13636 = vmatmul.mubr.bf16.gmra.mrb[184].mxu1 %v17382_v31 }
0x1754   :  { %13639 = vmatprep.mubr.msk.bf16.mxu1 %vm15878_vm2, %v15877_v6 }
0x175b   :  { %13640 = vmatmul.mubr.bf16.gmra.mrb[188].mxu1 %v17387_v29 }
0x175c   :  { %13643 = vmatprep.mubr.msk.bf16.mxu1 %vm15878_vm2, %v15877_v6 }
0x1763   :  { %13644 = vmatmul.mubr.bf16.gmra.mrb[192].mxu1 %v17392_v33 }
0x1764   :  { %13647 = vmatprep.mubr.msk.bf16.mxu1 %vm15878_vm2, %v15877_v6 }
0x176b   :  { %13648 = vmatmul.mubr.bf16.gmra.mrb[196].mxu1 %v17397_v34 }
0x176c   :  { %13651 = vmatprep.mubr.msk.bf16.mxu1 %vm15878_vm2, %v15877_v6 }
0x1773   :  { %13652 = vmatmul.mubr.bf16.gmra.mrb[200].mxu1 %v17402_v35 }
0x1774   :  { %13655 = vmatprep.mubr.msk.bf16.mxu1 %vm15878_vm2, %v15877_v6 }
0x177b   :  { %13656 = vmatmul.mubr.bf16.gmra.mrb[204].mxu1 %v17407_v36 }
0x177c   :  { %13659 = vmatprep.mubr.msk.bf16.mxu1 %vm15878_vm2, %v15877_v6 }
0x1783   :  { %13660 = vmatmul.mubr.bf16.gmra.mrb[208].mxu1 %v17412_v37 }
0x1784   :  { %13663 = vmatprep.mubr.msk.bf16.mxu1 %vm15878_vm2, %v15877_v6 }
0x178b   :  { %13664 = vmatmul.mubr.bf16.gmra.mrb[212].mxu1 %v17417_v39 }
0x178c   :  { %10336 = vmatprep.mubr.bf16.mxu1 %v15876_v0 }
0x17fe   :  { %v13485_v43 = vpop.f32.mrb[172].mxu1 }
0x17ff   :  { %v8286_v45 = vmul.f32 %v13485_v43, %v11680_v14  ;;  %v8238_v46 = vpop.f32.mrb[173].mxu1 }
0x1800   :  { %v8284_v47 = vmul.f32 %v11680_v14, %v8238_v46  ;;  %v13486_v48 = vpop.f32.mrb[174].mxu1 }
0x1801   :  { %v8301_v49 = vadd.f32 %v11681_v44, %v8286_v45  ;;  %v8287_v51 = vmul.f32 %v13486_v48, %v11680_v14  ;;  %v8241_v52 = vpop.f32.mrb[175].mxu1  ;;  %v14624_v45 = vld [vmem:[#allocation72 + $0x48] sm:$0xff]   ;;  %v14625_v48 = vld [vmem:[#allocation72 + $0x50] sm:$0xff]  }
0x1802   :  { %v8299_v54 = vadd.f32 %v11681_v44, %v8284_v47  ;;  %v8285_v55 = vmul.f32 %v11680_v14, %v8241_v52 }
0x1803   :  { %v8309_v56 = vmax.f32 %v8301_v49, 0.0  ;;  %v8302_v59 = vadd.f32 %v11681_v44, %v8287_v51 }
0x1804   :  { %v8307_v60 = vmax.f32 %v8299_v54, 0.0  ;;  %v8300_v61 = vadd.f32 %v11681_v44, %v8285_v55  ;;  %v14628_v55 = vld [vmem:[#allocation72 + $0x58] sm:$0xff]  }
0x1805   :  { %v8320_v62 = vpack.c.bf16 %v8309_v56, %v8309_v56  ;;  %v8310_v63 = vmax.f32 %v8302_v59, 0.0 }
0x1806   :  { %v8318_v1 = vpack.c.bf16 %v8307_v60, %v8307_v60  ;;  %v8308_v2 = vmax.f32 %v8300_v61, 0.0  ;;  %v13489_v3 = vpop.f32.mrb[176].mxu1 }
0x1807   :  { %8329 = vst.msk [vmem:[#allocation20 + $0xc] sm:$0xf] %vm4510_vm3, %v8320_v62  ;;  %v8321_v4 = vpack.c.bf16 %v8310_v63, %v8310_v63  ;;  %v8290_v5 = vmul.f32 %v13489_v3, %v11680_v14  ;;  %v8254_v8 = vpop.f32.mrb[177].mxu1 }
0x1808   :  { %8327 = vst.msk [vmem:[#allocation20 + $0x4] sm:$0xf] %vm4510_vm3, %v8318_v1  ;;  %v8319_v7 = vpack.c.bf16 %v8308_v2, %v8308_v2  ;;  %v8288_v12 = vmul.f32 %v11680_v14, %v8254_v8  ;;  %v13490_v10 = vpop.f32.mrb[178].mxu1 }
0x1809   :  { %8330 = vst.msk [vmem:[#allocation20 + $0x10] sm:$0xf] %vm4510_vm3, %v8321_v4  ;;  %v8305_v15 = vadd.f32 %v11681_v44, %v8290_v5  ;;  %v8291_v17 = vmul.f32 %v13490_v10, %v11680_v14  ;;  %v8257_v53 = vpop.f32.mrb[179].mxu1 }
0x180a   :  { %8328 = vst.msk [vmem:[#allocation20 + $0x8] sm:$0xf] %vm4510_vm3, %v8319_v7  ;;  %v8303_v58 = vadd.f32 %v11681_v44, %v8288_v12  ;;  %v8289_v18 = vmul.f32 %v11680_v14, %v8257_v53 }
0x180b   :  { %v8313_v19 = vmax.f32 %v8305_v15, 0.0  ;;  %v8306_v9 = vadd.f32 %v11681_v44, %v8291_v17 }
0x180c   :  { %v8311_v20 = vmax.f32 %v8303_v58, 0.0  ;;  %v8304_v21 = vadd.f32 %v11681_v44, %v8289_v18 }
0x180d   :  { %v8324_v22 = vpack.c.bf16 %v8313_v19, %v8313_v19  ;;  %v8314_v23 = vmax.f32 %v8306_v9, 0.0 }
0x180e   :  { %v8322_v24 = vpack.c.bf16 %v8311_v20, %v8311_v20  ;;  %v8312_v50 = vmax.f32 %v8304_v21, 0.0 }
0x180f   :  { %8333 = vst.msk [vmem:[#allocation20 + $0x1c] sm:$0xf] %vm4510_vm3, %v8324_v22  ;;  %v8325_v32 = vpack.c.bf16 %v8314_v23, %v8314_v23  ;;  %v14619_v40 = vld [vmem:[#allocation20] sm:$0xff]  }
0x1810   :  { %8331 = vst.msk [vmem:[#allocation20 + $0x14] sm:$0xf] %vm4510_vm3, %v8322_v24  ;;  %v8323_v25 = vpack.c.bf16 %v8312_v50, %v8312_v50  ;;  %v14614_v57 = vld [vmem:[#allocation20 + $0xc] sm:$0xff]  }
0x1811   :  { %8334 = vst.msk [vmem:[#allocation20 + $0x20] sm:$0xf] %vm4510_vm3, %v8325_v32  ;;  %v14612_v27 = vld [vmem:[#allocation20 + $0x4] sm:$0xff]  }
0x1812   :  { %8332 = vst.msk [vmem:[#allocation20 + $0x18] sm:$0xf] %vm4510_vm3, %v8323_v25  ;;  %13499 = vmatprep.mubr.msk.bf16.mxu0 %vm4560_vm4, %v14612_v27  ;;  %v14622_v44 = vld [vmem:[#allocation20 + $0x8] sm:$0xff]  }
0x1813   :  { %13500 = vmatmul.mubr.msk.bf16.vlgmr.msra.gmra.mrb[164].mxu0 %vm4560_vm4, %v14614_v57  ;;  %v14627_v56 = vld [vmem:[#allocation20 + $0x8] sm:$0xff]   ;;  %v14632_v57 = vld [vmem:[#allocation89] sm:$0xff]  }
0x1814   :  { %13508 = vmatpush3.bf16.msra.mxu0 %v14613_v11 }
0x1815   :  { %13509 = vmatprep.subr.bf16.mxu0 %v14615_v26 }
0x1817   :  { %v14623_v46 = vld [vmem:[#allocation20 + $0x10] sm:$0xff]  }
0x1818   :  { %13510 = vmatpush3.bf16.msra.mxu0 %v14615_v26  ;;  %v14618_v30 = vld [vmem:[#allocation20 + $0x1c] sm:$0xff]   ;;  %v14629_v63 = vld [vmem:[#allocation20 + $0x10] sm:$0xff]  }
0x1819   :  { %v14616_v28 = vld [vmem:[#allocation20 + $0x14] sm:$0xff]   ;;  %13511 = vmatprep.subr.bf16.mxu0 %v14617_v16  ;;  %v14631_v8 = vld [vmem:[#allocation20 + $0x20] sm:$0xff]  }
0x181a   :  { %13503 = vmatprep.mubr.msk.bf16.mxu0 %vm4560_vm4, %v14616_v28  ;;  %v14626_v54 = vld [vmem:[#allocation20 + $0x18] sm:$0xff]   ;;  %v14634_v28 = vld [vmem:[#allocation89 + $0x10] sm:$0xff]  }
0x181b   :  { %13504 = vmatmul.mubr.msk.bf16.gmra.mrb[168].mxu0 %vm4560_vm4, %v14618_v30  ;;  %v14630_v1 = vld [vmem:[#allocation20 + $0x18] sm:$0xff]  }
0x181c   :  { %13512 = vmatpush3.bf16.msra.mxu0 %v14617_v16  ;;  %13515 = vmatprep.mubr.msk.bf16.mxu0 %vm4560_vm4, %v14619_v40  ;;  %v14633_v16 = vld [vmem:[#allocation89 + $0x8] sm:$0xff]   ;;  %v14635_v30 = vld [vmem:[#allocation89 + $0x18] sm:$0xff]   ;;  %v11718_v40 = vld [vmem:[#allocation75] ss:$0 sm:$0xff] }
0x181d   :  { %13513 = vmatprep.subr.bf16.mxu0 %v14620_v38 }
0x181e   :  { %v9873_v41 = vpop.f32.mrb[180].mxu1 }
0x181f   :  { %v13633_v14 = vpop.f32.mrb[181].mxu1 }
0x1820   :  { %v9875_v11 = vpop.f32.mrb[182].mxu1  ;;  %13514 = vmatpush3.bf16.msra.mxu0 %v14620_v38  ;;  %v14638_v38 = vld [vmem:[%s17925_s29 + $0x4] ss:$12 sps:$4 sm:$0xff]  }
0x1821   :  { %v13634_v43 = vpop.f32.mrb[183].mxu1  ;;  %13523 = vmatprep.subr.bf16.mxu0 %v14621_v42 }
0x1823   :  { %13516 = vmatmul.mubr.msk.bf16.vlgmr.msra.gmra.mrb[164].mxu0 %vm4560_vm4, %v14622_v44 }
0x1824   :  { %13524 = vmatpush3.bf16.msra.mxu0 %v14621_v42  ;;  %13519 = vmatprep.mubr.msk.bf16.mxu0 %vm4560_vm4, %v14623_v46  ;;  %v11719_v42 = vld [vmem:[#allocation74] ss:$0 sm:$0xff] }
0x1825   :  { %13525 = vmatprep.subr.bf16.mxu0 %v14624_v45 }
0x1826   :  { %v17436_v47 = vpop.f32.mrb[184].mxu1 }
0x1827   :  { %v13637_v49 = vpop.f32.mrb[185].mxu1 }
0x1828   :  { %v17438_v51 = vpop.f32.mrb[186].mxu1  ;;  %13526 = vmatpush3.bf16.msra.mxu0 %v14624_v45 }
0x1829   :  { %v13638_v52 = vpop.f32.mrb[187].mxu1  ;;  %13527 = vmatprep.subr.bf16.mxu0 %v14625_v48 }
0x182b   :  { %13520 = vmatmul.mubr.msk.bf16.gmra.mrb[168].mxu0 %vm4560_vm4, %v14626_v54 }
0x182c   :  { %13528 = vmatpush3.bf16.msra.mxu0 %v14625_v48  ;;  %13531 = vmatprep.mubr.msk.bf16.mxu0 %vm4560_vm4, %v14627_v56 }
0x182d   :  { %13529 = vmatprep.subr.bf16.mxu0 %v14628_v55 }
0x182e   :  { %v17442_v59 = vpop.f32.mrb[188].mxu1 }
0x182f   :  { %v13641_v60 = vpop.f32.mrb[189].mxu1 }
0x1830   :  { %v17444_v61 = vpop.f32.mrb[190].mxu1  ;;  %13530 = vmatpush3.bf16.msra.mxu0 %v14628_v55 }
0x1831   :  { %v13642_v62 = vpop.f32.mrb[191].mxu1  ;;  %13539 = vmatprep.subr.bf16.mxu0 %v14632_v57 }
0x1833   :  { %13532 = vmatmul.mubr.msk.bf16.vlgmr.msra.gmra.mrb[164].mxu0 %vm4560_vm4, %v14629_v63 }
0x1834   :  { %13535 = vmatprep.mubr.msk.bf16.mxu0 %vm4560_vm4, %v14630_v1  ;;  %13540 = vmatpush3.bf16.msra.mxu0 %v14632_v57 }
0x1835   :  { %13541 = vmatprep.subr.bf16.mxu0 %v14633_v16 }
0x1836   :  { %v17448_v2 = vpop.f32.mrb[192].mxu1 }
0x1837   :  { %v13645_v3 = vpop.f32.mrb[193].mxu1 }
0x1838   :  { %v17450_v4 = vpop.f32.mrb[194].mxu1  ;;  %13542 = vmatpush3.bf16.msra.mxu0 %v14633_v16 }
0x1839   :  { %v13646_v5 = vpop.f32.mrb[195].mxu1  ;;  %13543 = vmatprep.subr.bf16.mxu0 %v14634_v28 }
0x183b   :  { %13536 = vmatmul.mubr.msk.bf16.gmra.mrb[168].mxu0 %vm4560_vm4, %v14631_v8 }
0x183c   :  { %13544 = vmatpush3.bf16.msra.mxu0 %v14634_v28 }
0x183d   :  { %13545 = vmatprep.subr.bf16.mxu0 %v14635_v30 }
0x183e   :  { %v17453_v7 = vpop.f32.mrb[196].mxu1 }
0x183f   :  { %v13649_v12 = vpop.f32.mrb[197].mxu1 }
0x1840   :  { %v17455_v10 = vpop.f32.mrb[198].mxu1  ;;  %13546 = vmatpush3.bf16.msra.mxu0 %v14635_v30 }
0x1841   :  { %v13650_v15 = vpop.f32.mrb[199].mxu1  ;;  %9316 = vmatprep.subr.bf16.mxu0 %v14638_v38 }
0x1846   :  { %v17457_v17 = vpop.f32.mrb[200].mxu1 }
0x1847   :  { %v13653_v53 = vpop.f32.mrb[201].mxu1 }
0x1848   :  { %v17459_v58 = vpop.f32.mrb[202].mxu1 }
0x1849   :  { %v13654_v18 = vpop.f32.mrb[203].mxu1 }
0x184e   :  { %v17461_v19 = vpop.f32.mrb[204].mxu1 }
0x184f   :  { %v13657_v9 = vpop.f32.mrb[205].mxu1 }
0x1850   :  { %v17463_v20 = vpop.f32.mrb[206].mxu1 }
0x1851   :  { %v13658_v21 = vpop.f32.mrb[207].mxu1 }
0x1856   :  { %v17465_v22 = vpop.f32.mrb[208].mxu1 }
0x1857   :  { %v13661_v23 = vpop.f32.mrb[209].mxu1 }
0x1858   :  { %v17467_v24 = vpop.f32.mrb[210].mxu1 }
0x1859   :  { %v13662_v50 = vpop.f32.mrb[211].mxu1 }
0x185e   :  { %v17469_v32 = vpop.f32.mrb[212].mxu1 }
0x185f   :  { %v13665_v25 = vpop.f32.mrb[213].mxu1 }
0x1860   :  { %v17471_v26 = vpop.f32.mrb[214].mxu1 }
0x1861   :  { %v13666_v27 = vpop.f32.mrb[215].mxu1 }
0x1906   :  { %v13533_v41 = vpop.f32.mrb[164].mxu0 }
0x1907   :  { %v8766_v14 = vmul.f32 %v13533_v41, %v11718_v40  ;;  %v8718_v11 = vpop.f32.mrb[165].mxu0 }
0x1908   :  { %v8764_v43 = vmul.f32 %v11718_v40, %v8718_v11  ;;  %v13534_v44 = vpop.f32.mrb[166].mxu0 }
0x1909   :  { %v8781_v45 = vadd.f32 %v11719_v42, %v8766_v14  ;;  %v8767_v46 = vmul.f32 %v13534_v44, %v11718_v40  ;;  %v8721_v48 = vpop.f32.mrb[167].mxu0 }
0x190a   :  { %v8779_v49 = vadd.f32 %v11719_v42, %v8764_v43  ;;  %v8765_v52 = vmul.f32 %v11718_v40, %v8721_v48 }
0x190b   :  { %v8789_v54 = vmax.f32 %v8781_v45, 0.0  ;;  %v8782_v55 = vadd.f32 %v11719_v42, %v8767_v46 }
0x190c   :  { %v8780_v56 = vadd.f32 %v11719_v42, %v8765_v52  ;;  %v8787_v60 = vmax.f32 %v8779_v49, 0.0 }
0x190d   :  { %v8802_v62 = vmul.f32 0.4, %v8789_v54  ;;  %v8790_v63 = vmax.f32 %v8782_v55, 0.0  ;;  %v8805_v5 = vmul.f32 0.8666667, %v8789_v54 }
0x190e   :  { %v8788_v1 = vmax.f32 %v8780_v56, 0.0  ;;  %v13537_v3 = vpop.f32.mrb[168].mxu0  ;;  %v8807_v8 = vmul.f32 0.6666667, %v8789_v54  ;;  %v8795_v53 = vmul.f32 0.53333336, %v8787_v60 }
0x190f   :  { %v8770_v12 = vmul.f32 %v13537_v3, %v11718_v40  ;;  %v8734_v15 = vpop.f32.mrb[169].mxu0  ;;  %v8798_v18 = vmul.f32 0.06666667, %v8787_v60  ;;  %v8808_v9 = vmul.f32 0.33333334, %v8790_v63 }
0x1910   :  { %v8768_v21 = vmul.f32 %v11718_v40, %v8734_v15  ;;  %v8811_v23 = vmul.f32 0.8, %v8790_v63  ;;  %v8796_v50 = vmul.f32 0.46666667, %v8788_v1  ;;  %v8799_v25 = vmul.f32 0.93333334, %v8788_v1 }
0x1911   :  { %v8785_v27 = vadd.f32 %v11719_v42, %v8770_v12  ;;  %v8801_v57 = vmul.f32 0.6, %v8788_v1  ;;  %v8804_v16 = vmul.f32 0.13333334, %v8788_v1  ;;  %v13538_v30 = vpop.f32.mrb[170].mxu0  ;;  %v8809_v38 = vadd.f32 %v8808_v9, %v8807_v8 }
0x1912   :  { %v8783_v28 = vadd.f32 %v11719_v42, %v8768_v21  ;;  %v8800_v41 = vadd.f32 %v8799_v25, %v8798_v18  ;;  %v8771_v11 = vmul.f32 %v13538_v30, %v11718_v40  ;;  %v8737_v43 = vpop.f32.mrb[171].mxu0  ;;  %v8797_v44 = vadd.f32 %v8796_v50, %v8795_v53  ;;  %v14636_v50 = vld [vmem:[%s17925_s29] ss:$12 sps:$4 sm:$0xff]  }
0x1913   :  { %v8793_v14 = vmax.f32 %v8785_v27, 0.0  ;;  %v8803_v45 = vadd.f32 %v8802_v62, %v8801_v57  ;;  %v8769_v48 = vmul.f32 %v11718_v40, %v8737_v43  ;;  %v8806_v49 = vadd.f32 %v8805_v5, %v8804_v16  ;;  %v14641_v40 = vld [vmem:[%s17925_s29 + $0x1c] ss:$12 sps:$4 sm:$0xff]  }
0x1914   :  { %v8791_v46 = vmax.f32 %v8783_v28, 0.0  ;;  %v8810_v52 = vmul.f32 0.2, %v8789_v54  ;;  %v8813_v55 = vmul.f32 0.73333335, %v8790_v63  ;;  %v8786_v56 = vadd.f32 %v11719_v42, %v8771_v11 }
0x1915   :  { %v8816_v3 = vmul.f32 0.26666668, %v8790_v63  ;;  %v8838_v12 = vpack.c.bf16 %v8803_v45, %v8800_v41  ;;  %v8826_v21 = vmul.f32 0.13333334, %v8793_v14  ;;  %v8831_v8 = vmul.f32 0.93333334, %v8793_v14 }
0x1916   :  { %v8814_v1 = vmul.f32 0.26666668, %v8791_v46  ;;  %v8817_v15 = vmul.f32 0.73333335, %v8791_v46  ;;  %v8794_v18 = vmax.f32 %v8786_v56, 0.0  ;;  %v8784_v9 = vadd.f32 %v11719_v42, %v8769_v48 }
0x1917   :  { %v8837_v25 = vpack.c.bf16 %v8797_v44, %v8787_v60  ;;  %v8839_v27 = vpack.c.bf16 %v8809_v38, %v8806_v49  ;;  %v8812_v53 = vadd.f32 %v8811_v23, %v8810_v52  ;;  %v8834_v28 = vmul.f32 0.46666667, %v8793_v14  ;;  %v14639_v45 = vld [vmem:[%s17925_s29 + $0x18] ss:$12 sps:$4 sm:$0xff]   ;;  %v14644_v52 = vld [vmem:[%s17925_s29 + $0x34] ss:$12 sps:$4 sm:$0xff]  }
0x1918   :  { %v8815_v62 = vadd.f32 %v8814_v1, %v8813_v55  ;;  %v8832_v5 = vmul.f32 0.06666667, %v8794_v18  ;;  %v8835_v57 = vmul.f32 0.53333336, %v8794_v18  ;;  %v8792_v54 = vmax.f32 %v8784_v9, 0.0 }
0x1919   :  { %v8818_v16 = vadd.f32 %v8817_v15, %v8816_v3  ;;  %v8819_v63 = vmul.f32 0.8, %v8791_v46  ;;  %v8822_v30 = vmul.f32 0.33333334, %v8791_v46  ;;  %13547 = vmatprep.mubr.msk.bf16.mxu0 %vm4560_vm4, %v8837_v25  ;;  %v8829_v38 = vmul.f32 0.6, %v8793_v14 }
0x191a   :  { %v8840_v41 = vpack.c.bf16 %v8815_v62, %v8812_v53  ;;  %v8820_v11 = vmul.f32 0.2, %v8792_v54  ;;  %v8823_v42 = vmul.f32 0.6666667, %v8792_v54  ;;  %v8825_v60 = vmul.f32 0.8666667, %v8792_v54  ;;  %13548 = vmatmul.mubr.msk.bf16.vlgmr.msra.gmra.mrb[172].mxu0 %vm4560_vm4, %v8838_v12 }
0x191b   :  { %v8833_v23 = vadd.f32 %v8832_v5, %v8831_v8  ;;  %v8828_v43 = vmul.f32 0.4, %v8792_v54  ;;  %13551 = vmatprep.mubr.msk.bf16.mxu0 %vm4560_vm4, %v8839_v27  ;;  %v8836_v44 = vadd.f32 %v8835_v57, %v8834_v28  ;;  %9317 = vmatpush1.bf16.msra.mxu0 %v14636_v50  ;;  %v14642_v1 = vld [vmem:[%s17925_s29 + $0x30] ss:$12 sps:$4 sm:$0xff]   ;;  %v14647_v15 = vld [vmem:[%s17925_s29 + $0x4c] ss:$12 sps:$4 sm:$0xff]  }
0x191c   :  { %v8821_v46 = vadd.f32 %v8820_v11, %v8819_v63  ;;  %v8824_v48 = vadd.f32 %v8823_v42, %v8822_v30  ;;  %v8827_v49 = vadd.f32 %v8826_v21, %v8825_v60  ;;  %9318 = vmatprep.subr.bf16.mxu0 %v14641_v40  ;;  %v14645_v21 = vld [vmem:[%s17925_s29 + $0x48] ss:$12 sps:$4 sm:$0xff]   ;;  %v14650_v8 = vld [vmem:[%s17925_s29 + $0x64] ss:$12 sps:$4 sm:$0xff]   ;;  %v14659_v62 = vld [vmem:[%s17925_s29 + $0xac] ss:$12 sps:$4 sm:$0xff]  }
0x191d   :  { %v8830_v55 = vadd.f32 %v8829_v38, %v8828_v43  ;;  %v8844_v56 = vpack.c.bf16 %v8794_v18, %v8836_v44  ;;  %v14648_v18 = vld [vmem:[%s17925_s29 + $0x60] ss:$12 sps:$4 sm:$0xff]   ;;  %v14653_v9 = vld [vmem:[%s17925_s29 + $0x7c] ss:$12 sps:$4 sm:$0xff]   ;;  %v14651_v25 = vld [vmem:[%s17925_s29 + $0x78] ss:$12 sps:$4 sm:$0xff]  }
0x191e   :  { %v8841_v3 = vpack.c.bf16 %v8821_v46, %v8818_v16  ;;  %v8842_v14 = vpack.c.bf16 %v8827_v49, %v8824_v48  ;;  %v14654_v27 = vld [vmem:[%s17925_s29 + $0x90] ss:$12 sps:$4 sm:$0xff]   ;;  %v14656_v53 = vld [vmem:[%s17925_s29 + $0x94] ss:$12 sps:$4 sm:$0xff]   ;;  %v14665_v49 = vld [vmem:[%s17925_s29 + $0x38] ss:$12 sps:$4 sm:$0xff]  }
0x191f   :  { %v8843_v12 = vpack.c.bf16 %v8833_v23, %v8830_v55  ;;  %9319 = vmatpush1.bf16.msra.mxu0 %v14639_v45  ;;  %v14657_v50 = vld [vmem:[%s17925_s29 + $0xa8] ss:$12 sps:$4 sm:$0xff]   ;;  %v14663_v43 = vld [vmem:[%s17925_s29 + $0x20] ss:$12 sps:$4 sm:$0xff]  }
0x1920   :  { %9320 = vmatprep.subr.bf16.mxu0 %v14644_v52  ;;  %v14661_v42 = vld [vmem:[%s17925_s29 + $0x8] ss:$12 sps:$4 sm:$0xff]  }
0x1922   :  { %13552 = vmatmul.mubr.msk.bf16.gmra.mrb[176].mxu0 %vm4560_vm4, %v8840_v41 }
0x1923   :  { %13555 = vmatprep.mubr.msk.bf16.mxu0 %vm4560_vm4, %v8841_v3  ;;  %9321 = vmatpush1.bf16.msra.mxu0 %v14642_v1  ;;  %v14667_v3 = vld [vmem:[%s17925_s29 + $0x50] ss:$12 sps:$4 sm:$0xff]  }
0x1924   :  { %9322 = vmatprep.subr.bf16.mxu0 %v14647_v15 }
0x1927   :  { %9323 = vmatpush1.bf16.msra.mxu0 %v14645_v21  ;;  %v14669_v21 = vld [vmem:[%s17925_s29 + $0x68] ss:$12 sps:$4 sm:$0xff]  }
0x1928   :  { %9324 = vmatprep.subr.bf16.mxu0 %v14650_v8 }
0x192a   :  { %13556 = vmatmul.mubr.msk.bf16.gmra.mrb[180].mxu0 %vm4560_vm4, %v8842_v14 }
0x192b   :  { %13559 = vmatprep.mubr.msk.bf16.mxu0 %vm4560_vm4, %v8843_v12  ;;  %9325 = vmatpush1.bf16.msra.mxu0 %v14648_v18 }
0x192c   :  { %9326 = vmatprep.subr.bf16.mxu0 %v14653_v9 }
0x192f   :  { %9327 = vmatpush1.bf16.msra.mxu0 %v14651_v25 }
0x1930   :  { %9328 = vmatprep.subr.bf16.mxu0 %v14656_v53  ;;  %v14673_v53 = vld [vmem:[%s17925_s29 + $0x98] ss:$12 sps:$4 sm:$0xff]  }
0x1932   :  { %13560 = vmatmul.mubr.msk.bf16.gmra.mrb[184].mxu0 %vm4560_vm4, %v8844_v56 }
0x1933   :  { %9348 = vmatprep.mubr.bf16.mxu0 %v15876_v0  ;;  %9329 = vmatpush1.bf16.msra.mxu0 %v14654_v27  ;;  %v14671_v27 = vld [vmem:[%s17925_s29 + $0x80] ss:$12 sps:$4 sm:$0xff]  }
0x1934   :  { %9330 = vmatprep.subr.bf16.mxu0 %v14659_v62 }
0x1937   :  { %9331 = vmatpush1.bf16.msra.mxu0 %v14657_v50  ;;  %v14675_v50 = vld [vmem:[%s17925_s29 + $0xb0] ss:$12 sps:$4 sm:$0xff]  }
0x1938   :  { %13563 = vmatprep.subr.bf16.mxu0 %v15877_v6 }
0x19ed   :  { %v13549_v40 = vpop.f32.mrb[172].mxu0 }
0x19ee   :  { %v8935_v5 = vpop.f32.mrb[173].mxu0 }
0x19ef   :  { %v9001_v57 = vpack.c.bf16 %v8935_v5, %v8935_v5  ;;  %v13550_v54 = vpop.f32.mrb[174].mxu0 }
0x19f0   :  { %v8938_v16 = vpop.f32.mrb[175].mxu0 }
0x19f1   :  { %9018 = vst [vmem:[#allocation22 + $0x4] sm:$0xf] %v9001_v57  ;;  %v12041_v28 = vpack.c.bf16 %v13549_v40, %v8938_v16  ;;  %v14679_v40 = vld [vmem:[%s17924_s12 + $0x4] ss:$12 sps:$4 sm:$0xff]  }
0x19f3   :  { %12149 = vst [vmem:[#allocation22 + $0x8] sm:$0xff] %v12041_v28  }
0x19f5   :  { %v13553_v63 = vpop.f32.mrb[176].mxu0 }
0x19f6   :  { %v8951_v30 = vpop.f32.mrb[177].mxu0 }
0x19f7   :  { %v12046_v41 = vpack.c.bf16 %v8951_v30, %v13550_v54  ;;  %v13554_v11 = vpop.f32.mrb[178].mxu0  ;;  %v14682_v30 = vld [vmem:[%s17924_s12 + $0x1c] ss:$12 sps:$4 sm:$0xff]  }
0x19f8   :  { %v8954_v60 = vpop.f32.mrb[179].mxu0  ;;  %v17500_v23 = vld [vmem:[#allocation22] sm:$0xff]  }
0x19f9   :  { %12150 = vst [vmem:[#allocation22 + $0x10] sm:$0xff] %v12046_v41   ;;  %v12051_v38 = vpack.c.bf16 %v13553_v63, %v8954_v60  ;;  %9349 = vmatmul.mubr.bf16.vlgmr.msra.gmra.mrb[188].mxu0 %v17500_v23  ;;  %v14677_v63 = vld [vmem:[%s17924_s12] ss:$12 sps:$4 sm:$0xff]   ;;  %v14680_v41 = vld [vmem:[%s17924_s12 + $0x18] ss:$12 sps:$4 sm:$0xff]  }
0x19fa   :  { %13564 = vmatpush3.bf16.msra.mxu0 %v14661_v42  ;;  %9357 = vmatprep.mubr.bf16.mxu0 %v15876_v0  ;;  %v17507_v55 = vld [vmem:[#allocation22 + $0x8] sm:$0xff]   ;;  %v14683_v42 = vld [vmem:[%s17924_s12 + $0x30] ss:$12 sps:$4 sm:$0xff]  }
0x19fb   :  { %12151 = vst [vmem:[#allocation22 + $0x18] sm:$0xff] %v12051_v38   ;;  %13565 = vmatprep.subr.bf16.mxu0 %v15877_v6  ;;  %v14688_v60 = vld [vmem:[%s17924_s12 + $0x4c] ss:$12 sps:$4 sm:$0xff]   ;;  %v14691_v38 = vld [vmem:[%s17924_s12 + $0x64] ss:$12 sps:$4 sm:$0xff]  }
0x19fd   :  { %v13557_v44 = vpop.f32.mrb[180].mxu0 }
0x19fe   :  { %v8967_v45 = vpop.f32.mrb[181].mxu0  ;;  %13566 = vmatpush3.bf16.msra.mxu0 %v14663_v43  ;;  %v14689_v43 = vld [vmem:[%s17924_s12 + $0x60] ss:$12 sps:$4 sm:$0xff]  }
0x19ff   :  { %v12056_v46 = vpack.c.bf16 %v8967_v45, %v13554_v11  ;;  %v13558_v48 = vpop.f32.mrb[182].mxu0  ;;  %13567 = vmatprep.subr.bf16.mxu0 %v15877_v6  ;;  %v14685_v11 = vld [vmem:[%s17924_s12 + $0x34] ss:$12 sps:$4 sm:$0xff]   ;;  %v14692_v45 = vld [vmem:[%s17924_s12 + $0x78] ss:$12 sps:$4 sm:$0xff]  }
0x1a00   :  { %v8970_v52 = vpop.f32.mrb[183].mxu0  ;;  %v14664_v9 = vld [vmem:[#allocation22 + $0x10] sm:$0xff]  }
0x1a01   :  { %12152 = vst [vmem:[#allocation22 + $0x20] sm:$0xff] %v12056_v46   ;;  %v12061_v56 = vpack.c.bf16 %v13557_v44, %v8970_v52  ;;  %9358 = vmatmul.mubr.bf16.gmra.mrb[192].mxu0 %v17507_v55  ;;  %v14694_v44 = vld [vmem:[%s17924_s12 + $0x7c] ss:$12 sps:$4 sm:$0xff]   ;;  %v14697_v46 = vld [vmem:[%s17924_s12 + $0x94] ss:$12 sps:$4 sm:$0xff]  }
0x1a02   :  { %9367 = vmatprep.mubr.bf16.mxu0 %v15876_v0  ;;  %13568 = vmatpush3.bf16.msra.mxu0 %v14665_v49  ;;  %v14666_v62 = vld [vmem:[#allocation22 + $0x18] sm:$0xff]   ;;  %v14698_v52 = vld [vmem:[%s17924_s12 + $0xa8] ss:$12 sps:$4 sm:$0xff]  }
0x1a03   :  { %12153 = vst [vmem:[#allocation22 + $0x28] sm:$0xff] %v12061_v56   ;;  %13569 = vmatprep.subr.bf16.mxu0 %v15877_v6  ;;  %v14700_v49 = vld [vmem:[%s17924_s12 + $0xac] ss:$12 sps:$4 sm:$0xff]   ;;  %v14711_v56 = vld [vmem:[%s17926_s19 + $0x34] ss:$12 sps:$4 sm:$0xff]  }
0x1a05   :  { %v13561_v14 = vpop.f32.mrb[184].mxu0 }
0x1a06   :  { %v8983_v12 = vpop.f32.mrb[185].mxu0  ;;  %13570 = vmatpush3.bf16.msra.mxu0 %v14667_v3  ;;  %v14712_v3 = vld [vmem:[%s17926_s19 + $0x38] ss:$12 sps:$4 sm:$0xff]  }
0x1a07   :  { %v12066_v1 = vpack.c.bf16 %v8983_v12, %v13558_v48  ;;  %v13562_v15 = vpop.f32.mrb[186].mxu0  ;;  %13571 = vmatprep.subr.bf16.mxu0 %v15877_v6  ;;  %v14695_v48 = vld [vmem:[%s17924_s12 + $0x90] ss:$12 sps:$4 sm:$0xff]  }
0x1a08   :  { %v9016_v8 = vpack.c.bf16 %v13562_v15, %v13562_v15  ;;  %v8986_v18 = vpop.f32.mrb[187].mxu0  ;;  %v14668_v5 = vld [vmem:[#allocation22 + $0x20] sm:$0xff]   ;;  %v14716_v12 = vld [vmem:[%s17926_s19 + $0x50] ss:$12 sps:$4 sm:$0xff]   ;;  %v14720_v15 = vld [vmem:[%s17926_s19 + $0x68] ss:$12 sps:$4 sm:$0xff]  }
0x1a09   :  { %12154 = vst [vmem:[#allocation22 + $0x30] sm:$0xff] %v12066_v1   ;;  %v12071_v25 = vpack.c.bf16 %v13561_v14, %v8986_v18  ;;  %9368 = vmatmul.mubr.bf16.gmra.mrb[196].mxu0 %v14664_v9  ;;  %v14715_v14 = vld [vmem:[%s17926_s19 + $0x4c] ss:$12 sps:$4 sm:$0xff]   ;;  %v14719_v1 = vld [vmem:[%s17926_s19 + $0x64] ss:$12 sps:$4 sm:$0xff]  }
0x1a0a   :  { %9033 = vst [vmem:[#allocation22 + $0x40] sm:$0xf] %v9016_v8  ;;  %9377 = vmatprep.mubr.bf16.mxu0 %v15876_v0  ;;  %13572 = vmatpush3.bf16.msra.mxu0 %v14669_v21  ;;  %v14670_v57 = vld [vmem:[#allocation22 + $0x28] sm:$0xff]   ;;  %v14725_v18 = vld [vmem:[%s17926_s19 + $0x90] ss:$12 sps:$4 sm:$0xff]  }
0x1a0b   :  { %12155 = vst [vmem:[#allocation22 + $0x38] sm:$0xff] %v12071_v25   ;;  %13573 = vmatprep.subr.bf16.mxu0 %v15877_v6  ;;  %v14723_v21 = vld [vmem:[%s17926_s19 + $0x7c] ss:$12 sps:$4 sm:$0xff]   ;;  %v14724_v8 = vld [vmem:[%s17926_s19 + $0x80] ss:$12 sps:$4 sm:$0xff]  }
0x1a0c   :  { %v14728_v25 = vld [vmem:[%s17926_s19 + $0x98] ss:$12 sps:$4 sm:$0xff]  }
0x1a0e   :  { %13574 = vmatpush3.bf16.msra.mxu0 %v14671_v27  ;;  %v14731_v27 = vld [vmem:[%s17926_s19 + $0xac] ss:$12 sps:$4 sm:$0xff]  }
0x1a0f   :  { %13575 = vmatprep.subr.bf16.mxu0 %v15877_v6 }
0x1a10   :  { %v14672_v54 = vld [vmem:[#allocation22 + $0x30] sm:$0xff]  }
0x1a11   :  { %9378 = vmatmul.mubr.bf16.gmra.mrb[200].mxu0 %v14666_v62  ;;  %v14676_v28 = vld [vmem:[#allocation22 + $0x40] sm:$0xff]  }
0x1a12   :  { %9387 = vmatprep.mubr.bf16.mxu0 %v15876_v0  ;;  %13576 = vmatpush3.bf16.msra.mxu0 %v14673_v53  ;;  %v14674_v16 = vld [vmem:[#allocation22 + $0x38] sm:$0xff]   ;;  %v14729_v53 = vld [vmem:[%s17926_s19 + $0xa8] ss:$12 sps:$4 sm:$0xff]  }
0x1a13   :  { %13577 = vmatprep.subr.bf16.mxu0 %v15877_v6 }
0x1a16   :  { %13578 = vmatpush3.bf16.msra.mxu0 %v14675_v50 }
0x1a17   :  { %9720 = vmatprep.subr.bf16.mxu0 %v14679_v40 }
0x1a19   :  { %9388 = vmatmul.mubr.bf16.gmra.mrb[204].mxu0 %v14668_v5 }
0x1a1a   :  { %9397 = vmatprep.mubr.bf16.mxu0 %v15876_v0 }
0x1a21   :  { %9398 = vmatmul.mubr.bf16.gmra.mrb[208].mxu0 %v14670_v57 }
0x1a22   :  { %9407 = vmatprep.mubr.bf16.mxu0 %v15876_v0 }
0x1a29   :  { %9408 = vmatmul.mubr.bf16.gmra.mrb[212].mxu0 %v14672_v54 }
0x1a2a   :  { %9417 = vmatprep.mubr.bf16.mxu0 %v15876_v0 }
0x1a31   :  { %9418 = vmatmul.mubr.bf16.gmra.mrb[216].mxu0 %v14674_v16 }
0x1a32   :  { %9427 = vmatprep.mubr.bf16.mxu0 %v15876_v0 }
0x1a39   :  { %9428 = vmatmul.mubr.bf16.gmra.mrb[220].mxu0 %v14676_v28 }
0x1a3a   :  { %13579 = vmatprep.mubr.msk.bf16.mxu0 %vm15878_vm2, %v15877_v6 }
0x1a41   :  { %13580 = vmatmul.mubr.bf16.vlgmr.msra.gmra.mrb[224].mxu0 %v17500_v23  ;;  %v14686_v23 = vld [vmem:[%s17924_s12 + $0x48] ss:$12 sps:$4 sm:$0xff]  }
0x1a42   :  { %9721 = vmatpush1.bf16.msra.mxu0 %v14677_v63  ;;  %13583 = vmatprep.mubr.msk.bf16.mxu0 %vm15878_vm2, %v15877_v6 }
0x1a43   :  { %9722 = vmatprep.subr.bf16.mxu0 %v14682_v30 }
0x1a46   :  { %9723 = vmatpush1.bf16.msra.mxu0 %v14680_v41 }
0x1a47   :  { %9724 = vmatprep.subr.bf16.mxu0 %v14685_v11 }
0x1a49   :  { %13584 = vmatmul.mubr.bf16.gmra.mrb[228].mxu0 %v17507_v55  ;;  %v14703_v55 = vld [vmem:[%s17926_s19 + $0x4] ss:$12 sps:$4 sm:$0xff]  }
0x1a4a   :  { %13587 = vmatprep.mubr.msk.bf16.mxu0 %vm15878_vm2, %v15877_v6  ;;  %9725 = vmatpush1.bf16.msra.mxu0 %v14683_v42 }
0x1a4b   :  { %9726 = vmatprep.subr.bf16.mxu0 %v14688_v60  ;;  %10304 = vmatprep.subr.bf16.mxu1 %v14703_v55 }
0x1a4e   :  { %9727 = vmatpush1.bf16.msra.mxu0 %v14686_v23 }
0x1a4f   :  { %9728 = vmatprep.subr.bf16.mxu0 %v14691_v38 }
0x1a51   :  { %13588 = vmatmul.mubr.bf16.gmra.mrb[232].mxu0 %v14664_v9  ;;  %v14727_v9 = vld [vmem:[%s17926_s19 + $0x94] ss:$12 sps:$4 sm:$0xff]  }
0x1a52   :  { %13591 = vmatprep.mubr.msk.bf16.mxu0 %vm15878_vm2, %v15877_v6  ;;  %9729 = vmatpush1.bf16.msra.mxu0 %v14689_v43 }
0x1a53   :  { %9730 = vmatprep.subr.bf16.mxu0 %v14694_v44 }
0x1a56   :  { %9731 = vmatpush1.bf16.msra.mxu0 %v14692_v45 }
0x1a57   :  { %9732 = vmatprep.subr.bf16.mxu0 %v14697_v46 }
0x1a59   :  { %13592 = vmatmul.mubr.bf16.gmra.mrb[236].mxu0 %v14666_v62  ;;  %v14732_v62 = vld [vmem:[%s17926_s19 + $0xb0] ss:$12 sps:$4 sm:$0xff]  }
0x1a5a   :  { %13595 = vmatprep.mubr.msk.bf16.mxu0 %vm15878_vm2, %v15877_v6  ;;  %9733 = vmatpush1.bf16.msra.mxu0 %v14695_v48 }
0x1a5b   :  { %9734 = vmatprep.subr.bf16.mxu0 %v14700_v49 }
0x1a5e   :  { %9735 = vmatpush1.bf16.msra.mxu0 %v14698_v52 }
0x1a5f   :  { %13667 = vmatprep.subr.bf16.mxu0 %v15877_v6 }
0x1a61   :  { %13596 = vmatmul.mubr.bf16.gmra.mrb[240].mxu0 %v14668_v5 }
0x1a62   :  { %13599 = vmatprep.mubr.msk.bf16.mxu0 %vm15878_vm2, %v15877_v6 }
0x1a69   :  { %13600 = vmatmul.mubr.bf16.gmra.mrb[244].mxu0 %v14670_v57 }
0x1a6a   :  { %13603 = vmatprep.mubr.msk.bf16.mxu0 %vm15878_vm2, %v15877_v6 }
0x1a71   :  { %13604 = vmatmul.mubr.bf16.gmra.mrb[248].mxu0 %v14672_v54 }
0x1a72   :  { %13607 = vmatprep.mubr.msk.bf16.mxu0 %vm15878_vm2, %v15877_v6 }
0x1a79   :  { %13608 = vmatmul.mubr.bf16.gmra.mrb[252].mxu0 %v14674_v16 }
0x1a7a   :  { %13611 = vmatprep.mubr.msk.bf16.mxu0 %vm15878_vm2, %v15877_v6 }
0x1a81   :  { %13612 = vmatmul.mubr.bf16.gmra.mrb[0].mxu0 %v14676_v28 }
0x1a82   :  { %9752 = vmatprep.mubr.bf16.mxu0 %v15876_v0 }
0x1a89   :  { %9753 = vmatmul.mubr.bf16.vlgmr.msra.gmra.mrb[188].mxu0 %v17377_v13  ;;  %v14701_v13 = vld [vmem:[%s17926_s19] ss:$12 sps:$4 sm:$0xff]  }
0x1a8a   :  { %9761 = vmatprep.mubr.bf16.mxu0 %v15876_v0  ;;  %10305 = vmatpush1.bf16.msra.mxu1 %v14701_v13  ;;  %v17634_v13 = vld [vmem:[%s17927_s13] sm:$0xff]  }
0x1a91   :  { %9762 = vmatmul.mubr.bf16.gmra.mrb[192].mxu0 %v17382_v31  ;;  %v14704_v31 = vld [vmem:[%s17926_s19 + $0x8] ss:$12 sps:$4 sm:$0xff]  }
0x1a92   :  { %9771 = vmatprep.mubr.bf16.mxu0 %v15876_v0  ;;  %13668 = vmatpush3.bf16.msra.mxu0 %v14704_v31 }
0x1a93   :  { %13669 = vmatprep.subr.bf16.mxu0 %v15877_v6 }
0x1a99   :  { %9772 = vmatmul.mubr.bf16.gmra.mrb[196].mxu0 %v17387_v29  ;;  %v14705_v29 = vld [vmem:[%s17926_s19 + $0x18] ss:$12 sps:$4 sm:$0xff]  }
0x1a9a   :  { %9781 = vmatprep.mubr.bf16.mxu0 %v15876_v0 }
0x1aa1   :  { %9782 = vmatmul.mubr.bf16.gmra.mrb[200].mxu0 %v17392_v33  ;;  %v14707_v33 = vld [vmem:[%s17926_s19 + $0x1c] ss:$12 sps:$4 sm:$0xff]  }
0x1aa2   :  { %9791 = vmatprep.mubr.bf16.mxu0 %v15876_v0  ;;  %10306 = vmatprep.subr.bf16.mxu1 %v14707_v33 }
0x1aa3   :  { %10307 = vmatpush1.bf16.msra.mxu1 %v14705_v29 }
0x1aa4   :  { %10308 = vmatprep.subr.bf16.mxu1 %v14711_v56 }
0x1aa9   :  { %9792 = vmatmul.mubr.bf16.gmra.mrb[204].mxu0 %v17397_v34  ;;  %v14708_v34 = vld [vmem:[%s17926_s19 + $0x20] ss:$12 sps:$4 sm:$0xff]  }
0x1aaa   :  { %9801 = vmatprep.mubr.bf16.mxu0 %v15876_v0  ;;  %13670 = vmatpush3.bf16.msra.mxu0 %v14708_v34 }
0x1aab   :  { %13671 = vmatprep.subr.bf16.mxu0 %v15877_v6 }
0x1aae   :  { %13672 = vmatpush3.bf16.msra.mxu0 %v14712_v3 }
0x1aaf   :  { %13673 = vmatprep.subr.bf16.mxu0 %v15877_v6 }
0x1ab1   :  { %9802 = vmatmul.mubr.bf16.gmra.mrb[208].mxu0 %v17402_v35  ;;  %v14709_v35 = vld [vmem:[%s17926_s19 + $0x30] ss:$12 sps:$4 sm:$0xff]  }
0x1ab2   :  { %9811 = vmatprep.mubr.bf16.mxu0 %v15876_v0  ;;  %10309 = vmatpush1.bf16.msra.mxu1 %v14709_v35 }
0x1ab3   :  { %10310 = vmatprep.subr.bf16.mxu1 %v14715_v14  ;;  %13674 = vmatpush3.bf16.msra.mxu0 %v14716_v12 }
0x1ab4   :  { %13675 = vmatprep.subr.bf16.mxu0 %v15877_v6 }
0x1ab7   :  { %13676 = vmatpush3.bf16.msra.mxu0 %v14720_v15 }
0x1ab8   :  { %13677 = vmatprep.subr.bf16.mxu0 %v15877_v6 }
0x1ab9   :  { %9812 = vmatmul.mubr.bf16.gmra.mrb[212].mxu0 %v17407_v36  ;;  %v14713_v36 = vld [vmem:[%s17926_s19 + $0x48] ss:$12 sps:$4 sm:$0xff]  }
0x1aba   :  { %9821 = vmatprep.mubr.bf16.mxu0 %v15876_v0  ;;  %10311 = vmatpush1.bf16.msra.mxu1 %v14713_v36 }
0x1abb   :  { %10312 = vmatprep.subr.bf16.mxu1 %v14719_v1  ;;  %13678 = vmatpush3.bf16.msra.mxu0 %v14724_v8 }
0x1abc   :  { %13679 = vmatprep.subr.bf16.mxu0 %v15877_v6 }
0x1abf   :  { %13680 = vmatpush3.bf16.msra.mxu0 %v14728_v25 }
0x1ac0   :  { %13681 = vmatprep.subr.bf16.mxu0 %v15877_v6 }
0x1ac1   :  { %9822 = vmatmul.mubr.bf16.gmra.mrb[216].mxu0 %v17412_v37  ;;  %v14717_v37 = vld [vmem:[%s17926_s19 + $0x60] ss:$12 sps:$4 sm:$0xff]  }
0x1ac2   :  { %9831 = vmatprep.mubr.bf16.mxu0 %v15876_v0  ;;  %10313 = vmatpush1.bf16.msra.mxu1 %v14717_v37 }
0x1ac3   :  { %10314 = vmatprep.subr.bf16.mxu1 %v14723_v21  ;;  %13682 = vmatpush3.bf16.msra.mxu0 %v14732_v62  ;;  %v17664_v62 = vld [vmem:[#allocation78] ss:$0 sm:$0xff] }
0x1ac9   :  { %9832 = vmatmul.mubr.bf16.gmra.mrb[220].mxu0 %v17417_v39  ;;  %v14721_v39 = vld [vmem:[%s17926_s19 + $0x78] ss:$12 sps:$4 sm:$0xff]  }
0x1aca   :  { %13683 = vmatprep.mubr.msk.bf16.mxu0 %vm15878_vm2, %v15877_v6  ;;  %10315 = vmatpush1.bf16.msra.mxu1 %v14721_v39 }
0x1acb   :  { %10316 = vmatprep.subr.bf16.mxu1 %v14727_v9 }
0x1ace   :  { %10317 = vmatpush1.bf16.msra.mxu1 %v14725_v18 }
0x1acf   :  { %10318 = vmatprep.subr.bf16.mxu1 %v14731_v27 }
0x1ad2   :  { %10319 = vmatpush1.bf16.msra.mxu1 %v14729_v53 }
0x1ad3   :  { %13719 = vmatprep.subr.bf16.mxu1 %v17634_v13 }
0x1b14   :  { %v9469_v50 = vpop.f32.mrb[224].mxu0 }
0x1b15   :  { %v13581_v40 = vpop.f32.mrb[225].mxu0  ;;  %v17666_v50 = vld [vmem:[#allocation77] ss:$0 sm:$0xff] }
0x1b16   :  { %v9471_v5 = vpop.f32.mrb[226].mxu0 }
0x1b17   :  { %v13582_v57 = vpop.f32.mrb[227].mxu0 }
0x1b1c   :  { %v9475_v54 = vpop.f32.mrb[228].mxu0 }
0x1b1d   :  { %v9880_v16 = vadd.f32 %v17436_v47, %v9475_v54  ;;  %v13585_v28 = vpop.f32.mrb[229].mxu0 }
0x1b1e   :  { %v9478_v63 = vpop.f32.mrb[230].mxu0 }
0x1b1f   :  { %v9883_v30 = vadd.f32 %v17438_v51, %v9478_v63  ;;  %v13586_v41 = vpop.f32.mrb[231].mxu0 }
0x1b24   :  { %v9483_v11 = vpop.f32.mrb[232].mxu0 }
0x1b25   :  { %v17619_v42 = vadd.f32 %v17442_v59, %v9483_v11  ;;  %v13589_v60 = vpop.f32.mrb[233].mxu0 }
0x1b26   :  { %v9486_v23 = vpop.f32.mrb[234].mxu0 }
0x1b27   :  { %v17622_v38 = vadd.f32 %v17444_v61, %v9486_v23  ;;  %v13590_v43 = vpop.f32.mrb[235].mxu0 }
0x1b2c   :  { %v9491_v44 = vpop.f32.mrb[236].mxu0 }
0x1b2d   :  { %v17625_v45 = vadd.f32 %v17448_v2, %v9491_v44  ;;  %v13593_v47 = vpop.f32.mrb[237].mxu0 }
0x1b2e   :  { %v9494_v46 = vpop.f32.mrb[238].mxu0 }
0x1b2f   :  { %v17628_v51 = vadd.f32 %v17450_v4, %v9494_v46  ;;  %v13594_v48 = vpop.f32.mrb[239].mxu0 }
0x1b34   :  { %v9499_v49 = vpop.f32.mrb[240].mxu0 }
0x1b35   :  { %v17631_v59 = vadd.f32 %v17453_v7, %v9499_v49  ;;  %v13597_v52 = vpop.f32.mrb[241].mxu0 }
0x1b36   :  { %v9502_v61 = vpop.f32.mrb[242].mxu0 }
0x1b37   :  { %v17637_v55 = vadd.f32 %v17455_v10, %v9502_v61  ;;  %v13598_v31 = vpop.f32.mrb[243].mxu0 }
0x1b3c   :  { %v9507_v2 = vpop.f32.mrb[244].mxu0 }
0x1b3d   :  { %v17641_v29 = vadd.f32 %v17457_v17, %v9507_v2  ;;  %v13601_v4 = vpop.f32.mrb[245].mxu0 }
0x1b3e   :  { %v9510_v33 = vpop.f32.mrb[246].mxu0 }
0x1b3f   :  { %v17644_v34 = vadd.f32 %v17459_v58, %v9510_v33  ;;  %v13602_v7 = vpop.f32.mrb[247].mxu0 }
0x1b44   :  { %v9515_v35 = vpop.f32.mrb[248].mxu0 }
0x1b45   :  { %v17647_v56 = vadd.f32 %v17461_v19, %v9515_v35  ;;  %v13605_v3 = vpop.f32.mrb[249].mxu0 }
0x1b46   :  { %v9518_v10 = vpop.f32.mrb[250].mxu0 }
0x1b47   :  { %v17650_v36 = vadd.f32 %v17463_v20, %v9518_v10  ;;  %v13606_v14 = vpop.f32.mrb[251].mxu0 }
0x1b4c   :  { %v9523_v12 = vpop.f32.mrb[252].mxu0 }
0x1b4d   :  { %v17653_v17 = vadd.f32 %v17465_v22, %v9523_v12  ;;  %v13609_v37 = vpop.f32.mrb[253].mxu0  ;;  %v14743_v12 = vld [vmem:[%s17927_s13 + $0x8] sm:$0xff]  }
0x1b4e   :  { %v9526_v1 = vpop.f32.mrb[254].mxu0 }
0x1b4f   :  { %v17656_v58 = vadd.f32 %v17467_v24, %v9526_v1  ;;  %v13610_v15 = vpop.f32.mrb[255].mxu0 }
0x1b54   :  { %v9531_v39 = vpop.f32.mrb[0].mxu0 }
0x1b55   :  { %v17659_v19 = vadd.f32 %v17469_v32, %v9531_v39  ;;  %v13613_v21 = vpop.f32.mrb[1].mxu0 }
0x1b56   :  { %v9534_v8 = vpop.f32.mrb[2].mxu0 }
0x1b57   :  { %v17662_v20 = vadd.f32 %v17471_v26, %v9534_v8  ;;  %v13614_v18 = vpop.f32.mrb[3].mxu0 }
0x1b5c   :  { %v9754_v9 = vpop.f32.mrb[188].mxu0 }
0x1b5d   :  { %v9756_v25 = vpop.f32.mrb[189].mxu0 }
0x1b5e   :  { %v9757_v22 = vpop.f32.mrb[190].mxu0 }
0x1b5f   :  { %v9759_v27 = vpop.f32.mrb[191].mxu0 }
0x1b60   :  { %v9942_v53 = vadd.f32 %v9759_v27, %v9754_v9  ;;  %v14744_v9 = vld [vmem:[%s17927_s13 + $0x10] sm:$0xff]  }
0x1b62   :  { %v9958_v24 = vadd.f32 %v9942_v53, %v9880_v16 }
0x1b64   :  { %v9981_v40 = vmul.f32 %v17664_v62, %v9958_v24  ;;  %v9763_v32 = vpop.f32.mrb[192].mxu0 }
0x1b65   :  { %v9765_v5 = vpop.f32.mrb[193].mxu0 }
0x1b66   :  { %v10004_v57 = vadd.f32 %v17666_v50, %v9981_v40  ;;  %v9943_v54 = vadd.f32 %v9765_v5, %v9757_v22  ;;  %v9767_v26 = vpop.f32.mrb[194].mxu0 }
0x1b67   :  { %v9769_v28 = vpop.f32.mrb[195].mxu0 }
0x1b68   :  { %v10020_v63 = vmax.f32 %v10004_v57, 0.0  ;;  %v9959_v41 = vadd.f32 %v9943_v54, %v9883_v30  ;;  %v9944_v11 = vadd.f32 %v9769_v28, %v9763_v32 }
0x1b6a   :  { %v10039_v60 = vpack.c.bf16 %v10020_v63, %v10020_v63  ;;  %v9982_v23 = vmul.f32 %v17664_v62, %v9959_v41  ;;  %v9960_v43 = vadd.f32 %v9944_v11, %v17619_v42 }
0x1b6c   :  { %10056 = vst [vmem:[#allocation23 + $0x4] sm:$0xf] %v10039_v60  ;;  %v10005_v16 = vadd.f32 %v17666_v50, %v9982_v23  ;;  %v9983_v44 = vmul.f32 %v17664_v62, %v9960_v43  ;;  %v9773_v47 = vpop.f32.mrb[196].mxu0 }
0x1b6d   :  { %v9775_v46 = vpop.f32.mrb[197].mxu0 }
0x1b6e   :  { %v10006_v48 = vadd.f32 %v17666_v50, %v9983_v44  ;;  %v9945_v49 = vadd.f32 %v9775_v46, %v9767_v26  ;;  %v9777_v52 = vpop.f32.mrb[198].mxu0  ;;  %v10021_v30 = vmax.f32 %v10005_v16, 0.0 }
0x1b6f   :  { %v9779_v61 = vpop.f32.mrb[199].mxu0 }
0x1b70   :  { %v10022_v31 = vmax.f32 %v10006_v48, 0.0  ;;  %v9961_v2 = vadd.f32 %v9945_v49, %v17622_v38  ;;  %v9946_v4 = vadd.f32 %v9779_v61, %v9773_v47 }
0x1b72   :  { %v12076_v33 = vpack.c.bf16 %v10022_v31, %v10021_v30  ;;  %v9984_v42 = vmul.f32 %v17664_v62, %v9961_v2  ;;  %v9962_v7 = vadd.f32 %v9946_v4, %v17625_v45 }
0x1b73   :  { %v14733_v35 = vld [vmem:[#allocation23] sm:$0xff]  }
0x1b74   :  { %12156 = vst [vmem:[#allocation23 + $0x8] sm:$0xff] %v12076_v33   ;;  %v10007_v3 = vadd.f32 %v17666_v50, %v9984_v42  ;;  %v9985_v10 = vmul.f32 %v17664_v62, %v9962_v7  ;;  %v9783_v14 = vpop.f32.mrb[200].mxu0  ;;  %10337 = vmatmul.mubr.bf16.vlgmr.msra.gmra.mrb[216].mxu1 %v14733_v35  ;;  %13684 = vmatmul.mubr.bf16.vlgmr.msra.gmra.mrb[4].mxu0 %v14733_v35 }
0x1b75   :  { %v9785_v37 = vpop.f32.mrb[201].mxu0  ;;  %10345 = vmatprep.mubr.bf16.mxu1 %v15876_v0  ;;  %13687 = vmatprep.mubr.msk.bf16.mxu0 %vm15878_vm2, %v15877_v6 }
0x1b76   :  { %v10008_v38 = vadd.f32 %v17666_v50, %v9985_v10  ;;  %v9947_v1 = vadd.f32 %v9785_v37, %v9777_v52  ;;  %v9787_v15 = vpop.f32.mrb[202].mxu0  ;;  %13720 = vmatpush3.bf16.msra.mxu1 %v17634_v13  ;;  %v10023_v39 = vmax.f32 %v10007_v3, 0.0 }
0x1b77   :  { %v9789_v45 = vpop.f32.mrb[203].mxu0  ;;  %13721 = vmatprep.subr.bf16.mxu1 %v14743_v12 }
0x1b78   :  { %v10024_v21 = vmax.f32 %v10008_v38, 0.0  ;;  %v9963_v8 = vadd.f32 %v9947_v1, %v17628_v51  ;;  %v9948_v18 = vadd.f32 %v9789_v45, %v9783_v14 }
0x1b7a   :  { %v12081_v25 = vpack.c.bf16 %v10024_v21, %v10023_v39  ;;  %v9986_v22 = vmul.f32 %v17664_v62, %v9963_v8  ;;  %v9964_v27 = vadd.f32 %v9948_v18, %v17631_v59  ;;  %13722 = vmatpush3.bf16.msra.mxu1 %v14743_v12 }
0x1b7b   :  { %v14734_v53 = vld [vmem:[#allocation23 + $0x8] sm:$0xff]   ;;  %13723 = vmatprep.subr.bf16.mxu1 %v14744_v9 }
0x1b7c   :  { %12157 = vst [vmem:[#allocation23 + $0x10] sm:$0xff] %v12081_v25   ;;  %v10009_v24 = vadd.f32 %v17666_v50, %v9986_v22  ;;  %v9987_v40 = vmul.f32 %v17664_v62, %v9964_v27  ;;  %v9793_v13 = vpop.f32.mrb[204].mxu0  ;;  %10346 = vmatmul.mubr.bf16.gmra.mrb[220].mxu1 %v14734_v53  ;;  %13688 = vmatmul.mubr.bf16.gmra.mrb[8].mxu0 %v14734_v53 }
0x1b7d   :  { %v9795_v32 = vpop.f32.mrb[205].mxu0  ;;  %10355 = vmatprep.mubr.bf16.mxu1 %v15876_v0  ;;  %13691 = vmatprep.mubr.msk.bf16.mxu0 %vm15878_vm2, %v15877_v6 }
0x1b7e   :  { %v10010_v51 = vadd.f32 %v17666_v50, %v9987_v40  ;;  %v9949_v5 = vadd.f32 %v9795_v32, %v9787_v15  ;;  %v9797_v57 = vpop.f32.mrb[206].mxu0  ;;  %13724 = vmatpush3.bf16.msra.mxu1 %v14744_v9  ;;  %v10025_v54 = vmax.f32 %v10009_v24, 0.0 }
0x1b7f   :  { %v9799_v59 = vpop.f32.mrb[207].mxu0 }
0x1b80   :  { %v10026_v26 = vmax.f32 %v10010_v51, 0.0  ;;  %v9965_v28 = vadd.f32 %v9949_v5, %v17637_v55  ;;  %v9950_v63 = vadd.f32 %v9799_v59, %v9793_v13 }
0x1b82   :  { %v12086_v41 = vpack.c.bf16 %v10026_v26, %v10025_v54  ;;  %v9988_v11 = vmul.f32 %v17664_v62, %v9965_v28  ;;  %v9966_v60 = vadd.f32 %v9950_v63, %v17641_v29 }
0x1b83   :  { %v14735_v23 = vld [vmem:[#allocation23 + $0x10] sm:$0xff]  }
0x1b84   :  { %12158 = vst [vmem:[#allocation23 + $0x18] sm:$0xff] %v12086_v41   ;;  %v10011_v43 = vadd.f32 %v17666_v50, %v9988_v11  ;;  %v9989_v16 = vmul.f32 %v17664_v62, %v9966_v60  ;;  %v9803_v44 = vpop.f32.mrb[208].mxu0  ;;  %10356 = vmatmul.mubr.bf16.gmra.mrb[224].mxu1 %v14735_v23  ;;  %13692 = vmatmul.mubr.bf16.gmra.mrb[12].mxu0 %v14735_v23 }
0x1b85   :  { %v9805_v47 = vpop.f32.mrb[209].mxu0  ;;  %10365 = vmatprep.mubr.bf16.mxu1 %v15876_v0  ;;  %13695 = vmatprep.mubr.msk.bf16.mxu0 %vm15878_vm2, %v15877_v6 }
0x1b86   :  { %v10012_v46 = vadd.f32 %v17666_v50, %v9989_v16  ;;  %v9951_v48 = vadd.f32 %v9805_v47, %v9797_v57  ;;  %v9807_v55 = vpop.f32.mrb[210].mxu0  ;;  %v10027_v49 = vmax.f32 %v10011_v43, 0.0 }
0x1b87   :  { %v9809_v29 = vpop.f32.mrb[211].mxu0 }
0x1b88   :  { %v10028_v52 = vmax.f32 %v10012_v46, 0.0  ;;  %v9967_v61 = vadd.f32 %v9951_v48, %v17644_v34  ;;  %v9952_v30 = vadd.f32 %v9809_v29, %v9803_v44  ;;  %v14747_v29 = vld [vmem:[%s17927_s13 + $0x28] sm:$0xff]  }
0x1b8a   :  { %v12091_v31 = vpack.c.bf16 %v10028_v52, %v10027_v49  ;;  %v9990_v2 = vmul.f32 %v17664_v62, %v9967_v61  ;;  %v9968_v4 = vadd.f32 %v9952_v30, %v17647_v56  ;;  %v14748_v49 = vld [vmem:[%s17927_s13 + $0x30] sm:$0xff]  }
0x1b8b   :  { %v14736_v33 = vld [vmem:[#allocation23 + $0x18] sm:$0xff]  }
0x1b8c   :  { %12159 = vst [vmem:[#allocation23 + $0x20] sm:$0xff] %v12091_v31   ;;  %v10013_v42 = vadd.f32 %v17666_v50, %v9990_v2  ;;  %v9991_v7 = vmul.f32 %v17664_v62, %v9968_v4  ;;  %v9813_v35 = vpop.f32.mrb[212].mxu0  ;;  %10366 = vmatmul.mubr.bf16.gmra.mrb[228].mxu1 %v14736_v33  ;;  %13696 = vmatmul.mubr.bf16.gmra.mrb[16].mxu0 %v14736_v33 }
0x1b8d   :  { %v9815_v3 = vpop.f32.mrb[213].mxu0  ;;  %10375 = vmatprep.mubr.bf16.mxu1 %v15876_v0  ;;  %13699 = vmatprep.mubr.msk.bf16.mxu0 %vm15878_vm2, %v15877_v6 }
0x1b8e   :  { %v10014_v10 = vadd.f32 %v17666_v50, %v9991_v7  ;;  %v9953_v14 = vadd.f32 %v9815_v3, %v9807_v55  ;;  %v9817_v34 = vpop.f32.mrb[214].mxu0  ;;  %v10029_v12 = vmax.f32 %v10013_v42, 0.0  ;;  %v14746_v55 = vld [vmem:[%s17927_s13 + $0x20] sm:$0xff]   ;;  %v17746_v3 = vld [vmem:[#allocation81] ss:$0 sm:$0xff] }
0x1b8f   :  { %v9819_v56 = vpop.f32.mrb[215].mxu0 }
0x1b90   :  { %v10030_v37 = vmax.f32 %v10014_v10, 0.0  ;;  %v9969_v38 = vadd.f32 %v9953_v14, %v17650_v36  ;;  %v9954_v1 = vadd.f32 %v9819_v56, %v9813_v35 }
0x1b92   :  { %v12096_v15 = vpack.c.bf16 %v10030_v37, %v10029_v12  ;;  %v9992_v45 = vmul.f32 %v17664_v62, %v9969_v38  ;;  %v9970_v39 = vadd.f32 %v9954_v1, %v17653_v17  ;;  %v17749_v1 = vld [vmem:[#allocation80] ss:$0 sm:$0xff] }
0x1b93   :  { %v14737_v21 = vld [vmem:[#allocation23 + $0x20] sm:$0xff]  }
0x1b94   :  { %12160 = vst [vmem:[#allocation23 + $0x28] sm:$0xff] %v12096_v15   ;;  %v10015_v8 = vadd.f32 %v17666_v50, %v9992_v45  ;;  %v9993_v18 = vmul.f32 %v17664_v62, %v9970_v39  ;;  %v9823_v9 = vpop.f32.mrb[216].mxu0  ;;  %10376 = vmatmul.mubr.bf16.gmra.mrb[232].mxu1 %v14737_v21  ;;  %13700 = vmatmul.mubr.bf16.gmra.mrb[20].mxu0 %v14737_v21 }
0x1b95   :  { %v9825_v25 = vpop.f32.mrb[217].mxu0  ;;  %10385 = vmatprep.mubr.bf16.mxu1 %v15876_v0  ;;  %13703 = vmatprep.mubr.msk.bf16.mxu0 %vm15878_vm2, %v15877_v6 }
0x1b96   :  { %v10016_v22 = vadd.f32 %v17666_v50, %v9993_v18  ;;  %v9955_v27 = vadd.f32 %v9825_v25, %v9817_v34  ;;  %v9827_v36 = vpop.f32.mrb[218].mxu0  ;;  %v10031_v53 = vmax.f32 %v10015_v8, 0.0 }
0x1b97   :  { %v9829_v17 = vpop.f32.mrb[219].mxu0 }
0x1b98   :  { %v10032_v24 = vmax.f32 %v10016_v22, 0.0  ;;  %v9971_v40 = vadd.f32 %v9955_v27, %v17656_v58  ;;  %v9956_v13 = vadd.f32 %v9829_v17, %v9823_v9 }
0x1b9a   :  { %v12101_v32 = vpack.c.bf16 %v10032_v24, %v10031_v53  ;;  %v9994_v51 = vmul.f32 %v17664_v62, %v9971_v40  ;;  %v9972_v5 = vadd.f32 %v9956_v13, %v17659_v19 }
0x1b9b   :  { %v14738_v57 = vld [vmem:[#allocation23 + $0x28] sm:$0xff]  }
0x1b9c   :  { %12161 = vst [vmem:[#allocation23 + $0x30] sm:$0xff] %v12101_v32   ;;  %v10017_v59 = vadd.f32 %v17666_v50, %v9994_v51  ;;  %v9995_v54 = vmul.f32 %v17664_v62, %v9972_v5  ;;  %v9833_v26 = vpop.f32.mrb[220].mxu0  ;;  %10386 = vmatmul.mubr.bf16.gmra.mrb[236].mxu1 %v14738_v57  ;;  %13704 = vmatmul.mubr.bf16.gmra.mrb[24].mxu0 %v14738_v57 }
0x1b9d   :  { %v9834_v28 = vpop.f32.mrb[221].mxu0  ;;  %10395 = vmatprep.mubr.bf16.mxu1 %v15876_v0  ;;  %13707 = vmatprep.mubr.msk.bf16.mxu0 %vm15878_vm2, %v15877_v6 }
0x1b9e   :  { %v10018_v63 = vadd.f32 %v17666_v50, %v9995_v54  ;;  %v9957_v41 = vadd.f32 %v9834_v28, %v9827_v36  ;;  %v9836_v58 = vpop.f32.mrb[222].mxu0  ;;  %v10033_v11 = vmax.f32 %v10017_v59, 0.0 }
0x1b9f   :  { %v9837_v19 = vpop.f32.mrb[223].mxu0 }
0x1ba0   :  { %v10034_v60 = vmax.f32 %v10018_v63, 0.0  ;;  %v9973_v23 = vadd.f32 %v9957_v41, %v17662_v20 }
0x1ba2   :  { %v12106_v43 = vpack.c.bf16 %v10034_v60, %v10033_v11  ;;  %v9996_v16 = vmul.f32 %v17664_v62, %v9973_v23 }
0x1ba3   :  { %v14739_v44 = vld [vmem:[#allocation23 + $0x30] sm:$0xff]  }
0x1ba4   :  { %12162 = vst [vmem:[#allocation23 + $0x38] sm:$0xff] %v12106_v43   ;;  %v10019_v47 = vadd.f32 %v17666_v50, %v9996_v16  ;;  %10396 = vmatmul.mubr.bf16.gmra.mrb[240].mxu1 %v14739_v44  ;;  %13708 = vmatmul.mubr.bf16.gmra.mrb[28].mxu0 %v14739_v44  ;;  %v14745_v50 = vld [vmem:[%s17927_s13 + $0x18] sm:$0xff]  }
0x1ba5   :  { %10405 = vmatprep.mubr.bf16.mxu1 %v15876_v0  ;;  %13711 = vmatprep.mubr.msk.bf16.mxu0 %vm15878_vm2, %v15877_v6 }
0x1ba6   :  { %v10035_v46 = vmax.f32 %v10019_v47, 0.0  ;;  %13725 = vmatprep.subr.bf16.mxu1 %v14745_v50 }
0x1ba7   :  { %13726 = vmatpush3.bf16.msra.mxu1 %v14745_v50 }
0x1ba8   :  { %v10054_v48 = vpack.c.bf16 %v10035_v46, %v10035_v46  ;;  %13727 = vmatprep.subr.bf16.mxu1 %v14746_v55 }
0x1baa   :  { %10071 = vst [vmem:[#allocation23 + $0x40] sm:$0xf] %v10054_v48 }
0x1bab   :  { %v14740_v20 = vld [vmem:[#allocation23 + $0x38] sm:$0xff]   ;;  %13728 = vmatpush3.bf16.msra.mxu1 %v14746_v55 }
0x1bac   :  { %10406 = vmatmul.mubr.bf16.gmra.mrb[244].mxu1 %v14740_v20  ;;  %13712 = vmatmul.mubr.bf16.gmra.mrb[32].mxu0 %v14740_v20 }
0x1bad   :  { %10415 = vmatprep.mubr.bf16.mxu1 %v15876_v0  ;;  %13715 = vmatprep.mubr.msk.bf16.mxu0 %vm15878_vm2, %v15877_v6  ;;  %v14749_v0 = vld [vmem:[%s17927_s13 + $0x38] sm:$0xff]  }
0x1bae   :  { %13729 = vmatprep.subr.bf16.mxu1 %v14747_v29 }
0x1baf   :  { %13730 = vmatpush3.bf16.msra.mxu1 %v14747_v29 }
0x1bb0   :  { %13731 = vmatprep.subr.bf16.mxu1 %v14748_v49 }
0x1bb1   :  { %v14741_v62 = vld [vmem:[#allocation23 + $0x40] sm:$0xff]  }
0x1bb3   :  { %13732 = vmatpush3.bf16.msra.mxu1 %v14748_v49 }
0x1bb4   :  { %10416 = vmatmul.mubr.bf16.gmra.mrb[248].mxu1 %v14741_v62  ;;  %13716 = vmatmul.mubr.bf16.gmra.mrb[36].mxu0 %v14741_v62 }
0x1bb5   :  { %13733 = vmatprep.subr.bf16.mxu1 %v14749_v0 }
0x1bb7   :  { %13734 = vmatpush3.bf16.msra.mxu1 %v14749_v0 }
0x1c47   :  { %v10338_v6 = vpop.f32.mrb[216].mxu1  ;;  %v10457_v52 = vpop.f32.mrb[4].mxu0 }
0x1c48   :  { %v10340_v61 = vpop.f32.mrb[217].mxu1  ;;  %v13685_v30 = vpop.f32.mrb[5].mxu0 }
0x1c49   :  { %v10341_v31 = vpop.f32.mrb[218].mxu1  ;;  %v10459_v2 = vpop.f32.mrb[6].mxu0 }
0x1c4a   :  { %v10343_v4 = vpop.f32.mrb[219].mxu1  ;;  %v13686_v33 = vpop.f32.mrb[7].mxu0 }
0x1c4b   :  { %v10526_v42 = vadd.f32 %v10343_v4, %v10338_v6 }
0x1c4f   :  { %v10347_v7 = vpop.f32.mrb[220].mxu1  ;;  %v10463_v35 = vpop.f32.mrb[8].mxu0 }
0x1c50   :  { %v10542_v10 = vadd.f32 %v10526_v42, %v10463_v35  ;;  %v10349_v14 = vpop.f32.mrb[221].mxu1  ;;  %v13689_v34 = vpop.f32.mrb[9].mxu0 }
0x1c51   :  { %v10527_v56 = vadd.f32 %v10349_v14, %v10341_v31  ;;  %v10351_v12 = vpop.f32.mrb[222].mxu1  ;;  %v10466_v37 = vpop.f32.mrb[10].mxu0 }
0x1c52   :  { %v10565_v38 = vmul.f32 %v17746_v3, %v10542_v10  ;;  %v10353_v15 = vpop.f32.mrb[223].mxu1  ;;  %v13690_v45 = vpop.f32.mrb[11].mxu0 }
0x1c53   :  { %v10543_v39 = vadd.f32 %v10527_v56, %v10466_v37  ;;  %v10528_v21 = vadd.f32 %v10353_v15, %v10347_v7 }
0x1c54   :  { %v10588_v8 = vadd.f32 %v17749_v1, %v10565_v38 }
0x1c55   :  { %v10566_v18 = vmul.f32 %v17746_v3, %v10543_v39 }
0x1c56   :  { %v10604_v53 = vmax.f32 %v10588_v8, 0.0 }
0x1c57   :  { %v10589_v9 = vadd.f32 %v17749_v1, %v10566_v18  ;;  %v10357_v25 = vpop.f32.mrb[224].mxu1  ;;  %v10471_v22 = vpop.f32.mrb[12].mxu0 }
0x1c58   :  { %v10544_v27 = vadd.f32 %v10528_v21, %v10471_v22  ;;  %v10359_v36 = vpop.f32.mrb[225].mxu1  ;;  %v13693_v17 = vpop.f32.mrb[13].mxu0 }
0x1c59   :  { %v10605_v24 = vmax.f32 %v10589_v9, 0.0  ;;  %v10529_v40 = vadd.f32 %v10359_v36, %v10351_v12  ;;  %v10361_v13 = vpop.f32.mrb[226].mxu1  ;;  %v10474_v32 = vpop.f32.mrb[14].mxu0 }
0x1c5a   :  { %v10567_v51 = vmul.f32 %v17746_v3, %v10544_v27  ;;  %v10363_v5 = vpop.f32.mrb[227].mxu1  ;;  %v13694_v57 = vpop.f32.mrb[15].mxu0 }
0x1c5b   :  { %v10545_v59 = vadd.f32 %v10529_v40, %v10474_v32  ;;  %v10530_v54 = vadd.f32 %v10363_v5, %v10357_v25  ;;  %v10620_v26 = vpack.c.bf16 %v10605_v24, %v10604_v53 }
0x1c5c   :  { %v10590_v28 = vadd.f32 %v17749_v1, %v10567_v51 }
0x1c5d   :  { %v10568_v63 = vmul.f32 %v17746_v3, %v10545_v59  ;;  %13735 = vmatprep.mubr.bf16.mxu1 %v10620_v26 }
0x1c5e   :  { %v10606_v43 = vmax.f32 %v10590_v28, 0.0 }
0x1c5f   :  { %v10591_v41 = vadd.f32 %v17749_v1, %v10568_v63  ;;  %v10367_v58 = vpop.f32.mrb[228].mxu1  ;;  %v10479_v19 = vpop.f32.mrb[16].mxu0 }
0x1c60   :  { %v10546_v11 = vadd.f32 %v10530_v54, %v10479_v19  ;;  %v10369_v60 = vpop.f32.mrb[229].mxu1  ;;  %v13697_v23 = vpop.f32.mrb[17].mxu0 }
0x1c61   :  { %v10607_v16 = vmax.f32 %v10591_v41, 0.0  ;;  %v10531_v44 = vadd.f32 %v10369_v60, %v10361_v13  ;;  %v10371_v47 = vpop.f32.mrb[230].mxu1  ;;  %v10482_v46 = vpop.f32.mrb[18].mxu0 }
0x1c62   :  { %v10569_v48 = vmul.f32 %v17746_v3, %v10546_v11  ;;  %v10373_v20 = vpop.f32.mrb[231].mxu1  ;;  %v13698_v62 = vpop.f32.mrb[19].mxu0 }
0x1c63   :  { %v10621_v50 = vpack.c.bf16 %v10607_v16, %v10606_v43  ;;  %v10547_v55 = vadd.f32 %v10531_v44, %v10482_v46  ;;  %v10532_v29 = vadd.f32 %v10373_v20, %v10367_v58 }
0x1c64   :  { %v10592_v49 = vadd.f32 %v17749_v1, %v10569_v48 }
0x1c65   :  { %v10570_v0 = vmul.f32 %v17746_v3, %v10547_v55  ;;  %13736 = vmatmul.mubr.bf16.vlgmr.msra.gmra.mrb[252].mxu1 %v10621_v50 }
0x1c66   :  { %v10608_v4 = vmax.f32 %v10592_v49, 0.0 }
0x1c67   :  { %v10593_v6 = vadd.f32 %v17749_v1, %v10570_v0  ;;  %v10377_v52 = vpop.f32.mrb[232].mxu1  ;;  %v10487_v61 = vpop.f32.mrb[20].mxu0 }
0x1c68   :  { %v10548_v30 = vadd.f32 %v10532_v29, %v10487_v61  ;;  %v10379_v31 = vpop.f32.mrb[233].mxu1  ;;  %v13701_v2 = vpop.f32.mrb[21].mxu0 }
0x1c69   :  { %v10609_v33 = vmax.f32 %v10593_v6, 0.0  ;;  %v10533_v42 = vadd.f32 %v10379_v31, %v10371_v47  ;;  %v10381_v7 = vpop.f32.mrb[234].mxu1  ;;  %v10490_v35 = vpop.f32.mrb[22].mxu0 }
0x1c6a   :  { %v10571_v10 = vmul.f32 %v17746_v3, %v10548_v30  ;;  %v10383_v14 = vpop.f32.mrb[235].mxu1  ;;  %v13702_v34 = vpop.f32.mrb[23].mxu0 }
0x1c6b   :  { %v10549_v56 = vadd.f32 %v10533_v42, %v10490_v35  ;;  %v10534_v12 = vadd.f32 %v10383_v14, %v10377_v52  ;;  %v10622_v37 = vpack.c.bf16 %v10609_v33, %v10608_v4 }
0x1c6c   :  { %v10594_v38 = vadd.f32 %v17749_v1, %v10571_v10 }
0x1c6d   :  { %v10572_v15 = vmul.f32 %v17746_v3, %v10549_v56  ;;  %13739 = vmatprep.mubr.bf16.mxu1 %v10622_v37 }
0x1c6e   :  { %v10610_v25 = vmax.f32 %v10594_v38, 0.0 }
0x1c6f   :  { %v10595_v45 = vadd.f32 %v17749_v1, %v10572_v15  ;;  %v10387_v39 = vpop.f32.mrb[236].mxu1  ;;  %v10495_v21 = vpop.f32.mrb[24].mxu0 }
0x1c70   :  { %v10550_v8 = vadd.f32 %v10534_v12, %v10495_v21  ;;  %v10389_v18 = vpop.f32.mrb[237].mxu1  ;;  %v13705_v9 = vpop.f32.mrb[25].mxu0 }
0x1c71   :  { %v10611_v22 = vmax.f32 %v10595_v45, 0.0  ;;  %v10535_v27 = vadd.f32 %v10389_v18, %v10381_v7  ;;  %v10391_v36 = vpop.f32.mrb[238].mxu1  ;;  %v10498_v17 = vpop.f32.mrb[26].mxu0 }
0x1c72   :  { %v10573_v53 = vmul.f32 %v17746_v3, %v10550_v8  ;;  %v10393_v24 = vpop.f32.mrb[239].mxu1  ;;  %v13706_v40 = vpop.f32.mrb[27].mxu0 }
0x1c73   :  { %v10623_v13 = vpack.c.bf16 %v10611_v22, %v10610_v25  ;;  %v10551_v32 = vadd.f32 %v10535_v27, %v10498_v17  ;;  %v10536_v51 = vadd.f32 %v10393_v24, %v10387_v39 }
0x1c74   :  { %v10596_v5 = vadd.f32 %v17749_v1, %v10573_v53 }
0x1c75   :  { %v10574_v57 = vmul.f32 %v17746_v3, %v10551_v32  ;;  %13740 = vmatmul.mubr.bf16.gmra.mrb[0].mxu1 %v10623_v13 }
0x1c76   :  { %v10612_v58 = vmax.f32 %v10596_v5, 0.0  ;;  %v11835_v5 = vld [vmem:[#allocation83] ss:$0 sm:$0xff] }
0x1c77   :  { %v10597_v59 = vadd.f32 %v17749_v1, %v10574_v57  ;;  %v10397_v54 = vpop.f32.mrb[240].mxu1  ;;  %v10503_v26 = vpop.f32.mrb[28].mxu0 }
0x1c78   :  { %v10552_v28 = vadd.f32 %v10536_v51, %v10503_v26  ;;  %v10399_v63 = vpop.f32.mrb[241].mxu1  ;;  %v13709_v41 = vpop.f32.mrb[29].mxu0 }
0x1c79   :  { %v10613_v19 = vmax.f32 %v10597_v59, 0.0  ;;  %v10537_v11 = vadd.f32 %v10399_v63, %v10391_v36  ;;  %v10401_v60 = vpop.f32.mrb[242].mxu1  ;;  %v10506_v23 = vpop.f32.mrb[30].mxu0 }
0x1c7a   :  { %v10575_v43 = vmul.f32 %v17746_v3, %v10552_v28  ;;  %v10403_v16 = vpop.f32.mrb[243].mxu1  ;;  %v13710_v44 = vpop.f32.mrb[31].mxu0 }
0x1c7b   :  { %v10553_v47 = vadd.f32 %v10537_v11, %v10506_v23  ;;  %v10538_v46 = vadd.f32 %v10403_v16, %v10397_v54  ;;  %v10624_v48 = vpack.c.bf16 %v10613_v19, %v10612_v58 }
0x1c7c   :  { %v10598_v20 = vadd.f32 %v17749_v1, %v10575_v43 }
0x1c7d   :  { %v10576_v62 = vmul.f32 %v17746_v3, %v10553_v47  ;;  %13743 = vmatprep.mubr.bf16.mxu1 %v10624_v48 }
0x1c7e   :  { %v10614_v52 = vmax.f32 %v10598_v20, 0.0 }
0x1c7f   :  { %v10599_v50 = vadd.f32 %v17749_v1, %v10576_v62  ;;  %v10407_v55 = vpop.f32.mrb[244].mxu1  ;;  %v10511_v29 = vpop.f32.mrb[32].mxu0 }
0x1c80   :  { %v10554_v49 = vadd.f32 %v10538_v46, %v10511_v29  ;;  %v10409_v0 = vpop.f32.mrb[245].mxu1  ;;  %v13713_v6 = vpop.f32.mrb[33].mxu0 }
0x1c81   :  { %v10615_v61 = vmax.f32 %v10599_v50, 0.0  ;;  %v10539_v30 = vadd.f32 %v10409_v0, %v10401_v60  ;;  %v10411_v31 = vpop.f32.mrb[246].mxu1  ;;  %v10514_v2 = vpop.f32.mrb[34].mxu0 }
0x1c82   :  { %v10577_v4 = vmul.f32 %v17746_v3, %v10554_v49  ;;  %v10413_v33 = vpop.f32.mrb[247].mxu1  ;;  %v13714_v42 = vpop.f32.mrb[35].mxu0 }
0x1c83   :  { %v10625_v7 = vpack.c.bf16 %v10615_v61, %v10614_v52  ;;  %v10555_v35 = vadd.f32 %v10539_v30, %v10514_v2  ;;  %v10540_v10 = vadd.f32 %v10413_v33, %v10407_v55 }
0x1c84   :  { %v10600_v14 = vadd.f32 %v17749_v1, %v10577_v4 }
0x1c85   :  { %v10578_v34 = vmul.f32 %v17746_v3, %v10555_v35  ;;  %13744 = vmatmul.mubr.bf16.gmra.mrb[4].mxu1 %v10625_v7 }
0x1c86   :  { %v10616_v39 = vmax.f32 %v10600_v14, 0.0 }
0x1c87   :  { %v10601_v56 = vadd.f32 %v17749_v1, %v10578_v34  ;;  %v10417_v12 = vpop.f32.mrb[248].mxu1  ;;  %v10519_v37 = vpop.f32.mrb[36].mxu0 }
0x1c88   :  { %v10556_v38 = vadd.f32 %v10540_v10, %v10519_v37  ;;  %v10418_v15 = vpop.f32.mrb[249].mxu1  ;;  %v13717_v45 = vpop.f32.mrb[37].mxu0 }
0x1c89   :  { %v10617_v21 = vmax.f32 %v10601_v56, 0.0  ;;  %v10541_v8 = vadd.f32 %v10418_v15, %v10411_v31  ;;  %v10420_v18 = vpop.f32.mrb[250].mxu1  ;;  %v10522_v9 = vpop.f32.mrb[38].mxu0 }
0x1c8a   :  { %v10579_v25 = vmul.f32 %v17746_v3, %v10556_v38  ;;  %v10421_v22 = vpop.f32.mrb[251].mxu1  ;;  %v13718_v27 = vpop.f32.mrb[39].mxu0 }
0x1c8b   :  { %v10557_v36 = vadd.f32 %v10541_v8, %v10522_v9  ;;  %v10626_v17 = vpack.c.bf16 %v10617_v21, %v10616_v39 }
0x1c8c   :  { %v10602_v53 = vadd.f32 %v17749_v1, %v10579_v25 }
0x1c8d   :  { %v10580_v24 = vmul.f32 %v17746_v3, %v10557_v36  ;;  %13747 = vmatprep.mubr.bf16.mxu1 %v10626_v17 }
0x1c8e   :  { %v10618_v13 = vmax.f32 %v10602_v53, 0.0 }
0x1c8f   :  { %v10603_v40 = vadd.f32 %v17749_v1, %v10580_v24 }
0x1c91   :  { %v10619_v32 = vmax.f32 %v10603_v40, 0.0 }
0x1c93   :  { %v10627_v51 = vpack.c.bf16 %v10619_v32, %v10618_v13 }
0x1c95   :  { %13748 = vmatmul.mubr.bf16.gmra.mrb[8].mxu1 %v10627_v51 }
0x1d38   :  { %v13737_v57 = vpop.f32.mrb[252].mxu1 }
0x1d39   :  { %v10742_v59 = vadd.f32 %v13737_v57, %v11835_v5  ;;  %v10733_v54 = vpop.f32.mrb[253].mxu1 }
0x1d3a   :  { %v10734_v26 = vadd.f32 %v11835_v5, %v10733_v54  ;;  %v13738_v28 = vpop.f32.mrb[254].mxu1 }
0x1d3b   :  { %10798 = vst [vmem:[#allocation90 + $0x10] sm:$0xff] %v10742_v59  ;;  %v10745_v63 = vadd.f32 %v13738_v28, %v11835_v5  ;;  %v10736_v41 = vpop.f32.mrb[255].mxu1 }
0x1d3c   :  { %10796 = vst [vmem:[#allocation90] sm:$0xff] %v10734_v26  ;;  %v10737_v58 = vadd.f32 %v11835_v5, %v10736_v41 }
0x1d3d   :  { %10799 = vst [vmem:[#allocation90 + $0x18] sm:$0xff] %v10745_v63 }
0x1d3e   :  { %10797 = vst [vmem:[#allocation90 + $0x8] sm:$0xff] %v10737_v58 }
0x1d48   :  { %v13741_v3 = vpop.f32.mrb[0].mxu1 }
0x1d49   :  { %v10758_v19 = vadd.f32 %v13741_v3, %v11835_v5  ;;  %v10749_v1 = vpop.f32.mrb[1].mxu1 }
0x1d4a   :  { %v10750_v11 = vadd.f32 %v11835_v5, %v10749_v1  ;;  %v13742_v60 = vpop.f32.mrb[2].mxu1 }
0x1d4b   :  { %10802 = vst [vmem:[#allocation90 + $0x30] sm:$0xff] %v10758_v19  ;;  %v10761_v23 = vadd.f32 %v13742_v60, %v11835_v5  ;;  %v10752_v43 = vpop.f32.mrb[3].mxu1 }
0x1d4c   :  { %10800 = vst [vmem:[#allocation90 + $0x20] sm:$0xff] %v10750_v11  ;;  %v10753_v16 = vadd.f32 %v11835_v5, %v10752_v43 }
0x1d4d   :  { %10803 = vst [vmem:[#allocation90 + $0x38] sm:$0xff] %v10761_v23 }
0x1d4e   :  { %10801 = vst [vmem:[#allocation90 + $0x28] sm:$0xff] %v10753_v16 }
0x1d58   :  { %v13745_v44 = vpop.f32.mrb[4].mxu1 }
0x1d59   :  { %v10774_v47 = vadd.f32 %v13745_v44, %v11835_v5  ;;  %v10765_v46 = vpop.f32.mrb[5].mxu1 }
0x1d5a   :  { %v10766_v48 = vadd.f32 %v11835_v5, %v10765_v46  ;;  %v13746_v20 = vpop.f32.mrb[6].mxu1 }
0x1d5b   :  { %10806 = vst [vmem:[#allocation90 + $0x50] sm:$0xff] %v10774_v47  ;;  %v10777_v62 = vadd.f32 %v13746_v20, %v11835_v5  ;;  %v10768_v50 = vpop.f32.mrb[7].mxu1 }
0x1d5c   :  { %10804 = vst [vmem:[#allocation90 + $0x40] sm:$0xff] %v10766_v48  ;;  %v10769_v55 = vadd.f32 %v11835_v5, %v10768_v50 }
0x1d5d   :  { %10807 = vst [vmem:[#allocation90 + $0x58] sm:$0xff] %v10777_v62 }
0x1d5e   :  { %10805 = vst [vmem:[#allocation90 + $0x48] sm:$0xff] %v10769_v55 }
0x1d68   :  { %v13749_v29 = vpop.f32.mrb[8].mxu1 }
0x1d69   :  { %v10790_v49 = vadd.f32 %v13749_v29, %v11835_v5  ;;  %v10781_v0 = vpop.f32.mrb[9].mxu1 }
0x1d6a   :  { %v10782_v6 = vadd.f32 %v11835_v5, %v10781_v0  ;;  %v13750_v52 = vpop.f32.mrb[10].mxu1 }
0x1d6b   :  { %10810 = vst [vmem:[#allocation90 + $0x70] sm:$0xff] %v10790_v49  ;;  %v10793_v61 = vadd.f32 %v13750_v52, %v11835_v5  ;;  %v10784_v30 = vpop.f32.mrb[11].mxu1 }
0x1d6c   :  { %10808 = vst [vmem:[#allocation90 + $0x60] sm:$0xff] %v10782_v6  ;;  %v10785_v31 = vadd.f32 %v11835_v5, %v10784_v30 }
0x1d6d   :  { %10811 = vst [vmem:[#allocation90 + $0x78] sm:$0xff] %v10793_v61 }
0x1d6e   :  { %10809 = vst [vmem:[#allocation90 + $0x68] sm:$0xff] %v10785_v31 }
0x1d6f   :  { %15707 = shalt.err (!%p15704_p12)
}
0x1d70   :  { %s15708_s4 = scalar_lea.hbm %s16218_s27, 2048 }
0x1d71   :  { %p15709_p13 = scmp.ne.s32.totalorder %s16218_s27, %s15708_s4  ;;  %p15712_p0 = scmp.lt.u32.totalorder %s15708_s4, %s16218_s27 }
0x1d73   :  { %p15714_p1 = pnand %p15712_p0, %p15709_p13 }
0x1d75   :  { %15717 = shalt.err (!%p15714_p1)
}
0x1d76   :  { %s15883_s6 = smov 128   ;;  %s15884_s0 = smov 8  }
0x1d77   :  { %10823 = dma.vmem_to_hbm [thread:$0]  %s10818_s2, 2048, %s16218_s27, [#allocation26], %s15883_s6, %s15883_s6, %s15884_s0  }
0x1d78   :  { %15762 = dma.done.wait [#allocation26], 2048  }
0x1d79   :  { %15763 = vsyncadd [#allocation26], 4294965248 }
0x1d7a   :  { %10827 = vsyncpa [#allocation25], 1 }
0x1d7b   :  { %10828 = vsyncpa [#allocation28], 1 }
0x1d7c   :  { %10829 = vsyncpa [#allocation31], 1 }
0x1d7d   :  { %10830 = vsyncpa [#allocation34], 1 }
0x1d7e   :  { %10831 = vsyncpa [#allocation37], 1 }
0x1d7f   :  { %10832 = vsyncpa [#allocation40], 1 }
0x1d80   :  { %10833 = vsyncpa [#allocation43], 1 }
0x1d81   :  { %10834 = vsyncpa [#allocation46], 1 }
0x1d82   :  { %10835 = vsyncpa [#allocation49], 1 }
0x1d83   :  { %10836 = vsyncpa [#allocation52], 1 }
0x1d84   :  { %10837 = vsyncpa [#allocation55], 1 }
0x1d85   :  { %10838 = vsyncpa [#allocation58], 1 }
0x1d86   :  { %10839 = vsyncpa [#allocation61], 1 }
0x1d87   :  { %10840 = vsyncpa [#allocation64], 1 }
0x1d88   :  { %10841 = vsyncpa [#allocation67], 1 }
0x1d89   :  { %10842 = vsyncpa [#allocation70], 1 }
0x1d8a   :  { %10843 = vsyncpa [#allocation73], 1 }
0x1d8b   :  { %10844 = vsyncpa [#allocation76], 1 }
0x1d8c   :  { %10845 = vsyncpa [#allocation79], 1 }
0x1d8d   :  { %10846 = vsyncpa [#allocation82], 1 }
0x1d8e   :  { %10847 = vsyncpa [#allocation85], 1 }
0x1d8f   :  { %10848 = vsyncpa [#allocation88], 1 }
0x1d90   :  { %10849 = vsyncpa [#allocation26], 1 }

</bundles_post_ra>
